<compile_context>
chip_gen: v7x
topology: tpu7x:2x2x1
jax: 0.10.0
libtpu: 0.0.40
codegen_flags: <defaults>
</compile_context>

<pallas_src>
import jax
import jax.numpy as jnp
import numpy as np
from jax.experimental import pallas as pl
from jax.experimental.pallas import tpu as pltpu


def _round_up(v, m):
    return (v + m - 1) // m * m


def _pick_row_group(H, W, Cp, N):
    """Output rows computed per grid step (must divide H).

    Large enough to fill the MXU M dimension and amortize per-step overhead,
    small enough that the f32 VMEM accumulators stay ~<= 2 MiB, and split so
    that there are at least 2 parallel grid points (v7x has 2 TensorCores).
    """
    budget = 2 * 1024 * 1024
    max_rows = max(1, budget // (W * Cp * 4) - 2)
    divisors = [d for d in range(1, H + 1) if H % d == 0]
    fitting = [d for d in divisors if d <= max_rows] or [1]
    rg = max(fitting)
    if N * (H // rg) < 2:
        cands = [d for d in fitting if N * (H // d) >= 2]
        if cands:
            rg = max(cands)
    return rg


def _make_kernel(W, Cp, RG):
    RG2 = RG + 2          # h1 rows computed per group (one halo row each side)
    RG4 = RG + 4          # padded-x rows consumed per group
    M1 = RG2 * W
    M2 = RG * W
    K = 3 * Cp

    def kernel(x_ref, w1_ref, b1_ref, w2_ref, b2_ref, out_ref,
               cat_ref, acc1_ref, acc2_ref):
        g = pl.program_id(1)
        a = g * RG                                    # first output row of group

        # ---- stage the 3 column-shifted copies of this group's x rows ------
        # (1 aligned + 2 sublane-shifted slices instead of 9 per-tap ones)
        xrows = x_ref[pl.ds(a, RG4)]                  # (RG4, W+2, Cp) bf16
        for dw in range(3):
            cat_ref[:, :, dw * Cp:(dw + 1) * Cp] = xrows[:, dw:dw + W, :]

        # residual + folded BN2 bias pre-loaded into the conv2 accumulator
        # (center column block == x rows [a, a+RG), cols [0, W); aligned read).
        # NOTE: the skip connection is added in bf16 (same precision as the
        # conv path), which adds bf16 rounding vs. a pure-f32 reference.
        identity = cat_ref[2:2 + RG, :, Cp:2 * Cp]
        acc2_ref[...] = identity.astype(jnp.float32).reshape(M2, Cp) + b2_ref[...]

        # ---- conv1 (+ folded BN1): 3 dots of K = 3*Cp into a VMEM f32 acc --
        for dh in range(3):
            patch = cat_ref[dh:dh + RG2, :, :].reshape(M1, K)
            contrib = jnp.dot(patch, w1_ref[dh],
                              preferred_element_type=jnp.float32)
            if dh == 0:
                acc1_ref[...] = contrib + b1_ref[...]
            else:
                acc1_ref[...] += contrib
        h1 = jnp.maximum(acc1_ref[...], 0.0).astype(jnp.bfloat16)
        h1 = h1.reshape(RG2, W, Cp)

        # ---- restage the 3 column-shifted copies of h1 (zero column halo) --
        cat_ref[0:RG2, 0:1, 0:Cp] = jnp.zeros((RG2, 1, Cp), jnp.bfloat16)
        cat_ref[0:RG2, 1:W, 0:Cp] = h1[:, 0:W - 1, :]
        cat_ref[0:RG2, :, Cp:2 * Cp] = h1
        cat_ref[0:RG2, 0:W - 1, 2 * Cp:K] = h1[:, 1:W, :]
        cat_ref[0:RG2, W - 1:W, 2 * Cp:K] = jnp.zeros((RG2, 1, Cp), jnp.bfloat16)

        # h1 rows outside the image are conv2's zero padding, not conv1 output.
        @pl.when(g == 0)
        def _():
            cat_ref[0:1, :, :] = jnp.zeros((1, W, K), jnp.bfloat16)

        @pl.when(g == pl.num_programs(1) - 1)
        def _():
            cat_ref[RG + 1:RG + 2, :, :] = jnp.zeros((1, W, K), jnp.bfloat16)

        # ---- conv2 (+ folded BN2) + residual + ReLU -------------------------
        for dh in range(3):
            patch = cat_ref[dh:dh + RG, :, :].reshape(M2, K)
            acc2_ref[...] += jnp.dot(patch, w2_ref[dh],
                                     preferred_element_type=jnp.float32)
        out = jnp.maximum(acc2_ref[...], 0.0)
        out_ref[...] = out.reshape(RG, W, Cp).astype(jnp.bfloat16)

    return kernel


def fold_basic_block_params(p, C, Cp, eps=1e-5):
    """Fold eval-mode BN into the conv weights; reshape for the fused-K kernel.

    Returns (w1, b1, w2, b2): w* of shape (3, 3*Cp, Cp) bf16, rows ordered
    kw-major / in-channel-minor to match the kernel's column-concatenated
    patches; b* of shape (1, Cp) f32 (beta - mean * gamma / sqrt(var + eps)).
    """
    def fold(w, gamma, beta, mean, var):
        s = gamma / jnp.sqrt(var + eps)                           # (C,)
        w_hwio = jnp.transpose(w, (2, 3, 1, 0)) * s               # (3,3,Ci,Co)
        w_pad = jnp.zeros((3, 3, Cp, Cp), jnp.float32).at[:, :, :C, :C].set(w_hwio)
        b_pad = jnp.zeros((Cp,), jnp.float32).at[:C].set(beta - mean * s)
        return (w_pad.reshape(3, 3 * Cp, Cp).astype(jnp.bfloat16),
                b_pad.reshape(1, Cp))

    w1, b1 = fold(p["w1"], p["bn1_gamma"], p["bn1_beta"], p["bn1_mean"], p["bn1_var"])
    w2, b2 = fold(p["w2"], p["bn2_gamma"], p["bn2_beta"], p["bn2_mean"], p["bn2_var"])
    return w1, b1, w2, b2


def basic_block_nhwc(x, folded, row_group=None):
    """Chainable BasicBlock forward.

    x:      (N, H, W, Cp) bfloat16, NHWC with channels zero-padded to a
            multiple of 128.  Stacked blocks should stay in this layout/dtype.
    folded: output of fold_basic_block_params.
    Returns (N, H, W, Cp) bfloat16; padded channels stay zero, so the result
    feeds the next block directly (no layout round-trips between blocks).
    """
    w1, b1, w2, b2 = folded
    N, H, W, Cp = x.shape
    assert Cp % 128 == 0 and w1.shape == (3, 3 * Cp, Cp)
    assert W >= 2
    RG = row_group if row_group is not None else _pick_row_group(H, W, Cp, N)
    assert H % RG == 0
    G = H // RG

    # One fused pad supplies the whole 3x3 halo: 1 column each side, 2 rows
    # top/bottom (conv1 is recomputed for one halo row of h1 per group side,
    # which is what makes the row groups independent / megacore-shardable).
    xp = jnp.pad(x, ((0, 0), (2, 2), (1, 1), (0, 0)))

    kernel = _make_kernel(W, Cp, RG)

    x_spec = pl.BlockSpec((None, H + 4, W + 2, Cp), lambda n, g: (n, 0, 0, 0))
    out_spec = pl.BlockSpec((None, RG, W, Cp), lambda n, g: (n, g, 0, 0))

    def const_spec(shape, single_buffered):
        index_map = lambda n, g: (0,) * len(shape)
        if single_buffered:
            # Grid-invariant operand: one buffer is enough; don't waste VMEM on
            # a second buffer that is never refilled (v7x: 64 MiB physical).
            return pl.BlockSpec(shape, index_map, pipeline_mode=pl.Buffered(1))
        return pl.BlockSpec(shape, index_map)

    scratch_shapes = [
        pltpu.VMEM((RG + 4, W, 3 * Cp), jnp.bfloat16),   # column-concat patches
        pltpu.VMEM(((RG + 2) * W, Cp), jnp.float32),     # conv1 accumulator
        pltpu.VMEM((RG * W, Cp), jnp.float32),           # conv2 accumulator
    ]

    # VMEM budget derived from the actual tiles (keeps headroom; stays small
    # relative to v7x's 64 MiB physical VMEM for realistic shapes).
    bf2 = 2
    need = (2 * (H + 4) * (W + 2) * Cp * bf2             # x block (double buffered)
            + 2 * RG * W * Cp * bf2                      # out block (double buffered)
            + 2 * 2 * (9 * Cp * Cp * bf2 + Cp * 4)       # weights + biases (worst case)
            + (RG + 4) * W * 3 * Cp * bf2                # cat scratch
            + ((RG + 2) + RG) * W * Cp * 4)              # f32 accumulators
    vmem_limit = int(min(max(2 * need, 32 * 1024 * 1024), 96 * 1024 * 1024))

    def run(single_buffered_weights):
        return pl.pallas_call(
            kernel,
            out_shape=jax.ShapeDtypeStruct((N, H, W, Cp), jnp.bfloat16),
            grid=(N, G),
            in_specs=[x_spec,
                      const_spec((3, 3 * Cp, Cp), single_buffered_weights),
                      const_spec((1, Cp), single_buffered_weights),
                      const_spec((3, 3 * Cp, Cp), single_buffered_weights),
                      const_spec((1, Cp), single_buffered_weights)],
            out_specs=out_spec,
            scratch_shapes=scratch_shapes,
            compiler_params=pltpu.CompilerParams(
                dimension_semantics=("parallel", "parallel"),
                vmem_limit_bytes=vmem_limit),
        )(xp, w1, b1, w2, b2)

    try:
        return run(True)
    except Exception:
        # pl.Buffered(1) / pipeline_mode not supported by this JAX build:
        # fall back to default (double-buffered) weight specs.
        return run(False)


def basic_block_forward(x_nchw, p, eps=1e-5, row_group=None):
    """BasicBlock(inplanes=planes, stride=1, downsample=None), eval-mode BN.

    NCHW f32 convenience wrapper around basic_block_nhwc; only use it at the
    boundary of a stack of blocks (chained blocks should stay in the NHWC
    channel-padded bf16 format returned by basic_block_nhwc).
    """
    N, C, H, W = x_nchw.shape
    assert p["w1"].shape == (C, C, 3, 3), "no-downsample block needs Cin == Cout"
    Cp = _round_up(C, 128)
    folded = fold_basic_block_params(p, C, Cp, eps)
    x = jnp.transpose(x_nchw, (0, 2, 3, 1))
    x = jnp.pad(x, ((0, 0), (0, 0), (0, 0), (0, Cp - C))).astype(jnp.bfloat16)
    out = basic_block_nhwc(x, folded, row_group=row_group)       # (N,H,W,Cp) bf16
    return jnp.transpose(out[..., :C].astype(jnp.float32), (0, 3, 1, 2))


def ref_forward(x_nchw, p, eps=1e-5):
    """Pure-JAX f32 reference (eval-mode BN) for correctness checking."""
    x = jnp.transpose(x_nchw, (0, 2, 3, 1))

    def conv(h, w):
        w_hwio = jnp.transpose(w, (2, 3, 1, 0))
        return jax.lax.conv_general_dilated(
            h, w_hwio, (1, 1), "SAME",
            dimension_numbers=("NHWC", "HWIO", "NHWC"))

    def bn(h, g, b, m, v):
        return (h - m) / jnp.sqrt(v + eps) * g + b

    h = jax.nn.relu(bn(conv(x, p["w1"]), p["bn1_gamma"], p["bn1_beta"],
                       p["bn1_mean"], p["bn1_var"]))
    h = bn(conv(h, p["w2"]), p["bn2_gamma"], p["bn2_beta"],
           p["bn2_mean"], p["bn2_var"])
    out = jax.nn.relu(h + x)
    return jnp.transpose(out, (0, 3, 1, 2))


if __name__ == "__main__":
    key = jax.random.PRNGKey(0)
    N, C, H, W = 2, 8, 16, 16   # inplanes == planes == 8, stride=1, downsample=None
    ks = jax.random.split(key, 11)
    params = {
        "w1":        jax.random.normal(ks[0], (C, C, 3, 3), jnp.float32) * 0.1,
        "bn1_gamma": jax.random.uniform(ks[1], (C,), jnp.float32, 0.5, 1.5),
        "bn1_beta":  jax.random.normal(ks[2], (C,), jnp.float32) * 0.1,
        "bn1_mean":  jax.random.normal(ks[3], (C,), jnp.float32) * 0.1,
        "bn1_var":   jax.random.uniform(ks[4], (C,), jnp.float32, 0.5, 1.5),
        "w2":        jax.random.normal(ks[5], (C, C, 3, 3), jnp.float32) * 0.1,
        "bn2_gamma": jax.random.uniform(ks[6], (C,), jnp.float32, 0.5, 1.5),
        "bn2_beta":  jax.random.normal(ks[7], (C,), jnp.float32) * 0.1,
        "bn2_mean":  jax.random.normal(ks[8], (C,), jnp.float32) * 0.1,
        "bn2_var":   jax.random.uniform(ks[9], (C,), jnp.float32, 0.5, 1.5),
    }
    x = jax.random.normal(ks[10], (N, C, H, W), jnp.float32)

    ref = jax.block_until_ready(ref_forward(x, params))

    # Default row grouping (single group per image at this size).
    out = jax.block_until_ready(basic_block_forward(x, params))
    np.testing.assert_allclose(np.asarray(out), np.asarray(ref),
                               atol=5e-2, rtol=5e-2)

    # Also exercise the multi-row-group path (independent grid steps with
    # conv1 halo recompute) that larger images / v7x megacore sharding use.
    out2 = jax.block_until_ready(basic_block_forward(x, params, row_group=H // 2))
    np.testing.assert_allclose(np.asarray(out2), np.asarray(ref),
                               atol=5e-2, rtol=5e-2)

    print("KERNEL_OK")
</pallas_src>

<mosaic_0001>
module attributes {stable_mosaic.version = 11 : i64} {
  func.func @kernel(%arg0: i32, %arg1: i32, %arg2: memref<1x20x18x128xbf16, #tpu.memory_space<vmem>>, %arg3: memref<3x384x128xbf16, #tpu.memory_space<vmem>>, %arg4: memref<1x128xf32, #tpu.memory_space<vmem>>, %arg5: memref<3x384x128xbf16, #tpu.memory_space<vmem>>, %arg6: memref<1x128xf32, #tpu.memory_space<vmem>>, %arg7: memref<1x16x16x128xbf16, #tpu.memory_space<vmem>>, %arg8: memref<20x16x384xbf16, #tpu.memory_space<vmem>>, %arg9: memref<288x128xf32, #tpu.memory_space<vmem>>, %arg10: memref<256x128xf32, #tpu.memory_space<vmem>>) attributes {dimension_semantics = [#tpu.dimension_semantics<parallel>, #tpu.dimension_semantics<parallel>], iteration_bounds = array<i64: 2, 1>, scalar_prefetch = 0 : i64, scratch_operands = 3 : i64, tpu.core_type = #tpu.core_type<tc>, window_params = [{transform_indices = @transform_0, window_bounds = array<i64: 1, 20, 18, 128>}, {pipeline_mode = #tpu.pipeline_mode<synchronous>, transform_indices = @transform_1, window_bounds = array<i64: 3, 384, 128>}, {pipeline_mode = #tpu.pipeline_mode<synchronous>, transform_indices = @transform_2, window_bounds = array<i64: 1, 128>}, {pipeline_mode = #tpu.pipeline_mode<synchronous>, transform_indices = @transform_3, window_bounds = array<i64: 3, 384, 128>}, {pipeline_mode = #tpu.pipeline_mode<synchronous>, transform_indices = @transform_4, window_bounds = array<i64: 1, 128>}, {transform_indices = @transform_5, window_bounds = array<i64: 1, 16, 16, 128>}]} {
    %c16_i32 = arith.constant 16 : i32
    %0 = arith.muli %arg1, %c16_i32 : i32
    %c0 = arith.constant 0 : index
    %1 = arith.index_cast %0 : i32 to index
    %c0_0 = arith.constant 0 : index
    %c0_1 = arith.constant 0 : index
    %2 = vector.load %arg2[%c0, %1, %c0_0, %c0_1] : memref<1x20x18x128xbf16, #tpu.memory_space<vmem>>, vector<1x20x18x128xbf16>
    %3 = vector.shape_cast %2 : vector<1x20x18x128xbf16> to vector<20x18x128xbf16>
    %4 = vector.extract_strided_slice %3 {offsets = [0, 0, 0], sizes = [20, 16, 128], strides = [1, 1, 1]} : vector<20x18x128xbf16> to vector<20x16x128xbf16>
    %c0_2 = arith.constant 0 : index
    %c0_3 = arith.constant 0 : index
    %c0_4 = arith.constant 0 : index
    %5 = vector.load %arg8[%c0_2, %c0_3, %c0_4] : memref<20x16x384xbf16, #tpu.memory_space<vmem>>, vector<20x16x128xbf16>
    tpu.vector_store %arg8[%c0_2, %c0_3, %c0_4], %4 {strides = array<i32>} : memref<20x16x384xbf16, #tpu.memory_space<vmem>>, vector<20x16x128xbf16>,
    %6 = vector.extract_strided_slice %3 {offsets = [0, 1, 0], sizes = [20, 16, 128], strides = [1, 1, 1]} : vector<20x18x128xbf16> to vector<20x16x128xbf16>
    %c0_5 = arith.constant 0 : index
    %c0_6 = arith.constant 0 : index
    %c128 = arith.constant 128 : index
    %7 = vector.load %arg8[%c0_5, %c0_6, %c128] : memref<20x16x384xbf16, #tpu.memory_space<vmem>>, vector<20x16x128xbf16>
    tpu.vector_store %arg8[%c0_5, %c0_6, %c128], %6 {strides = array<i32>} : memref<20x16x384xbf16, #tpu.memory_space<vmem>>, vector<20x16x128xbf16>,
    %8 = vector.extract_strided_slice %3 {offsets = [0, 2, 0], sizes = [20, 16, 128], strides = [1, 1, 1]} : vector<20x18x128xbf16> to vector<20x16x128xbf16>
    %c0_7 = arith.constant 0 : index
    %c0_8 = arith.constant 0 : index
    %c256 = arith.constant 256 : index
    %9 = vector.load %arg8[%c0_7, %c0_8, %c256] : memref<20x16x384xbf16, #tpu.memory_space<vmem>>, vector<20x16x128xbf16>
    tpu.vector_store %arg8[%c0_7, %c0_8, %c256], %8 {strides = array<i32>} : memref<20x16x384xbf16, #tpu.memory_space<vmem>>, vector<20x16x128xbf16>,
    %c2 = arith.constant 2 : index
    %c0_9 = arith.constant 0 : index
    %c128_10 = arith.constant 128 : index
    %10 = vector.load %arg8[%c2, %c0_9, %c128_10] : memref<20x16x384xbf16, #tpu.memory_space<vmem>>, vector<16x16x128xbf16>
    %11 = arith.extf %10 : vector<16x16x128xbf16> to vector<16x16x128xf32>
    %12 = vector.shape_cast %11 : vector<16x16x128xf32> to vector<256x128xf32>
    %c0_11 = arith.constant 0 : index
    %c0_12 = arith.constant 0 : index
    %13 = vector.load %arg6[%c0_11, %c0_12] : memref<1x128xf32, #tpu.memory_space<vmem>>, vector<1x128xf32>
    %14 = vector.broadcast %13 : vector<1x128xf32> to vector<256x128xf32>
    %15 = arith.addf %12, %14 : vector<256x128xf32>
    %c0_13 = arith.constant 0 : index
    %c0_14 = arith.constant 0 : index
    %16 = vector.load %arg10[%c0_13, %c0_14] : memref<256x128xf32, #tpu.memory_space<vmem>>, vector<256x128xf32>
    tpu.vector_store %arg10[%c0_13, %c0_14], %15 {strides = array<i32>} : memref<256x128xf32, #tpu.memory_space<vmem>>, vector<256x128xf32>,
    %c0_15 = arith.constant 0 : index
    %c0_16 = arith.constant 0 : index
    %c0_17 = arith.constant 0 : index
    %17 = vector.load %arg8[%c0_15, %c0_16, %c0_17] : memref<20x16x384xbf16, #tpu.memory_space<vmem>>, vector<18x16x384xbf16>
    %18 = vector.shape_cast %17 : vector<18x16x384xbf16> to vector<288x384xbf16>
    %c0_18 = arith.constant 0 : index
    %c0_19 = arith.constant 0 : index
    %c0_20 = arith.constant 0 : index
    %19 = vector.load %arg3[%c0_18, %c0_19, %c0_20] : memref<3x384x128xbf16, #tpu.memory_space<vmem>>, vector<1x384x128xbf16>
    %20 = vector.shape_cast %19 : vector<1x384x128xbf16> to vector<384x128xbf16>
    %cst = arith.constant dense<0.000000e+00> : vector<288x128xf32>
    %21 = tpu.matmul %18, %20, %cst {dimension_numbers = #tpu.dot_dimension_numbers<[1], [0], [0], [1], [0, 0, 1, 1], [], []>} : vector<288x384xbf16>, vector<384x128xbf16>, vector<288x128xf32> -> vector<288x128xf32>
    %c0_21 = arith.constant 0 : index
    %c0_22 = arith.constant 0 : index
    %22 = vector.load %arg4[%c0_21, %c0_22] : memref<1x128xf32, #tpu.memory_space<vmem>>, vector<1x128xf32>
    %23 = vector.broadcast %22 : vector<1x128xf32> to vector<288x128xf32>
    %24 = arith.addf %21, %23 : vector<288x128xf32>
    %c0_23 = arith.constant 0 : index
    %c0_24 = arith.constant 0 : index
    %25 = vector.load %arg9[%c0_23, %c0_24] : memref<288x128xf32, #tpu.memory_space<vmem>>, vector<288x128xf32>
    tpu.vector_store %arg9[%c0_23, %c0_24], %24 {strides = array<i32>} : memref<288x128xf32, #tpu.memory_space<vmem>>, vector<288x128xf32>,
    %c1 = arith.constant 1 : index
    %c0_25 = arith.constant 0 : index
    %c0_26 = arith.constant 0 : index
    %26 = vector.load %arg8[%c1, %c0_25, %c0_26] : memref<20x16x384xbf16, #tpu.memory_space<vmem>>, vector<18x16x384xbf16>
    %27 = vector.shape_cast %26 : vector<18x16x384xbf16> to vector<288x384xbf16>
    %c1_27 = arith.constant 1 : index
    %c0_28 = arith.constant 0 : index
    %c0_29 = arith.constant 0 : index
    %28 = vector.load %arg3[%c1_27, %c0_28, %c0_29] : memref<3x384x128xbf16, #tpu.memory_space<vmem>>, vector<1x384x128xbf16>
    %29 = vector.shape_cast %28 : vector<1x384x128xbf16> to vector<384x128xbf16>
    %cst_30 = arith.constant dense<0.000000e+00> : vector<288x128xf32>
    %30 = tpu.matmul %27, %29, %cst_30 {dimension_numbers = #tpu.dot_dimension_numbers<[1], [0], [0], [1], [0, 0, 1, 1], [], []>} : vector<288x384xbf16>, vector<384x128xbf16>, vector<288x128xf32> -> vector<288x128xf32>
    %c0_31 = arith.constant 0 : index
    %c0_32 = arith.constant 0 : index
    %31 = vector.load %arg9[%c0_31, %c0_32] : memref<288x128xf32, #tpu.memory_space<vmem>>, vector<288x128xf32>
    %32 = arith.addf %31, %30 : vector<288x128xf32>
    %c0_33 = arith.constant 0 : index
    %c0_34 = arith.constant 0 : index
    %33 = vector.load %arg9[%c0_33, %c0_34] : memref<288x128xf32, #tpu.memory_space<vmem>>, vector<288x128xf32>
    tpu.vector_store %arg9[%c0_33, %c0_34], %32 {strides = array<i32>} : memref<288x128xf32, #tpu.memory_space<vmem>>, vector<288x128xf32>,
    %c2_35 = arith.constant 2 : index
    %c0_36 = arith.constant 0 : index
    %c0_37 = arith.constant 0 : index
    %34 = vector.load %arg8[%c2_35, %c0_36, %c0_37] : memref<20x16x384xbf16, #tpu.memory_space<vmem>>, vector<18x16x384xbf16>
    %35 = vector.shape_cast %34 : vector<18x16x384xbf16> to vector<288x384xbf16>
    %c2_38 = arith.constant 2 : index
    %c0_39 = arith.constant 0 : index
    %c0_40 = arith.constant 0 : index
    %36 = vector.load %arg3[%c2_38, %c0_39, %c0_40] : memref<3x384x128xbf16, #tpu.memory_space<vmem>>, vector<1x384x128xbf16>
    %37 = vector.shape_cast %36 : vector<1x384x128xbf16> to vector<384x128xbf16>
    %cst_41 = arith.constant dense<0.000000e+00> : vector<288x128xf32>
    %38 = tpu.matmul %35, %37, %cst_41 {dimension_numbers = #tpu.dot_dimension_numbers<[1], [0], [0], [1], [0, 0, 1, 1], [], []>} : vector<288x384xbf16>, vector<384x128xbf16>, vector<288x128xf32> -> vector<288x128xf32>
    %c0_42 = arith.constant 0 : index
    %c0_43 = arith.constant 0 : index
    %39 = vector.load %arg9[%c0_42, %c0_43] : memref<288x128xf32, #tpu.memory_space<vmem>>, vector<288x128xf32>
    %40 = arith.addf %39, %38 : vector<288x128xf32>
    %c0_44 = arith.constant 0 : index
    %c0_45 = arith.constant 0 : index
    %41 = vector.load %arg9[%c0_44, %c0_45] : memref<288x128xf32, #tpu.memory_space<vmem>>, vector<288x128xf32>
    tpu.vector_store %arg9[%c0_44, %c0_45], %40 {strides = array<i32>} : memref<288x128xf32, #tpu.memory_space<vmem>>, vector<288x128xf32>,
    %c0_46 = arith.constant 0 : index
    %c0_47 = arith.constant 0 : index
    %42 = vector.load %arg9[%c0_46, %c0_47] : memref<288x128xf32, #tpu.memory_space<vmem>>, vector<288x128xf32>
    %cst_48 = arith.constant 0.000000e+00 : f32
    %43 = vector.broadcast %cst_48 : f32 to vector<288x128xf32>
    %44 = arith.maximumf %42, %43 : vector<288x128xf32>
    %45 = arith.truncf %44 : vector<288x128xf32> to vector<288x128xbf16>
    %46 = vector.shape_cast %45 : vector<288x128xbf16> to vector<18x16x128xbf16>
    %cst_49 = arith.constant 0.000000e+00 : bf16
    %47 = vector.broadcast %cst_49 : bf16 to vector<18x1x128xbf16>
    %c0_50 = arith.constant 0 : index
    %c0_51 = arith.constant 0 : index
    %c0_52 = arith.constant 0 : index
    %48 = vector.load %arg8[%c0_50, %c0_51, %c0_52] : memref<20x16x384xbf16, #tpu.memory_space<vmem>>, vector<18x1x128xbf16>
    tpu.vector_store %arg8[%c0_50, %c0_51, %c0_52], %47 {strides = array<i32>} : memref<20x16x384xbf16, #tpu.memory_space<vmem>>, vector<18x1x128xbf16>,
    %49 = vector.extract_strided_slice %46 {offsets = [0, 0, 0], sizes = [18, 15, 128], strides = [1, 1, 1]} : vector<18x16x128xbf16> to vector<18x15x128xbf16>
    %c0_53 = arith.constant 0 : index
    %c1_54 = arith.constant 1 : index
    %c0_55 = arith.constant 0 : index
    %50 = vector.load %arg8[%c0_53, %c1_54, %c0_55] : memref<20x16x384xbf16, #tpu.memory_space<vmem>>, vector<18x15x128xbf16>
    tpu.vector_store %arg8[%c0_53, %c1_54, %c0_55], %49 {strides = array<i32>} : memref<20x16x384xbf16, #tpu.memory_space<vmem>>, vector<18x15x128xbf16>,
    %c0_56 = arith.constant 0 : index
    %c0_57 = arith.constant 0 : index
    %c128_58 = arith.constant 128 : index
    %51 = vector.load %arg8[%c0_56, %c0_57, %c128_58] : memref<20x16x384xbf16, #tpu.memory_space<vmem>>, vector<18x16x128xbf16>
    tpu.vector_store %arg8[%c0_56, %c0_57, %c128_58], %46 {strides = array<i32>} : memref<20x16x384xbf16, #tpu.memory_space<vmem>>, vector<18x16x128xbf16>,
    %52 = vector.extract_strided_slice %46 {offsets = [0, 1, 0], sizes = [18, 15, 128], strides = [1, 1, 1]} : vector<18x16x128xbf16> to vector<18x15x128xbf16>
    %c0_59 = arith.constant 0 : index
    %c0_60 = arith.constant 0 : index
    %c256_61 = arith.constant 256 : index
    %53 = vector.load %arg8[%c0_59, %c0_60, %c256_61] : memref<20x16x384xbf16, #tpu.memory_space<vmem>>, vector<18x15x128xbf16>
    tpu.vector_store %arg8[%c0_59, %c0_60, %c256_61], %52 {strides = array<i32>} : memref<20x16x384xbf16, #tpu.memory_space<vmem>>, vector<18x15x128xbf16>,
    %cst_62 = arith.constant 0.000000e+00 : bf16
    %54 = vector.broadcast %cst_62 : bf16 to vector<18x1x128xbf16>
    %c0_63 = arith.constant 0 : index
    %c15 = arith.constant 15 : index
    %c256_64 = arith.constant 256 : index
    %55 = vector.load %arg8[%c0_63, %c15, %c256_64] : memref<20x16x384xbf16, #tpu.memory_space<vmem>>, vector<18x1x128xbf16>
    tpu.vector_store %arg8[%c0_63, %c15, %c256_64], %54 {strides = array<i32>} : memref<20x16x384xbf16, #tpu.memory_space<vmem>>, vector<18x1x128xbf16>,
    %c0_i32 = arith.constant 0 : i32
    %56 = arith.cmpi eq, %arg1, %c0_i32 : i32
    %57 = arith.extui %56 : i1 to i32
    %c0_i32_65 = arith.constant 0 : i32
    %58 = arith.cmpi ne, %57, %c0_i32_65 : i32
    scf.if %58 {
      %cst_108 = arith.constant 0.000000e+00 : bf16
      %94 = vector.broadcast %cst_108 : bf16 to vector<1x16x384xbf16>
      %c0_109 = arith.constant 0 : index
      %c0_110 = arith.constant 0 : index
      %c0_111 = arith.constant 0 : index
      %95 = vector.load %arg8[%c0_109, %c0_110, %c0_111] : memref<20x16x384xbf16, #tpu.memory_space<vmem>>, vector<1x16x384xbf16>
      tpu.vector_store %arg8[%c0_109, %c0_110, %c0_111], %94 {strides = array<i32>} : memref<20x16x384xbf16, #tpu.memory_space<vmem>>, vector<1x16x384xbf16>,
    } else {
    }
    %c0_i32_66 = arith.constant 0 : i32
    %59 = arith.cmpi eq, %arg1, %c0_i32_66 : i32
    %60 = arith.extui %59 : i1 to i32
    %c0_i32_67 = arith.constant 0 : i32
    %61 = arith.cmpi ne, %60, %c0_i32_67 : i32
    scf.if %61 {
      %cst_108 = arith.constant 0.000000e+00 : bf16
      %94 = vector.broadcast %cst_108 : bf16 to vector<1x16x384xbf16>
      %c17 = arith.constant 17 : index
      %c0_109 = arith.constant 0 : index
      %c0_110 = arith.constant 0 : index
      %95 = vector.load %arg8[%c17, %c0_109, %c0_110] : memref<20x16x384xbf16, #tpu.memory_space<vmem>>, vector<1x16x384xbf16>
      tpu.vector_store %arg8[%c17, %c0_109, %c0_110], %94 {strides = array<i32>} : memref<20x16x384xbf16, #tpu.memory_space<vmem>>, vector<1x16x384xbf16>,
    } else {
    }
    %c0_68 = arith.constant 0 : index
    %c0_69 = arith.constant 0 : index
    %c0_70 = arith.constant 0 : index
    %62 = vector.load %arg8[%c0_68, %c0_69, %c0_70] : memref<20x16x384xbf16, #tpu.memory_space<vmem>>, vector<16x16x384xbf16>
    %63 = vector.shape_cast %62 : vector<16x16x384xbf16> to vector<256x384xbf16>
    %c0_71 = arith.constant 0 : index
    %c0_72 = arith.constant 0 : index
    %64 = vector.load %arg10[%c0_71, %c0_72] : memref<256x128xf32, #tpu.memory_space<vmem>>, vector<256x128xf32>
    %c0_73 = arith.constant 0 : index
    %c0_74 = arith.constant 0 : index
    %c0_75 = arith.constant 0 : index
    %65 = vector.load %arg5[%c0_73, %c0_74, %c0_75] : memref<3x384x128xbf16, #tpu.memory_space<vmem>>, vector<1x384x128xbf16>
    %66 = vector.shape_cast %65 : vector<1x384x128xbf16> to vector<384x128xbf16>
    %cst_76 = arith.constant dense<0.000000e+00> : vector<256x128xf32>
    %67 = tpu.matmul %63, %66, %cst_76 {dimension_numbers = #tpu.dot_dimension_numbers<[1], [0], [0], [1], [0, 0, 1, 1], [], []>} : vector<256x384xbf16>, vector<384x128xbf16>, vector<256x128xf32> -> vector<256x128xf32>
    %68 = arith.addf %64, %67 : vector<256x128xf32>
    %c0_77 = arith.constant 0 : index
    %c0_78 = arith.constant 0 : index
    %69 = vector.load %arg10[%c0_77, %c0_78] : memref<256x128xf32, #tpu.memory_space<vmem>>, vector<256x128xf32>
    tpu.vector_store %arg10[%c0_77, %c0_78], %68 {strides = array<i32>} : memref<256x128xf32, #tpu.memory_space<vmem>>, vector<256x128xf32>,
    %c1_79 = arith.constant 1 : index
    %c0_80 = arith.constant 0 : index
    %c0_81 = arith.constant 0 : index
    %70 = vector.load %arg8[%c1_79, %c0_80, %c0_81] : memref<20x16x384xbf16, #tpu.memory_space<vmem>>, vector<16x16x384xbf16>
    %71 = vector.shape_cast %70 : vector<16x16x384xbf16> to vector<256x384xbf16>
    %c0_82 = arith.constant 0 : index
    %c0_83 = arith.constant 0 : index
    %72 = vector.load %arg10[%c0_82, %c0_83] : memref<256x128xf32, #tpu.memory_space<vmem>>, vector<256x128xf32>
    %c1_84 = arith.constant 1 : index
    %c0_85 = arith.constant 0 : index
    %c0_86 = arith.constant 0 : index
    %73 = vector.load %arg5[%c1_84, %c0_85, %c0_86] : memref<3x384x128xbf16, #tpu.memory_space<vmem>>, vector<1x384x128xbf16>
    %74 = vector.shape_cast %73 : vector<1x384x128xbf16> to vector<384x128xbf16>
    %cst_87 = arith.constant dense<0.000000e+00> : vector<256x128xf32>
    %75 = tpu.matmul %71, %74, %cst_87 {dimension_numbers = #tpu.dot_dimension_numbers<[1], [0], [0], [1], [0, 0, 1, 1], [], []>} : vector<256x384xbf16>, vector<384x128xbf16>, vector<256x128xf32> -> vector<256x128xf32>
    %76 = arith.addf %72, %75 : vector<256x128xf32>
    %c0_88 = arith.constant 0 : index
    %c0_89 = arith.constant 0 : index
    %77 = vector.load %arg10[%c0_88, %c0_89] : memref<256x128xf32, #tpu.memory_space<vmem>>, vector<256x128xf32>
    tpu.vector_store %arg10[%c0_88, %c0_89], %76 {strides = array<i32>} : memref<256x128xf32, #tpu.memory_space<vmem>>, vector<256x128xf32>,
    %c2_90 = arith.constant 2 : index
    %c0_91 = arith.constant 0 : index
    %c0_92 = arith.constant 0 : index
    %78 = vector.load %arg8[%c2_90, %c0_91, %c0_92] : memref<20x16x384xbf16, #tpu.memory_space<vmem>>, vector<16x16x384xbf16>
    %79 = vector.shape_cast %78 : vector<16x16x384xbf16> to vector<256x384xbf16>
    %c0_93 = arith.constant 0 : index
    %c0_94 = arith.constant 0 : index
    %80 = vector.load %arg10[%c0_93, %c0_94] : memref<256x128xf32, #tpu.memory_space<vmem>>, vector<256x128xf32>
    %c2_95 = arith.constant 2 : index
    %c0_96 = arith.constant 0 : index
    %c0_97 = arith.constant 0 : index
    %81 = vector.load %arg5[%c2_95, %c0_96, %c0_97] : memref<3x384x128xbf16, #tpu.memory_space<vmem>>, vector<1x384x128xbf16>
    %82 = vector.shape_cast %81 : vector<1x384x128xbf16> to vector<384x128xbf16>
    %cst_98 = arith.constant dense<0.000000e+00> : vector<256x128xf32>
    %83 = tpu.matmul %79, %82, %cst_98 {dimension_numbers = #tpu.dot_dimension_numbers<[1], [0], [0], [1], [0, 0, 1, 1], [], []>} : vector<256x384xbf16>, vector<384x128xbf16>, vector<256x128xf32> -> vector<256x128xf32>
    %84 = arith.addf %80, %83 : vector<256x128xf32>
    %c0_99 = arith.constant 0 : index
    %c0_100 = arith.constant 0 : index
    %85 = vector.load %arg10[%c0_99, %c0_100] : memref<256x128xf32, #tpu.memory_space<vmem>>, vector<256x128xf32>
    tpu.vector_store %arg10[%c0_99, %c0_100], %84 {strides = array<i32>} : memref<256x128xf32, #tpu.memory_space<vmem>>, vector<256x128xf32>,
    %c0_101 = arith.constant 0 : index
    %c0_102 = arith.constant 0 : index
    %86 = vector.load %arg10[%c0_101, %c0_102] : memref<256x128xf32, #tpu.memory_space<vmem>>, vector<256x128xf32>
    %cst_103 = arith.constant 0.000000e+00 : f32
    %87 = vector.broadcast %cst_103 : f32 to vector<256x128xf32>
    %88 = arith.maximumf %86, %87 : vector<256x128xf32>
    %89 = vector.shape_cast %88 : vector<256x128xf32> to vector<16x16x128xf32>
    %90 = arith.truncf %89 : vector<16x16x128xf32> to vector<16x16x128xbf16>
    %c0_104 = arith.constant 0 : index
    %c0_105 = arith.constant 0 : index
    %c0_106 = arith.constant 0 : index
    %c0_107 = arith.constant 0 : index
    %91 = vector.load %arg7[%c0_104, %c0_105, %c0_106, %c0_107] : memref<1x16x16x128xbf16, #tpu.memory_space<vmem>>, vector<1x16x16x128xbf16>
    %92 = vector.shape_cast %91 : vector<1x16x16x128xbf16> to vector<16x16x128xbf16>
    %93 = vector.shape_cast %90 : vector<16x16x128xbf16> to vector<1x16x16x128xbf16>
    tpu.vector_store %arg7[%c0_104, %c0_105, %c0_106, %c0_107], %93 {strides = array<i32>} : memref<1x16x16x128xbf16, #tpu.memory_space<vmem>>, vector<1x16x16x128xbf16>,
    return
  }
  func.func @transform_0(%arg0: i32, %arg1: i32) -> (i32, i32, i32, i32) {
    %c0_i32 = arith.constant 0 : i32
    %c0_i32_0 = arith.constant 0 : i32
    %c0_i32_1 = arith.constant 0 : i32
    %c0_i32_2 = arith.constant 0 : i32
    return %arg0, %c0_i32, %c0_i32_0, %c0_i32_1 : i32, i32, i32, i32
  }
  func.func @transform_1(%arg0: i32, %arg1: i32) -> (i32, i32, i32) {
    %c0_i32 = arith.constant 0 : i32
    %c0_i32_0 = arith.constant 0 : i32
    %c0_i32_1 = arith.constant 0 : i32
    %c0_i32_2 = arith.constant 0 : i32
    return %c0_i32, %c0_i32_0, %c0_i32_1 : i32, i32, i32
  }
  func.func @transform_2(%arg0: i32, %arg1: i32) -> (i32, i32) {
    %c0_i32 = arith.constant 0 : i32
    %c0_i32_0 = arith.constant 0 : i32
    %c0_i32_1 = arith.constant 0 : i32
    return %c0_i32, %c0_i32_0 : i32, i32
  }
  func.func @transform_3(%arg0: i32, %arg1: i32) -> (i32, i32, i32) {
    %c0_i32 = arith.constant 0 : i32
    %c0_i32_0 = arith.constant 0 : i32
    %c0_i32_1 = arith.constant 0 : i32
    %c0_i32_2 = arith.constant 0 : i32
    return %c0_i32, %c0_i32_0, %c0_i32_1 : i32, i32, i32
  }
  func.func @transform_4(%arg0: i32, %arg1: i32) -> (i32, i32) {
    %c0_i32 = arith.constant 0 : i32
    %c0_i32_0 = arith.constant 0 : i32
    %c0_i32_1 = arith.constant 0 : i32
    return %c0_i32, %c0_i32_0 : i32, i32
  }
  func.func @transform_5(%arg0: i32, %arg1: i32) -> (i32, i32, i32, i32) {
    %c0_i32 = arith.constant 0 : i32
    %c0_i32_0 = arith.constant 0 : i32
    %c0_i32_1 = arith.constant 0 : i32
    return %arg0, %arg1, %c0_i32, %c0_i32_0 : i32, i32, i32, i32
  }
}

module attributes {stable_mosaic.version = 11 : i64} {
  func.func @kernel(%arg0: i32, %arg1: i32, %arg2: memref<1x20x18x128xbf16, #tpu.memory_space<vmem>>, %arg3: memref<3x384x128xbf16, #tpu.memory_space<vmem>>, %arg4: memref<1x128xf32, #tpu.memory_space<vmem>>, %arg5: memref<3x384x128xbf16, #tpu.memory_space<vmem>>, %arg6: memref<1x128xf32, #tpu.memory_space<vmem>>, %arg7: memref<1x16x16x128xbf16, #tpu.memory_space<vmem>>, %arg8: memref<20x16x384xbf16, #tpu.memory_space<vmem>>, %arg9: memref<288x128xf32, #tpu.memory_space<vmem>>, %arg10: memref<256x128xf32, #tpu.memory_space<vmem>>) attributes {dimension_semantics = [#tpu.dimension_semantics<parallel>, #tpu.dimension_semantics<parallel>], iteration_bounds = array<i64: 2, 1>, scalar_prefetch = 0 : i64, scratch_operands = 3 : i64, tpu.core_type = #tpu.core_type<tc>, window_params = [{transform_indices = @transform_0, window_bounds = array<i64: 1, 20, 18, 128>}, {pipeline_mode = #tpu.pipeline_mode<synchronous>, transform_indices = @transform_1, window_bounds = array<i64: 3, 384, 128>}, {pipeline_mode = #tpu.pipeline_mode<synchronous>, transform_indices = @transform_2, window_bounds = array<i64: 1, 128>}, {pipeline_mode = #tpu.pipeline_mode<synchronous>, transform_indices = @transform_3, window_bounds = array<i64: 3, 384, 128>}, {pipeline_mode = #tpu.pipeline_mode<synchronous>, transform_indices = @transform_4, window_bounds = array<i64: 1, 128>}, {transform_indices = @transform_5, window_bounds = array<i64: 1, 16, 16, 128>}]} {
    %c16_i32 = arith.constant 16 : i32
    %0 = arith.muli %arg1, %c16_i32 : i32
    %c0 = arith.constant 0 : index
    %1 = arith.index_cast %0 : i32 to index
    %c0_0 = arith.constant 0 : index
    %c0_1 = arith.constant 0 : index
    %2 = vector.load %arg2[%c0, %1, %c0_0, %c0_1] : memref<1x20x18x128xbf16, #tpu.memory_space<vmem>>, vector<1x20x18x128xbf16>
    %3 = vector.shape_cast %2 : vector<1x20x18x128xbf16> to vector<20x18x128xbf16>
    %4 = vector.extract_strided_slice %3 {offsets = [0, 0, 0], sizes = [20, 16, 128], strides = [1, 1, 1]} : vector<20x18x128xbf16> to vector<20x16x128xbf16>
    %c0_2 = arith.constant 0 : index
    %c0_3 = arith.constant 0 : index
    %c0_4 = arith.constant 0 : index
    %5 = vector.load %arg8[%c0_2, %c0_3, %c0_4] : memref<20x16x384xbf16, #tpu.memory_space<vmem>>, vector<20x16x128xbf16>
    tpu.vector_store %arg8[%c0_2, %c0_3, %c0_4], %4 {strides = array<i32>} : memref<20x16x384xbf16, #tpu.memory_space<vmem>>, vector<20x16x128xbf16>,
    %6 = vector.extract_strided_slice %3 {offsets = [0, 1, 0], sizes = [20, 16, 128], strides = [1, 1, 1]} : vector<20x18x128xbf16> to vector<20x16x128xbf16>
    %c0_5 = arith.constant 0 : index
    %c0_6 = arith.constant 0 : index
    %c128 = arith.constant 128 : index
    %7 = vector.load %arg8[%c0_5, %c0_6, %c128] : memref<20x16x384xbf16, #tpu.memory_space<vmem>>, vector<20x16x128xbf16>
    tpu.vector_store %arg8[%c0_5, %c0_6, %c128], %6 {strides = array<i32>} : memref<20x16x384xbf16, #tpu.memory_space<vmem>>, vector<20x16x128xbf16>,
    %8 = vector.extract_strided_slice %3 {offsets = [0, 2, 0], sizes = [20, 16, 128], strides = [1, 1, 1]} : vector<20x18x128xbf16> to vector<20x16x128xbf16>
    %c0_7 = arith.constant 0 : index
    %c0_8 = arith.constant 0 : index
    %c256 = arith.constant 256 : index
    %9 = vector.load %arg8[%c0_7, %c0_8, %c256] : memref<20x16x384xbf16, #tpu.memory_space<vmem>>, vector<20x16x128xbf16>
    tpu.vector_store %arg8[%c0_7, %c0_8, %c256], %8 {strides = array<i32>} : memref<20x16x384xbf16, #tpu.memory_space<vmem>>, vector<20x16x128xbf16>,
    %c2 = arith.constant 2 : index
    %c0_9 = arith.constant 0 : index
    %c128_10 = arith.constant 128 : index
    %10 = vector.load %arg8[%c2, %c0_9, %c128_10] : memref<20x16x384xbf16, #tpu.memory_space<vmem>>, vector<16x16x128xbf16>
    %11 = arith.extf %10 : vector<16x16x128xbf16> to vector<16x16x128xf32>
    %12 = vector.shape_cast %11 : vector<16x16x128xf32> to vector<256x128xf32>
    %c0_11 = arith.constant 0 : index
    %c0_12 = arith.constant 0 : index
    %13 = vector.load %arg6[%c0_11, %c0_12] : memref<1x128xf32, #tpu.memory_space<vmem>>, vector<1x128xf32>
    %14 = vector.broadcast %13 : vector<1x128xf32> to vector<256x128xf32>
    %15 = arith.addf %12, %14 : vector<256x128xf32>
    %c0_13 = arith.constant 0 : index
    %c0_14 = arith.constant 0 : index
    %16 = vector.load %arg10[%c0_13, %c0_14] : memref<256x128xf32, #tpu.memory_space<vmem>>, vector<256x128xf32>
    tpu.vector_store %arg10[%c0_13, %c0_14], %15 {strides = array<i32>} : memref<256x128xf32, #tpu.memory_space<vmem>>, vector<256x128xf32>,
    %c0_15 = arith.constant 0 : index
    %c0_16 = arith.constant 0 : index
    %c0_17 = arith.constant 0 : index
    %17 = vector.load %arg8[%c0_15, %c0_16, %c0_17] : memref<20x16x384xbf16, #tpu.memory_space<vmem>>, vector<18x16x384xbf16>
    %18 = vector.shape_cast %17 : vector<18x16x384xbf16> to vector<288x384xbf16>
    %c0_18 = arith.constant 0 : index
    %c0_19 = arith.constant 0 : index
    %c0_20 = arith.constant 0 : index
    %19 = vector.load %arg3[%c0_18, %c0_19, %c0_20] : memref<3x384x128xbf16, #tpu.memory_space<vmem>>, vector<1x384x128xbf16>
    %20 = vector.shape_cast %19 : vector<1x384x128xbf16> to vector<384x128xbf16>
    %cst = arith.constant dense<0.000000e+00> : vector<288x128xf32>
    %21 = tpu.matmul %18, %20, %cst {dimension_numbers = #tpu.dot_dimension_numbers<[1], [0], [0], [1], [0, 0, 1, 1], [], []>} : vector<288x384xbf16>, vector<384x128xbf16>, vector<288x128xf32> -> vector<288x128xf32>
    %c0_21 = arith.constant 0 : index
    %c0_22 = arith.constant 0 : index
    %22 = vector.load %arg4[%c0_21, %c0_22] : memref<1x128xf32, #tpu.memory_space<vmem>>, vector<1x128xf32>
    %23 = vector.broadcast %22 : vector<1x128xf32> to vector<288x128xf32>
    %24 = arith.addf %21, %23 : vector<288x128xf32>
    %c0_23 = arith.constant 0 : index
    %c0_24 = arith.constant 0 : index
    %25 = vector.load %arg9[%c0_23, %c0_24] : memref<288x128xf32, #tpu.memory_space<vmem>>, vector<288x128xf32>
    tpu.vector_store %arg9[%c0_23, %c0_24], %24 {strides = array<i32>} : memref<288x128xf32, #tpu.memory_space<vmem>>, vector<288x128xf32>,
    %c1 = arith.constant 1 : index
    %c0_25 = arith.constant 0 : index
    %c0_26 = arith.constant 0 : index
    %26 = vector.load %arg8[%c1, %c0_25, %c0_26] : memref<20x16x384xbf16, #tpu.memory_space<vmem>>, vector<18x16x384xbf16>
    %27 = vector.shape_cast %26 : vector<18x16x384xbf16> to vector<288x384xbf16>
    %c1_27 = arith.constant 1 : index
    %c0_28 = arith.constant 0 : index
    %c0_29 = arith.constant 0 : index
    %28 = vector.load %arg3[%c1_27, %c0_28, %c0_29] : memref<3x384x128xbf16, #tpu.memory_space<vmem>>, vector<1x384x128xbf16>
    %29 = vector.shape_cast %28 : vector<1x384x128xbf16> to vector<384x128xbf16>
    %cst_30 = arith.constant dense<0.000000e+00> : vector<288x128xf32>
    %30 = tpu.matmul %27, %29, %cst_30 {dimension_numbers = #tpu.dot_dimension_numbers<[1], [0], [0], [1], [0, 0, 1, 1], [], []>} : vector<288x384xbf16>, vector<384x128xbf16>, vector<288x128xf32> -> vector<288x128xf32>
    %c0_31 = arith.constant 0 : index
    %c0_32 = arith.constant 0 : index
    %31 = vector.load %arg9[%c0_31, %c0_32] : memref<288x128xf32, #tpu.memory_space<vmem>>, vector<288x128xf32>
    %32 = arith.addf %31, %30 : vector<288x128xf32>
    %c0_33 = arith.constant 0 : index
    %c0_34 = arith.constant 0 : index
    %33 = vector.load %arg9[%c0_33, %c0_34] : memref<288x128xf32, #tpu.memory_space<vmem>>, vector<288x128xf32>
    tpu.vector_store %arg9[%c0_33, %c0_34], %32 {strides = array<i32>} : memref<288x128xf32, #tpu.memory_space<vmem>>, vector<288x128xf32>,
    %c2_35 = arith.constant 2 : index
    %c0_36 = arith.constant 0 : index
    %c0_37 = arith.constant 0 : index
    %34 = vector.load %arg8[%c2_35, %c0_36, %c0_37] : memref<20x16x384xbf16, #tpu.memory_space<vmem>>, vector<18x16x384xbf16>
    %35 = vector.shape_cast %34 : vector<18x16x384xbf16> to vector<288x384xbf16>
    %c2_38 = arith.constant 2 : index
    %c0_39 = arith.constant 0 : index
    %c0_40 = arith.constant 0 : index
    %36 = vector.load %arg3[%c2_38, %c0_39, %c0_40] : memref<3x384x128xbf16, #tpu.memory_space<vmem>>, vector<1x384x128xbf16>
    %37 = vector.shape_cast %36 : vector<1x384x128xbf16> to vector<384x128xbf16>
    %cst_41 = arith.constant dense<0.000000e+00> : vector<288x128xf32>
    %38 = tpu.matmul %35, %37, %cst_41 {dimension_numbers = #tpu.dot_dimension_numbers<[1], [0], [0], [1], [0, 0, 1, 1], [], []>} : vector<288x384xbf16>, vector<384x128xbf16>, vector<288x128xf32> -> vector<288x128xf32>
    %c0_42 = arith.constant 0 : index
    %c0_43 = arith.constant 0 : index
    %39 = vector.load %arg9[%c0_42, %c0_43] : memref<288x128xf32, #tpu.memory_space<vmem>>, vector<288x128xf32>
    %40 = arith.addf %39, %38 : vector<288x128xf32>
    %c0_44 = arith.constant 0 : index
    %c0_45 = arith.constant 0 : index
    %41 = vector.load %arg9[%c0_44, %c0_45] : memref<288x128xf32, #tpu.memory_space<vmem>>, vector<288x128xf32>
    tpu.vector_store %arg9[%c0_44, %c0_45], %40 {strides = array<i32>} : memref<288x128xf32, #tpu.memory_space<vmem>>, vector<288x128xf32>,
    %c0_46 = arith.constant 0 : index
    %c0_47 = arith.constant 0 : index
    %42 = vector.load %arg9[%c0_46, %c0_47] : memref<288x128xf32, #tpu.memory_space<vmem>>, vector<288x128xf32>
    %cst_48 = arith.constant 0.000000e+00 : f32
    %43 = vector.broadcast %cst_48 : f32 to vector<288x128xf32>
    %44 = arith.maximumf %42, %43 : vector<288x128xf32>
    %45 = arith.truncf %44 : vector<288x128xf32> to vector<288x128xbf16>
    %46 = vector.shape_cast %45 : vector<288x128xbf16> to vector<18x16x128xbf16>
    %cst_49 = arith.constant 0.000000e+00 : bf16
    %47 = vector.broadcast %cst_49 : bf16 to vector<18x1x128xbf16>
    %c0_50 = arith.constant 0 : index
    %c0_51 = arith.constant 0 : index
    %c0_52 = arith.constant 0 : index
    %48 = vector.load %arg8[%c0_50, %c0_51, %c0_52] : memref<20x16x384xbf16, #tpu.memory_space<vmem>>, vector<18x1x128xbf16>
    tpu.vector_store %arg8[%c0_50, %c0_51, %c0_52], %47 {strides = array<i32>} : memref<20x16x384xbf16, #tpu.memory_space<vmem>>, vector<18x1x128xbf16>,
    %49 = vector.extract_strided_slice %46 {offsets = [0, 0, 0], sizes = [18, 15, 128], strides = [1, 1, 1]} : vector<18x16x128xbf16> to vector<18x15x128xbf16>
    %c0_53 = arith.constant 0 : index
    %c1_54 = arith.constant 1 : index
    %c0_55 = arith.constant 0 : index
    %50 = vector.load %arg8[%c0_53, %c1_54, %c0_55] : memref<20x16x384xbf16, #tpu.memory_space<vmem>>, vector<18x15x128xbf16>
    tpu.vector_store %arg8[%c0_53, %c1_54, %c0_55], %49 {strides = array<i32>} : memref<20x16x384xbf16, #tpu.memory_space<vmem>>, vector<18x15x128xbf16>,
    %c0_56 = arith.constant 0 : index
    %c0_57 = arith.constant 0 : index
    %c128_58 = arith.constant 128 : index
    %51 = vector.load %arg8[%c0_56, %c0_57, %c128_58] : memref<20x16x384xbf16, #tpu.memory_space<vmem>>, vector<18x16x128xbf16>
    tpu.vector_store %arg8[%c0_56, %c0_57, %c128_58], %46 {strides = array<i32>} : memref<20x16x384xbf16, #tpu.memory_space<vmem>>, vector<18x16x128xbf16>,
    %52 = vector.extract_strided_slice %46 {offsets = [0, 1, 0], sizes = [18, 15, 128], strides = [1, 1, 1]} : vector<18x16x128xbf16> to vector<18x15x128xbf16>
    %c0_59 = arith.constant 0 : index
    %c0_60 = arith.constant 0 : index
    %c256_61 = arith.constant 256 : index
    %53 = vector.load %arg8[%c0_59, %c0_60, %c256_61] : memref<20x16x384xbf16, #tpu.memory_space<vmem>>, vector<18x15x128xbf16>
    tpu.vector_store %arg8[%c0_59, %c0_60, %c256_61], %52 {strides = array<i32>} : memref<20x16x384xbf16, #tpu.memory_space<vmem>>, vector<18x15x128xbf16>,
    %cst_62 = arith.constant 0.000000e+00 : bf16
    %54 = vector.broadcast %cst_62 : bf16 to vector<18x1x128xbf16>
    %c0_63 = arith.constant 0 : index
    %c15 = arith.constant 15 : index
    %c256_64 = arith.constant 256 : index
    %55 = vector.load %arg8[%c0_63, %c15, %c256_64] : memref<20x16x384xbf16, #tpu.memory_space<vmem>>, vector<18x1x128xbf16>
    tpu.vector_store %arg8[%c0_63, %c15, %c256_64], %54 {strides = array<i32>} : memref<20x16x384xbf16, #tpu.memory_space<vmem>>, vector<18x1x128xbf16>,
    %c0_i32 = arith.constant 0 : i32
    %56 = arith.cmpi eq, %arg1, %c0_i32 : i32
    %57 = arith.extui %56 : i1 to i32
    %c0_i32_65 = arith.constant 0 : i32
    %58 = arith.cmpi ne, %57, %c0_i32_65 : i32
    scf.if %58 {
      %cst_108 = arith.constant 0.000000e+00 : bf16
      %94 = vector.broadcast %cst_108 : bf16 to vector<1x16x384xbf16>
      %c0_109 = arith.constant 0 : index
      %c0_110 = arith.constant 0 : index
      %c0_111 = arith.constant 0 : index
      %95 = vector.load %arg8[%c0_109, %c0_110, %c0_111] : memref<20x16x384xbf16, #tpu.memory_space<vmem>>, vector<1x16x384xbf16>
      tpu.vector_store %arg8[%c0_109, %c0_110, %c0_111], %94 {strides = array<i32>} : memref<20x16x384xbf16, #tpu.memory_space<vmem>>, vector<1x16x384xbf16>,
    } else {
    }
    %c0_i32_66 = arith.constant 0 : i32
    %59 = arith.cmpi eq, %arg1, %c0_i32_66 : i32
    %60 = arith.extui %59 : i1 to i32
    %c0_i32_67 = arith.constant 0 : i32
    %61 = arith.cmpi ne, %60, %c0_i32_67 : i32
    scf.if %61 {
      %cst_108 = arith.constant 0.000000e+00 : bf16
      %94 = vector.broadcast %cst_108 : bf16 to vector<1x16x384xbf16>
      %c17 = arith.constant 17 : index
      %c0_109 = arith.constant 0 : index
      %c0_110 = arith.constant 0 : index
      %95 = vector.load %arg8[%c17, %c0_109, %c0_110] : memref<20x16x384xbf16, #tpu.memory_space<vmem>>, vector<1x16x384xbf16>
      tpu.vector_store %arg8[%c17, %c0_109, %c0_110], %94 {strides = array<i32>} : memref<20x16x384xbf16, #tpu.memory_space<vmem>>, vector<1x16x384xbf16>,
    } else {
    }
    %c0_68 = arith.constant 0 : index
    %c0_69 = arith.constant 0 : index
    %c0_70 = arith.constant 0 : index
    %62 = vector.load %arg8[%c0_68, %c0_69, %c0_70] : memref<20x16x384xbf16, #tpu.memory_space<vmem>>, vector<16x16x384xbf16>
    %63 = vector.shape_cast %62 : vector<16x16x384xbf16> to vector<256x384xbf16>
    %c0_71 = arith.constant 0 : index
    %c0_72 = arith.constant 0 : index
    %64 = vector.load %arg10[%c0_71, %c0_72] : memref<256x128xf32, #tpu.memory_space<vmem>>, vector<256x128xf32>
    %c0_73 = arith.constant 0 : index
    %c0_74 = arith.constant 0 : index
    %c0_75 = arith.constant 0 : index
    %65 = vector.load %arg5[%c0_73, %c0_74, %c0_75] : memref<3x384x128xbf16, #tpu.memory_space<vmem>>, vector<1x384x128xbf16>
    %66 = vector.shape_cast %65 : vector<1x384x128xbf16> to vector<384x128xbf16>
    %cst_76 = arith.constant dense<0.000000e+00> : vector<256x128xf32>
    %67 = tpu.matmul %63, %66, %cst_76 {dimension_numbers = #tpu.dot_dimension_numbers<[1], [0], [0], [1], [0, 0, 1, 1], [], []>} : vector<256x384xbf16>, vector<384x128xbf16>, vector<256x128xf32> -> vector<256x128xf32>
    %68 = arith.addf %64, %67 : vector<256x128xf32>
    %c0_77 = arith.constant 0 : index
    %c0_78 = arith.constant 0 : index
    %69 = vector.load %arg10[%c0_77, %c0_78] : memref<256x128xf32, #tpu.memory_space<vmem>>, vector<256x128xf32>
    tpu.vector_store %arg10[%c0_77, %c0_78], %68 {strides = array<i32>} : memref<256x128xf32, #tpu.memory_space<vmem>>, vector<256x128xf32>,
    %c1_79 = arith.constant 1 : index
    %c0_80 = arith.constant 0 : index
    %c0_81 = arith.constant 0 : index
    %70 = vector.load %arg8[%c1_79, %c0_80, %c0_81] : memref<20x16x384xbf16, #tpu.memory_space<vmem>>, vector<16x16x384xbf16>
    %71 = vector.shape_cast %70 : vector<16x16x384xbf16> to vector<256x384xbf16>
    %c0_82 = arith.constant 0 : index
    %c0_83 = arith.constant 0 : index
    %72 = vector.load %arg10[%c0_82, %c0_83] : memref<256x128xf32, #tpu.memory_space<vmem>>, vector<256x128xf32>
    %c1_84 = arith.constant 1 : index
    %c0_85 = arith.constant 0 : index
    %c0_86 = arith.constant 0 : index
    %73 = vector.load %arg5[%c1_84, %c0_85, %c0_86] : memref<3x384x128xbf16, #tpu.memory_space<vmem>>, vector<1x384x128xbf16>
    %74 = vector.shape_cast %73 : vector<1x384x128xbf16> to vector<384x128xbf16>
    %cst_87 = arith.constant dense<0.000000e+00> : vector<256x128xf32>
    %75 = tpu.matmul %71, %74, %cst_87 {dimension_numbers = #tpu.dot_dimension_numbers<[1], [0], [0], [1], [0, 0, 1, 1], [], []>} : vector<256x384xbf16>, vector<384x128xbf16>, vector<256x128xf32> -> vector<256x128xf32>
    %76 = arith.addf %72, %75 : vector<256x128xf32>
    %c0_88 = arith.constant 0 : index
    %c0_89 = arith.constant 0 : index
    %77 = vector.load %arg10[%c0_88, %c0_89] : memref<256x128xf32, #tpu.memory_space<vmem>>, vector<256x128xf32>
    tpu.vector_store %arg10[%c0_88, %c0_89], %76 {strides = array<i32>} : memref<256x128xf32, #tpu.memory_space<vmem>>, vector<256x128xf32>,
    %c2_90 = arith.constant 2 : index
    %c0_91 = arith.constant 0 : index
    %c0_92 = arith.constant 0 : index
    %78 = vector.load %arg8[%c2_90, %c0_91, %c0_92] : memref<20x16x384xbf16, #tpu.memory_space<vmem>>, vector<16x16x384xbf16>
    %79 = vector.shape_cast %78 : vector<16x16x384xbf16> to vector<256x384xbf16>
    %c0_93 = arith.constant 0 : index
    %c0_94 = arith.constant 0 : index
    %80 = vector.load %arg10[%c0_93, %c0_94] : memref<256x128xf32, #tpu.memory_space<vmem>>, vector<256x128xf32>
    %c2_95 = arith.constant 2 : index
    %c0_96 = arith.constant 0 : index
    %c0_97 = arith.constant 0 : index
    %81 = vector.load %arg5[%c2_95, %c0_96, %c0_97] : memref<3x384x128xbf16, #tpu.memory_space<vmem>>, vector<1x384x128xbf16>
    %82 = vector.shape_cast %81 : vector<1x384x128xbf16> to vector<384x128xbf16>
    %cst_98 = arith.constant dense<0.000000e+00> : vector<256x128xf32>
    %83 = tpu.matmul %79, %82, %cst_98 {dimension_numbers = #tpu.dot_dimension_numbers<[1], [0], [0], [1], [0, 0, 1, 1], [], []>} : vector<256x384xbf16>, vector<384x128xbf16>, vector<256x128xf32> -> vector<256x128xf32>
    %84 = arith.addf %80, %83 : vector<256x128xf32>
    %c0_99 = arith.constant 0 : index
    %c0_100 = arith.constant 0 : index
    %85 = vector.load %arg10[%c0_99, %c0_100] : memref<256x128xf32, #tpu.memory_space<vmem>>, vector<256x128xf32>
    tpu.vector_store %arg10[%c0_99, %c0_100], %84 {strides = array<i32>} : memref<256x128xf32, #tpu.memory_space<vmem>>, vector<256x128xf32>,
    %c0_101 = arith.constant 0 : index
    %c0_102 = arith.constant 0 : index
    %86 = vector.load %arg10[%c0_101, %c0_102] : memref<256x128xf32, #tpu.memory_space<vmem>>, vector<256x128xf32>
    %cst_103 = arith.constant 0.000000e+00 : f32
    %87 = vector.broadcast %cst_103 : f32 to vector<256x128xf32>
    %88 = arith.maximumf %86, %87 : vector<256x128xf32>
    %89 = vector.shape_cast %88 : vector<256x128xf32> to vector<16x16x128xf32>
    %90 = arith.truncf %89 : vector<16x16x128xf32> to vector<16x16x128xbf16>
    %c0_104 = arith.constant 0 : index
    %c0_105 = arith.constant 0 : index
    %c0_106 = arith.constant 0 : index
    %c0_107 = arith.constant 0 : index
    %91 = vector.load %arg7[%c0_104, %c0_105, %c0_106, %c0_107] : memref<1x16x16x128xbf16, #tpu.memory_space<vmem>>, vector<1x16x16x128xbf16>
    %92 = vector.shape_cast %91 : vector<1x16x16x128xbf16> to vector<16x16x128xbf16>
    %93 = vector.shape_cast %90 : vector<16x16x128xbf16> to vector<1x16x16x128xbf16>
    tpu.vector_store %arg7[%c0_104, %c0_105, %c0_106, %c0_107], %93 {strides = array<i32>} : memref<1x16x16x128xbf16, #tpu.memory_space<vmem>>, vector<1x16x16x128xbf16>,
    return
  }
  func.func @transform_0(%arg0: i32, %arg1: i32) -> (i32, i32, i32, i32) {
    %c0_i32 = arith.constant 0 : i32
    %c0_i32_0 = arith.constant 0 : i32
    %c0_i32_1 = arith.constant 0 : i32
    %c0_i32_2 = arith.constant 0 : i32
    return %arg0, %c0_i32, %c0_i32_0, %c0_i32_1 : i32, i32, i32, i32
  }
  func.func @transform_1(%arg0: i32, %arg1: i32) -> (i32, i32, i32) {
    %c0_i32 = arith.constant 0 : i32
    %c0_i32_0 = arith.constant 0 : i32
    %c0_i32_1 = arith.constant 0 : i32
    %c0_i32_2 = arith.constant 0 : i32
    return %c0_i32, %c0_i32_0, %c0_i32_1 : i32, i32, i32
  }
  func.func @transform_2(%arg0: i32, %arg1: i32) -> (i32, i32) {
    %c0_i32 = arith.constant 0 : i32
    %c0_i32_0 = arith.constant 0 : i32
    %c0_i32_1 = arith.constant 0 : i32
    return %c0_i32, %c0_i32_0 : i32, i32
  }
  func.func @transform_3(%arg0: i32, %arg1: i32) -> (i32, i32, i32) {
    %c0_i32 = arith.constant 0 : i32
    %c0_i32_0 = arith.constant 0 : i32
    %c0_i32_1 = arith.constant 0 : i32
    %c0_i32_2 = arith.constant 0 : i32
    return %c0_i32, %c0_i32_0, %c0_i32_1 : i32, i32, i32
  }
  func.func @transform_4(%arg0: i32, %arg1: i32) -> (i32, i32) {
    %c0_i32 = arith.constant 0 : i32
    %c0_i32_0 = arith.constant 0 : i32
    %c0_i32_1 = arith.constant 0 : i32
    return %c0_i32, %c0_i32_0 : i32, i32
  }
  func.func @transform_5(%arg0: i32, %arg1: i32) -> (i32, i32, i32, i32) {
    %c0_i32 = arith.constant 0 : i32
    %c0_i32_0 = arith.constant 0 : i32
    %c0_i32_1 = arith.constant 0 : i32
    return %arg0, %arg1, %c0_i32, %c0_i32_0 : i32, i32, i32, i32
  }
}

</mosaic_0001>

<bundles_post_ra>
// kernel: tpu_custom_call.1
= control target key start
LH: loop header
LB: loop body
LE: loop exit
PB: predicated region body
PF: predicated region fallthrough
CT: control target
= control target key end

     0   :  { %10 = vsyncpa [#allocation6], 0  ;;  %s10172_s0 = inlined_call_operand.vmem [shape: bf16[2,20,18,128], index: 0, kind: input, shape index: {}]   ;;  %s10173_s1 = inlined_call_operand.vmem [shape: bf16[3,384,128], index: 1, kind: input, shape index: {}]   ;;  %s10174_s2 = inlined_call_operand.vmem [shape: f32[1,128], index: 2, kind: input, shape index: {}]   ;;  %s10175_s3 = inlined_call_operand.hbm [shape: bf16[3,384,128], index: 3, kind: input, shape index: {}]   ;;  %s10176_s4 = inlined_call_operand.vmem [shape: f32[1,128], index: 4, kind: input, shape index: {}]   ;;  %s10177_s5 = inlined_call_operand.hbm [shape: bf16[2,16,16,128], index: 5, kind: output, shape index: {}]  }
   0x1   :  { %11 = vsyncpa [#allocation7], 0 }
   0x2   :  { %13 = vsyncpa [#allocation7 + $0x1], 0  ;;  %s7812_s18 = smov 0   ;;  %s7814_s19 = smov 0  }
   0x3   :  { %s7816_s20 = smov 0   ;;  %s7818_s21 = smov 0  }
   0x4   :  { %s7820_s22 = smov 0   ;;  %s7822_s23 = smov 0  }
   0x5 LB: > { %s5929_s24 = sadd.s32 4294967295, %s7773_s23   ;;  %s5930_s25 = sadd.s32 4294967294, %s7773_s23   ;;  %s7773_s23 = sphi %s7822_s23, %s19_s23   ;;  %s7769_s22 = sphi %s7820_s22, %s10324_s22   ;;  %s7765_s21 = sphi %s7818_s21, %s10323_s21   ;;  %s7761_s20 = sphi %s7816_s20, %s10322_s20   ;;  %s7757_s19 = sphi %s7814_s19, %s10321_s19   ;;  %s7753_s18 = sphi %s7812_s18, %s10320_s18  }
   0x6   : > { %s31_s26 = sadd.s32 1, %s7769_s22  ;;  %s150_s27 = sadd.s32 1, %s7761_s20 }
   0x7   : > { %p33_p0 = scmp.ge.s32.totalorder %s31_s26, 2  ;;  %p160_p1 = scmp.ne.s32.totalorder %s7761_s20, %s7757_s19 }
   0x8   : > { %p161_p2 = scmp.eq.s32.totalorder %s5929_s24, 1  ;;  %p166_p3 = scmp.ne.s32.totalorder %s7757_s19, %s7753_s18 }
   0x9   : > { %s10326_s26 = smov (%p33_p0, %s31_s26), 0  ;;  %p167_p5 = scmp.eq.s32.totalorder %s5930_s25, 1 }
   0xa   : > { %p7852_p4 = por %p161_p2, %p160_p1  ;;  %s145_s29 = ssub.s32 %s7769_s22, %s10326_s26 }
   0xb   : > { %p5931_p6 = scmp.ge.s32.totalorder %s7773_s23, 1  ;;  %p148_p7 = scmp.eq.s32.totalorder %s145_s29, 0 }
   0xc   : > { %s10187_s28 = scalar_select %p7852_p4, 1, 0 }
   0xd   : > { %p7859_p8 = por %p167_p5, %p166_p3  ;;  %p174_p9 = scmp.lt.s32.totalorder %s7773_s23, 3 }
   0xe   : > { %s7865_s6 = scalar_select %p148_p7, %s7761_s20, %s150_s27  }
   0xf   : > { %s10188_s30 = scalar_select %p7859_p8, 1, 0 }
  0x10   : > { %p7867_p10 = pnand %p5931_p6, %p174_p9  ;;  %p7871_p11 = scmp.eq.s32.totalorder %s5929_s24, 0 }
  0x11   : > { %s7775_s9 = smov [#allocation5]   ;;  %s7663_s14 = scalar_lea.hbm %s10175_s3, 9216 }
  0x12   : > { %s10189_s7 = scalar_select %p7867_p10, 1, 0 }
  0x13   : > { %s10190_s8 = scalar_select %p7871_p11, 1, 0 }
  0x14   : > { %p7402_p12 = pneg %p7867_p10  ;;  %s192_s10 = sshll.u32 %s7775_s9, 4  ;;  %s193_s10 = int_to_ptr.vmem [resolvable:$true] %s192_s10 }
  0x15   : > { %p7664_p0 = scmp.ne.s32.totalorder %s10175_s3, %s7663_s14  ;;  %p7670_p5 = scmp.lt.u32.totalorder %s7663_s14, %s10175_s3 }
  0x16   : > { %p7879_p13 = pnand %p7871_p11, %p7402_p12 }
  0x18   : > { %p7665_p1 = pneg %p7879_p13 }
  0x1a   : > { %p7666_p2 = pnand %p7665_p1, %p7664_p0 }
  0x1c   : > { %p7667_p3 = pneg %p7666_p2 }
  0x1e   : > { %p7672_p6 = pnand %p7670_p5, %p7667_p3 }
  0x20   : > { %7675 = shalt.err (!%p7672_p6)
}
  0x21   : > { %s7676_s25 = scalar_lea.vmem %s193_s10, 9216  ;;  %p7684_p8 = scmp.lt.s32.totalorder %s193_s10, %s193_s10 }
  0x22   : > { %p7677_p7 = scmp.ne.s32.totalorder %s193_s10, %s7676_s25  ;;  %p7685_p4 = scmp.lt.s32.totalorder %s7676_s25, %s7676_s25 }
  0x24   : > { %p7679_p9 = pnand %p7677_p7, %p7665_p1  ;;  %p7686_p11 = por %p7685_p4, %p7684_p8 }
  0x26   : > { %p7680_p12 = pneg %p7679_p9 }
  0x28   : > { %p7687_p10 = pnand %p7686_p11, %p7680_p12 }
  0x2a   : > { %7690 = shalt.err (!%p7687_p10)
}
  0x2b   : > { %s7776_s27 = smov 64   ;;  %s7777_s29 = smov 4  }
  0x2c   : > { %7405 = dma.hbm_to_vmem [thread:$0]  (!%p7879_p13), %s10175_s3, 9216, %s193_s10, [#allocation6], %s7776_s27, %s7776_s27, %s7777_s29  }
  0x2d   : > { %p10192_p0 = scmp.ne.s32.totalorder %s10189_s7, 0 }
  0x2f   : > { %219 = sbr.rel (%p10192_p0) target bundleno = 1192 (0x4a8), region = 40 }
  0x36   : > { %p10193_p2 = scmp.ne.s32.totalorder %s10190_s8, 0 }
  0x38   : > { %7744 = dma.done.wait (%p10193_p2), [#allocation6], 9216  }
  0x39   : > { %7746 = vsyncadd (%p10193_p2), [#allocation6], 4294958080  ;;  %v7778_v0 = vmov 0   ;;  %v7467_v1 = vld [vmem:[%s10173_s1] sm:$0xff]   ;;  %v7468_v2 = vld [vmem:[%s10173_s1 + $0x8] sm:$0xff]   ;;  %p247_p4 = scmp.lt.s32.totalorder %s7765_s21, 1 }
  0x3a   : > { %1273 = vmatprep.subr.bf16.mxu0 %v7778_v0  ;;  %3619 = vst [vmem:[#allocation2 + $0x8] sm:$0xff] %v7778_v0  ;;  %v7469_v3 = vld [vmem:[%s10173_s1 + $0x10] sm:$0xff]   ;;  %v7476_v4 = vld [vmem:[%s10173_s1 + $0x80] sm:$0xff]   ;;  %v7470_v5 = vld [vmem:[%s10173_s1 + $0x18] sm:$0xff]   ;;  %vm518_vm0 = vsmask.f32 7424 }
  0x3b   : > { %1274 = vmatpush1.bf16.msra.mxu0 %v7467_v1  ;;  %6871 = vmatprep.subr.bf16.mxu1 %v7476_v4  ;;  %v7478_v6 = vld [vmem:[%s10173_s1 + $0x88] sm:$0xff]   ;;  %v7480_v7 = vld [vmem:[%s10173_s1 + $0x90] sm:$0xff]   ;;  %v7471_v8 = vld [vmem:[%s10173_s1 + $0x20] sm:$0xff]   ;;  %s248_s13 = scalar_select %p247_p4, %s7765_s21, 1  ;;  %vm3172_vm1 = vcmask 1040384   ;;  %vm799_vm3 = vcmask 1046528  }
  0x3c   : > { %1275 = vmatprep.subr.bf16.mxu0 %v7778_v0  ;;  %6872 = vmatpush3.bf16.msra.mxu1 %v7476_v4  ;;  %v7482_v9 = vld [vmem:[%s10173_s1 + $0x98] sm:$0xff]   ;;  %v7472_v10 = vld [vmem:[%s10173_s1 + $0x28] sm:$0xff]   ;;  %v7484_v11 = vld [vmem:[%s10173_s1 + $0xa0] sm:$0xff]   ;;  %vm3173_vm2 = vsmask.f32 256  ;;  %vm3373_vm5 = vcmask 1047552  }
  0x3d   : > { %6873 = vmatprep.subr.bf16.mxu1 %v7478_v6  ;;  %s7395_s15 = smul.u32 240, %s248_s13  ;;  %v7473_v12 = vld [vmem:[%s10173_s1 + $0x30] sm:$0xff]   ;;  %v7486_v13 = vld [vmem:[%s10173_s1 + $0xa8] sm:$0xff]   ;;  %v7474_v14 = vld [vmem:[%s10173_s1 + $0x38] sm:$0xff]   ;;  %vm3374_vm6 = vsmask.f32 7938 }
  0x3e   : > { %v7475_v22 = vld [vmem:[%s10173_s1 + $0x40] sm:$0xff]   ;;  %v7488_v23 = vld [vmem:[%s10173_s1 + $0xb0] sm:$0xff]   ;;  %v7490_v34 = vld [vmem:[%s10173_s1 + $0xb8] sm:$0xff]   ;;  %vm3557_vm9 = vcmask 1047559   ;;  %vm3558_vm10 = vsmask.f32 7966 }
  0x3f   : > { %1276 = vmatpush1.bf16.msra.mxu0 %v7468_v2  ;;  %s7953_s9 = scalar_lea.vmem %s10172_s0, %s7395_s15  ;;  %v7477_v44 = vld [vmem:[%s10173_s1 + $0x48] sm:$0xff]   ;;  %vm8007_vm4 = vmand %vm3172_vm1, %vm3173_vm2  ;;  %v7479_v54 = vld [vmem:[%s10173_s1 + $0x50] sm:$0xff]   ;;  %s244_s25 = sand.u32 1, %s7757_s19  }
  0x40   : > { %1277 = vmatprep.subr.bf16.mxu0 %v7778_v0  ;;  %6874 = vmatpush3.bf16.msra.mxu1 %v7478_v6  ;;  %v7963_v15 = vld [vmem:[%s7953_s9] sm:$0xff]   ;;  %v7492_v16 = vld [vmem:[%s7953_s9 + $0x8] ss:$0 sps:$4 sm:$0x11]   ;;  %v7967_v17 = vld [vmem:[%s7953_s9 + $0xc] sm:$0xff]   ;;  %s6289_s29 = sshll.u32 %s7765_s21, 11 }
  0x41   : > { %6875 = vmatprep.subr.bf16.mxu1 %v7480_v7  ;;  %v520_v18 = vshrl.u32 %v7963_v15, 16  ;;  %v522_v19 = vshll.u32 %v7963_v15, 16  ;;  %v527_v20 = vshll.u32 %v7492_v16, 16  ;;  %438 = vst [vmem:[#allocation2] sm:$0xff] %v7963_v15  ;;  %v800_v21 = vrot.slane %v7963_v15, 1  ;;  %439 = vst [vmem:[#allocation2 + $0x18] sm:$0xff] %v7967_v17  ;;  %s10118_s10 = scalar_lea.hbm %s10177_s5, %s6289_s29 }
  0x42   : > { %v801_v24 = vrot.slane %v7492_v16, 1  ;;  %v7494_v25 = vld [vmem:[%s7953_s9 + $0x14] ss:$0 sps:$4 sm:$0x11]   ;;  %v803_v26 = vrot.slane %v7967_v17, 1  ;;  %v532_v29 = vshrl.u32 %v7967_v17, 16  ;;  %vm9309_vm7 = vmand %vm3373_vm5, %vm3374_vm6 }
  0x43   : > { %1278 = vmatpush1.bf16.msra.mxu0 %v7469_v3  ;;  %v524_v27 = vrot.slane %v522_v19, 1  ;;  %v529_v28 = vrot.slane %v527_v20, 1  ;;  %v534_v30 = vshll.u32 %v7967_v17, 16  ;;  %v804_v32 = vrot.slane %v7494_v25, 1  ;;  %v7994_v39 = vld [vmem:[%s7953_s9 + $0x18] sm:$0xff]   ;;  %v8000_v43 = vld [vmem:[%s7953_s9 + $0x24] sm:$0xff]   ;;  %vm9316_vm8 = vmand %vm3373_vm5, %vm518_vm0 }
  0x44   : > { %1279 = vmatprep.subr.bf16.mxu0 %v7778_v0  ;;  %6876 = vmatpush3.bf16.msra.mxu1 %v7480_v7  ;;  %v802_v31 = vsel %vm799_vm3, %v800_v21, %v801_v24  ;;  %v539_v33 = vshll.u32 %v7494_v25, 16  ;;  %v7498_v42 = vld [vmem:[%s7953_s9 + $0x20] ss:$0 sps:$4 sm:$0x11]   ;;  %v544_v47 = vshrl.u32 %v7994_v39, 16  ;;  %v546_v48 = vshll.u32 %v7994_v39, 16  ;;  %vm9350_vm11 = vmand %vm3557_vm9, %vm3558_vm10 }
  0x45   : > { %6877 = vmatprep.subr.bf16.mxu1 %v7482_v9  ;;  %v525_v35 = vor.u32 %v524_v27, %v520_v18  ;;  %880 = vst [vmem:[#allocation2 + $0x10] sm:$0xff] %v802_v31  ;;  %6887 = vmatprep.mubr.bf16.mxu1 %v802_v31  ;;  %v536_v36 = vrot.slane %v534_v30, 1  ;;  %v7991_v37 = vsel %vm799_vm3, %v803_v26, %v804_v32  ;;  %440 = vst [vmem:[#allocation2 + $0x30] sm:$0xff] %v7994_v39  ;;  %v7500_v56 = vld [vmem:[%s7953_s9 + $0x2c] ss:$0 sps:$4 sm:$0x11]  }
  0x46   : > { %v541_v38 = vrot.slane %v539_v33, 1  ;;  %881 = vst [vmem:[#allocation2 + $0x28] sm:$0xff] %v7991_v37  ;;  %v806_v49 = vrot.slane %v7994_v39, 1  ;;  %v551_v52 = vshll.u32 %v7498_v42, 16  ;;  %v807_v53 = vrot.slane %v7498_v42, 1  ;;  %441 = vst [vmem:[#allocation2 + $0x48] sm:$0xff] %v8000_v43 }
  0x47   : > { %1280 = vmatpush1.bf16.msra.mxu0 %v7470_v5  ;;  %v530_v40 = vsel %vm518_vm0, %v525_v35, %v529_v28  ;;  %v537_v41 = vor.u32 %v536_v36, %v532_v29  ;;  %v548_v55 = vrot.slane %v546_v48, 1  ;;  %v809_v57 = vrot.slane %v8000_v43, 1  ;;  %v8035_v62 = vld [vmem:[%s10173_s1 + $0xc0] sm:$0xff]   ;;  %v8039_v4 = vld [vmem:[%s7953_s9 + $0x30] sm:$0xff]   ;;  %v7481_v5 = vld [vmem:[%s10173_s1 + $0x58] sm:$0xff]   ;;  %s10126_s21 = scalar_lea.sflag [#allocation7], %s244_s25 }
  0x48   : > { %1281 = vmatprep.subr.bf16.mxu0 %v7778_v0  ;;  %6878 = vmatpush3.bf16.msra.mxu1 %v7482_v9  ;;  %v3175_v46 = vld [vmem:[#allocation2] sm:$0x1]  ;;  %v556_v58 = vshrl.u32 %v8000_v43, 16  ;;  %v553_v59 = vrot.slane %v551_v52, 1  ;;  %v808_v60 = vsel %vm799_vm3, %v806_v49, %v807_v53  ;;  %v558_v61 = vshll.u32 %v8000_v43, 16  ;;  %442 = vst [vmem:[#allocation2 + $0x60] sm:$0xff] %v8039_v4 }
  0x49   : > { %6879 = vmatprep.subr.bf16.mxu1 %v7484_v11  ;;  %1305 = vmatprep.mubr.bf16.mxu0 %v530_v40  ;;  %v3176_v50 = vsel %vm8007_vm4, 0, %v3175_v46  ;;  %v8019_v51 = vsel %vm518_vm0, %v537_v41, %v541_v38  ;;  %v549_v63 = vor.u32 %v548_v55, %v544_v47  ;;  %882 = vst [vmem:[#allocation2 + $0x40] sm:$0xff] %v808_v60  ;;  %v810_v1 = vrot.slane %v7500_v56, 1  ;;  %v7504_v9 = vld [vmem:[%s7953_s9 + $0x38] ss:$0 sps:$4 sm:$0x11]  }
  0x4a   : > { %3177 = vst [vmem:[#allocation2] sm:$0x1] %v3176_v50  ;;  %780 = vst [vmem:[#allocation2 + $0x20] sm:$0xff] %v8019_v51  ;;  %v563_v2 = vshll.u32 %v7500_v56, 16  ;;  %v560_v3 = vrot.slane %v558_v61, 1  ;;  %v575_v16 = vshll.u32 %v7504_v9, 16 }
  0x4b   : > { %1282 = vmatpush1.bf16.msra.mxu0 %v7471_v8  ;;  %3618 = vst [vmem:[#allocation2] sm:$0xff] %v7778_v0  ;;  %v8045_v6 = vsel %vm518_vm0, %v549_v63, %v553_v59  ;;  %v8048_v7 = vsel %vm799_vm3, %v809_v57, %v810_v1  ;;  %v813_v18 = vrot.slane %v7504_v9, 1  ;;  %v8066_v19 = vld [vmem:[%s10173_s1 + $0xc8] sm:$0xff]   ;;  %v7483_v27 = vld [vmem:[%s10173_s1 + $0x60] sm:$0xff]   ;;  %v8086_v32 = vld [vmem:[%s10173_s1 + $0xd0] sm:$0xff]   ;;  %p10318_p10 = scmp.ne.s32.totalorder %s10187_s28, 0 }
  0x4c   : > { %1283 = vmatprep.subr.bf16.mxu0 %v7778_v0  ;;  %6880 = vmatpush3.bf16.msra.mxu1 %v7484_v11  ;;  %v565_v8 = vrot.slane %v563_v2, 1  ;;  %781 = vst [vmem:[#allocation2 + $0x38] sm:$0xff] %v8045_v6  ;;  %883 = vst [vmem:[#allocation2 + $0x58] sm:$0xff] %v8048_v7  ;;  %v568_v11 = vshrl.u32 %v8039_v4, 16  ;;  %v577_v24 = vrot.slane %v575_v16, 1  ;;  %v8099_v38 = vld [vmem:[%s7953_s9 + $0x54] sm:$0xff]  }
  0x4d   : > { %6881 = vmatprep.subr.bf16.mxu1 %v7486_v13  ;;  %v7510_v40 = vld [vmem:[%s7953_s9 + $0x50] ss:$0 sps:$4 sm:$0x11]   ;;  %v8106_v41 = vld [vmem:[%s7953_s9 + $0x60] sm:$0xff]   ;;  %v7485_v42 = vld [vmem:[%s10173_s1 + $0x68] sm:$0xff]   ;;  %445 = vst [vmem:[#allocation2 + $0xa8] sm:$0xff] %v8099_v38 }
  0x4e   : > { %v8120_v49 = vld [vmem:[%s10173_s1 + $0xd8] sm:$0xff]   ;;  %v599_v50 = vshll.u32 %v7510_v40, 16  ;;  %v819_v52 = vrot.slane %v7510_v40, 1  ;;  %v821_v53 = vrot.slane %v8099_v38, 1  ;;  %446 = vst [vmem:[#allocation2 + $0xc0] sm:$0xff] %v8106_v41  ;;  %v824_v59 = vrot.slane %v8106_v41, 1 }
  0x4f   : > { %1284 = vmatpush1.bf16.msra.mxu0 %v7472_v10  ;;  %v561_v10 = vor.u32 %v560_v3, %v556_v58  ;;  %v7512_v57 = vld [vmem:[%s7953_s9 + $0x5c] ss:$0 sps:$4 sm:$0x11]   ;;  %v606_v58 = vshll.u32 %v8099_v38, 16  ;;  %v8137_v63 = vld [vmem:[%s7953_s9 + $0x6c] sm:$0xff]   ;;  %s7779_s8 = smov [#allocation8]  }
  0x50   : > { %1285 = vmatprep.subr.bf16.mxu0 %v7778_v0  ;;  %6882 = vmatpush3.bf16.msra.mxu1 %v7486_v13  ;;  %v812_v13 = vrot.slane %v8039_v4, 1  ;;  %v7487_v1 = vld [vmem:[%s10173_s1 + $0x70] sm:$0xff]   ;;  %v822_v3 = vrot.slane %v7512_v57, 1  ;;  %v7514_v9 = vld [vmem:[%s7953_s9 + $0x68] ss:$0 sps:$4 sm:$0x11]  }
  0x51   : > { %6883 = vmatprep.subr.bf16.mxu1 %v7488_v23  ;;  %v8069_v20 = vsel %vm518_vm0, %v561_v10, %v565_v8  ;;  %v8146_v8 = vld [vmem:[%s10173_s1 + $0xe0] sm:$0xff]   ;;  %v827_v10 = vrot.slane %v8137_v63, 1  ;;  %447 = vst [vmem:[#allocation2 + $0xd8] sm:$0xff] %v8137_v63  ;;  %v7570_v45 = vld [vmem:[%s10173_s1 + $0x208] sm:$0xff]   ;;  %s7695_s14 = sshll.u32 %s7779_s8, 4  ;;  %s7696_s14 = int_to_ptr.vmem [resolvable:$false] %s7695_s14 }
  0x52   : > { %782 = vst [vmem:[#allocation2 + $0x50] sm:$0xff] %v8069_v20  ;;  %v814_v25 = vsel %vm799_vm3, %v812_v13, %v813_v18  ;;  %v8157_v18 = vld [vmem:[%s7953_s9 + $0x78] sm:$0xff]   ;;  %v8184_v40 = vld [vmem:[%s7953_s9 + $0x80] ss:$0 sps:$4 sm:$0x11]   ;;  %s7697_s15 = scalar_lea.vmem %s7696_s14, 4096 }
  0x53   : > { %1286 = vmatpush1.bf16.msra.mxu0 %v7473_v12  ;;  %v570_v12 = vshll.u32 %v8039_v4, 16  ;;  %884 = vst [vmem:[#allocation2 + $0x70] sm:$0xff] %v814_v25  ;;  %448 = vst [vmem:[#allocation2 + $0xf0] sm:$0xff] %v8157_v18 }
  0x54   : > { %1287 = vmatprep.subr.bf16.mxu0 %v7778_v0  ;;  %6884 = vmatpush3.bf16.msra.mxu1 %v7488_v23 }
  0x55   : > { %6885 = vmatprep.subr.bf16.mxu1 %v7490_v34  ;;  %v572_v21 = vrot.slane %v570_v12, 1  ;;  %v823_v12 = vsel %vm799_vm3, %v821_v53, %v822_v3  ;;  %v8209_v53 = vld [vmem:[%s10173_s1 + $0xf0] sm:$0xff]  }
  0x56   : > { %887 = vst [vmem:[#allocation2 + $0xb8] sm:$0xff] %v823_v12 }
  0x57   : > { %1288 = vmatpush1.bf16.msra.mxu0 %v7474_v14  ;;  %v8059_v14 = vld [vmem:[%s7953_s9 + $0x3c] sm:$0xff]   ;;  %v573_v28 = vor.u32 %v572_v21, %v568_v11 }
  0x58   : > { %1289 = vmatprep.subr.bf16.mxu0 %v7778_v0  ;;  %6886 = vmatpush3.bf16.msra.mxu1 %v7490_v34  ;;  %v815_v23 = vrot.slane %v8059_v14, 1  ;;  %443 = vst [vmem:[#allocation2 + $0x78] sm:$0xff] %v8059_v14  ;;  %v580_v26 = vshrl.u32 %v8059_v14, 16  ;;  %v582_v30 = vshll.u32 %v8059_v14, 16  ;;  %v7489_v21 = vld [vmem:[%s10173_s1 + $0x78] sm:$0xff]  }
  0x59   : > { %7171 = vmatprep.subr.bf16.mxu1 %v7778_v0  ;;  %v8090_v33 = vsel %vm518_vm0, %v573_v28, %v577_v24 }
  0x5a   : > { %v584_v35 = vrot.slane %v582_v30, 1  ;;  %783 = vst [vmem:[#allocation2 + $0x68] sm:$0xff] %v8090_v33  ;;  %v830_v30 = vrot.slane %v8157_v18, 1 }
  0x5b   : > { %1290 = vmatpush1.bf16.msra.mxu0 %v7475_v22  ;;  %6888 = vmatmul.mubr.bf16.vlgmr.msra.gmra.mrb[0].mxu1 %v7991_v37  ;;  %v7506_v22 = vld [vmem:[%s7953_s9 + $0x44] ss:$0 sps:$4 sm:$0x11]   ;;  %v8096_v37 = vld [vmem:[%s7953_s9 + $0x48] sm:$0xff]  }
  0x5c   : > { %1291 = vmatprep.subr.bf16.mxu0 %v7778_v0  ;;  %6891 = vmatprep.mubr.bf16.mxu1 %v808_v60  ;;  %v816_v29 = vrot.slane %v7506_v22, 1  ;;  %v587_v31 = vshll.u32 %v7506_v22, 16  ;;  %v592_v46 = vshrl.u32 %v8096_v37, 16  ;;  %v594_v47 = vshll.u32 %v8096_v37, 16  ;;  %444 = vst [vmem:[#allocation2 + $0x90] sm:$0xff] %v8096_v37 }
  0x5d   : > { %7187 = vmatpush1.bf16.msra.mxu1 %v8035_v62  ;;  %v818_v48 = vrot.slane %v8096_v37, 1  ;;  %v601_v60 = vrot.slane %v599_v50, 1  ;;  %v825_v22 = vrot.slane %v7514_v9, 1 }
  0x5e   : > { %7172 = vmatprep.subr.bf16.mxu1 %v7778_v0  ;;  %v8093_v34 = vsel %vm799_vm3, %v815_v23, %v816_v29  ;;  %v589_v36 = vrot.slane %v587_v31, 1  ;;  %v596_v56 = vrot.slane %v594_v47, 1  ;;  %v616_v23 = vshrl.u32 %v8106_v41, 16  ;;  %v8196_v47 = vld [vmem:[%s7953_s9 + $0x8c] ss:$0 sps:$4 sm:$0x11]  }
  0x5f   : > { %1292 = vmatpush1.bf16.msra.mxu0 %v7477_v44  ;;  %885 = vst [vmem:[#allocation2 + $0x88] sm:$0xff] %v8093_v34  ;;  %v585_v44 = vor.u32 %v584_v35, %v580_v26  ;;  %v820_v61 = vsel %vm799_vm3, %v818_v48, %v819_v52  ;;  %v618_v26 = vshll.u32 %v8106_v41, 16  ;;  %v826_v28 = vsel %vm799_vm3, %v824_v59, %v825_v22  ;;  %v8222_v59 = vld [vmem:[%s10173_s1 + $0xf8] sm:$0xff]  }
  0x60   : > { %1293 = vmatprep.subr.bf16.mxu0 %v7778_v0  ;;  %v597_v2 = vor.u32 %v596_v56, %v592_v46  ;;  %886 = vst [vmem:[#allocation2 + $0xa0] sm:$0xff] %v820_v61  ;;  %v623_v29 = vshll.u32 %v7514_v9, 16  ;;  %888 = vst [vmem:[#allocation2 + $0xd0] sm:$0xff] %v826_v28  ;;  %v8191_v46 = vld [vmem:[%s7953_s9 + $0x84] sm:$0xff]   ;;  %v628_v52 = vshrl.u32 %v8137_v63, 16  ;;  %v834_v56 = vrot.slane %v8196_v47, 1 }
  0x61   : > { %7188 = vmatpush1.bf16.msra.mxu1 %v8066_v19  ;;  %v8128_v55 = vsel %vm518_vm0, %v585_v44, %v589_v36  ;;  %v620_v35 = vrot.slane %v618_v26, 1  ;;  %v833_v50 = vrot.slane %v8191_v46, 1  ;;  %449 = vst [vmem:[#allocation2 + $0x108] sm:$0xff] %v8191_v46  ;;  %v8250_v9 = vld [vmem:[%s10173_s1 + $0x100] sm:$0xff]   ;;  %v647_v22 = vshll.u32 %v8184_v40, 16 }
  0x62   : > { %7173 = vmatprep.subr.bf16.mxu1 %v7778_v0  ;;  %784 = vst [vmem:[#allocation2 + $0x80] sm:$0xff] %v8128_v55  ;;  %v8153_v11 = vsel %vm518_vm0, %v597_v2, %v601_v60  ;;  %v625_v36 = vrot.slane %v623_v29, 1  ;;  %v8231_v2 = vld [vmem:[%s7953_s9 + $0x98] ss:$0 sps:$4 sm:$0x11]  }
  0x63   : > { %1294 = vmatpush1.bf16.msra.mxu0 %v7479_v54  ;;  %v604_v54 = vshrl.u32 %v8099_v38, 16  ;;  %6892 = vmatmul.mubr.bf16.gmra.mrb[4].mxu1 %v8048_v7  ;;  %v611_v7 = vshll.u32 %v7512_v57, 16  ;;  %785 = vst [vmem:[#allocation2 + $0x98] sm:$0xff] %v8153_v11  ;;  %v621_v44 = vor.u32 %v620_v35, %v616_v23  ;;  %v630_v57 = vshll.u32 %v8137_v63, 16  ;;  %v8268_v23 = vld [vmem:[%s7953_s9 + $0xa8] sm:$0xff]  }
  0x64   : > { %1295 = vmatprep.subr.bf16.mxu0 %v7778_v0  ;;  %6895 = vmatprep.mubr.bf16.mxu1 %v814_v25  ;;  %v7517_v25 = vld [vmem:[%s7953_s9 + $0x74] ss:$0 sps:$4 sm:$0x11]   ;;  %v8225_v60 = vsel %vm799_vm3, %v833_v50, %v834_v56  ;;  %v837_v3 = vrot.slane %v8231_v2, 1  ;;  %452 = vst [vmem:[#allocation2 + $0x150] sm:$0xff] %v8268_v23  ;;  %v654_v50 = vshll.u32 %v8191_v46, 16 }
  0x65   : > { %7189 = vmatpush1.bf16.msra.mxu1 %v8086_v32  ;;  %v613_v16 = vrot.slane %v611_v7, 1  ;;  %v828_v31 = vrot.slane %v7517_v25, 1  ;;  %v8200_v48 = vsel %vm518_vm0, %v621_v44, %v625_v36  ;;  %891 = vst [vmem:[#allocation2 + $0x118] sm:$0xff] %v8225_v60  ;;  %v8243_v7 = vld [vmem:[%s7953_s9 + $0xa4] ss:$0 sps:$4 sm:$0x11]  }
  0x66   : > { %7174 = vmatprep.subr.bf16.mxu1 %v7778_v0  ;;  %787 = vst [vmem:[#allocation2 + $0xc8] sm:$0xff] %v8200_v48  ;;  %v8278_v29 = vld [vmem:[%s7953_s9 + $0xb0] ss:$0 sps:$4 sm:$0x11]   ;;  %v659_v56 = vshll.u32 %v8196_v47, 16 }
  0x67   : > { %1296 = vmatpush1.bf16.msra.mxu0 %v7481_v5  ;;  %v608_v5 = vrot.slane %v606_v58, 1  ;;  %v635_v58 = vshll.u32 %v7517_v25, 16  ;;  %v843_v36 = vrot.slane %v8278_v29, 1 }
  0x68   : > { %1297 = vmatprep.subr.bf16.mxu0 %v7778_v0 }
  0x69   : > { %v609_v13 = vor.u32 %v608_v5, %v604_v54  ;;  %7190 = vmatpush1.bf16.msra.mxu1 %v8120_v49  ;;  %v8240_v5 = vld [vmem:[%s7953_s9 + $0x9c] sm:$0xff]  }
  0x6a   : > { %7175 = vmatprep.subr.bf16.mxu1 %v7778_v0  ;;  %451 = vst [vmem:[#allocation2 + $0x138] sm:$0xff] %v8240_v5 }
  0x6b   : > { %1298 = vmatpush1.bf16.msra.mxu0 %v7483_v27  ;;  %v8167_v24 = vsel %vm518_vm0, %v609_v13, %v613_v16  ;;  %v8175_v27 = vld [vmem:[%s10173_s1 + $0xe8] sm:$0xff]   ;;  %6896 = vmatmul.mubr.bf16.gmra.mrb[8].mxu1 %v8093_v34  ;;  %v831_v34 = vrot.slane %v8184_v40, 1  ;;  %v839_v13 = vrot.slane %v8240_v5, 1  ;;  %v840_v16 = vrot.slane %v8243_v7, 1 }
  0x6c   : > { %1299 = vmatprep.subr.bf16.mxu0 %v7778_v0  ;;  %786 = vst [vmem:[#allocation2 + $0xb0] sm:$0xff] %v8167_v24  ;;  %6899 = vmatprep.mubr.bf16.mxu1 %v820_v61  ;;  %v632_v61 = vrot.slane %v630_v57, 1  ;;  %v8296_v40 = vld [vmem:[%s7953_s9 + $0xbc] ss:$0 sps:$4 sm:$0x11]   ;;  %v8324_v57 = vld [vmem:[%s7953_s9 + $0xcc] sm:$0xff]  }
  0x6d   : > { %7191 = vmatpush1.bf16.msra.mxu1 %v8146_v8  ;;  %v832_v54 = vsel %vm799_vm3, %v830_v30, %v831_v34  ;;  %v8272_v25 = vsel %vm799_vm3, %v839_v13, %v840_v16  ;;  %v842_v30 = vrot.slane %v8268_v23, 1  ;;  %v846_v34 = vrot.slane %v8296_v40, 1  ;;  %455 = vst [vmem:[#allocation2 + $0x198] sm:$0xff] %v8324_v57 }
  0x6e   : > { %7176 = vmatprep.subr.bf16.mxu1 %v7778_v0  ;;  %890 = vst [vmem:[#allocation2 + $0x100] sm:$0xff] %v832_v54  ;;  %893 = vst [vmem:[#allocation2 + $0x148] sm:$0xff] %v8272_v25  ;;  %v851_v13 = vrot.slane %v8324_v57, 1 }
  0x6f   : > { %1300 = vmatpush1.bf16.msra.mxu0 %v7485_v42  ;;  %v8188_v42 = vsel %vm799_vm3, %v827_v10, %v828_v31  ;;  %v8290_v31 = vld [vmem:[%s7953_s9 + $0xb4] sm:$0xff]   ;;  %v8307_v44 = vsel %vm799_vm3, %v842_v30, %v843_v36  ;;  %v688_v30 = vshrl.u32 %v8268_v23, 16 }
  0x70   : > { %1301 = vmatprep.subr.bf16.mxu0 %v7778_v0  ;;  %889 = vst [vmem:[#allocation2 + $0xe8] sm:$0xff] %v8188_v42  ;;  %453 = vst [vmem:[#allocation2 + $0x168] sm:$0xff] %v8290_v31 }
  0x71   : > { %7192 = vmatpush1.bf16.msra.mxu1 %v8175_v27  ;;  %894 = vst [vmem:[#allocation2 + $0x160] sm:$0xff] %v8307_v44 }
  0x72   : > { %7177 = vmatprep.subr.bf16.mxu1 %v7778_v0 }
  0x73   : > { %1302 = vmatpush1.bf16.msra.mxu0 %v7487_v1  ;;  %v637_v1 = vrot.slane %v635_v58, 1  ;;  %6900 = vmatmul.mubr.bf16.gmra.mrb[12].mxu1 %v823_v12 }
  0x74   : > { %1303 = vmatprep.subr.bf16.mxu0 %v7778_v0  ;;  %6903 = vmatprep.mubr.bf16.mxu1 %v826_v28  ;;  %v649_v28 = vrot.slane %v647_v22, 1  ;;  %v676_v22 = vshrl.u32 %v8240_v5, 16 }
  0x75   : > { %7193 = vmatpush1.bf16.msra.mxu1 %v8209_v53 }
  0x76   : > { %7178 = vmatprep.subr.bf16.mxu1 %v7778_v0 }
  0x77   : > { %1304 = vmatpush1.bf16.msra.mxu0 %v7489_v21  ;;  %v642_v21 = vshll.u32 %v8157_v18, 16 }
  0x78   : > { %1911 = vmatprep.subr.bf16.mxu0 %v7778_v0 }
  0x79   : > { %7194 = vmatpush1.bf16.msra.mxu1 %v8222_v59  ;;  %v644_v26 = vrot.slane %v642_v21, 1  ;;  %v671_v21 = vshll.u32 %v8231_v2, 16  ;;  %v690_v2 = vshll.u32 %v8268_v23, 16 }
  0x7a   : > { %1306 = vmatmul.mubr.bf16.vlgmr.msra.gmra.mrb[0].mxu0 %v7963_v15  ;;  %v8228_v15 = vld [vmem:[%s7953_s9 + $0x90] sm:$0xff]   ;;  %7179 = vmatprep.subr.bf16.mxu1 %v7778_v0 }
  0x7b   : > { %1912 = vmatpush1.bf16.msra.mxu0 %v8035_v62  ;;  %1313 = vmatprep.mubr.bf16.mxu0 %v8019_v51  ;;  %v633_v51 = vor.u32 %v632_v61, %v628_v52  ;;  %v836_v62 = vrot.slane %v8228_v15, 1  ;;  %450 = vst [vmem:[#allocation2 + $0x120] sm:$0xff] %v8228_v15  ;;  %v8312_v52 = vld [vmem:[%s7953_s9 + $0xc0] sm:$0xff]   ;;  %v8331_v61 = vld [vmem:[%s7953_s9 + $0xc8] ss:$0 sps:$4 sm:$0x11]  }
  0x7c   : > { %1913 = vmatprep.subr.bf16.mxu0 %v7778_v0  ;;  %6904 = vmatmul.mubr.bf16.gmra.mrb[16].mxu1 %v8188_v42  ;;  %454 = vst [vmem:[#allocation2 + $0x180] sm:$0xff] %v8312_v52  ;;  %v848_v47 = vrot.slane %v8312_v52, 1  ;;  %v673_v36 = vrot.slane %v671_v21, 1  ;;  %v724_v21 = vshrl.u32 %v8324_v57, 16 }
  0x7d   : > { %v8253_v10 = vsel %vm518_vm0, %v633_v51, %v637_v1  ;;  %v8256_v12 = vsel %vm799_vm3, %v836_v62, %v837_v3  ;;  %6907 = vmatprep.mubr.bf16.mxu1 %v832_v54  ;;  %7195 = vmatpush1.bf16.msra.mxu1 %v8250_v9  ;;  %v8318_v54 = vld [vmem:[%s10173_s1 + $0x110] sm:$0xff]   ;;  %v661_v1 = vrot.slane %v659_v56, 1  ;;  %v849_v62 = vrot.slane %v8331_v61, 1 }
  0x7e   : > { %788 = vst [vmem:[#allocation2 + $0xe0] sm:$0xff] %v8253_v10  ;;  %892 = vst [vmem:[#allocation2 + $0x130] sm:$0xff] %v8256_v12  ;;  %7180 = vmatprep.subr.bf16.mxu1 %v7778_v0  ;;  %v8342_v3 = vld [vmem:[%s7953_s9 + $0xd4] ss:$0 sps:$4 sm:$0x11]   ;;  %v692_v56 = vrot.slane %v690_v2, 1 }
  0x7f   : > { %1914 = vmatpush1.bf16.msra.mxu0 %v8066_v19  ;;  %v640_v19 = vshrl.u32 %v8157_v18, 16 }
  0x80   : > { %1915 = vmatprep.subr.bf16.mxu0 %v7778_v0 }
  0x81   : > { %v645_v35 = vor.u32 %v644_v26, %v640_v19  ;;  %v8358_v19 = vsel %vm799_vm3, %v848_v47, %v849_v62  ;;  %v707_v47 = vshll.u32 %v8296_v40, 16  ;;  %v693_v62 = vor.u32 %v692_v56, %v688_v30  ;;  %v7548_v56 = vld [vmem:[%s10173_s1 + $0x1a8] sm:$0xff]  }
  0x82   : > { %1314 = vmatmul.mubr.bf16.gmra.mrb[4].mxu0 %v7967_v17  ;;  %v8287_v17 = vld [vmem:[%s10173_s1 + $0x108] sm:$0xff]   ;;  %896 = vst [vmem:[#allocation2 + $0x190] sm:$0xff] %v8358_v19  ;;  %v714_v40 = vshll.u32 %v8312_v52, 16 }
  0x83   : > { %1321 = vmatprep.mubr.bf16.mxu0 %v8045_v6  ;;  %1916 = vmatpush1.bf16.msra.mxu0 %v8086_v32  ;;  %v845_v6 = vrot.slane %v8290_v31, 1  ;;  %v652_v32 = vshrl.u32 %v8191_v46, 16  ;;  %v8304_v42 = vsel %vm518_vm0, %v645_v35, %v649_v28  ;;  %v683_v28 = vshll.u32 %v8243_v7, 16 }
  0x84   : > { %1917 = vmatprep.subr.bf16.mxu0 %v7778_v0  ;;  %789 = vst [vmem:[#allocation2 + $0xf8] sm:$0xff] %v8304_v42  ;;  %7196 = vmatpush1.bf16.msra.mxu1 %v8287_v17  ;;  %v700_v7 = vshrl.u32 %v8290_v31, 16 }
  0x85   : > { %v8328_v58 = vsel %vm799_vm3, %v845_v6, %v846_v34  ;;  %7181 = vmatprep.subr.bf16.mxu1 %v7778_v0  ;;  %6908 = vmatmul.mubr.bf16.gmra.mrb[20].mxu1 %v8225_v60  ;;  %v666_v60 = vshll.u32 %v8228_v15, 16  ;;  %v695_v6 = vshll.u32 %v8278_v29, 16  ;;  %v685_v34 = vrot.slane %v683_v28, 1 }
  0x86   : > { %895 = vst [vmem:[#allocation2 + $0x178] sm:$0xff] %v8328_v58  ;;  %6911 = vmatprep.mubr.bf16.mxu1 %v8256_v12  ;;  %v678_v12 = vshll.u32 %v8240_v5, 16  ;;  %v702_v29 = vshll.u32 %v8290_v31, 16 }
  0x87   : > { %1918 = vmatpush1.bf16.msra.mxu0 %v8120_v49  ;;  %v656_v49 = vrot.slane %v654_v50, 1  ;;  %v668_v35 = vrot.slane %v666_v60, 1 }
  0x88   : > { %1919 = vmatprep.subr.bf16.mxu0 %v7778_v0  ;;  %7197 = vmatpush1.bf16.msra.mxu1 %v8318_v54 }
  0x89   : > { %v657_v51 = vor.u32 %v656_v49, %v652_v32  ;;  %7182 = vmatprep.subr.bf16.mxu1 %v7778_v0  ;;  %v680_v32 = vrot.slane %v678_v12, 1  ;;  %v697_v49 = vrot.slane %v695_v6, 1  ;;  %v716_v12 = vrot.slane %v714_v40, 1  ;;  %v8573_v40 = vld [vmem:[#allocation2 + $0x78] sm:$0xff] }
  0x8a   : > { %1322 = vmatmul.mubr.bf16.gmra.mrb[8].mxu0 %v7994_v39  ;;  %v8352_v39 = vld [vmem:[%s10173_s1 + $0x118] sm:$0xff]  }
  0x8b   : > { %1329 = vmatprep.mubr.bf16.mxu0 %v8069_v20  ;;  %1920 = vmatpush1.bf16.msra.mxu0 %v8146_v8  ;;  %v8355_v16 = vsel %vm518_vm0, %v657_v51, %v661_v1  ;;  %v852_v20 = vrot.slane %v8342_v3, 1  ;;  %v664_v8 = vshrl.u32 %v8228_v15, 16  ;;  %v681_v1 = vor.u32 %v680_v32, %v676_v22 }
  0x8c   : > { %1921 = vmatprep.subr.bf16.mxu0 %v7778_v0  ;;  %790 = vst [vmem:[#allocation2 + $0x110] sm:$0xff] %v8355_v16  ;;  %v8380_v0 = vld [vmem:[#allocation2 + $0x8] sm:$0xff]  ;;  %7198 = vmatpush1.bf16.msra.mxu1 %v8352_v39  ;;  %v726_v22 = vshll.u32 %v8324_v57, 16 }
  0x8d   : > { %v8371_v26 = vsel %vm799_vm3, %v851_v13, %v852_v20  ;;  %v669_v50 = vor.u32 %v668_v35, %v664_v8  ;;  %7183 = vmatprep.subr.bf16.mxu1 %v8380_v0  ;;  %v704_v13 = vrot.slane %v702_v29, 1  ;;  %v712_v20 = vshrl.u32 %v8312_v52, 16  ;;  %6912 = vmatmul.mubr.bf16.gmra.mrb[24].mxu1 %v8272_v25  ;;  %v8428_v35 = vld [vmem:[#allocation2 + $0x18] sm:$0xff] }
  0x8e   : > { %897 = vst [vmem:[#allocation2 + $0x1a8] sm:$0xff] %v8371_v26  ;;  %v719_v8 = vshll.u32 %v8331_v61, 16  ;;  %6915 = vmatprep.mubr.bf16.mxu1 %v8307_v44  ;;  %v8417_v25 = vsel %vm518_vm0, %v693_v62, %v697_v49  ;;  %v731_v44 = vshll.u32 %v8342_v3, 16  ;;  %v728_v30 = vrot.slane %v726_v22, 1  ;;  %v8525_v49 = vld [vmem:[#allocation2 + $0x30] sm:$0xff] }
  0x8f   : > { %1922 = vmatpush1.bf16.msra.mxu0 %v8175_v27  ;;  %v8388_v27 = vld [vmem:[%s10173_s1 + $0x120] sm:$0xff]   ;;  %v8397_v51 = vsel %vm518_vm0, %v669_v50, %v673_v36  ;;  %v705_v60 = vor.u32 %v704_v13, %v700_v7  ;;  %793 = vst [vmem:[#allocation2 + $0x158] sm:$0xff] %v8417_v25  ;;  %v3178_v36 = vld [vmem:[#allocation2 + $0x18] sm:$0x1]  ;;  %v717_v2 = vor.u32 %v716_v12, %v712_v20 }
  0x90   : > { %1923 = vmatprep.subr.bf16.mxu0 %v8380_v0  ;;  %791 = vst [vmem:[#allocation2 + $0x128] sm:$0xff] %v8397_v51  ;;  %7199 = vmatpush1.bf16.msra.mxu1 %v8388_v27  ;;  %v721_v61 = vrot.slane %v719_v8, 1  ;;  %v733_v6 = vrot.slane %v731_v44, 1  ;;  %v3179_v32 = vsel %vm8007_vm4, 0, %v3178_v36  ;;  %v729_v3 = vor.u32 %v728_v30, %v724_v21  ;;  %v8509_v50 = vld [vmem:[%s10173_s1 + $0x140] sm:$0xff]   ;;  %v8589_v21 = vld [vmem:[#allocation2 + $0x90] sm:$0xff] }
  0x91   : > { %7184 = vmatprep.subr.bf16.mxu1 %v8380_v0  ;;  %3180 = vst [vmem:[#allocation2 + $0x18] sm:$0x1] %v3179_v32  ;;  %v8554_v13 = vld [vmem:[#allocation2 + $0x60] sm:$0xff]  ;;  %v7568_v12 = vld [vmem:[%s10173_s1 + $0x1f8] sm:$0xff]   ;;  %v8635_v32 = vld [vmem:[#allocation2 + $0xf0] sm:$0xff] }
  0x92   : > { %1330 = vmatmul.mubr.bf16.gmra.mrb[12].mxu0 %v8000_v43  ;;  %v8405_v43 = vld [vmem:[%s10173_s1 + $0x128] sm:$0xff]   ;;  %v8447_v7 = vsel %vm518_vm0, %v729_v3, %v733_v6  ;;  %v3202_v36 = vld [vmem:[#allocation2 + $0xd8] sm:$0x1]  ;;  %v1665_v3 = vld [vmem:[#allocation2 + $0x20] sm:$0xff] }
  0x93   : > { %1337 = vmatprep.mubr.bf16.mxu0 %v8090_v33  ;;  %1924 = vmatpush1.bf16.msra.mxu0 %v8209_v53  ;;  %v8409_v33 = vsel %vm518_vm0, %v681_v1, %v685_v34  ;;  %v709_v53 = vrot.slane %v707_v47, 1  ;;  %v8441_v34 = vsel %vm518_vm0, %v717_v2, %v721_v61  ;;  %796 = vst [vmem:[#allocation2 + $0x1a0] sm:$0xff] %v8447_v7  ;;  %v7552_v1 = vld [vmem:[%s10173_s1 + $0x1b8] sm:$0xff]   ;;  %v8541_v47 = vld [vmem:[#allocation2 + $0x48] sm:$0xff] }
  0x94   : > { %1925 = vmatprep.subr.bf16.mxu0 %v8380_v0  ;;  %792 = vst [vmem:[#allocation2 + $0x140] sm:$0xff] %v8409_v33  ;;  %7200 = vmatpush1.bf16.msra.mxu1 %v8405_v43  ;;  %795 = vst [vmem:[#allocation2 + $0x188] sm:$0xff] %v8441_v34  ;;  %v8605_v61 = vld [vmem:[#allocation2 + $0xa8] sm:$0xff] }
  0x95   : > { %v8426_v28 = vsel %vm518_vm0, %v705_v60, %v709_v53  ;;  %7185 = vmatprep.subr.bf16.mxu1 %v8380_v0  ;;  %6916 = vmatmul.mubr.bf16.gmra.mrb[28].mxu1 %v8328_v58  ;;  %v7559_v53 = vld [vmem:[%s10173_s1 + $0x1d8] sm:$0xff]   ;;  %v7563_v60 = vld [vmem:[%s10173_s1 + $0x1e8] sm:$0xff]  }
  0x96   : > { %794 = vst [vmem:[#allocation2 + $0x170] sm:$0xff] %v8426_v28  ;;  %6919 = vmatprep.mubr.bf16.mxu1 %v8358_v19  ;;  %v7545_v19 = vld [vmem:[%s10173_s1 + $0x190] sm:$0xff]  }
  0x97   : > { %1926 = vmatpush1.bf16.msra.mxu0 %v8222_v59  ;;  %v7541_v59 = vld [vmem:[%s10173_s1 + $0x130] sm:$0xff]  }
  0x98   : > { %1927 = vmatprep.subr.bf16.mxu0 %v8380_v0  ;;  %7201 = vmatpush1.bf16.msra.mxu1 %v7541_v59 }
  0x99   : > { %7186 = vmatprep.subr.bf16.mxu1 %v8380_v0 }
  0x9a   : > { %1338 = vmatmul.mubr.bf16.gmra.mrb[16].mxu0 %v8039_v4  ;;  %v7542_v4 = vld [vmem:[%s10173_s1 + $0x138] sm:$0xff]  }
  0x9b   : > { %1345 = vmatprep.mubr.bf16.mxu0 %v8128_v55  ;;  %1928 = vmatpush1.bf16.msra.mxu0 %v8250_v9  ;;  %v8472_v55 = vld [vmem:[%s7953_s9 + $0xd8] sm:$0xff]   ;;  %v8481_v9 = vld [vmem:[%s7953_s9 + $0xe0] ss:$0 sps:$4 sm:$0x11]  }
  0x9c   : > { %1929 = vmatprep.subr.bf16.mxu0 %v8380_v0  ;;  %7202 = vmatpush1.bf16.msra.mxu1 %v7542_v4  ;;  %456 = vst [vmem:[#allocation2 + $0x1b0] sm:$0xff] %v8472_v55  ;;  %v855_v2 = vrot.slane %v8481_v9, 1 }
  0x9d   : > { %2620 = vmatprep.subr.bf16.mxu1 %v8380_v0  ;;  %6920 = vmatmul.mubr.bf16.gmra.mrb[32].mxu1 %v8371_v26 }
  0x9e   : > { %1991 = vmatprep.mubr.bf16.mxu1 %v8167_v24 }
  0x9f   : > { %1930 = vmatpush1.bf16.msra.mxu0 %v8287_v17  ;;  %v736_v17 = vshrl.u32 %v8472_v55, 16 }
  0xa0   : > { %1931 = vmatprep.subr.bf16.mxu0 %v8380_v0 }
  0xa2   : > { %1346 = vmatmul.mubr.bf16.gmra.mrb[20].mxu0 %v8059_v14  ;;  %v7543_v14 = vld [vmem:[%s10173_s1 + $0x180] sm:$0xff]  }
  0xa3   : > { %1353 = vmatprep.mubr.bf16.mxu0 %v8153_v11  ;;  %1932 = vmatpush1.bf16.msra.mxu0 %v8318_v54  ;;  %v7544_v11 = vld [vmem:[%s10173_s1 + $0x188] sm:$0xff]   ;;  %v738_v54 = vshll.u32 %v8472_v55, 16 }
  0xa4   : > { %1933 = vmatprep.subr.bf16.mxu0 %v8380_v0 }
  0xa5   : > { %1992 = vmatmul.mubr.bf16.vlgmr.msra.gmra.mrb[36].mxu1 %v8099_v38 }
  0xa6   : > { %1999 = vmatprep.mubr.bf16.mxu1 %v8200_v48  ;;  %2621 = vmatpush1.bf16.msra.mxu1 %v7543_v14  ;;  %v7551_v14 = vld [vmem:[%s10173_s1 + $0x148] sm:$0xff]  }
  0xa7   : > { %1934 = vmatpush1.bf16.msra.mxu0 %v8352_v39  ;;  %2622 = vmatprep.subr.bf16.mxu1 %v8380_v0 }
  0xa8   : > { %1935 = vmatprep.subr.bf16.mxu0 %v8380_v0 }
  0xaa   : > { %1354 = vmatmul.mubr.bf16.gmra.mrb[24].mxu0 %v8096_v37  ;;  %v740_v37 = vrot.slane %v738_v54, 1  ;;  %2623 = vmatpush1.bf16.msra.mxu1 %v7544_v11  ;;  %v3211_v11 = vld [vmem:[#allocation2 + $0x120] sm:$0x1]  ;;  %v7555_v54 = vld [vmem:[%s10173_s1 + $0x158] sm:$0xff]  }
  0xab   : > { %1361 = vmatprep.mubr.bf16.mxu0 %v8167_v24  ;;  %1936 = vmatpush1.bf16.msra.mxu0 %v8388_v27  ;;  %v743_v24 = vshll.u32 %v8481_v9, 16  ;;  %v7546_v27 = vld [vmem:[%s10173_s1 + $0x198] sm:$0xff]   ;;  %v8650_v9 = vld [vmem:[#allocation2 + $0x120] sm:$0xff] }
  0xac   : > { %1937 = vmatprep.subr.bf16.mxu0 %v8380_v0  ;;  %v741_v58 = vor.u32 %v740_v37, %v736_v17  ;;  %2624 = vmatprep.subr.bf16.mxu1 %v8380_v0  ;;  %v1671_v17 = vld [vmem:[#allocation2 + $0x50] sm:$0xff]  ;;  %v8664_v37 = vld [vmem:[#allocation2 + $0x138] sm:$0xff] }
  0xad   : > { %v745_v39 = vrot.slane %v743_v24, 1  ;;  %2000 = vmatmul.mubr.bf16.gmra.mrb[40].mxu1 %v8106_v41 }
  0xae   : > { %2007 = vmatprep.mubr.bf16.mxu1 %v8253_v10  ;;  %2625 = vmatpush1.bf16.msra.mxu1 %v7545_v19  ;;  %v7560_v19 = vld [vmem:[%s10173_s1 + $0x168] sm:$0xff]  }
  0xaf   : > { %1938 = vmatpush1.bf16.msra.mxu0 %v8405_v43  ;;  %v8497_v26 = vsel %vm518_vm0, %v741_v58, %v745_v39  ;;  %2626 = vmatprep.subr.bf16.mxu1 %v8380_v0  ;;  %v3190_v43 = vld [vmem:[#allocation2 + $0x78] sm:$0x1]  ;;  %v1674_v58 = vld [vmem:[#allocation2 + $0x68] sm:$0xff]  ;;  %v7557_v39 = vld [vmem:[%s10173_s1 + $0x160] sm:$0xff]  }
  0xb0   : > { %1939 = vmatprep.subr.bf16.mxu0 %v8380_v0  ;;  %797 = vst [vmem:[#allocation2 + $0x1b8] sm:$0xff] %v8497_v26  ;;  %v3191_v8 = vsel %vm8007_vm4, 0, %v3190_v43 }
  0xb1   : > { %3192 = vst [vmem:[#allocation2 + $0x78] sm:$0x1] %v3191_v8 }
  0xb2   : > { %1362 = vmatmul.mubr.bf16.gmra.mrb[28].mxu0 %v8099_v38  ;;  %v7547_v38 = vld [vmem:[%s10173_s1 + $0x1a0] sm:$0xff]   ;;  %2627 = vmatpush1.bf16.msra.mxu1 %v7546_v27  ;;  %v8675_v27 = vld [vmem:[#allocation2 + $0x150] sm:$0xff] }
  0xb3   : > { %1369 = vmatprep.mubr.bf16.mxu0 %v8200_v48  ;;  %1940 = vmatpush1.bf16.msra.mxu0 %v7541_v59  ;;  %v3181_v48 = vld [vmem:[#allocation2 + $0x30] sm:$0x1] }
  0xb4   : > { %1941 = vmatprep.subr.bf16.mxu0 %v8380_v0  ;;  %2628 = vmatprep.subr.bf16.mxu1 %v8380_v0  ;;  %v3182_v29 = vsel %vm8007_vm4, 0, %v3181_v48  ;;  %v7562_v48 = vld [vmem:[%s10173_s1 + $0x170] sm:$0xff]  }
  0xb5   : > { %2008 = vmatmul.mubr.bf16.gmra.mrb[44].mxu1 %v8137_v63  ;;  %3183 = vst [vmem:[#allocation2 + $0x30] sm:$0x1] %v3182_v29  ;;  %v8688_v29 = vld [vmem:[#allocation2 + $0x168] sm:$0xff] }
  0xb6   : > { %2015 = vmatprep.mubr.bf16.mxu1 %v8304_v42  ;;  %2629 = vmatpush1.bf16.msra.mxu1 %v7547_v38  ;;  %v1677_v38 = vld [vmem:[#allocation2 + $0x80] sm:$0xff] }
  0xb7   : > { %1942 = vmatpush1.bf16.msra.mxu0 %v7542_v4  ;;  %2630 = vmatprep.subr.bf16.mxu1 %v8380_v0  ;;  %v8642_v4 = vld [vmem:[#allocation2 + $0x108] sm:$0xff] }
  0xb8   : > { %6923 = vmatprep.subr.bf16.mxu0 %v8509_v50 }
  0xba   : > { %1370 = vmatmul.mubr.bf16.gmra.mrb[32].mxu0 %v8106_v41  ;;  %v7550_v41 = vld [vmem:[%s10173_s1 + $0x1b0] sm:$0xff]   ;;  %2631 = vmatpush1.bf16.msra.mxu1 %v7548_v56  ;;  %v7567_v56 = vld [vmem:[%s10173_s1 + $0x178] sm:$0xff]  }
  0xbb   : > { %1377 = vmatprep.mubr.bf16.mxu0 %v8253_v10  ;;  %2632 = vmatprep.subr.bf16.mxu1 %v8380_v0  ;;  %v3184_v10 = vld [vmem:[#allocation2 + $0x48] sm:$0x1] }
  0xbc   : > { %v3185_v62 = vsel %vm8007_vm4, 0, %v3184_v10  ;;  %v1680_v10 = vld [vmem:[#allocation2 + $0x98] sm:$0xff] }
  0xbd   : > { %2016 = vmatmul.mubr.bf16.gmra.mrb[48].mxu1 %v8157_v18  ;;  %3186 = vst [vmem:[#allocation2 + $0x48] sm:$0x1] %v3185_v62  ;;  %v3223_v62 = vld [vmem:[#allocation2 + $0x180] sm:$0x1] }
  0xbe   : > { %2023 = vmatprep.mubr.bf16.mxu1 %v8355_v16  ;;  %2633 = vmatpush1.bf16.msra.mxu1 %v7550_v41 }
  0xbf   : > { %2634 = vmatprep.subr.bf16.mxu1 %v8380_v0 }
  0xc2   : > { %1378 = vmatmul.mubr.bf16.gmra.mrb[36].mxu0 %v8137_v63  ;;  %v7554_v63 = vld [vmem:[%s10173_s1 + $0x1c0] sm:$0xff]   ;;  %2635 = vmatpush1.bf16.msra.mxu1 %v7552_v1 }
  0xc3   : > { %1385 = vmatprep.mubr.bf16.mxu0 %v8304_v42  ;;  %2636 = vmatprep.subr.bf16.mxu1 %v8380_v0  ;;  %v3187_v42 = vld [vmem:[#allocation2 + $0x60] sm:$0x1] }
  0xc4   : > { %v3188_v20 = vsel %vm8007_vm4, 0, %v3187_v42  ;;  %v7569_v1 = vld [vmem:[%s10173_s1 + $0x200] sm:$0xff]   ;;  %v3224_v42 = vsel %vm8007_vm4, 0, %v3223_v62 }
  0xc5   : > { %2024 = vmatmul.mubr.bf16.gmra.mrb[52].mxu1 %v8191_v46  ;;  %3189 = vst [vmem:[#allocation2 + $0x60] sm:$0x1] %v3188_v20  ;;  %v2392_v20 = vld [vmem:[#allocation2 + $0xc8] sm:$0xff] }
  0xc6   : > { %2031 = vmatprep.mubr.bf16.mxu1 %v8397_v51  ;;  %2637 = vmatpush1.bf16.msra.mxu1 %v7554_v63  ;;  %v8697_v63 = vld [vmem:[#allocation2 + $0x180] sm:$0xff] }
  0xc7   : > { %2638 = vmatprep.subr.bf16.mxu1 %v8380_v0  ;;  %3225 = vst [vmem:[#allocation2 + $0x180] sm:$0x1] %v3224_v42  ;;  %v8801_v42 = vld [vmem:[#allocation2 + $0xe8] sm:$0xff] }
  0xca   : > { %1386 = vmatmul.mubr.bf16.gmra.mrb[40].mxu0 %v8157_v18  ;;  %v7556_v18 = vld [vmem:[%s10173_s1 + $0x1c8] sm:$0xff]  }
  0xcb   : > { %1393 = vmatprep.mubr.bf16.mxu0 %v8355_v16  ;;  %2639 = vmatpush1.bf16.msra.mxu1 %v7556_v18  ;;  %v7558_v16 = vld [vmem:[%s10173_s1 + $0x1d0] sm:$0xff]   ;;  %v3226_v18 = vld [vmem:[#allocation2 + $0x198] sm:$0x1] }
  0xcc   : > { %2640 = vmatprep.subr.bf16.mxu1 %v8380_v0  ;;  %v3227_v43 = vsel %vm8007_vm4, 0, %v3226_v18 }
  0xcd   : > { %2032 = vmatmul.mubr.bf16.gmra.mrb[56].mxu1 %v8228_v15 }
  0xce   : > { %2039 = vmatprep.mubr.bf16.mxu1 %v8409_v33 }
  0xcf   : > { %2641 = vmatpush1.bf16.msra.mxu1 %v7558_v16  ;;  %v8703_v16 = vld [vmem:[#allocation2 + $0x198] sm:$0xff] }
  0xd0   : > { %2642 = vmatprep.subr.bf16.mxu1 %v8380_v0  ;;  %3228 = vst [vmem:[#allocation2 + $0x198] sm:$0x1] %v3227_v43 }
  0xd2   : > { %1394 = vmatmul.mubr.bf16.gmra.mrb[44].mxu0 %v8191_v46  ;;  %v7561_v46 = vld [vmem:[%s10173_s1 + $0x1e0] sm:$0xff]  }
  0xd3   : > { %1401 = vmatprep.mubr.bf16.mxu0 %v8397_v51  ;;  %2643 = vmatpush1.bf16.msra.mxu1 %v7559_v53  ;;  %v3193_v51 = vld [vmem:[#allocation2 + $0x90] sm:$0x1]  ;;  %v8708_v53 = vld [vmem:[#allocation2 + $0x8] sm:$0xff] }
  0xd4   : > { %2644 = vmatprep.subr.bf16.mxu1 %v8380_v0  ;;  %v3194_v22 = vsel %vm8007_vm4, 0, %v3193_v51  ;;  %3622 = vst [vmem:[#allocation2 + $0x198] sm:$0xff] %v8708_v53 }
  0xd5   : > { %2040 = vmatmul.mubr.bf16.gmra.mrb[60].mxu1 %v8240_v5  ;;  %3195 = vst [vmem:[#allocation2 + $0x90] sm:$0x1] %v3194_v22 }
  0xd6   : > { %2047 = vmatprep.mubr.bf16.mxu1 %v8417_v25 }
  0xd7   : > { %2645 = vmatpush1.bf16.msra.mxu1 %v7561_v46  ;;  %v8715_v46 = vld [vmem:[#allocation2 + $0x58] sm:$0xff] }
  0xd8   : > { %2646 = vmatprep.subr.bf16.mxu1 %v8380_v0 }
  0xda   : > { %1402 = vmatmul.mubr.bf16.gmra.mrb[48].mxu0 %v8228_v15  ;;  %v7566_v15 = vld [vmem:[%s10173_s1 + $0x1f0] sm:$0xff]  }
  0xdb   : > { %1409 = vmatprep.mubr.bf16.mxu0 %v8409_v33  ;;  %2647 = vmatpush1.bf16.msra.mxu1 %v7563_v60  ;;  %v3196_v33 = vld [vmem:[#allocation2 + $0xa8] sm:$0x1] }
  0xdc   : > { %2648 = vmatprep.subr.bf16.mxu1 %v8380_v0  ;;  %v3197_v44 = vsel %vm8007_vm4, 0, %v3196_v33  ;;  %v8723_v60 = vld [vmem:[%s7953_s9 + $0xe4] sm:$0xff]   ;;  %v7578_v33 = vld [vmem:[%s7953_s9 + $0xec] ss:$0 sps:$4 sm:$0x11]   ;;  %s5936_s9 = sshll.u32 %s244_s25, 7 }
  0xdd   : > { %2048 = vmatmul.mubr.bf16.gmra.mrb[64].mxu1 %v8268_v23  ;;  %3198 = vst [vmem:[#allocation2 + $0xa8] sm:$0x1] %v3197_v44  ;;  %v748_v44 = vshrl.u32 %v8723_v60, 16  ;;  %s10069_s27 = scalar_lea.vmem [#allocation8], %s5936_s9 }
  0xde   : > { %2055 = vmatprep.mubr.bf16.mxu1 %v8426_v28  ;;  %s5842_s12 = sshll.u32 %s10069_s27, 4  ;;  %s10120_s12 = int_to_ptr.vmem [resolvable:$true] %s5842_s12 }
  0xdf   : > { %2649 = vmatpush1.bf16.msra.mxu1 %v7566_v15  ;;  %v2395_v15 = vld [vmem:[#allocation2 + $0xe0] sm:$0xff]  ;;  %s7691_s7 = scalar_lea.vmem %s10120_s12, 2048  ;;  %p7698_p1 = scmp.lt.s32.totalorder %s10120_s12, %s7696_s14 }
  0xe0   : > { %2650 = vmatprep.subr.bf16.mxu1 %v8380_v0  ;;  %v8622_v0 = vld [vmem:[#allocation2 + $0xd8] sm:$0xff]  ;;  %p7692_p8 = scmp.ne.s32.totalorder %s10120_s12, %s7691_s7  ;;  %p7699_p3 = scmp.lt.s32.totalorder %s7697_s15, %s7691_s7 }
  0xe2   : > { %1410 = vmatmul.mubr.bf16.gmra.mrb[52].mxu0 %v8240_v5  ;;  %v3199_v5 = vld [vmem:[#allocation2 + $0xc0] sm:$0x1]  ;;  %p7693_p11 = pnand %p7692_p8, %p10318_p10  ;;  %p7700_p5 = por %p7699_p3, %p7698_p1 }
  0xe3   : > { %1417 = vmatprep.mubr.bf16.mxu0 %v8417_v25  ;;  %2651 = vmatpush1.bf16.msra.mxu1 %v7568_v12  ;;  %v8614_v25 = vld [vmem:[#allocation2 + $0xc0] sm:$0xff]  ;;  %v3200_v30 = vsel %vm8007_vm4, 0, %v3199_v5  ;;  %v750_v12 = vshll.u32 %v8723_v60, 16 }
  0xe4   : > { %3201 = vst [vmem:[#allocation2 + $0xc0] sm:$0x1] %v3200_v30  ;;  %v755_v30 = vshll.u32 %v7578_v33, 16  ;;  %p7694_p13 = pneg %p7693_p11 }
  0xe5   : > { %2056 = vmatmul.mubr.bf16.gmra.mrb[68].mxu1 %v8290_v31  ;;  %v752_v5 = vrot.slane %v750_v12, 1 }
  0xe6   : > { %2063 = vmatprep.mubr.bf16.mxu1 %v8441_v34  ;;  %p7701_p6 = pnand %p7700_p5, %p7694_p13 }
  0xea   : > { %1418 = vmatmul.mubr.bf16.gmra.mrb[56].mxu0 %v8268_v23  ;;  %v3203_v23 = vsel %vm8007_vm4, 0, %v3202_v36  ;;  %v753_v36 = vor.u32 %v752_v5, %v748_v44 }
  0xeb   : > { %1425 = vmatprep.mubr.bf16.mxu0 %v8426_v28  ;;  %3204 = vst [vmem:[#allocation2 + $0xd8] sm:$0x1] %v3203_v23  ;;  %v854_v28 = vrot.slane %v8472_v55, 1  ;;  %v757_v23 = vrot.slane %v755_v30, 1  ;;  %v8824_v30 = vld [vmem:[#allocation2 + $0x118] sm:$0xff] }
  0xed   : > { %2064 = vmatmul.mubr.bf16.gmra.mrb[72].mxu1 %v8312_v52  ;;  %v8631_v6 = vsel %vm799_vm3, %v854_v28, %v855_v2  ;;  %v8738_v28 = vld [vmem:[#allocation2 + $0x70] sm:$0xff] }
  0xee   : > { %2071 = vmatprep.mubr.bf16.mxu1 %v8447_v7 }
  0xf2   : > { %1426 = vmatmul.mubr.bf16.gmra.mrb[60].mxu0 %v8290_v31  ;;  %v3205_v31 = vld [vmem:[#allocation2 + $0xf0] sm:$0x1] }
  0xf3   : > { %1433 = vmatprep.mubr.bf16.mxu0 %v8441_v34  ;;  %v3206_v59 = vsel %vm8007_vm4, 0, %v3205_v31  ;;  %v3208_v34 = vld [vmem:[#allocation2 + $0x108] sm:$0x1]  ;;  %v857_v31 = vrot.slane %v8723_v60, 1 }
  0xf4   : > { %3207 = vst [vmem:[#allocation2 + $0xf0] sm:$0x1] %v3206_v59  ;;  %v858_v59 = vrot.slane %v7578_v33, 1 }
  0xf5   : > { %2072 = vmatmul.mubr.bf16.gmra.mrb[76].mxu1 %v8324_v57 }
  0xf6   : > { %2079 = vmatprep.mubr.bf16.mxu1 %v8497_v26  ;;  %v3217_v26 = vld [vmem:[#allocation2 + $0x150] sm:$0x1] }
  0xfa   : > { %1434 = vmatmul.mubr.bf16.gmra.mrb[64].mxu0 %v8312_v52  ;;  %v3209_v52 = vsel %vm8007_vm4, 0, %v3208_v34 }
  0xfb   : > { %1441 = vmatprep.mubr.bf16.mxu0 %v8447_v7  ;;  %v1668_v7 = vld [vmem:[#allocation2 + $0x38] sm:$0xff]  ;;  %3210 = vst [vmem:[#allocation2 + $0x108] sm:$0x1] %v3209_v52  ;;  %v8751_v52 = vsel %vm518_vm0, %v753_v36, %v757_v23 }
  0xfd   : > { %2080 = vmatmul.mubr.bf16.gmra.mrb[80].mxu1 %v8472_v55  ;;  %v7553_v55 = vld [vmem:[%s10173_s1 + $0x150] sm:$0xff]  }
  0xfe   : > { %2652 = vmatprep.mubr.bf16.mxu1 %v1668_v7 }
 0x102   : > { %1442 = vmatmul.mubr.bf16.gmra.mrb[68].mxu0 %v8324_v57  ;;  %v3212_v57 = vsel %vm8007_vm4, 0, %v3211_v11 }
 0x103   : > { %1943 = vmatprep.mubr.bf16.mxu0 %v1665_v3  ;;  %3213 = vst [vmem:[#allocation2 + $0x120] sm:$0x1] %v3212_v57  ;;  %v8743_v3 = vld [vmem:[#allocation2 + $0x88] sm:$0xff]  ;;  %v2398_v57 = vld [vmem:[#allocation2 + $0xf8] sm:$0xff] }
 0x105   : > { %2653 = vmatmul.mubr.bf16.vlgmr.msra.gmra.mrb[84].mxu1 %v8525_v49 }
 0x106   : > { %2660 = vmatprep.mubr.bf16.mxu1 %v1671_v17 }
 0x10a   : > { %1944 = vmatmul.mubr.bf16.vlgmr.msra.gmra.mrb[72].mxu0 %v8428_v35  ;;  %v3214_v35 = vld [vmem:[#allocation2 + $0x138] sm:$0x1] }
 0x10b   : > { %6924 = vmatpush3.bf16.msra.mxu0 %v8509_v50  ;;  %1951 = vmatprep.mubr.bf16.mxu0 %v1668_v7  ;;  %v3215_v24 = vsel %vm8007_vm4, 0, %v3214_v35  ;;  %v3218_v50 = vsel %vm8007_vm4, 0, %v3217_v26  ;;  %v8770_v35 = vld [vmem:[#allocation2 + $0xb8] sm:$0xff]  ;;  %v8785_v26 = vld [vmem:[%s10174_s2] ss:$0 sm:$0xff] }
 0x10c   : > { %6925 = vmatprep.subr.bf16.mxu0 %v7551_v14  ;;  %3216 = vst [vmem:[#allocation2 + $0x138] sm:$0x1] %v3215_v24  ;;  %3219 = vst [vmem:[#allocation2 + $0x150] sm:$0x1] %v3218_v50  ;;  %v7574_v24 = vld [vmem:[%s10173_s1 + $0x228] sm:$0xff]   ;;  %v7575_v50 = vld [vmem:[%s10173_s1 + $0x230] sm:$0xff]  }
 0x10d   : > { %2661 = vmatmul.mubr.bf16.gmra.mrb[88].mxu1 %v8541_v47 }
 0x10e   : > { %2668 = vmatprep.mubr.bf16.mxu1 %v1674_v58 }
 0x10f   : > { %6926 = vmatpush3.bf16.msra.mxu0 %v7551_v14  ;;  %v8756_v14 = vsel %vm799_vm3, %v857_v31, %v858_v59  ;;  %v2407_v59 = vld [vmem:[#allocation2 + $0x140] sm:$0xff] }
 0x110   : > { %6927 = vmatprep.subr.bf16.mxu0 %v7553_v55 }
 0x112   : > { %1952 = vmatmul.mubr.bf16.gmra.mrb[76].mxu0 %v8525_v49  ;;  %v3220_v49 = vld [vmem:[#allocation2 + $0x168] sm:$0x1] }
 0x113   : > { %6928 = vmatpush3.bf16.msra.mxu0 %v7553_v55  ;;  %1959 = vmatprep.mubr.bf16.mxu0 %v1671_v17  ;;  %v3221_v41 = vsel %vm8007_vm4, 0, %v3220_v49  ;;  %v7573_v55 = vld [vmem:[%s10173_s1 + $0x220] sm:$0xff]  }
 0x114   : > { %6929 = vmatprep.subr.bf16.mxu0 %v7555_v54  ;;  %3222 = vst [vmem:[#allocation2 + $0x168] sm:$0x1] %v3221_v41  ;;  %v8766_v17 = vld [vmem:[#allocation2 + $0xa0] sm:$0xff]  ;;  %v8793_v41 = vld [vmem:[#allocation2 + $0xd0] sm:$0xff] }
 0x115   : > { %2669 = vmatmul.mubr.bf16.gmra.mrb[92].mxu1 %v8554_v13 }
 0x116   : > { %2676 = vmatprep.mubr.bf16.mxu1 %v1677_v38 }
 0x117   : > { %6930 = vmatpush3.bf16.msra.mxu0 %v7555_v54 }
 0x118   : > { %6931 = vmatprep.subr.bf16.mxu0 %v7557_v39 }
 0x11a   : > { %1960 = vmatmul.mubr.bf16.gmra.mrb[80].mxu0 %v8541_v47  ;;  %v2389_v47 = vld [vmem:[#allocation2 + $0xb0] sm:$0xff] }
 0x11b   : > { %1967 = vmatprep.mubr.bf16.mxu0 %v1674_v58  ;;  %6932 = vmatpush3.bf16.msra.mxu0 %v7557_v39 }
 0x11c   : > { %6933 = vmatprep.subr.bf16.mxu0 %v7560_v19 }
 0x11d   : > { %2677 = vmatmul.mubr.bf16.gmra.mrb[96].mxu1 %v8573_v40 }
 0x11e   : > { %2684 = vmatprep.mubr.bf16.mxu1 %v1680_v10 }
 0x11f   : > { %6934 = vmatpush3.bf16.msra.mxu0 %v7560_v19  ;;  %v2401_v19 = vld [vmem:[#allocation2 + $0x110] sm:$0xff] }
 0x120   : > { %6935 = vmatprep.subr.bf16.mxu0 %v7562_v48 }
 0x122   : > { %1968 = vmatmul.mubr.bf16.gmra.mrb[84].mxu0 %v8554_v13  ;;  %v1666_v13 = vld [vmem:[#allocation2 + $0x28] sm:$0xff] }
 0x123   : > { %1975 = vmatprep.mubr.bf16.mxu0 %v1677_v38  ;;  %6936 = vmatpush3.bf16.msra.mxu0 %v7562_v48 }
 0x124   : > { %6937 = vmatprep.subr.bf16.mxu0 %v7567_v56 }
 0x125   : > { %2685 = vmatmul.mubr.bf16.gmra.mrb[100].mxu1 %v8589_v21 }
 0x126   : > { %2692 = vmatprep.mubr.bf16.mxu1 %v2389_v47 }
 0x127   : > { %6938 = vmatpush3.bf16.msra.mxu0 %v7567_v56 }
 0x128   : > { %6975 = vmatprep.subr.bf16.mxu0 %v7569_v1 }
 0x12a   : > { %1976 = vmatmul.mubr.bf16.gmra.mrb[88].mxu0 %v8573_v40  ;;  %v8711_v40 = vld [vmem:[#allocation2 + $0x40] sm:$0xff] }
 0x12b   : > { %1983 = vmatprep.mubr.bf16.mxu0 %v1680_v10 }
 0x12d   : > { %2693 = vmatmul.mubr.bf16.gmra.mrb[104].mxu1 %v8605_v61  ;;  %v7571_v61 = vld [vmem:[%s10173_s1 + $0x210] sm:$0xff]  }
 0x12e   : > { %2700 = vmatprep.mubr.bf16.mxu1 %v2392_v20  ;;  %v8713_v8 = vpop.f32.mrb[0].mxu1 }
 0x12f   : > { %v8720_v51 = vpop.f32.mrb[1].mxu1 }
 0x132   : > { %1984 = vmatmul.mubr.bf16.gmra.mrb[92].mxu0 %v8589_v21  ;;  %v8725_v21 = vpop.f32.mrb[2].mxu1 }
 0x133   : > { %6939 = vmatprep.mubr.bf16.mxu0 %v1666_v13  ;;  %v8728_v22 = vpop.f32.mrb[3].mxu1 }
 0x135   : > { %2701 = vmatmul.mubr.bf16.gmra.mrb[108].mxu1 %v8614_v25  ;;  %v7572_v25 = vld [vmem:[%s10173_s1 + $0x218] sm:$0xff]  }
 0x136   : > { %2708 = vmatprep.mubr.bf16.mxu1 %v2395_v15  ;;  %v8740_v2 = vpop.f32.mrb[4].mxu1 }
 0x137   : > { %v8748_v34 = vpop.f32.mrb[5].mxu1 }
 0x138   : > { %v8753_v7 = vpop.f32.mrb[6].mxu1 }
 0x139   : > { %v8759_v11 = vpop.f32.mrb[7].mxu1 }
 0x13a   : > { %6940 = vmatmul.mubr.bf16.vlgmr.msra.gmra.mrb[96].mxu0 %v8711_v40 }
 0x13b   : > { %6976 = vmatpush3.bf16.msra.mxu0 %v7569_v1  ;;  %6943 = vmatprep.mubr.bf16.mxu0 %v8715_v46 }
 0x13c   : > { %6977 = vmatprep.subr.bf16.mxu0 %v7570_v45 }
 0x13d   : > { %2709 = vmatmul.mubr.bf16.gmra.mrb[112].mxu1 %v8622_v0 }
 0x13e   : > { %2716 = vmatprep.mubr.bf16.mxu1 %v2398_v57  ;;  %v8768_v54 = vpop.f32.mrb[8].mxu1 }
 0x13f   : > { %6978 = vmatpush3.bf16.msra.mxu0 %v7570_v45  ;;  %v8775_v58 = vpop.f32.mrb[9].mxu1 }
 0x140   : > { %6979 = vmatprep.subr.bf16.mxu0 %v7571_v61  ;;  %v8777_v39 = vpop.f32.mrb[10].mxu1 }
 0x141   : > { %v8780_v0 = vpop.f32.mrb[11].mxu1 }
 0x142   : > { %6944 = vmatmul.mubr.bf16.gmra.mrb[100].mxu0 %v8738_v28 }
 0x143   : > { %6947 = vmatprep.mubr.bf16.mxu0 %v8743_v3  ;;  %6980 = vmatpush3.bf16.msra.mxu0 %v7571_v61  ;;  %v8819_v61 = vld [vmem:[#allocation2 + $0x100] sm:$0xff] }
 0x144   : > { %6981 = vmatprep.subr.bf16.mxu0 %v7572_v25 }
 0x145   : > { %2717 = vmatmul.mubr.bf16.gmra.mrb[116].mxu1 %v8635_v32  ;;  %v7576_v32 = vld [vmem:[%s10173_s1 + $0x238] sm:$0xff]  }
 0x146   : > { %2724 = vmatprep.mubr.bf16.mxu1 %v2401_v19  ;;  %v8795_v10 = vpop.f32.mrb[12].mxu1  ;;  %v8842_v19 = vld [vmem:[#allocation2 + $0x130] sm:$0xff] }
 0x147   : > { %6982 = vmatpush3.bf16.msra.mxu0 %v7572_v25  ;;  %v8806_v13 = vpop.f32.mrb[13].mxu1 }
 0x148   : > { %6983 = vmatprep.subr.bf16.mxu0 %v7573_v55  ;;  %v8808_v20 = vpop.f32.mrb[14].mxu1 }
 0x149   : > { %v8814_v43 = vpop.f32.mrb[15].mxu1 }
 0x14a   : > { %6948 = vmatmul.mubr.bf16.gmra.mrb[104].mxu0 %v8766_v17 }
 0x14b   : > { %6951 = vmatprep.mubr.bf16.mxu0 %v8770_v35  ;;  %6984 = vmatpush3.bf16.msra.mxu0 %v7573_v55 }
 0x14c   : > { %6985 = vmatprep.subr.bf16.mxu0 %v7574_v24 }
 0x14d   : > { %v1307_v38 = vpop.f32.mrb[0].mxu0  ;;  %2725 = vmatmul.mubr.bf16.gmra.mrb[120].mxu1 %v8642_v4 }
 0x14e   : > { %v1309_v48 = vpop.f32.mrb[1].mxu0  ;;  %v1308_v56 = vadd.f32 %v8785_v26, %v1307_v38 }
 0x14f   : > { %v1310_v49 = vpop.f32.mrb[2].mxu0  ;;  %6986 = vmatpush3.bf16.msra.mxu0 %v7574_v24 }
 0x150   : > { %v8798_v1 = vadd.f32 %v8720_v51, %v1308_v56  ;;  %v1312_v47 = vpop.f32.mrb[3].mxu0  ;;  %v1311_v62 = vadd.f32 %v8785_v26, %v1310_v49  ;;  %6987 = vmatprep.subr.bf16.mxu0 %v7575_v50  ;;  %v7653_v51 = vld [vmem:[#allocation2 + $0x128] sm:$0xff] }
 0x151   : > { %2732 = vmatprep.mubr.bf16.mxu1 %v7653_v51  ;;  %v8850_v56 = vld [vmem:[#allocation2 + $0x148] sm:$0xff] }
 0x152   : > { %v8811_v18 = vadd.f32 %v8728_v22, %v1311_v62  ;;  %6952 = vmatmul.mubr.bf16.gmra.mrb[108].mxu0 %v8793_v41  ;;  %v8821_v22 = vpop.f32.mrb[16].mxu1 }
 0x153   : > { %6955 = vmatprep.mubr.bf16.mxu0 %v8801_v42  ;;  %6988 = vmatpush3.bf16.msra.mxu0 %v7575_v50  ;;  %v8826_v36 = vpop.f32.mrb[17].mxu1 }
 0x154   : > { %6989 = vmatprep.subr.bf16.mxu0 %v7576_v32  ;;  %v8831_v23 = vpop.f32.mrb[18].mxu1 }
 0x155   : > { %v1315_v45 = vpop.f32.mrb[4].mxu0  ;;  %v8834_v31 = vpop.f32.mrb[19].mxu1  ;;  %2733 = vmatmul.mubr.bf16.gmra.mrb[124].mxu1 %v8650_v9 }
 0x156   : > { %v1316_v15 = vadd.f32 %v8785_v26, %v1315_v45  ;;  %v1317_v33 = vpop.f32.mrb[5].mxu0  ;;  %2740 = vmatprep.mubr.bf16.mxu1 %v2407_v59  ;;  %v7579_v59 = vld [vmem:[#allocation5 + $0x80] sm:$0xff]  }
 0x157   : > { %v1318_v12 = vpop.f32.mrb[6].mxu0  ;;  %6990 = vmatpush3.bf16.msra.mxu0 %v7576_v32  ;;  %v2410_v32 = vld [vmem:[#allocation2 + $0x158] sm:$0xff]  ;;  %7027 = vmatprep.subr.bf16.mxu1 %v7579_v59 }
 0x158   : > { %v1319_v44 = vadd.f32 %v8785_v26, %v1318_v12  ;;  %v1320_v5 = vpop.f32.mrb[7].mxu0  ;;  %v8829_v4 = vadd.f32 %v8713_v8, %v1316_v15  ;;  %v8844_v50 = vpop.f32.mrb[20].mxu1  ;;  %7028 = vmatpush3.bf16.msra.mxu1 %v7579_v59  ;;  %v7655_v59 = vld [vmem:[#allocation2 + $0x190] sm:$0xff] }
 0x159   : > { %v8852_v49 = vpop.f32.mrb[21].mxu1 }
 0x15a   : > { %6956 = vmatmul.mubr.bf16.gmra.mrb[112].mxu0 %v8819_v61  ;;  %v8837_v25 = vadd.f32 %v8725_v21, %v1319_v44  ;;  %v8854_v9 = vpop.f32.mrb[22].mxu1  ;;  %v8868_v44 = vld [vmem:[#allocation2 + $0x178] sm:$0xff] }
 0x15b   : > { %6959 = vmatprep.mubr.bf16.mxu0 %v8824_v30  ;;  %v8860_v62 = vpop.f32.mrb[23].mxu1 }
 0x15d   : > { %v1323_v57 = vpop.f32.mrb[8].mxu0  ;;  %2741 = vmatmul.mubr.bf16.gmra.mrb[128].mxu1 %v8664_v37 }
 0x15e   : > { %v1325_v55 = vpop.f32.mrb[9].mxu0  ;;  %v1324_v8 = vadd.f32 %v8785_v26, %v1323_v57  ;;  %2748 = vmatprep.mubr.bf16.mxu1 %v2410_v32 }
 0x15f   : > { %v1326_v24 = vpop.f32.mrb[10].mxu0  ;;  %v7654_v55 = vld [vmem:[#allocation2 + $0x160] sm:$0xff] }
 0x160   : > { %v8847_v38 = vadd.f32 %v8748_v34, %v1324_v8  ;;  %v1328_v48 = vpop.f32.mrb[11].mxu0  ;;  %v1327_v21 = vadd.f32 %v8785_v26, %v1326_v24  ;;  %v8865_v33 = vpop.f32.mrb[24].mxu1  ;;  %v2413_v24 = vld [vmem:[#allocation2 + $0x170] sm:$0xff] }
 0x161   : > { %v8870_v5 = vpop.f32.mrb[25].mxu1 }
 0x162   : > { %v8857_v47 = vadd.f32 %v8759_v11, %v1327_v21  ;;  %6960 = vmatmul.mubr.bf16.gmra.mrb[116].mxu0 %v8842_v19  ;;  %v8875_v37 = vpop.f32.mrb[26].mxu1 }
 0x163   : > { %6963 = vmatprep.mubr.bf16.mxu0 %v8850_v56  ;;  %v8877_v8 = vpop.f32.mrb[27].mxu1 }
 0x165   : > { %v1331_v34 = vpop.f32.mrb[12].mxu0  ;;  %2749 = vmatmul.mubr.bf16.gmra.mrb[132].mxu1 %v8675_v27 }
 0x166   : > { %v1332_v45 = vadd.f32 %v8785_v26, %v1331_v34  ;;  %v1333_v51 = vpop.f32.mrb[13].mxu0  ;;  %2756 = vmatprep.mubr.bf16.mxu1 %v2413_v24  ;;  %v7656_v24 = vld [vmem:[#allocation2 + $0x1a8] sm:$0xff] }
 0x167   : > { %v1334_v15 = vpop.f32.mrb[14].mxu0 }
 0x168   : > { %v1335_v11 = vadd.f32 %v8785_v26, %v1334_v15  ;;  %v1336_v12 = vpop.f32.mrb[15].mxu0  ;;  %v8873_v57 = vadd.f32 %v8740_v2, %v1332_v45  ;;  %v8885_v45 = vpop.f32.mrb[28].mxu1 }
 0x16a   : > { %6964 = vmatmul.mubr.bf16.gmra.mrb[120].mxu0 %v7654_v55  ;;  %v8880_v48 = vadd.f32 %v8753_v7, %v1335_v11  ;;  %v8891_v11 = vpop.f32.mrb[29].mxu1 }
 0x16b   : > { %6967 = vmatprep.mubr.bf16.mxu0 %v8868_v44  ;;  %v8893_v12 = vpop.f32.mrb[30].mxu1 }
 0x16c   : > { %v8898_v55 = vpop.f32.mrb[31].mxu1 }
 0x16d   : > { %v1339_v21 = vpop.f32.mrb[16].mxu0  ;;  %2757 = vmatmul.mubr.bf16.gmra.mrb[136].mxu1 %v8688_v29 }
 0x16e   : > { %v1341_v2 = vpop.f32.mrb[17].mxu0  ;;  %v1340_v32 = vadd.f32 %v8785_v26, %v1339_v21  ;;  %v7657_v21 = vld [vmem:[#allocation2 + $0x188] sm:$0xff] }
 0x16f   : > { %v1342_v34 = vpop.f32.mrb[18].mxu0  ;;  %2764 = vmatprep.mubr.bf16.mxu1 %v7657_v21 }
 0x170   : > { %v8888_v51 = vadd.f32 %v8775_v58, %v1340_v32  ;;  %v1344_v15 = vpop.f32.mrb[19].mxu0  ;;  %v1343_v7 = vadd.f32 %v8785_v26, %v1342_v34 }
 0x171   : > { %v8902_v15 = vpop.f32.mrb[32].mxu1 }
 0x172   : > { %10196 = vst [vmem:[#allocation11_spill] sm:$0xff] %v8888_v51  ;;  %v8896_v27 = vadd.f32 %v8780_v0, %v1343_v7  ;;  %6968 = vmatmul.mubr.bf16.gmra.mrb[124].mxu0 %v7655_v59 }
 0x173   : > { %6971 = vmatprep.mubr.bf16.mxu0 %v7656_v24 }
 0x174   : > { %10197 = vst [vmem:[#allocation12_spill] sm:$0xff] %v8896_v27  ;;  %v8905_v27 = vpop.f32.mrb[33].mxu1 }
 0x175   : > { %v1347_v58 = vpop.f32.mrb[20].mxu0  ;;  %v8910_v24 = vpop.f32.mrb[34].mxu1  ;;  %2765 = vmatmul.mubr.bf16.gmra.mrb[140].mxu1 %v8697_v63 }
 0x176   : > { %v1348_v2 = vadd.f32 %v8785_v26, %v1347_v58  ;;  %v1349_v32 = vpop.f32.mrb[21].mxu0  ;;  %v8913_v29 = vpop.f32.mrb[35].mxu1 }
 0x177   : > { %v1350_v34 = vpop.f32.mrb[22].mxu0  ;;  %v7658_v32 = vld [vmem:[#allocation2 + $0x1a0] sm:$0xff] }
 0x178   : > { %v1351_v0 = vadd.f32 %v8785_v26, %v1350_v34  ;;  %v1352_v7 = vpop.f32.mrb[23].mxu0  ;;  %v8908_v59 = vadd.f32 %v8768_v54, %v1348_v2  ;;  %2772 = vmatprep.mubr.bf16.mxu1 %v7658_v32  ;;  %v7580_v34 = vld [vmem:[#allocation5 + $0x88] sm:$0xff]   ;;  %v8921_v51 = vpop.f32.mrb[36].mxu1 }
 0x179   : > { %7029 = vmatprep.subr.bf16.mxu1 %v7580_v34 }
 0x17a   : > { %10198 = vst [vmem:[#allocation13_spill] sm:$0xff] %v8908_v59  ;;  %6972 = vmatmul.mubr.bf16.gmra.mrb[128].mxu0 %v8631_v6  ;;  %v8916_v58 = vadd.f32 %v8777_v39, %v1351_v0  ;;  %7030 = vmatpush3.bf16.msra.mxu1 %v7580_v34 }
 0x17b   : > { %6991 = vmatprep.mubr.bf16.mxu0 %v8711_v40  ;;  %v1995_v40 = vpop.f32.mrb[37].mxu1 }
 0x17c   : > { %v8927_v63 = vpop.f32.mrb[38].mxu1 }
 0x17d   : > { %v1355_v21 = vpop.f32.mrb[24].mxu0  ;;  %2773 = vmatmul.mubr.bf16.gmra.mrb[144].mxu1 %v8703_v16 }
 0x17e   : > { %v1357_v7 = vpop.f32.mrb[25].mxu0  ;;  %v1356_v54 = vadd.f32 %v8785_v26, %v1355_v21  ;;  %v1998_v21 = vpop.f32.mrb[39].mxu1 }
 0x17f   : > { %v1358_v2 = vpop.f32.mrb[26].mxu0 }
 0x180   : > { %v8924_v59 = vadd.f32 %v8806_v13, %v1356_v54  ;;  %v1360_v39 = vpop.f32.mrb[27].mxu0  ;;  %v1359_v0 = vadd.f32 %v8785_v26, %v1358_v2  ;;  %v7659_v13 = vld [vmem:[#allocation2 + $0x1b8] sm:$0xff]  ;;  %v8936_v34 = vpop.f32.mrb[40].mxu1 }
 0x181   : > { %2780 = vmatprep.mubr.bf16.mxu1 %v7659_v13 }
 0x182   : > { %v8930_v32 = vadd.f32 %v8814_v43, %v1359_v0  ;;  %6992 = vmatmul.mubr.bf16.vlgmr.msra.gmra.mrb[132].mxu0 %v8715_v46  ;;  %v2003_v0 = vpop.f32.mrb[41].mxu1 }
 0x183   : > { %6995 = vmatprep.mubr.bf16.mxu0 %v8738_v28  ;;  %v8942_v21 = vpop.f32.mrb[42].mxu1 }
 0x184   : > { %v2006_v16 = vpop.f32.mrb[43].mxu1 }
 0x185   : > { %v1363_v7 = vpop.f32.mrb[28].mxu0  ;;  %v7581_v16 = vld [vmem:[#allocation5 + $0x90] sm:$0xff]  }
 0x186   : > { %v1364_v54 = vadd.f32 %v8785_v26, %v1363_v7  ;;  %v1365_v2 = vpop.f32.mrb[29].mxu0  ;;  %v7660_v7 = vld [vmem:[#allocation2 + $0x1b0] sm:$0xff]  ;;  %7031 = vmatprep.subr.bf16.mxu1 %v7581_v16 }
 0x187   : > { %v1366_v39 = vpop.f32.mrb[30].mxu0  ;;  %2781 = vmatmul.mubr.bf16.gmra.mrb[148].mxu1 %v7660_v7 }
 0x188   : > { %v1367_v40 = vadd.f32 %v8785_v26, %v1366_v39  ;;  %v1368_v43 = vpop.f32.mrb[31].mxu0  ;;  %v8940_v46 = vadd.f32 %v8795_v10, %v1364_v54  ;;  %2788 = vmatprep.mubr.bf16.mxu1 %v8751_v52  ;;  %v8951_v54 = vpop.f32.mrb[44].mxu1  ;;  %7032 = vmatpush3.bf16.msra.mxu1 %v7581_v16 }
 0x18a   : > { %6996 = vmatmul.mubr.bf16.gmra.mrb[136].mxu0 %v8743_v3  ;;  %v8946_v28 = vadd.f32 %v8808_v20, %v1367_v40  ;;  %v2011_v40 = vpop.f32.mrb[45].mxu1 }
 0x18b   : > { %6999 = vmatprep.mubr.bf16.mxu0 %v8766_v17  ;;  %v8957_v0 = vpop.f32.mrb[46].mxu1 }
 0x18c   : > { %v2014_v52 = vpop.f32.mrb[47].mxu1 }
 0x18d   : > { %v1371_v13 = vpop.f32.mrb[32].mxu0 }
 0x18e   : > { %v1373_v2 = vpop.f32.mrb[33].mxu0  ;;  %v1372_v39 = vadd.f32 %v8785_v26, %v1371_v13 }
 0x18f   : > { %v1374_v10 = vpop.f32.mrb[34].mxu0  ;;  %2789 = vmatmul.mubr.bf16.gmra.mrb[152].mxu1 %v8723_v60 }
 0x190   : > { %v8954_v43 = vadd.f32 %v8826_v36, %v1372_v39  ;;  %v1376_v3 = vpop.f32.mrb[35].mxu0  ;;  %v1375_v20 = vadd.f32 %v8785_v26, %v1374_v10  ;;  %7043 = vmatprep.mubr.bf16.mxu1 %v8708_v53  ;;  %v8967_v39 = vpop.f32.mrb[48].mxu1 }
 0x191   : > { %v2019_v10 = vpop.f32.mrb[49].mxu1 }
 0x192   : > { %v8960_v17 = vadd.f32 %v8834_v31, %v1375_v20  ;;  %7000 = vmatmul.mubr.bf16.gmra.mrb[140].mxu0 %v8770_v35 }
 0x193   : > { %7003 = vmatprep.mubr.bf16.mxu0 %v8793_v41  ;;  %v8973_v41 = vpop.f32.mrb[50].mxu1 }
 0x194   : > { %v2022_v60 = vpop.f32.mrb[51].mxu1 }
 0x195   : > { %v1379_v36 = vpop.f32.mrb[36].mxu0 }
 0x196   : > { %v1380_v7 = vadd.f32 %v8785_v26, %v1379_v36  ;;  %v1381_v13 = vpop.f32.mrb[37].mxu0 }
 0x197   : > { %v1382_v2 = vpop.f32.mrb[38].mxu0 }
 0x198   : > { %v1383_v31 = vadd.f32 %v8785_v26, %v1382_v2  ;;  %v1384_v35 = vpop.f32.mrb[39].mxu0  ;;  %v8971_v3 = vadd.f32 %v8821_v22, %v1380_v7  ;;  %v8981_v13 = vpop.f32.mrb[52].mxu1 }
 0x19a   : > { %7004 = vmatmul.mubr.bf16.gmra.mrb[144].mxu0 %v8801_v42  ;;  %v8977_v20 = vadd.f32 %v8831_v23, %v1383_v31  ;;  %v2027_v42 = vpop.f32.mrb[53].mxu1  ;;  %v7582_v31 = vld [vmem:[#allocation5 + $0x98] sm:$0xff]  }
 0x19b   : > { %7007 = vmatprep.mubr.bf16.mxu0 %v8819_v61  ;;  %v8987_v35 = vpop.f32.mrb[54].mxu1  ;;  %7033 = vmatprep.subr.bf16.mxu1 %v7582_v31 }
 0x19c   : > { %v2030_v61 = vpop.f32.mrb[55].mxu1  ;;  %7034 = vmatpush3.bf16.msra.mxu1 %v7582_v31 }
 0x19d   : > { %v1387_v40 = vpop.f32.mrb[40].mxu0 }
 0x19e   : > { %v1388_v52 = vadd.f32 %v8785_v26, %v1387_v40  ;;  %v1389_v16 = vpop.f32.mrb[41].mxu0 }
 0x19f   : > { %v1390_v36 = vpop.f32.mrb[42].mxu0 }
 0x1a0   : > { %v8984_v22 = vadd.f32 %v8852_v49, %v1388_v52  ;;  %v1391_v7 = vadd.f32 %v8785_v26, %v1390_v36  ;;  %v1392_v2 = vpop.f32.mrb[43].mxu0  ;;  %v8995_v52 = vpop.f32.mrb[56].mxu1 }
 0x1a2   : > { %v8990_v23 = vadd.f32 %v8860_v62, %v1391_v7  ;;  %7008 = vmatmul.mubr.bf16.gmra.mrb[148].mxu0 %v8824_v30  ;;  %v2411_v30 = vld [vmem:[#allocation2 + $0x160] sm:$0xff]  ;;  %v2035_v7 = vpop.f32.mrb[57].mxu1 }
 0x1a3   : > { %7011 = vmatprep.mubr.bf16.mxu0 %v8842_v19  ;;  %v9001_v2 = vpop.f32.mrb[58].mxu1  ;;  %v2417_v7 = vld [vmem:[#allocation2 + $0x190] sm:$0xff] }
 0x1a4   : > { %v2038_v42 = vpop.f32.mrb[59].mxu1 }
 0x1a5   : > { %v1395_v10 = vpop.f32.mrb[44].mxu0  ;;  %v7583_v42 = vld [vmem:[#allocation5 + $0xa0] sm:$0xff]  }
 0x1a6   : > { %v1396_v49 = vadd.f32 %v8785_v26, %v1395_v10  ;;  %v1397_v60 = vpop.f32.mrb[45].mxu0  ;;  %7035 = vmatprep.subr.bf16.mxu1 %v7583_v42 }
 0x1a7   : > { %v1398_v40 = vpop.f32.mrb[46].mxu0  ;;  %7036 = vmatpush3.bf16.msra.mxu1 %v7583_v42 }
 0x1a8   : > { %v8998_v16 = vadd.f32 %v8844_v50, %v1396_v49  ;;  %v1399_v62 = vadd.f32 %v8785_v26, %v1398_v40  ;;  %v1400_v36 = vpop.f32.mrb[47].mxu0  ;;  %v9008_v49 = vpop.f32.mrb[60].mxu1 }
 0x1aa   : > { %v9004_v19 = vadd.f32 %v8854_v9, %v1399_v62  ;;  %7012 = vmatmul.mubr.bf16.gmra.mrb[152].mxu0 %v8850_v56  ;;  %v2043_v9 = vpop.f32.mrb[61].mxu1 }
 0x1ab   : > { %7015 = vmatprep.mubr.bf16.mxu0 %v2411_v30  ;;  %v9014_v62 = vpop.f32.mrb[62].mxu1 }
 0x1ac   : > { %10200 = vst [vmem:[#allocation15_spill] sm:$0xff] %v9014_v62  ;;  %v2046_v30 = vpop.f32.mrb[63].mxu1 }
 0x1ad   : > { %v1403_v61 = vpop.f32.mrb[48].mxu0 }
 0x1ae   : > { %v1404_v31 = vadd.f32 %v8785_v26, %v1403_v61  ;;  %v1405_v10 = vpop.f32.mrb[49].mxu0 }
 0x1af   : > { %v1406_v50 = vpop.f32.mrb[50].mxu0 }
 0x1b0   : > { %v9011_v60 = vadd.f32 %v8870_v5, %v1404_v31  ;;  %v1407_v40 = vadd.f32 %v8785_v26, %v1406_v50  ;;  %v1408_v36 = vpop.f32.mrb[51].mxu0  ;;  %v2420_v50 = vld [vmem:[#allocation2 + $0x1a8] sm:$0xff] }
 0x1b1   : > { %v9021_v36 = vpop.f32.mrb[64].mxu1 }
 0x1b2   : > { %10199 = vst [vmem:[#allocation14_spill] sm:$0xff] %v9011_v60  ;;  %v9017_v56 = vadd.f32 %v8877_v8, %v1407_v40  ;;  %7016 = vmatmul.mubr.bf16.gmra.mrb[156].mxu0 %v8868_v44  ;;  %v2051_v44 = vpop.f32.mrb[65].mxu1 }
 0x1b3   : > { %7019 = vmatprep.mubr.bf16.mxu0 %v2417_v7  ;;  %v9027_v30 = vpop.f32.mrb[66].mxu1 }
 0x1b4   : > { %10201 = vst [vmem:[#allocation16_spill] sm:$0xff] %v9017_v56  ;;  %10202 = vst [vmem:[#allocation17_spill] sm:$0xff] %v9027_v30 }
 0x1b5   : > { %v1411_v61 = vpop.f32.mrb[52].mxu0 }
 0x1b6   : > { %v1412_v5 = vadd.f32 %v8785_v26, %v1411_v61  ;;  %v1413_v31 = vpop.f32.mrb[53].mxu0  ;;  %v2054_v61 = vpop.f32.mrb[67].mxu1 }
 0x1b7   : > { %v1414_v10 = vpop.f32.mrb[54].mxu0  ;;  %v7585_v31 = vld [vmem:[#allocation5 + $0x40] sm:$0xff]   ;;  %v7588_v61 = vld [vmem:[#allocation5 + $0x8] sm:$0xff]  }
 0x1b8   : > { %v9024_v9 = vadd.f32 %v8865_v33, %v1412_v5  ;;  %v1415_v8 = vadd.f32 %v8785_v26, %v1414_v10  ;;  %v1416_v40 = vpop.f32.mrb[55].mxu0  ;;  %v7586_v33 = vld [vmem:[#allocation5] sm:$0xff]   ;;  %v9034_v60 = vpop.f32.mrb[68].mxu1  ;;  %6463 = vmatprep.subr.bf16.mxu0 %v7585_v31 }
 0x1b9   : > { %10204 = vst [vmem:[#allocation19_spill] sm:$0xff] %v9034_v60  ;;  %6464 = vmatpush3.bf16.msra.mxu0 %v7586_v33  ;;  %v7591_v33 = vld [vmem:[#allocation5 + $0x10] sm:$0xff]  }
 0x1ba   : > { %v9030_v7 = vadd.f32 %v8875_v37, %v1415_v8  ;;  %7020 = vmatmul.mubr.bf16.gmra.mrb[160].mxu0 %v2420_v50  ;;  %v2059_v50 = vpop.f32.mrb[69].mxu1 }
 0x1bb   : > { %7023 = vmatprep.mubr.bf16.mxu0 %v8631_v6  ;;  %v9040_v40 = vpop.f32.mrb[70].mxu1  ;;  %v7587_v6 = vld [vmem:[#allocation5 + $0x48] sm:$0xff]  }
 0x1bc   : > { %10203 = vst [vmem:[#allocation18_spill] sm:$0xff] %v9030_v7  ;;  %10206 = vst [vmem:[#allocation21_spill] sm:$0xff] %v9040_v40  ;;  %6465 = vmatprep.subr.bf16.mxu0 %v7587_v6  ;;  %v7584_v6 = vld [vmem:[#allocation5 + $0xa8] sm:$0xff]  }
 0x1bd   : > { %v1419_v42 = vpop.f32.mrb[56].mxu0  ;;  %6466 = vmatpush3.bf16.msra.mxu0 %v7588_v61  ;;  %v7592_v61 = vld [vmem:[#allocation5 + $0x58] sm:$0xff]   ;;  %7037 = vmatprep.subr.bf16.mxu1 %v7584_v6 }
 0x1be   : > { %v1420_v56 = vadd.f32 %v8785_v26, %v1419_v42  ;;  %v1421_v62 = vpop.f32.mrb[57].mxu0  ;;  %7038 = vmatpush3.bf16.msra.mxu1 %v7584_v6 }
 0x1bf   : > { %v1422_v5 = vpop.f32.mrb[58].mxu0  ;;  %v2062_v62 = vpop.f32.mrb[71].mxu1 }
 0x1c0   : > { %v9037_v10 = vadd.f32 %v8891_v11, %v1420_v56  ;;  %v1423_v37 = vadd.f32 %v8785_v26, %v1422_v5  ;;  %v1424_v8 = vpop.f32.mrb[59].mxu0  ;;  %v7590_v56 = vld [vmem:[#allocation5 + $0x50] sm:$0xff]  }
 0x1c1   : > { %v9048_v8 = vpop.f32.mrb[72].mxu1  ;;  %6467 = vmatprep.subr.bf16.mxu0 %v7590_v56  ;;  %v7594_v56 = vld [vmem:[#allocation5 + $0x60] sm:$0xff]  }
 0x1c2   : > { %10205 = vst [vmem:[#allocation20_spill] sm:$0xff] %v9037_v10  ;;  %v9043_v44 = vadd.f32 %v8898_v55, %v1423_v37  ;;  %7024 = vmatmul.mubr.bf16.gmra.mrb[164].mxu0 %v8756_v14  ;;  %10208 = vst [vmem:[#allocation23_spill] sm:$0xff] %v9048_v8  ;;  %v2067_v50 = vpop.f32.mrb[73].mxu1 }
 0x1c3   : > { %3929 = vmatprep.mubr.bf16.mxu0 %v8708_v53  ;;  %6468 = vmatpush3.bf16.msra.mxu0 %v7591_v33  ;;  %v9054_v62 = vpop.f32.mrb[74].mxu1 }
 0x1c4   : > { %10207 = vst [vmem:[#allocation22_spill] sm:$0xff] %v9043_v44  ;;  %10210 = vst [vmem:[#allocation25_spill] sm:$0xff] %v9054_v62  ;;  %v7593_v44 = vld [vmem:[#allocation5 + $0x18] sm:$0xff]   ;;  %6469 = vmatprep.subr.bf16.mxu0 %v7592_v61 }
 0x1c5   : > { %v1427_v11 = vpop.f32.mrb[60].mxu0 }
 0x1c6   : > { %v1428_v42 = vadd.f32 %v8785_v26, %v1427_v11  ;;  %v1429_v31 = vpop.f32.mrb[61].mxu0 }
 0x1c7   : > { %v1430_v5 = vpop.f32.mrb[62].mxu0  ;;  %v2070_v31 = vpop.f32.mrb[75].mxu1  ;;  %6470 = vmatpush3.bf16.msra.mxu0 %v7593_v44  ;;  %v7596_v44 = vld [vmem:[#allocation5 + $0x68] sm:$0xff]  }
 0x1c8   : > { %v9051_v55 = vadd.f32 %v8885_v45, %v1428_v42  ;;  %v1431_v14 = vadd.f32 %v8785_v26, %v1430_v5  ;;  %v1432_v37 = vpop.f32.mrb[63].mxu0  ;;  %v9060_v33 = vpop.f32.mrb[76].mxu1  ;;  %6471 = vmatprep.subr.bf16.mxu0 %v7594_v56  ;;  %v7598_v56 = vld [vmem:[#allocation5 + $0x70] sm:$0xff]  }
 0x1c9   : > { %v7595_v37 = vld [vmem:[#allocation5 + $0x20] sm:$0xff]   ;;  %10212 = vst [vmem:[#allocation27_spill] sm:$0xff] %v9060_v33  ;;  %v2075_v31 = vpop.f32.mrb[77].mxu1 }
 0x1ca   : > { %10209 = vst [vmem:[#allocation24_spill] sm:$0xff] %v9051_v55  ;;  %v9057_v11 = vadd.f32 %v8893_v12, %v1431_v14  ;;  %v9066_v6 = vpop.f32.mrb[78].mxu1 }
 0x1cb   : > { %6472 = vmatpush3.bf16.msra.mxu0 %v7595_v37  ;;  %10214 = vst [vmem:[#allocation29_spill] sm:$0xff] %v9066_v6 }
 0x1cc   : > { %10211 = vst [vmem:[#allocation26_spill] sm:$0xff] %v9057_v11  ;;  %6473 = vmatprep.subr.bf16.mxu0 %v7596_v44 }
 0x1cd   : > { %v1435_v45 = vpop.f32.mrb[64].mxu0 }
 0x1ce   : > { %v1436_v42 = vadd.f32 %v8785_v26, %v1435_v45  ;;  %v1437_v5 = vpop.f32.mrb[65].mxu0  ;;  %v2078_v45 = vpop.f32.mrb[79].mxu1 }
 0x1cf   : > { %v1438_v50 = vpop.f32.mrb[66].mxu0  ;;  %v7597_v5 = vld [vmem:[#allocation5 + $0x28] sm:$0xff]   ;;  %v7601_v45 = vld [vmem:[#allocation5 + $0x78] sm:$0xff]  }
 0x1d0   : > { %v9063_v40 = vadd.f32 %v8905_v27, %v1436_v42  ;;  %v1439_v12 = vadd.f32 %v8785_v26, %v1438_v50  ;;  %v1440_v14 = vpop.f32.mrb[67].mxu0  ;;  %6474 = vmatpush3.bf16.msra.mxu0 %v7597_v5 }
 0x1d1   : > { %v9072_v14 = vpop.f32.mrb[80].mxu1  ;;  %6475 = vmatprep.subr.bf16.mxu0 %v7598_v56 }
 0x1d2   : > { %10213 = vst [vmem:[#allocation28_spill] sm:$0xff] %v9063_v40  ;;  %v9069_v61 = vadd.f32 %v8913_v29, %v1439_v12  ;;  %v7600_v40 = vld [vmem:[#allocation5 + $0x30] sm:$0xff]   ;;  %10216 = vst [vmem:[#allocation31_spill] sm:$0xff] %v9072_v14  ;;  %v2083_v31 = vpop.f32.mrb[81].mxu1 }
 0x1d3   : > { %v9078_v44 = vpop.f32.mrb[82].mxu1 }
 0x1d4   : > { %10215 = vst [vmem:[#allocation30_spill] sm:$0xff] %v9069_v61  ;;  %6476 = vmatpush3.bf16.msra.mxu0 %v7600_v40  ;;  %10218 = vst [vmem:[#allocation33_spill] sm:$0xff] %v9078_v44 }
 0x1d5   : > { %v1443_v33 = vpop.f32.mrb[68].mxu0  ;;  %6477 = vmatprep.subr.bf16.mxu0 %v7601_v45 }
 0x1d6   : > { %v1444_v27 = vadd.f32 %v8785_v26, %v1443_v33  ;;  %v1445_v42 = vpop.f32.mrb[69].mxu0  ;;  %v2086_v33 = vpop.f32.mrb[83].mxu1 }
 0x1d7   : > { %v1446_v50 = vpop.f32.mrb[70].mxu0  ;;  %v7602_v42 = vld [vmem:[#allocation5 + $0x38] sm:$0xff]  }
 0x1d8   : > { %v9075_v37 = vadd.f32 %v8902_v15, %v1444_v27  ;;  %v1447_v29 = vadd.f32 %v8785_v26, %v1446_v50  ;;  %v1448_v12 = vpop.f32.mrb[71].mxu0  ;;  %6478 = vmatpush3.bf16.msra.mxu0 %v7602_v42  ;;  %v9085_v15 = vpop.f32.mrb[84].mxu1 }
 0x1d9   : > { %10220 = vst [vmem:[#allocation35_spill] sm:$0xff] %v9085_v15  ;;  %v2656_v27 = vpop.f32.mrb[85].mxu1  ;;  %v7589_v15 = vld [vmem:[#allocation5 + $0xb0] sm:$0xff]  }
 0x1da   : > { %10217 = vst [vmem:[#allocation32_spill] sm:$0xff] %v9075_v37  ;;  %v9081_v5 = vadd.f32 %v8910_v24, %v1447_v29  ;;  %v9087_v50 = vpop.f32.mrb[86].mxu1  ;;  %7039 = vmatprep.subr.bf16.mxu1 %v7589_v15 }
 0x1db   : > { %10221 = vst [vmem:[#allocation36_spill] sm:$0xff] %v9087_v50  ;;  %3930 = vmatmul.mubr.bf16.vlgmr.msra.gmra.mrb[168].mxu0 %v8708_v53  ;;  %v2659_v40 = vpop.f32.mrb[87].mxu1  ;;  %7040 = vmatpush3.bf16.msra.mxu1 %v7589_v15 }
 0x1dc   : > { %10219 = vst [vmem:[#allocation34_spill] sm:$0xff] %v9081_v5 }
 0x1dd   : > { %v1945_v61 = vpop.f32.mrb[72].mxu0 }
 0x1de   : > { %v1947_v6 = vpop.f32.mrb[73].mxu0 }
 0x1df   : > { %v9083_v56 = vpop.f32.mrb[74].mxu0 }
 0x1e0   : > { %v1950_v26 = vpop.f32.mrb[75].mxu0  ;;  %v9090_v31 = vpop.f32.mrb[88].mxu1 }
 0x1e1   : > { %10222 = vst [vmem:[#allocation37_spill] sm:$0xff] %v9090_v31  ;;  %v2664_v33 = vpop.f32.mrb[89].mxu1  ;;  %v7599_v31 = vld [vmem:[#allocation5 + $0xb8] sm:$0xff]  }
 0x1e2   : > { %v9092_v6 = vpop.f32.mrb[90].mxu1  ;;  %7041 = vmatprep.subr.bf16.mxu1 %v7599_v31 }
 0x1e3   : > { %10223 = vst [vmem:[#allocation38_spill] sm:$0xff] %v9092_v6  ;;  %v2667_v42 = vpop.f32.mrb[91].mxu1  ;;  %7042 = vmatpush3.bf16.msra.mxu1 %v7599_v31 }
 0x1e5   : > { %v1953_v12 = vpop.f32.mrb[76].mxu0 }
 0x1e6   : > { %v1955_v24 = vpop.f32.mrb[77].mxu0 }
 0x1e7   : > { %v1956_v29 = vpop.f32.mrb[78].mxu0 }
 0x1e8   : > { %v1958_v45 = vpop.f32.mrb[79].mxu0  ;;  %v9096_v27 = vpop.f32.mrb[92].mxu1 }
 0x1e9   : > { %10224 = vst [vmem:[#allocation39_spill] sm:$0xff] %v9096_v27  ;;  %v2672_v37 = vpop.f32.mrb[93].mxu1 }
 0x1ea   : > { %v9098_v40 = vpop.f32.mrb[94].mxu1 }
 0x1eb   : > { %10225 = vst [vmem:[#allocation40_spill] sm:$0xff] %v9098_v40  ;;  %v2675_v24 = vpop.f32.mrb[95].mxu1 }
 0x1ed   : > { %v1961_v5 = vpop.f32.mrb[80].mxu0 }
 0x1ee   : > { %v1963_v44 = vpop.f32.mrb[81].mxu0 }
 0x1ef   : > { %v9094_v26 = vpop.f32.mrb[82].mxu0 }
 0x1f0   : > { %v1966_v50 = vpop.f32.mrb[83].mxu0  ;;  %v9100_v6 = vpop.f32.mrb[96].mxu1 }
 0x1f1   : > { %10226 = vst [vmem:[#allocation41_spill] sm:$0xff] %v9100_v6  ;;  %v2680_v14 = vpop.f32.mrb[97].mxu1  ;;  %v7603_v6 = vld [vmem:[#allocation5 + $0x100] sm:$0xff]  }
 0x1f2   : > { %v9102_v11 = vpop.f32.mrb[98].mxu1  ;;  %6599 = vmatprep.subr.bf16.mxu1 %v7603_v6 }
 0x1f3   : > { %10227 = vst [vmem:[#allocation42_spill] sm:$0xff] %v9102_v11  ;;  %v2683_v27 = vpop.f32.mrb[99].mxu1 }
 0x1f5   : > { %v1969_v45 = vpop.f32.mrb[84].mxu0 }
 0x1f6   : > { %v1971_v33 = vpop.f32.mrb[85].mxu0 }
 0x1f7   : > { %v1972_v42 = vpop.f32.mrb[86].mxu0 }
 0x1f8   : > { %v1974_v44 = vpop.f32.mrb[87].mxu0  ;;  %v9104_v62 = vpop.f32.mrb[100].mxu1 }
 0x1f9   : > { %10228 = vst [vmem:[#allocation43_spill] sm:$0xff] %v9104_v62  ;;  %v2688_v24 = vpop.f32.mrb[101].mxu1 }
 0x1fa   : > { %v9106_v40 = vpop.f32.mrb[102].mxu1 }
 0x1fb   : > { %10229 = vst [vmem:[#allocation44_spill] sm:$0xff] %v9106_v40  ;;  %v2691_v55 = vpop.f32.mrb[103].mxu1 }
 0x1fd   : > { %v1977_v50 = vpop.f32.mrb[88].mxu0 }
 0x1fe   : > { %v1979_v37 = vpop.f32.mrb[89].mxu0 }
 0x1ff   : > { %v1980_v10 = vpop.f32.mrb[90].mxu0 }
 0x200   : > { %v1982_v15 = vpop.f32.mrb[91].mxu0  ;;  %v9108_v8 = vpop.f32.mrb[104].mxu1 }
 0x201   : > { %10230 = vst [vmem:[#allocation45_spill] sm:$0xff] %v9108_v8  ;;  %v2696_v14 = vpop.f32.mrb[105].mxu1 }
 0x202   : > { %v9110_v11 = vpop.f32.mrb[106].mxu1 }
 0x203   : > { %v2699_v27 = vpop.f32.mrb[107].mxu1 }
 0x205   : > { %v1985_v31 = vpop.f32.mrb[92].mxu0 }
 0x206   : > { %v1987_v33 = vpop.f32.mrb[93].mxu0 }
 0x207   : > { %v1988_v60 = vpop.f32.mrb[94].mxu0 }
 0x208   : > { %v1990_v44 = vpop.f32.mrb[95].mxu0  ;;  %v9112_v30 = vpop.f32.mrb[108].mxu1 }
 0x209   : > { %v2704_v8 = vpop.f32.mrb[109].mxu1 }
 0x20a   : > { %v9121_v27 = vpop.f32.mrb[110].mxu1 }
 0x20d   : > { %v6941_v37 = vpop.f32.mrb[96].mxu0 }
 0x20e   : > { %v2131_v7 = vadd.f32 %v6941_v37, %v1953_v12  ;;  %v2122_v62 = vpop.f32.mrb[97].mxu0 }
 0x20f   : > { %v2123_v15 = vadd.f32 %v2122_v62, %v1945_v61  ;;  %v6942_v24 = vpop.f32.mrb[98].mxu0  ;;  %v2707_v62 = vpop.f32.mrb[111].mxu1 }
 0x210   : > { %v9115_v55 = vadd.f32 %v2131_v7, %v8829_v4  ;;  %v2134_v33 = vadd.f32 %v6942_v24, %v1956_v29  ;;  %v2125_v40 = vpop.f32.mrb[99].mxu0  ;;  %v9129_v8 = vpop.f32.mrb[112].mxu1 }
 0x211   : > { %v9118_v44 = vadd.f32 %v2123_v15, %v8798_v1  ;;  %v2126_v14 = vadd.f32 %v2125_v40, %v9083_v56  ;;  %v2712_v15 = vpop.f32.mrb[113].mxu1 }
 0x212   : > { %v9124_v12 = vadd.f32 %v2134_v33, %v8837_v25 }
 0x213   : > { %v9127_v61 = vadd.f32 %v2126_v14, %v8811_v18  ;;  %v9138_v18 = vpop.f32.mrb[114].mxu1 }
 0x215   : > { %v6945_v6 = vpop.f32.mrb[100].mxu0 }
 0x216   : > { %v2147_v4 = vadd.f32 %v6945_v6, %v1969_v45  ;;  %v2138_v7 = vpop.f32.mrb[101].mxu0 }
 0x217   : > { %v2139_v29 = vadd.f32 %v2138_v7, %v1961_v5  ;;  %v6946_v37 = vpop.f32.mrb[102].mxu0  ;;  %v2715_v5 = vpop.f32.mrb[115].mxu1 }
 0x218   : > { %v9132_v1 = vadd.f32 %v2147_v4, %v8873_v57  ;;  %v2150_v56 = vadd.f32 %v6946_v37, %v1972_v42  ;;  %v2141_v40 = vpop.f32.mrb[103].mxu0  ;;  %v9146_v4 = vpop.f32.mrb[116].mxu1 }
 0x219   : > { %v9135_v25 = vadd.f32 %v2139_v29, %v8847_v38  ;;  %v2142_v24 = vadd.f32 %v2141_v40, %v9094_v26  ;;  %v10231_v38 = vld [vmem:[#allocation13_spill] sm:$0xff]  ;;  %v2720_v37 = vpop.f32.mrb[117].mxu1  ;;  %v10232_v40 = vld [vmem:[#allocation11_spill] sm:$0xff] }
 0x21a   : > { %v9141_v45 = vadd.f32 %v2150_v56, %v8880_v48  ;;  %v9154_v15 = vpop.f32.mrb[118].mxu1 }
 0x21b   : > { %v9144_v33 = vadd.f32 %v2142_v24, %v8857_v47  ;;  %v10234_v24 = vld [vmem:[#allocation12_spill] sm:$0xff] }
 0x21d   : > { %v6949_v14 = vpop.f32.mrb[104].mxu0 }
 0x21e   : > { %v2163_v57 = vadd.f32 %v6949_v14, %v1985_v31  ;;  %v2154_v62 = vpop.f32.mrb[105].mxu0  ;;  %v2723_v31 = vpop.f32.mrb[119].mxu1 }
 0x21f   : > { %v2155_v42 = vadd.f32 %v2154_v62, %v1977_v50  ;;  %v6950_v6 = vpop.f32.mrb[106].mxu0  ;;  %v9159_v50 = vld [vmem:[#allocation2 + $0x1a0] sm:$0xff] }
 0x220   : > { %v9149_v7 = vadd.f32 %v2163_v57, %v10231_v38  ;;  %v2166_v26 = vadd.f32 %v6950_v6, %v1988_v60  ;;  %v2157_v29 = vpop.f32.mrb[107].mxu0  ;;  %10233 = vst [vmem:[#allocation13_spill] sm:$0xff] %v9159_v50  ;;  %3623 = vst [vmem:[#allocation2 + $0x1a0] sm:$0xff] %v8708_v53 }
 0x221   : > { %v9152_v48 = vadd.f32 %v2155_v42, %v10232_v40  ;;  %v2158_v56 = vadd.f32 %v2157_v29, %v1980_v10  ;;  %v9167_v42 = vpop.f32.mrb[120].mxu1 }
 0x222   : > { %v9157_v47 = vadd.f32 %v2166_v26, %v8916_v58  ;;  %v2728_v26 = vpop.f32.mrb[121].mxu1 }
 0x223   : > { %v9162_v5 = vadd.f32 %v2158_v56, %v10234_v24  ;;  %v9177_v37 = vpop.f32.mrb[122].mxu1 }
 0x225   : > { %v6953_v60 = vpop.f32.mrb[108].mxu0 }
 0x226   : > { %v2179_v14 = vadd.f32 %v6953_v60, %v8936_v34  ;;  %v2170_v57 = vpop.f32.mrb[109].mxu0 }
 0x227   : > { %v2171_v62 = vadd.f32 %v2170_v57, %v8921_v51  ;;  %v6954_v10 = vpop.f32.mrb[110].mxu0  ;;  %v2731_v51 = vpop.f32.mrb[123].mxu1 }
 0x228   : > { %v9170_v58 = vadd.f32 %v2179_v14, %v8940_v46  ;;  %v2182_v6 = vadd.f32 %v6954_v10, %v8942_v21  ;;  %v2173_v38 = vpop.f32.mrb[111].mxu0 }
 0x229   : > { %v9174_v29 = vadd.f32 %v2171_v62, %v8924_v59  ;;  %v2174_v53 = vadd.f32 %v2173_v38, %v8927_v63  ;;  %v9187_v59 = vpop.f32.mrb[124].mxu1 }
 0x22a   : > { %v9180_v34 = vadd.f32 %v2182_v6, %v8946_v28  ;;  %v2736_v14 = vpop.f32.mrb[125].mxu1 }
 0x22b   : > { %v9183_v40 = vadd.f32 %v2174_v53, %v8930_v32  ;;  %v9197_v62 = vpop.f32.mrb[126].mxu1  ;;  %v10235_v14 = vld [vmem:[#allocation17_spill] sm:$0xff] }
 0x22d   : > { %v6957_v46 = vpop.f32.mrb[112].mxu0 }
 0x22e   : > { %v2195_v56 = vadd.f32 %v6957_v46, %v8967_v39  ;;  %v2186_v21 = vpop.f32.mrb[113].mxu0 }
 0x22f   : > { %v2187_v31 = vadd.f32 %v2186_v21, %v8951_v54  ;;  %v6958_v24 = vpop.f32.mrb[114].mxu0  ;;  %v2739_v54 = vpop.f32.mrb[127].mxu1 }
 0x230   : > { %v9190_v63 = vadd.f32 %v2195_v56, %v8971_v3  ;;  %v2198_v60 = vadd.f32 %v6958_v24, %v8973_v41  ;;  %v2189_v28 = vpop.f32.mrb[115].mxu0 }
 0x231   : > { %v9194_v57 = vadd.f32 %v2187_v31, %v8954_v43  ;;  %v2190_v32 = vadd.f32 %v2189_v28, %v8957_v0  ;;  %v9207_v43 = vpop.f32.mrb[128].mxu1  ;;  %v7620_v31 = vld [vmem:[#allocation5 + $0x180] sm:$0xff]  }
 0x232   : > { %v9200_v39 = vadd.f32 %v2198_v60, %v8977_v20  ;;  %v2744_v51 = vpop.f32.mrb[129].mxu1 }
 0x233   : > { %v9203_v10 = vadd.f32 %v2190_v32, %v8960_v17  ;;  %v9217_v56 = vpop.f32.mrb[130].mxu1 }
 0x235   : > { %v6961_v3 = vpop.f32.mrb[116].mxu0 }
 0x236   : > { %v2211_v6 = vadd.f32 %v6961_v3, %v8995_v52  ;;  %v2202_v41 = vpop.f32.mrb[117].mxu0  ;;  %v10236_v3 = vld [vmem:[#allocation14_spill] sm:$0xff] }
 0x237   : > { %v2203_v38 = vadd.f32 %v2202_v41, %v8981_v13  ;;  %v6962_v26 = vpop.f32.mrb[118].mxu0  ;;  %v2747_v13 = vpop.f32.mrb[131].mxu1  ;;  %v10238_v41 = vld [vmem:[#allocation15_spill] sm:$0xff] }
 0x238   : > { %v9210_v0 = vadd.f32 %v2211_v6, %v8998_v16  ;;  %v2214_v53 = vadd.f32 %v6962_v26, %v9001_v2  ;;  %v2205_v20 = vpop.f32.mrb[119].mxu0  ;;  %v7619_v16 = vld [vmem:[#allocation5 + $0x1c0] sm:$0xff]   ;;  %v9227_v28 = vpop.f32.mrb[132].mxu1  ;;  %v10240_v26 = vld [vmem:[#allocation18_spill] sm:$0xff] }
 0x239   : > { %v9214_v46 = vadd.f32 %v2203_v38, %v8984_v22  ;;  %v2206_v17 = vadd.f32 %v2205_v20, %v8987_v35  ;;  %6735 = vmatprep.subr.bf16.mxu0 %v7619_v16  ;;  %v2752_v54 = vpop.f32.mrb[133].mxu1  ;;  %v10242_v20 = vld [vmem:[#allocation16_spill] sm:$0xff] }
 0x23a   : > { %v9220_v52 = vadd.f32 %v2214_v53, %v9004_v19  ;;  %6736 = vmatpush3.bf16.msra.mxu0 %v7620_v31  ;;  %v10245_v31 = vld [vmem:[#allocation19_spill] sm:$0xff] }
 0x23b   : > { %v9223_v21 = vadd.f32 %v2206_v17, %v8990_v23  ;;  %v10244_v17 = vld [vmem:[#allocation23_spill] sm:$0xff] }
 0x23d   : > { %v6965_v24 = vpop.f32.mrb[120].mxu0 }
 0x23e   : > { %v2227_v2 = vadd.f32 %v6965_v24, %v9021_v36  ;;  %v2218_v60 = vpop.f32.mrb[121].mxu0  ;;  %v9237_v36 = vpop.f32.mrb[134].mxu1 }
 0x23f   : > { %v2219_v22 = vadd.f32 %v2218_v60, %v9008_v49  ;;  %v6966_v35 = vpop.f32.mrb[122].mxu0  ;;  %10239 = vst [vmem:[#allocation12_spill] sm:$0xff] %v9237_v36  ;;  %v2755_v49 = vpop.f32.mrb[135].mxu1 }
 0x240   : > { %v9230_v19 = vadd.f32 %v2227_v2, %v9024_v9  ;;  %v2230_v32 = vadd.f32 %v6966_v35, %v10235_v14  ;;  %v2221_v23 = vpop.f32.mrb[123].mxu0  ;;  %v9247_v60 = vpop.f32.mrb[136].mxu1  ;;  %v10248_v14 = vld [vmem:[#allocation25_spill] sm:$0xff] }
 0x241   : > { %v9234_v6 = vadd.f32 %v2219_v22, %v10236_v3  ;;  %v2222_v38 = vadd.f32 %v2221_v23, %v10238_v41  ;;  %v10246_v22 = vld [vmem:[#allocation24_spill] sm:$0xff]  ;;  %v2760_v54 = vpop.f32.mrb[137].mxu1 }
 0x242   : > { %v9240_v53 = vadd.f32 %v2230_v32, %v10240_v26  ;;  %v10249_v3 = vld [vmem:[#allocation20_spill] sm:$0xff]  ;;  %v9257_v49 = vpop.f32.mrb[138].mxu1 }
 0x243   : > { %10237 = vst [vmem:[#allocation11_spill] sm:$0xff] %v9234_v6  ;;  %v9243_v51 = vadd.f32 %v2222_v38, %v10242_v20  ;;  %v10251_v38 = vld [vmem:[#allocation21_spill] sm:$0xff]  ;;  %v10252_v20 = vld [vmem:[#allocation26_spill] sm:$0xff] }
 0x244   : > { %10241 = vst [vmem:[#allocation17_spill] sm:$0xff] %v9240_v53  ;;  %v7638_v6 = vld [vmem:[#allocation5 + $0x1b8] sm:$0xff]  }
 0x245   : > { %10243 = vst [vmem:[#allocation14_spill] sm:$0xff] %v9243_v51  ;;  %v6969_v9 = vpop.f32.mrb[124].mxu0  ;;  %v9321_v51 = vld [vmem:[#allocation2 + $0x50] sm:$0xff] }
 0x246   : > { %v2243_v13 = vadd.f32 %v6969_v9, %v10244_v17  ;;  %v2234_v16 = vpop.f32.mrb[125].mxu0  ;;  %v2763_v17 = vpop.f32.mrb[139].mxu1 }
 0x247   : > { %v2235_v24 = vadd.f32 %v2234_v16, %v10245_v31  ;;  %v6970_v2 = vpop.f32.mrb[126].mxu0  ;;  %v10254_v16 = vld [vmem:[#allocation22_spill] sm:$0xff] }
 0x248   : > { %v9250_v35 = vadd.f32 %v2243_v13, %v10246_v22  ;;  %v2246_v23 = vadd.f32 %v6970_v2, %v10248_v14  ;;  %v2237_v32 = vpop.f32.mrb[127].mxu0  ;;  %v7622_v13 = vld [vmem:[#allocation5 + $0x1c8] sm:$0xff]   ;;  %v10256_v2 = vld [vmem:[#allocation31_spill] sm:$0xff] }
 0x249   : > { %v9254_v41 = vadd.f32 %v2235_v24, %v10249_v3  ;;  %v2238_v26 = vadd.f32 %v2237_v32, %v10251_v38  ;;  %v7623_v22 = vld [vmem:[#allocation5 + $0x188] sm:$0xff]   ;;  %6737 = vmatprep.subr.bf16.mxu0 %v7622_v13  ;;  %v10257_v24 = vld [vmem:[#allocation27_spill] sm:$0xff]  ;;  %v9267_v38 = vpop.f32.mrb[140].mxu1  ;;  %v10264_v13 = vld [vmem:[#allocation29_spill] sm:$0xff] }
 0x24a   : > { %10247 = vst [vmem:[#allocation15_spill] sm:$0xff] %v9250_v35  ;;  %v9260_v9 = vadd.f32 %v2246_v23, %v10252_v20  ;;  %6738 = vmatpush3.bf16.msra.mxu0 %v7623_v22  ;;  %10258 = vst [vmem:[#allocation19_spill] sm:$0xff] %v9267_v38  ;;  %v10261_v20 = vld [vmem:[#allocation33_spill] sm:$0xff] }
 0x24b   : > { %10250 = vst [vmem:[#allocation18_spill] sm:$0xff] %v9254_v41  ;;  %v9263_v31 = vadd.f32 %v2238_v26, %v10254_v16  ;;  %v10259_v41 = vld [vmem:[#allocation32_spill] sm:$0xff]  ;;  %v2768_v16 = vpop.f32.mrb[141].mxu1  ;;  %v7626_v22 = vld [vmem:[#allocation5 + $0x190] sm:$0xff]  }
 0x24c   : > { %10253 = vst [vmem:[#allocation16_spill] sm:$0xff] %v9260_v9  ;;  %v10262_v9 = vld [vmem:[#allocation28_spill] sm:$0xff]  ;;  %v7629_v16 = vld [vmem:[#allocation5 + $0x198] sm:$0xff]  }
 0x24d   : > { %10255 = vst [vmem:[#allocation23_spill] sm:$0xff] %v9263_v31  ;;  %v6973_v50 = vpop.f32.mrb[128].mxu0  ;;  %v7625_v31 = vld [vmem:[#allocation5 + $0x1d0] sm:$0xff]  }
 0x24e   : > { %v2259_v14 = vadd.f32 %v6973_v50, %v10256_v2  ;;  %v2250_v54 = vpop.f32.mrb[129].mxu0  ;;  %v9277_v2 = vpop.f32.mrb[142].mxu1  ;;  %6739 = vmatprep.subr.bf16.mxu0 %v7625_v31  ;;  %v10273_v31 = vld [vmem:[#allocation38_spill] sm:$0xff] }
 0x24f   : > { %v2251_v3 = vadd.f32 %v2250_v54, %v10257_v24  ;;  %v6974_v32 = vpop.f32.mrb[130].mxu0  ;;  %10265 = vst [vmem:[#allocation20_spill] sm:$0xff] %v9277_v2  ;;  %v10266_v54 = vld [vmem:[#allocation34_spill] sm:$0xff]  ;;  %v2771_v38 = vpop.f32.mrb[143].mxu1  ;;  %6740 = vmatpush3.bf16.msra.mxu0 %v7626_v22  ;;  %v7630_v22 = vld [vmem:[#allocation5 + $0x1e0] sm:$0xff]  }
 0x250   : > { %v9270_v23 = vadd.f32 %v2259_v14, %v10259_v41  ;;  %v2262_v17 = vadd.f32 %v6974_v32, %v10261_v20  ;;  %v2253_v26 = vpop.f32.mrb[131].mxu0  ;;  %v10268_v41 = vld [vmem:[#allocation30_spill] sm:$0xff]  ;;  %v9287_v2 = vpop.f32.mrb[144].mxu1 }
 0x251   : > { %v9274_v35 = vadd.f32 %v2251_v3, %v10262_v9  ;;  %v2254_v50 = vadd.f32 %v2253_v26, %v10264_v13  ;;  %v7628_v32 = vld [vmem:[#allocation5 + $0x1d8] sm:$0xff]   ;;  %v10271_v26 = vld [vmem:[#allocation35_spill] sm:$0xff]  ;;  %10272 = vst [vmem:[#allocation22_spill] sm:$0xff] %v9287_v2  ;;  %v7633_v2 = vld [vmem:[#allocation5 + $0x1a8] sm:$0xff]  }
 0x252   : > { %10260 = vst [vmem:[#allocation24_spill] sm:$0xff] %v9270_v23  ;;  %v9280_v24 = vadd.f32 %v2262_v17, %v10266_v54  ;;  %v10270_v23 = vld [vmem:[#allocation37_spill] sm:$0xff]  ;;  %6741 = vmatprep.subr.bf16.mxu0 %v7628_v32  ;;  %v2776_v54 = vpop.f32.mrb[145].mxu1  ;;  %v7631_v32 = vld [vmem:[#allocation5 + $0x1a0] sm:$0xff]  }
 0x253   : > { %10263 = vst [vmem:[#allocation25_spill] sm:$0xff] %v9274_v35  ;;  %v9283_v14 = vadd.f32 %v2254_v50, %v10268_v41  ;;  %6742 = vmatpush3.bf16.msra.mxu0 %v7629_v16 }
 0x254   : > { %10267 = vst [vmem:[#allocation21_spill] sm:$0xff] %v9280_v24  ;;  %6743 = vmatprep.subr.bf16.mxu0 %v7630_v22 }
 0x255   : > { %10269 = vst [vmem:[#allocation26_spill] sm:$0xff] %v9283_v14  ;;  %v6993_v20 = vpop.f32.mrb[132].mxu0  ;;  %v10274_v14 = vld [vmem:[#allocation36_spill] sm:$0xff] }
 0x256   : > { %v2840_v9 = vadd.f32 %v6993_v20, %v10270_v23  ;;  %v2831_v3 = vpop.f32.mrb[133].mxu0  ;;  %v9293_v23 = vpop.f32.mrb[146].mxu1 }
 0x257   : > { %v2832_v13 = vadd.f32 %v2831_v3, %v10271_v26  ;;  %v6994_v35 = vpop.f32.mrb[134].mxu0  ;;  %10275 = vst [vmem:[#allocation31_spill] sm:$0xff] %v9293_v23  ;;  %v2779_v3 = vpop.f32.mrb[147].mxu1  ;;  %6744 = vmatpush3.bf16.msra.mxu0 %v7631_v32  ;;  %v10279_v32 = vld [vmem:[#allocation42_spill] sm:$0xff] }
 0x258   : > { %v3012_v38 = vadd.f32 %v2840_v9, %v9115_v55  ;;  %v2843_v17 = vadd.f32 %v6994_v35, %v10273_v31  ;;  %v2834_v50 = vpop.f32.mrb[135].mxu0  ;;  %v7632_v35 = vld [vmem:[#allocation5 + $0x1e8] sm:$0xff]  }
 0x259   : > { %v3010_v41 = vadd.f32 %v2832_v13, %v9118_v44  ;;  %v2835_v24 = vadd.f32 %v2834_v50, %v10274_v14  ;;  %v10276_v13 = vld [vmem:[#allocation41_spill] sm:$0xff]  ;;  %6745 = vmatprep.subr.bf16.mxu0 %v7632_v35 }
 0x25a   : > { %v3013_v20 = vadd.f32 %v2843_v17, %v9124_v12  ;;  %v3120_v55 = vmax.f32 %v3012_v38, 0.0  ;;  %v10277_v17 = vld [vmem:[#allocation39_spill] sm:$0xff] }
 0x25b   : > { %v3011_v16 = vadd.f32 %v2835_v24, %v9127_v61  ;;  %v3118_v26 = vmax.f32 %v3010_v41, 0.0  ;;  %v9299_v61 = vpop.f32.mrb[148].mxu1  ;;  %6746 = vmatpush3.bf16.msra.mxu0 %v7633_v2 }
 0x25c   : > { %v3121_v9 = vmax.f32 %v3013_v20, 0.0  ;;  %10278 = vst [vmem:[#allocation27_spill] sm:$0xff] %v9299_v61  ;;  %v3503_v61 = vld [vmem:[#allocation2 + $0x10] sm:$0xff] }
 0x25d   : > { %v3119_v31 = vmax.f32 %v3011_v16, 0.0  ;;  %v6997_v54 = vpop.f32.mrb[136].mxu0 }
 0x25e   : > { %v3155_v44 = vpack.c.bf16 %v3121_v9, %v3120_v55  ;;  %v2856_v14 = vadd.f32 %v6997_v54, %v10276_v13  ;;  %v2847_v50 = vpop.f32.mrb[137].mxu0  ;;  %v2784_v55 = vpop.f32.mrb[149].mxu1  ;;  %v7634_v9 = vld [vmem:[#allocation5 + $0x1f0] sm:$0xff]  }
 0x25f   : > { %v3154_v12 = vpack.c.bf16 %v3119_v31, %v3118_v26  ;;  %v2848_v22 = vadd.f32 %v2847_v50, %v10277_v17  ;;  %v6998_v3 = vpop.f32.mrb[138].mxu0  ;;  %v10280_v31 = vld [vmem:[#allocation40_spill] sm:$0xff]  ;;  %v9305_v13 = vpop.f32.mrb[150].mxu1  ;;  %v7635_v50 = vld [vmem:[#allocation5 + $0x1b0] sm:$0xff]   ;;  %6747 = vmatprep.subr.bf16.mxu0 %v7634_v9 }
 0x260   : > { %v3237_v24 = vshrl.u32 %v3155_v44, 16  ;;  %v3240_v38 = vshll.u32 %v3155_v44, 16  ;;  %3431 = vst [vmem:[#allocation2 + $0x20] sm:$0xff] %v3155_v44  ;;  %v3016_v41 = vadd.f32 %v2856_v14, %v9132_v1  ;;  %v2859_v20 = vadd.f32 %v6998_v3, %v10279_v32  ;;  %v2850_v16 = vpop.f32.mrb[139].mxu0  ;;  %3937 = vmatprep.mubr.bf16.mxu0 %v3155_v44  ;;  %10281 = vst [vmem:[#allocation32_spill] sm:$0xff] %v9305_v13  ;;  %v2787_v14 = vpop.f32.mrb[151].mxu1 }
 0x261   : > { %v3233_v35 = vshll.u32 %v3154_v12, 16  ;;  %v3014_v26 = vadd.f32 %v2848_v22, %v9135_v25  ;;  %v2851_v54 = vadd.f32 %v2850_v16, %v10280_v31  ;;  %v3379_v3 = vld [vmem:[#allocation2 + $0x18] sm:$0xff]  ;;  %v3506_v22 = vld [vmem:[#allocation2 + $0x28] sm:$0xff]  ;;  %v3230_v32 = vshrl.u32 %v3154_v12, 16  ;;  %6748 = vmatpush3.bf16.msra.mxu0 %v7635_v50 }
 0x262   : > { %v3239_v2 = vrot.slane %v3237_v24, 7  ;;  %v3450_v1 = vrot.slane %v3240_v38, 1  ;;  %v3017_v44 = vadd.f32 %v2859_v20, %v9141_v45  ;;  %v3124_v23 = vmax.f32 %v3016_v41, 0.0  ;;  %v7637_v20 = vld [vmem:[#allocation5 + $0x1f8] sm:$0xff]   ;;  %v10286_v41 = vld [vmem:[#allocation45_spill] sm:$0xff] }
 0x263   : > { %v3448_v16 = vrot.slane %v3233_v35, 1  ;;  %v3015_v55 = vadd.f32 %v2851_v54, %v9144_v33  ;;  %v3122_v14 = vmax.f32 %v3014_v26, 0.0  ;;  %6749 = vmatprep.subr.bf16.mxu0 %v7637_v20 }
 0x264   : > { %v3242_v31 = vor.u32 %v3240_v38, %v3239_v2  ;;  %v3451_v13 = vor.u32 %v3450_v1, %v3237_v24  ;;  %v3125_v45 = vmax.f32 %v3017_v44, 0.0  ;;  %v9329_v24 = vld [vmem:[#allocation2 + $0x38] sm:$0xff]  ;;  %v10287_v2 = vld [vmem:[#allocation43_spill] sm:$0xff] }
 0x265   : > { %v3449_v9 = vor.u32 %v3448_v16, %v3230_v32  ;;  %v3123_v53 = vmax.f32 %v3015_v55, 0.0  ;;  %v7001_v36 = vpop.f32.mrb[140].mxu0  ;;  %6750 = vmatpush3.bf16.msra.mxu0 %v7638_v6 }
 0x266   : > { %v3380_v12 = vsel %vm9309_vm7, %v3242_v31, %v3379_v3  ;;  %v3507_v33 = vsel %vm9316_vm8, %v3451_v13, %v3506_v22  ;;  %v9327_v38 = vpack.c.bf16 %v3125_v45, %v3124_v23  ;;  %v2872_v35 = vadd.f32 %v7001_v36, %v10286_v41  ;;  %v2863_v54 = vpop.f32.mrb[141].mxu0  ;;  %v9335_v13 = vpop.f32.mrb[152].mxu1  ;;  %v10288_v31 = vld [vmem:[#allocation44_spill] sm:$0xff] }
 0x267   : > { %3381 = vst [vmem:[#allocation2 + $0x18] sm:$0xff] %v3380_v12  ;;  %3508 = vst [vmem:[#allocation2 + $0x28] sm:$0xff] %v3507_v33  ;;  %v3504_v26 = vsel %vm9316_vm8, %v3449_v9, %v3503_v61  ;;  %v3156_v50 = vpack.c.bf16 %v3123_v53, %v3122_v14  ;;  %v2864_v1 = vadd.f32 %v2863_v54, %v10287_v2  ;;  %v7002_v44 = vpop.f32.mrb[142].mxu0  ;;  %3938 = vmatmul.mubr.bf16.gmra.mrb[172].mxu0 %v3380_v12  ;;  %v2792_v61 = vpop.f32.mrb[153].mxu1  ;;  %v3385_v33 = vld [vmem:[#allocation2 + $0x48] sm:$0xff]  ;;  %v3509_v2 = vld [vmem:[#allocation2 + $0x40] sm:$0xff] }
 0x268   : > { %3505 = vst [vmem:[#allocation2 + $0x10] sm:$0xff] %v3504_v26  ;;  %v3251_v23 = vshrl.u32 %v9327_v38, 16  ;;  %v3254_v36 = vshll.u32 %v9327_v38, 16  ;;  %3433 = vst [vmem:[#allocation2 + $0x50] sm:$0xff] %v9327_v38  ;;  %v3020_v3 = vadd.f32 %v2872_v35, %v9149_v7  ;;  %v2875_v22 = vadd.f32 %v7002_v44, %v9110_v11  ;;  %v2866_v32 = vpop.f32.mrb[143].mxu0  ;;  %v9344_v20 = vpop.f32.mrb[154].mxu1 }
 0x269   : > { %v3244_v53 = vshrl.u32 %v3156_v50, 16  ;;  %v3247_v16 = vshll.u32 %v3156_v50, 16  ;;  %3432 = vst [vmem:[#allocation2 + $0x38] sm:$0xff] %v3156_v50  ;;  %v3018_v55 = vadd.f32 %v2864_v1, %v9152_v48  ;;  %v2867_v45 = vadd.f32 %v2866_v32, %v10288_v31  ;;  %3945 = vmatprep.mubr.bf16.mxu0 %v3156_v50  ;;  %v2795_v7 = vpop.f32.mrb[155].mxu1  ;;  %v3512_v11 = vld [vmem:[#allocation2 + $0x58] sm:$0xff]  ;;  %v3382_v50 = vld [vmem:[#allocation2 + $0x30] sm:$0xff] }
 0x26a   : > { %v3253_v9 = vrot.slane %v3251_v23, 7  ;;  %v3454_v14 = vrot.slane %v3254_v36, 1  ;;  %v3021_v12 = vadd.f32 %v2875_v22, %v9157_v47  ;;  %v3128_v1 = vmax.f32 %v3020_v3, 0.0  ;;  %v9354_v61 = vld [vmem:[#allocation2 + $0x80] sm:$0xff] }
 0x26b   : > { %v3246_v41 = vrot.slane %v3244_v53, 7  ;;  %v3452_v35 = vrot.slane %v3247_v16, 1  ;;  %v3019_v6 = vadd.f32 %v2867_v45, %v9162_v5  ;;  %v3126_v32 = vmax.f32 %v3018_v55, 0.0  ;;  %10291 = vst [vmem:[#allocation33_spill] sm:$0xff] %v9354_v61 }
 0x26c   : > { %v3256_v54 = vor.u32 %v3254_v36, %v3253_v9  ;;  %v3455_v26 = vor.u32 %v3454_v14, %v3251_v23  ;;  %v3129_v44 = vmax.f32 %v3021_v12, 0.0  ;;  %v9364_v9 = vld [vmem:[#allocation2 + $0x68] sm:$0xff] }
 0x26d   : > { %v3249_v47 = vor.u32 %v3247_v16, %v3246_v41  ;;  %v3453_v22 = vor.u32 %v3452_v35, %v3244_v53  ;;  %v3127_v31 = vmax.f32 %v3019_v6, 0.0  ;;  %v7005_v7 = vpop.f32.mrb[144].mxu0 }
 0x26e   : > { %v3563_v5 = vld [vmem:[#allocation2 + $0x28] sm:$0x80]  ;;  %v9358_v45 = vsel %vm9309_vm7, %v3256_v54, %v3385_v33  ;;  %v3513_v36 = vsel %vm9316_vm8, %v3455_v26, %v3512_v11  ;;  %v9362_v23 = vpack.c.bf16 %v3129_v44, %v3128_v1  ;;  %v2888_v3 = vadd.f32 %v7005_v7, %v9129_v8  ;;  %v2879_v53 = vpop.f32.mrb[145].mxu0 }
 0x26f   : > { %v3564_v16 = vsel %vm9350_vm11, 0, %v3563_v5  ;;  %v3560_v55 = vld [vmem:[#allocation2 + $0x10] sm:$0x80]  ;;  %3514 = vst [vmem:[#allocation2 + $0x58] sm:$0xff] %v3513_v36  ;;  %3387 = vst [vmem:[#allocation2 + $0x48] sm:$0xff] %v9358_v45  ;;  %v3383_v14 = vsel %vm9309_vm7, %v3249_v47, %v3382_v50  ;;  %v3510_v12 = vsel %vm9316_vm8, %v3453_v22, %v3509_v2  ;;  %v9374_v33 = vpack.c.bf16 %v3127_v31, %v3126_v32  ;;  %v7006_v11 = vpop.f32.mrb[146].mxu0 }
 0x270   : > { %3565 = vst [vmem:[#allocation2 + $0x28] sm:$0x80] %v3564_v16  ;;  %v3561_v8 = vsel %vm9350_vm11, 0, %v3560_v55  ;;  %3511 = vst [vmem:[#allocation2 + $0x40] sm:$0xff] %v3510_v12  ;;  %v3265_v41 = vshrl.u32 %v9362_v23, 16  ;;  %v3268_v35 = vshll.u32 %v9362_v23, 16  ;;  %v3024_v6 = vadd.f32 %v2888_v3, %v9170_v58  ;;  %3946 = vmatmul.mubr.bf16.gmra.mrb[176].mxu0 %v3383_v14 }
 0x271   : > { %3384 = vst [vmem:[#allocation2 + $0x30] sm:$0xff] %v3383_v14  ;;  %3435 = vst [vmem:[#allocation2 + $0x80] sm:$0xff] %v9362_v23  ;;  %v2882_v54 = vpop.f32.mrb[147].mxu0  ;;  %v3258_v26 = vshrl.u32 %v9374_v33, 16  ;;  %v3261_v50 = vshll.u32 %v9374_v33, 16  ;;  %v2880_v2 = vadd.f32 %v2879_v53, %v9112_v30  ;;  %v2891_v1 = vadd.f32 %v7006_v11, %v9138_v18  ;;  %3953 = vmatprep.mubr.bf16.mxu0 %v9327_v38  ;;  %v9388_v44 = vld [vmem:[#allocation2 + $0x8] sm:$0xff] }
 0x272   : > { %3562 = vst [vmem:[#allocation2 + $0x10] sm:$0x80] %v3561_v8  ;;  %3434 = vst [vmem:[#allocation2 + $0x68] sm:$0xff] %v9374_v33  ;;  %v3267_v58 = vrot.slane %v3265_v41, 7  ;;  %v3458_v47 = vrot.slane %v3268_v35, 1  ;;  %v2883_v22 = vadd.f32 %v2882_v54, %v9121_v27  ;;  %v3391_v32 = vld [vmem:[#allocation2 + $0x78] sm:$0xff] }
 0x273   : > { %3620 = vst [vmem:[#allocation2 + $0x10] sm:$0xff] %v9388_v44  ;;  %v3518_v31 = vld [vmem:[#allocation2 + $0x88] sm:$0xff]  ;;  %v3260_v7 = vrot.slane %v3258_v26, 7  ;;  %v3456_v5 = vrot.slane %v3261_v50, 1  ;;  %v3022_v36 = vadd.f32 %v2880_v2, %v9174_v29  ;;  %v3025_v30 = vadd.f32 %v2891_v1, %v9180_v34  ;;  %v3388_v53 = vld [vmem:[#allocation2 + $0x60] sm:$0xff]  ;;  %v3515_v38 = vld [vmem:[#allocation2 + $0x70] sm:$0xff] }
 0x274   : > { %v3270_v3 = vor.u32 %v3268_v35, %v3267_v58  ;;  %v3459_v18 = vor.u32 %v3458_v47, %v3265_v41  ;;  %v3132_v16 = vmax.f32 %v3024_v6, 0.0  ;;  %v3023_v55 = vadd.f32 %v2883_v22, %v9183_v40  ;;  %v7604_v54 = vld [vmem:[#allocation5 + $0xc0] sm:$0xff]   ;;  %v9401_v34 = vld [vmem:[#allocation2 + $0xb0] sm:$0xff]  ;;  %v7605_v40 = vld [vmem:[#allocation5 + $0x108] sm:$0xff]  }
 0x275   : > { %v3263_v14 = vor.u32 %v3261_v50, %v3260_v7  ;;  %v3457_v12 = vor.u32 %v3456_v5, %v3258_v26  ;;  %v3130_v11 = vmax.f32 %v3022_v36, 0.0  ;;  %v3133_v8 = vmax.f32 %v3025_v30, 0.0  ;;  %v7009_v27 = vpop.f32.mrb[148].mxu0  ;;  %v9413_v1 = vld [vmem:[#allocation2 + $0x98] sm:$0xff] }
 0x276   : > { %v9397_v61 = vsel %vm9309_vm7, %v3270_v3, %v3391_v32  ;;  %v3519_v29 = vsel %vm9316_vm8, %v3459_v18, %v3518_v31  ;;  %v3131_v41 = vmax.f32 %v3023_v55, 0.0  ;;  %v2904_v35 = vadd.f32 %v7009_v27, %v9167_v42  ;;  %v2895_v6 = vpop.f32.mrb[149].mxu0  ;;  %v3394_v27 = vld [vmem:[#allocation2 + $0x90] sm:$0xff] }
 0x277   : > { %3520 = vst [vmem:[#allocation2 + $0x88] sm:$0xff] %v3519_v29  ;;  %3393 = vst [vmem:[#allocation2 + $0x78] sm:$0xff] %v9397_v61  ;;  %v9407_v26 = vsel %vm9309_vm7, %v3263_v14, %v3388_v53  ;;  %v3516_v50 = vsel %vm9316_vm8, %v3457_v12, %v3515_v38  ;;  %v9411_v2 = vpack.c.bf16 %v3133_v8, %v3132_v16  ;;  %v7010_v47 = vpop.f32.mrb[150].mxu0  ;;  %v3630_v42 = vld [vmem:[#allocation2 + $0x28] sm:$0xff]  ;;  %v3566_v22 = vld [vmem:[#allocation2 + $0x40] sm:$0x80] }
 0x278   : > { %v2896_v58 = vadd.f32 %v2895_v6, %v9146_v4  ;;  %3517 = vst [vmem:[#allocation2 + $0x70] sm:$0xff] %v3516_v50  ;;  %3390 = vst [vmem:[#allocation2 + $0x60] sm:$0xff] %v9407_v26  ;;  %v9417_v32 = vpack.c.bf16 %v3131_v41, %v3130_v11  ;;  %v3028_v31 = vadd.f32 %v2904_v35, %v9190_v63  ;;  %v2898_v5 = vpop.f32.mrb[151].mxu0  ;;  %7044 = vmatmul.mubr.bf16.vlgmr.msra.gmra.mrb[156].mxu1 %v3630_v42  ;;  %v7606_v63 = vld [vmem:[#allocation5 + $0xc8] sm:$0xff]   ;;  %v7607_v16 = vld [vmem:[#allocation5 + $0x110] sm:$0xff]  }
 0x279   : > { %v2907_v7 = vadd.f32 %v7010_v47, %v9177_v37  ;;  %v3567_v36 = vsel %vm9350_vm11, 0, %v3566_v22  ;;  %3954 = vmatmul.mubr.bf16.gmra.mrb[180].mxu0 %v9358_v45  ;;  %v3279_v4 = vshrl.u32 %v9411_v2, 16  ;;  %v3282_v30 = vshll.u32 %v9411_v2, 16  ;;  %3437 = vst [vmem:[#allocation2 + $0xb0] sm:$0xff] %v9411_v2  ;;  %6600 = vmatpush3.bf16.msra.mxu1 %v7604_v54  ;;  %v3569_v37 = vld [vmem:[#allocation2 + $0x58] sm:$0x80] }
 0x27a   : > { %v3026_v3 = vadd.f32 %v2896_v58, %v9194_v57  ;;  %v2899_v18 = vadd.f32 %v2898_v5, %v9154_v15  ;;  %3568 = vst [vmem:[#allocation2 + $0x40] sm:$0x80] %v3567_v36  ;;  %3961 = vmatprep.mubr.bf16.mxu0 %v9374_v33  ;;  %v3272_v53 = vshrl.u32 %v9417_v32, 16  ;;  %v3275_v45 = vshll.u32 %v9417_v32, 16  ;;  %3436 = vst [vmem:[#allocation2 + $0x98] sm:$0xff] %v9417_v32  ;;  %v3397_v57 = vld [vmem:[#allocation2 + $0xa8] sm:$0xff] }
 0x27b   : > { %v3029_v38 = vadd.f32 %v2907_v7, %v9200_v39  ;;  %6601 = vmatprep.subr.bf16.mxu1 %v7605_v40  ;;  %v3281_v55 = vrot.slane %v3279_v4, 7  ;;  %v3462_v14 = vrot.slane %v3282_v30, 1  ;;  %v3136_v15 = vmax.f32 %v3028_v31, 0.0  ;;  %v3524_v11 = vld [vmem:[#allocation2 + $0xb8] sm:$0xff]  ;;  %v3521_v6 = vld [vmem:[#allocation2 + $0xa0] sm:$0xff]  ;;  %v7608_v47 = vld [vmem:[#allocation5 + $0xd0] sm:$0xff]  }
 0x27c   : > { %v3027_v12 = vadd.f32 %v2899_v18, %v9203_v10  ;;  %v3274_v8 = vrot.slane %v3272_v53, 7  ;;  %v3460_v33 = vrot.slane %v3275_v45, 1  ;;  %v3570_v29 = vsel %vm9350_vm11, 0, %v3569_v37  ;;  %v9437_v40 = vld [vmem:[#allocation2 + $0xe0] sm:$0xff]  ;;  %v9441_v31 = vld [vmem:[#allocation2 + $0xc8] sm:$0xff]  ;;  %v7609_v36 = vld [vmem:[#allocation5 + $0x118] sm:$0xff]  }
 0x27d   : > { %v3137_v54 = vmax.f32 %v3029_v38, 0.0  ;;  %v3284_v41 = vor.u32 %v3282_v30, %v3281_v55  ;;  %v3463_v35 = vor.u32 %v3462_v14, %v3279_v4  ;;  %v3134_v39 = vmax.f32 %v3026_v3, 0.0  ;;  %v7013_v58 = vpop.f32.mrb[152].mxu0  ;;  %3571 = vst [vmem:[#allocation2 + $0x58] sm:$0x80] %v3570_v29  ;;  %6602 = vmatpush3.bf16.msra.mxu1 %v7606_v63  ;;  %v3530_v29 = vld [vmem:[#allocation2 + $0xe8] sm:$0xff] }
 0x27e   : > { %v3135_v50 = vmax.f32 %v3027_v12, 0.0  ;;  %v3277_v10 = vor.u32 %v3275_v45, %v3274_v8  ;;  %v3461_v42 = vor.u32 %v3460_v33, %v3272_v53  ;;  %v2920_v7 = vadd.f32 %v7013_v58, %v9207_v43  ;;  %v2911_v5 = vpop.f32.mrb[153].mxu0  ;;  %6603 = vmatprep.subr.bf16.mxu1 %v7607_v16  ;;  %v7610_v12 = vld [vmem:[#allocation5 + $0xd8] sm:$0xff]   ;;  %v3400_v58 = vld [vmem:[#allocation2 + $0xc0] sm:$0xff] }
 0x27f   : > { %v9439_v22 = vpack.c.bf16 %v3137_v54, %v3136_v15  ;;  %v9446_v4 = vsel %vm9309_vm7, %v3284_v41, %v3397_v57  ;;  %v3525_v30 = vsel %vm9316_vm8, %v3463_v35, %v3524_v11  ;;  %v2912_v18 = vadd.f32 %v2911_v5, %v9187_v59  ;;  %v7014_v37 = vpop.f32.mrb[154].mxu0  ;;  %v3403_v59 = vld [vmem:[#allocation2 + $0xd8] sm:$0xff]  ;;  %v3572_v33 = vld [vmem:[#allocation2 + $0x70] sm:$0x80]  ;;  %v3575_v54 = vld [vmem:[#allocation2 + $0x88] sm:$0x80] }
 0x280   : > { %v9450_v3 = vpack.c.bf16 %v3135_v50, %v3134_v39  ;;  %3526 = vst [vmem:[#allocation2 + $0xb8] sm:$0xff] %v3525_v30  ;;  %3399 = vst [vmem:[#allocation2 + $0xa8] sm:$0xff] %v9446_v4  ;;  %v9456_v43 = vsel %vm9309_vm7, %v3277_v10, %v3394_v27  ;;  %v3522_v63 = vsel %vm9316_vm8, %v3461_v42, %v3521_v6  ;;  %v2914_v38 = vpop.f32.mrb[155].mxu0  ;;  %v3573_v5 = vsel %vm9350_vm11, 0, %v3572_v33  ;;  %v10293_v33 = vld [vmem:[#allocation11_spill] sm:$0xff] }
 0x281   : > { %v3293_v53 = vshrl.u32 %v9439_v22, 16  ;;  %v3296_v45 = vshll.u32 %v9439_v22, 16  ;;  %3439 = vst [vmem:[#allocation2 + $0xe0] sm:$0xff] %v9439_v22  ;;  %v3633_v16 = vld [vmem:[#allocation2 + $0x40] sm:$0xff]  ;;  %3962 = vmatmul.mubr.bf16.gmra.mrb[184].mxu0 %v9407_v26  ;;  %3523 = vst [vmem:[#allocation2 + $0xa0] sm:$0xff] %v3522_v63  ;;  %v3032_v14 = vadd.f32 %v2920_v7, %v9210_v0  ;;  %v3030_v15 = vadd.f32 %v2912_v18, %v9214_v46  ;;  %v9485_v18 = vld [vmem:[#allocation2 + $0x110] sm:$0xff] }
 0x282   : > { %3396 = vst [vmem:[#allocation2 + $0x90] sm:$0xff] %v9456_v43  ;;  %v3286_v55 = vshrl.u32 %v9450_v3, 16  ;;  %v3289_v57 = vshll.u32 %v9450_v3, 16  ;;  %3438 = vst [vmem:[#allocation2 + $0xc8] sm:$0xff] %v9450_v3  ;;  %7047 = vmatprep.mubr.bf16.mxu1 %v3633_v16  ;;  %6604 = vmatpush3.bf16.msra.mxu1 %v7608_v47  ;;  %v2923_v26 = vadd.f32 %v7014_v37, %v9217_v56  ;;  %v7611_v46 = vld [vmem:[#allocation5 + $0x120] sm:$0xff]   ;;  %v3527_v47 = vld [vmem:[#allocation2 + $0xd0] sm:$0xff] }
 0x283   : > { %v3295_v11 = vrot.slane %v3293_v53, 7  ;;  %v3466_v8 = vrot.slane %v3296_v45, 1  ;;  %v2915_v27 = vadd.f32 %v2914_v38, %v9197_v62  ;;  %3969 = vmatprep.mubr.bf16.mxu0 %v9362_v23  ;;  %6605 = vmatprep.subr.bf16.mxu1 %v7609_v36  ;;  %v3140_v0 = vmax.f32 %v3032_v14, 0.0  ;;  %10292 = vst [vmem:[#allocation28_spill] sm:$0xff] %v9485_v18  ;;  %3574 = vst [vmem:[#allocation2 + $0x70] sm:$0x80] %v3573_v5 }
 0x284   : > { %v3288_v41 = vrot.slane %v3286_v55, 7  ;;  %v3464_v35 = vrot.slane %v3289_v57, 1  ;;  %v3138_v6 = vmax.f32 %v3030_v15, 0.0  ;;  %v3033_v10 = vadd.f32 %v2923_v26, %v9220_v52  ;;  %v3636_v62 = vld [vmem:[#allocation2 + $0x58] sm:$0xff]  ;;  %v7613_v15 = vld [vmem:[#allocation5 + $0x128] sm:$0xff]  }
 0x285   : > { %v3298_v39 = vor.u32 %v3296_v45, %v3295_v11  ;;  %v3467_v50 = vor.u32 %v3466_v8, %v3293_v53  ;;  %v3031_v56 = vadd.f32 %v2915_v27, %v9223_v21  ;;  %7048 = vmatmul.mubr.bf16.gmra.mrb[160].mxu1 %v3636_v62  ;;  %v7017_v23 = vpop.f32.mrb[156].mxu0  ;;  %v3576_v36 = vsel %vm9350_vm11, 0, %v3575_v54  ;;  %v7612_v53 = vld [vmem:[#allocation5 + $0xe0] sm:$0xff]   ;;  %v9494_v16 = vld [vmem:[#allocation2 + $0xf8] sm:$0xff] }
 0x286   : > { %v3291_v42 = vor.u32 %v3289_v57, %v3288_v41  ;;  %v3465_v7 = vor.u32 %v3464_v35, %v3286_v55  ;;  %v3141_v21 = vmax.f32 %v3033_v10, 0.0  ;;  %v2927_v63 = vpop.f32.mrb[157].mxu0  ;;  %3577 = vst [vmem:[#allocation2 + $0x88] sm:$0x80] %v3576_v36  ;;  %6606 = vmatpush3.bf16.msra.mxu1 %v7610_v12 }
 0x287   : > { %v9481_v30 = vsel %vm9309_vm7, %v3298_v39, %v3403_v59  ;;  %v3531_v52 = vsel %vm9316_vm8, %v3467_v50, %v3530_v29  ;;  %v3139_v37 = vmax.f32 %v3031_v56, 0.0  ;;  %v2936_v59 = vadd.f32 %v7017_v23, %v9247_v60  ;;  %v7018_v57 = vpop.f32.mrb[158].mxu0  ;;  %v3581_v14 = vld [vmem:[#allocation2 + $0xb8] sm:$0x80]  ;;  %6607 = vmatprep.subr.bf16.mxu1 %v7611_v46  ;;  %v10294_v29 = vld [vmem:[#allocation12_spill] sm:$0xff]  ;;  %v3406_v39 = vld [vmem:[#allocation2 + $0xf0] sm:$0xff] }
 0x288   : > { %3532 = vst [vmem:[#allocation2 + $0xe8] sm:$0xff] %v3531_v52  ;;  %3405 = vst [vmem:[#allocation2 + $0xd8] sm:$0xff] %v9481_v30  ;;  %v9490_v45 = vsel %vm9309_vm7, %v3291_v42, %v3400_v58  ;;  %v3528_v38 = vsel %vm9316_vm8, %v3465_v7, %v3527_v47  ;;  %v2928_v55 = vadd.f32 %v2927_v63, %v9227_v28  ;;  %v2930_v26 = vpop.f32.mrb[159].mxu0  ;;  %v3578_v27 = vld [vmem:[#allocation2 + $0xa0] sm:$0x80]  ;;  %v3582_v60 = vsel %vm9350_vm11, 0, %v3581_v14 }
 0x289   : > { %3529 = vst [vmem:[#allocation2 + $0xd0] sm:$0xff] %v3528_v38  ;;  %3402 = vst [vmem:[#allocation2 + $0xc0] sm:$0xff] %v9490_v45  ;;  %v9499_v12 = vpack.c.bf16 %v3141_v21, %v3140_v0  ;;  %v9501_v11 = vpack.c.bf16 %v3139_v37, %v3138_v6  ;;  %v2939_v8 = vadd.f32 %v7018_v57, %v9257_v49  ;;  %3970 = vmatmul.mubr.bf16.gmra.mrb[188].mxu0 %v9397_v61  ;;  %v3409_v6 = vld [vmem:[#allocation2 + $0x108] sm:$0xff]  ;;  %v3536_v46 = vld [vmem:[#allocation2 + $0x118] sm:$0xff] }
 0x28a   : > { %v3036_v28 = vadd.f32 %v2936_v59, %v9230_v19  ;;  %v3034_v54 = vadd.f32 %v2928_v55, %v10293_v33  ;;  %v2931_v41 = vadd.f32 %v2930_v26, %v10294_v29  ;;  %v3579_v35 = vsel %vm9350_vm11, 0, %v3578_v27  ;;  %3583 = vst [vmem:[#allocation2 + $0xb8] sm:$0x80] %v3582_v60  ;;  %3977 = vmatprep.mubr.bf16.mxu0 %v9417_v32  ;;  %v10295_v50 = vld [vmem:[#allocation17_spill] sm:$0xff]  ;;  %v10296_v32 = vld [vmem:[#allocation14_spill] sm:$0xff]  ;;  %v3533_v7 = vld [vmem:[#allocation2 + $0x100] sm:$0xff] }
 0x28b   : > { %v3307_v49 = vshrl.u32 %v9499_v12, 16  ;;  %v3310_v0 = vshll.u32 %v9499_v12, 16  ;;  %3441 = vst [vmem:[#allocation2 + $0x110] sm:$0xff] %v9499_v12  ;;  %v3300_v61 = vshrl.u32 %v9501_v11, 16  ;;  %v3303_v19 = vshll.u32 %v9501_v11, 16  ;;  %3440 = vst [vmem:[#allocation2 + $0xf8] sm:$0xff] %v9501_v11  ;;  %6608 = vmatpush3.bf16.msra.mxu1 %v7612_v53 }
 0x28c   : > { %3580 = vst [vmem:[#allocation2 + $0xa0] sm:$0x80] %v3579_v35  ;;  %v3037_v58 = vadd.f32 %v2939_v8, %v10295_v50  ;;  %v3035_v47 = vadd.f32 %v2931_v41, %v10296_v32  ;;  %6609 = vmatprep.subr.bf16.mxu1 %v7613_v15  ;;  %v7614_v23 = vld [vmem:[#allocation5 + $0xe8] sm:$0xff]   ;;  %v3144_v5 = vmax.f32 %v3036_v28, 0.0  ;;  %v3142_v36 = vmax.f32 %v3034_v54, 0.0  ;;  %v9521_v37 = vld [vmem:[#allocation2 + $0x70] sm:$0xff] }
 0x28d   : > { %v3309_v10 = vrot.slane %v3307_v49, 7  ;;  %v3470_v56 = vrot.slane %v3310_v0, 1  ;;  %v3302_v62 = vrot.slane %v3300_v61, 7  ;;  %v3468_v42 = vrot.slane %v3303_v19, 1  ;;  %v7021_v63 = vpop.f32.mrb[160].mxu0  ;;  %v9523_v57 = vld [vmem:[#allocation2 + $0x140] sm:$0xff]  ;;  %7051 = vmatprep.mubr.bf16.mxu1 %v9521_v37 }
 0x28e   : > { %v3145_v52 = vmax.f32 %v3037_v58, 0.0  ;;  %v3143_v21 = vmax.f32 %v3035_v47, 0.0  ;;  %10297 = vst [vmem:[#allocation29_spill] sm:$0xff] %v9523_v57  ;;  %v9525_v14 = vld [vmem:[#allocation2 + $0x128] sm:$0xff]  ;;  %v2943_v8 = vpop.f32.mrb[161].mxu0  ;;  %v10299_v60 = vld [vmem:[#allocation22_spill] sm:$0xff] }
 0x28f   : > { %v3312_v53 = vor.u32 %v3310_v0, %v3309_v10  ;;  %v3471_v38 = vor.u32 %v3470_v56, %v3307_v49  ;;  %v3305_v59 = vor.u32 %v3303_v19, %v3302_v62  ;;  %v3469_v55 = vor.u32 %v3468_v42, %v3300_v61  ;;  %10298 = vst [vmem:[#allocation34_spill] sm:$0xff] %v9525_v14  ;;  %v9528_v15 = vld [vmem:[#allocation2 + $0x88] sm:$0xff]  ;;  %v10300_v33 = vld [vmem:[#allocation19_spill] sm:$0xff]  ;;  %v7022_v29 = vpop.f32.mrb[162].mxu0  ;;  %v7615_v41 = vld [vmem:[#allocation5 + $0x130] sm:$0xff]  }
 0x290   : > { %v9530_v26 = vpack.c.bf16 %v3145_v52, %v3144_v5  ;;  %v9532_v27 = vpack.c.bf16 %v3143_v21, %v3142_v36  ;;  %7052 = vmatmul.mubr.bf16.gmra.mrb[164].mxu1 %v9528_v15  ;;  %v2952_v28 = vadd.f32 %v7021_v63, %v10299_v60  ;;  %v2944_v54 = vadd.f32 %v2943_v8, %v10300_v33  ;;  %v2946_v19 = vpop.f32.mrb[163].mxu0  ;;  %v3415_v32 = vld [vmem:[#allocation2 + $0x138] sm:$0xff]  ;;  %v10301_v47 = vld [vmem:[#allocation15_spill] sm:$0xff]  ;;  %v10304_v5 = vld [vmem:[#allocation20_spill] sm:$0xff] }
 0x291   : > { %v9539_v35 = vsel %vm9309_vm7, %v3312_v53, %v3409_v6  ;;  %v3537_v49 = vsel %vm9316_vm8, %v3471_v38, %v3536_v46  ;;  %v9545_v0 = vsel %vm9309_vm7, %v3305_v59, %v3406_v39  ;;  %v3534_v61 = vsel %vm9316_vm8, %v3469_v55, %v3533_v7  ;;  %3978 = vmatmul.mubr.bf16.gmra.mrb[192].mxu0 %v9456_v43  ;;  %v7616_v43 = vld [vmem:[#allocation5 + $0xf0] sm:$0xff]   ;;  %v10302_v56 = vld [vmem:[#allocation18_spill] sm:$0xff]  ;;  %v10303_v42 = vld [vmem:[#allocation31_spill] sm:$0xff] }
 0x292   : > { %3538 = vst [vmem:[#allocation2 + $0x118] sm:$0xff] %v3537_v49  ;;  %3411 = vst [vmem:[#allocation2 + $0x108] sm:$0xff] %v9539_v35  ;;  %v3321_v6 = vshrl.u32 %v9530_v26, 16  ;;  %v3324_v46 = vshll.u32 %v9530_v26, 16  ;;  %v3314_v39 = vshrl.u32 %v9532_v27, 16  ;;  %v3317_v50 = vshll.u32 %v9532_v27, 16  ;;  %3985 = vmatprep.mubr.bf16.mxu0 %v9411_v2  ;;  %6610 = vmatpush3.bf16.msra.mxu1 %v7614_v23 }
 0x293   : > { %3535 = vst [vmem:[#allocation2 + $0x100] sm:$0xff] %v3534_v61  ;;  %3408 = vst [vmem:[#allocation2 + $0xf0] sm:$0xff] %v9545_v0  ;;  %v9558_v58 = vld [vmem:[#allocation2 + $0xa0] sm:$0xff]  ;;  %v3040_v10 = vadd.f32 %v2952_v28, %v10301_v47  ;;  %v3038_v62 = vadd.f32 %v2944_v54, %v10302_v56  ;;  %v2955_v7 = vadd.f32 %v7022_v29, %v10303_v42  ;;  %v7617_v52 = vld [vmem:[#allocation5 + $0x138] sm:$0xff]   ;;  %6611 = vmatprep.subr.bf16.mxu1 %v7615_v41 }
 0x294   : > { %3443 = vst [vmem:[#allocation2 + $0x140] sm:$0xff] %v9530_v26  ;;  %3442 = vst [vmem:[#allocation2 + $0x128] sm:$0xff] %v9532_v27  ;;  %v2947_v36 = vadd.f32 %v2946_v19, %v10304_v5  ;;  %7055 = vmatprep.mubr.bf16.mxu1 %v9558_v58  ;;  %v3323_v21 = vrot.slane %v3321_v6, 7  ;;  %v3474_v63 = vrot.slane %v3324_v46, 1  ;;  %v3316_v53 = vrot.slane %v3314_v39, 7  ;;  %v3542_v2 = vld [vmem:[#allocation2 + $0x148] sm:$0xff] }
 0x295   : > { %v3472_v38 = vrot.slane %v3317_v50, 1  ;;  %v3584_v59 = vld [vmem:[#allocation2 + $0xd0] sm:$0x80]  ;;  %v3412_v23 = vld [vmem:[#allocation2 + $0x120] sm:$0xff]  ;;  %v3148_v8 = vmax.f32 %v3040_v10, 0.0  ;;  %v3146_v60 = vmax.f32 %v3038_v62, 0.0 }
 0x296   : > { %v3539_v55 = vld [vmem:[#allocation2 + $0x130] sm:$0xff]  ;;  %v10305_v28 = vld [vmem:[#allocation16_spill] sm:$0xff]  ;;  %v10306_v54 = vld [vmem:[#allocation23_spill] sm:$0xff]  ;;  %v3326_v49 = vor.u32 %v3324_v46, %v3323_v21  ;;  %v3475_v61 = vor.u32 %v3474_v63, %v3321_v6  ;;  %v3319_v19 = vor.u32 %v3317_v50, %v3316_v53  ;;  %v7025_v56 = vpop.f32.mrb[164].mxu0  ;;  %6612 = vmatpush3.bf16.msra.mxu1 %v7616_v43  ;;  %v3585_v62 = vsel %vm9350_vm11, 0, %v3584_v59 }
 0x297   : > { %v3041_v33 = vadd.f32 %v2955_v7, %v10305_v28  ;;  %v3039_v29 = vadd.f32 %v2947_v36, %v10306_v54  ;;  %v3473_v47 = vor.u32 %v3472_v38, %v3314_v39  ;;  %v3587_v42 = vld [vmem:[#allocation2 + $0xe8] sm:$0x80]  ;;  %v7618_v5 = vld [vmem:[#allocation5 + $0xf8] sm:$0xff]   ;;  %v2968_v18 = vadd.f32 %v7025_v56, %v9335_v13  ;;  %v2959_v10 = vpop.f32.mrb[165].mxu0  ;;  %6613 = vmatprep.subr.bf16.mxu1 %v7617_v52  ;;  %v9573_v7 = vld [vmem:[#allocation5 + $0x140] sm:$0xff]  }
 0x298   : > { %v9568_v41 = vld [vmem:[#allocation2 + $0xb8] sm:$0xff]  ;;  %v9577_v6 = vsel %vm9309_vm7, %v3326_v49, %v3415_v32  ;;  %v3543_v46 = vsel %vm9316_vm8, %v3475_v61, %v3542_v2  ;;  %v9583_v39 = vsel %vm9309_vm7, %v3319_v19, %v3412_v23  ;;  %v9587_v50 = vld [vmem:[#allocation2 + $0x170] sm:$0xff]  ;;  %v7026_v36 = vpop.f32.mrb[166].mxu0  ;;  %3586 = vst [vmem:[#allocation2 + $0xd0] sm:$0x80] %v3585_v62  ;;  %v10307_v21 = vld [vmem:[#allocation24_spill] sm:$0xff] }
 0x299   : > { %v3149_v57 = vmax.f32 %v3041_v33, 0.0  ;;  %v3147_v14 = vmax.f32 %v3039_v29, 0.0  ;;  %v3540_v13 = vsel %vm9316_vm8, %v3473_v47, %v3539_v55  ;;  %v9589_v43 = vld [vmem:[#allocation2 + $0x158] sm:$0xff]  ;;  %7056 = vmatmul.mubr.bf16.gmra.mrb[168].mxu1 %v9568_v41  ;;  %3544 = vst [vmem:[#allocation2 + $0x148] sm:$0xff] %v3543_v46  ;;  %3417 = vst [vmem:[#allocation2 + $0x138] sm:$0xff] %v9577_v6  ;;  %v3044_v63 = vadd.f32 %v2968_v18, %v10307_v21  ;;  %v10308_v53 = vld [vmem:[#allocation27_spill] sm:$0xff] }
 0x29a   : > { %3541 = vst [vmem:[#allocation2 + $0x130] sm:$0xff] %v3540_v13  ;;  %3414 = vst [vmem:[#allocation2 + $0x120] sm:$0xff] %v9583_v39  ;;  %v2960_v38 = vadd.f32 %v2959_v10, %v10308_v53  ;;  %v2962_v59 = vpop.f32.mrb[167].mxu0  ;;  %v3590_v2 = vld [vmem:[#allocation2 + $0x100] sm:$0x80]  ;;  %3986 = vmatmul.mubr.bf16.gmra.mrb[196].mxu0 %v9446_v4  ;;  %v2971_v23 = vadd.f32 %v7026_v36, %v9344_v20  ;;  %v10309_v55 = vld [vmem:[#allocation32_spill] sm:$0xff]  ;;  %6614 = vmatpush3.bf16.msra.mxu1 %v7618_v5 }
 0x29b   : > { %v9594_v32 = vpack.c.bf16 %v3149_v57, %v3148_v8  ;;  %v9596_v52 = vpack.c.bf16 %v3147_v14, %v3146_v60  ;;  %v2963_v28 = vadd.f32 %v2962_v59, %v10309_v55  ;;  %v3588_v33 = vsel %vm9350_vm11, 0, %v3587_v42  ;;  %3993 = vmatprep.mubr.bf16.mxu0 %v9450_v3  ;;  %v3593_v8 = vld [vmem:[#allocation2 + $0x118] sm:$0x80]  ;;  %7075 = vmatprep.subr.bf16.mxu1 %v9573_v7  ;;  %v10310_v3 = vld [vmem:[#allocation25_spill] sm:$0xff]  ;;  %v3421_v56 = vld [vmem:[#allocation2 + $0x168] sm:$0xff] }
 0x29c   : > { %v3591_v57 = vsel %vm9350_vm11, 0, %v3590_v2  ;;  %3589 = vst [vmem:[#allocation2 + $0xe8] sm:$0x80] %v3588_v33  ;;  %v3152_v60 = vmax.f32 %v3044_v63, 0.0  ;;  %v3042_v54 = vadd.f32 %v2960_v38, %v10310_v3  ;;  %v10311_v29 = vld [vmem:[#allocation21_spill] sm:$0xff]  ;;  %v10312_v61 = vld [vmem:[#allocation26_spill] sm:$0xff] }
 0x29d   : > { %v3335_v18 = vshrl.u32 %v9594_v32, 16  ;;  %v3338_v14 = vshll.u32 %v9594_v32, 16  ;;  %3445 = vst [vmem:[#allocation2 + $0x170] sm:$0xff] %v9594_v32  ;;  %v3328_v4 = vshrl.u32 %v9596_v52, 16  ;;  %v3331_v20 = vshll.u32 %v9596_v52, 16  ;;  %3444 = vst [vmem:[#allocation2 + $0x158] sm:$0xff] %v9596_v52 }
 0x29e   : > { %3592 = vst [vmem:[#allocation2 + $0x100] sm:$0x80] %v3591_v57  ;;  %v3045_v49 = vadd.f32 %v2971_v23, %v10311_v29  ;;  %v3043_v19 = vadd.f32 %v2963_v28, %v10312_v61  ;;  %v3548_v5 = vld [vmem:[#allocation2 + $0x178] sm:$0xff]  ;;  %v3418_v46 = vld [vmem:[#allocation2 + $0x150] sm:$0xff]  ;;  %v3545_v13 = vld [vmem:[#allocation2 + $0x160] sm:$0xff]  ;;  %v3150_v36 = vmax.f32 %v3042_v54, 0.0 }
 0x29f   : > { %v3337_v47 = vrot.slane %v3335_v18, 7  ;;  %v3478_v42 = vrot.slane %v3338_v14, 1  ;;  %v3330_v10 = vrot.slane %v3328_v4, 7  ;;  %v3476_v62 = vrot.slane %v3331_v20, 1  ;;  %v9620_v55 = vld [vmem:[#allocation2 + $0x188] sm:$0xff]  ;;  %v9622_v28 = vld [vmem:[#allocation2 + $0xd0] sm:$0xff] }
 0x2a0   : > { %v3153_v21 = vmax.f32 %v3045_v49, 0.0  ;;  %v3151_v53 = vmax.f32 %v3043_v19, 0.0  ;;  %v3594_v63 = vsel %vm9350_vm11, 0, %v3593_v8  ;;  %7059 = vmatprep.mubr.bf16.mxu1 %v9622_v28  ;;  %v3599_v54 = vld [vmem:[#allocation2 + $0x148] sm:$0x80] }
 0x2a1   : > { %v3340_v59 = vor.u32 %v3338_v14, %v3337_v47  ;;  %v3479_v38 = vor.u32 %v3478_v42, %v3335_v18  ;;  %v3333_v2 = vor.u32 %v3331_v20, %v3330_v10  ;;  %v3477_v23 = vor.u32 %v3476_v62, %v3328_v4  ;;  %3595 = vst [vmem:[#allocation2 + $0x118] sm:$0x80] %v3594_v63  ;;  %v3596_v3 = vld [vmem:[#allocation2 + $0x130] sm:$0x80]  ;;  %v3554_v10 = vld [vmem:[#allocation2 + $0x1a8] sm:$0xff]  ;;  %v3424_v62 = vld [vmem:[#allocation2 + $0x180] sm:$0xff] }
 0x2a2   : > { %v3171_v33 = vpack.c.bf16 %v3153_v21, %v3152_v60  ;;  %v9624_v57 = vpack.c.bf16 %v3151_v53, %v3150_v36  ;;  %3994 = vmatmul.mubr.bf16.gmra.mrb[200].mxu0 %v9490_v45  ;;  %v3597_v45 = vsel %vm9350_vm11, 0, %v3596_v3  ;;  %v3600_v19 = vsel %vm9350_vm11, 0, %v3599_v54 }
 0x2a3   : > { %v9629_v29 = vsel %vm9309_vm7, %v3340_v59, %v3421_v56  ;;  %v3549_v18 = vsel %vm9316_vm8, %v3479_v38, %v3548_v5  ;;  %v9635_v14 = vsel %vm9309_vm7, %v3333_v2, %v3418_v46  ;;  %v3546_v4 = vsel %vm9316_vm8, %v3477_v23, %v3545_v13  ;;  %v9645_v49 = vld [vmem:[#allocation2 + $0xe8] sm:$0xff]  ;;  %4001 = vmatprep.mubr.bf16.mxu0 %v9439_v22  ;;  %v3551_v46 = vld [vmem:[#allocation2 + $0x190] sm:$0xff] }
 0x2a4   : > { %3550 = vst [vmem:[#allocation2 + $0x178] sm:$0xff] %v3549_v18  ;;  %3423 = vst [vmem:[#allocation2 + $0x168] sm:$0xff] %v9629_v29  ;;  %v3352_v20 = vshll.u32 %v3171_v33, 16  ;;  %v3342_v8 = vshrl.u32 %v9624_v57, 16  ;;  %v3345_v60 = vshll.u32 %v9624_v57, 16  ;;  %7060 = vmatmul.mubr.bf16.gmra.mrb[172].mxu1 %v9645_v49  ;;  %v3349_v47 = vshrl.u32 %v3171_v33, 16 }
 0x2a5   : > { %3547 = vst [vmem:[#allocation2 + $0x160] sm:$0xff] %v3546_v4  ;;  %3420 = vst [vmem:[#allocation2 + $0x150] sm:$0xff] %v9635_v14  ;;  %v9647_v61 = vld [vmem:[#allocation2 + $0x100] sm:$0xff] }
 0x2a6   : > { %3446 = vst [vmem:[#allocation2 + $0x188] sm:$0xff] %v9624_v57  ;;  %v3482_v56 = vrot.slane %v3352_v20, 1  ;;  %v3344_v42 = vrot.slane %v3342_v8, 7  ;;  %v3480_v5 = vrot.slane %v3345_v60, 1  ;;  %7063 = vmatprep.mubr.bf16.mxu1 %v9647_v61  ;;  %3598 = vst [vmem:[#allocation2 + $0x130] sm:$0x80] %v3597_v45 }
 0x2a7   : > { %3601 = vst [vmem:[#allocation2 + $0x148] sm:$0x80] %v3600_v19  ;;  %v4284_v20 = vld [vmem:[#allocation2 + $0x20] sm:$0xff]  ;;  %v4287_v45 = vld [vmem:[#allocation2 + $0x38] sm:$0xff] }
 0x2a8   : > { %v3483_v22 = vor.u32 %v3482_v56, %v3349_v47  ;;  %v3347_v13 = vor.u32 %v3345_v60, %v3344_v42  ;;  %v3481_v36 = vor.u32 %v3480_v5, %v3342_v8  ;;  %v9666_v2 = vld [vmem:[#allocation2 + $0x118] sm:$0xff]  ;;  %v7624_v8 = vld [vmem:[#allocation5 + $0x148] sm:$0xff]   ;;  %v7627_v47 = vld [vmem:[#allocation5 + $0x150] sm:$0xff]  }
 0x2a9   : > { %v4283_v60 = vld [vmem:[#allocation2 + $0x18] sm:$0xff]  ;;  %v4286_v42 = vld [vmem:[#allocation2 + $0x30] sm:$0xff] }
 0x2aa   : > { %v3555_v21 = vsel %vm9316_vm8, %v3483_v22, %v3554_v10  ;;  %v9660_v53 = vsel %vm9309_vm7, %v3347_v13, %v3424_v62  ;;  %v3552_v63 = vsel %vm9316_vm8, %v3481_v36, %v3551_v46  ;;  %4002 = vmatmul.mubr.bf16.gmra.mrb[204].mxu0 %v9481_v30  ;;  %v7636_v56 = vld [vmem:[#allocation5 + $0x158] sm:$0xff]   ;;  %v4290_v5 = vld [vmem:[#allocation2 + $0x50] sm:$0xff]  ;;  %v7640_v46 = vld [vmem:[#allocation5 + $0x168] sm:$0xff]  }
 0x2ab   : > { %3556 = vst [vmem:[#allocation2 + $0x1a8] sm:$0xff] %v3555_v21  ;;  %3553 = vst [vmem:[#allocation2 + $0x190] sm:$0xff] %v3552_v63  ;;  %v3605_v38 = vld [vmem:[#allocation2 + $0x178] sm:$0x80]  ;;  %4009 = vmatprep.mubr.bf16.mxu0 %v9501_v11  ;;  %v4289_v22 = vld [vmem:[#allocation2 + $0x48] sm:$0xff] }
 0x2ac   : > { %3426 = vst [vmem:[#allocation2 + $0x180] sm:$0xff] %v9660_v53  ;;  %v3602_v59 = vld [vmem:[#allocation2 + $0x160] sm:$0x80]  ;;  %v3606_v17 = vsel %vm9350_vm11, 0, %v3605_v38  ;;  %7064 = vmatmul.mubr.bf16.gmra.mrb[176].mxu1 %v9666_v2  ;;  %v4293_v13 = vld [vmem:[#allocation2 + $0x68] sm:$0xff]  ;;  %v7641_v36 = vld [vmem:[#allocation5 + $0x170] sm:$0xff]  }
 0x2ad   : > { %v3603_v23 = vsel %vm9350_vm11, 0, %v3602_v59  ;;  %v9674_v25 = vld [vmem:[#allocation2 + $0x130] sm:$0xff]  ;;  %3607 = vst [vmem:[#allocation2 + $0x178] sm:$0x80] %v3606_v17  ;;  %v7642_v21 = vld [vmem:[#allocation5 + $0x178] sm:$0xff]   ;;  %v4292_v63 = vld [vmem:[#allocation2 + $0x60] sm:$0xff] }
 0x2ae   : > { %3604 = vst [vmem:[#allocation2 + $0x160] sm:$0x80] %v3603_v23  ;;  %7067 = vmatprep.mubr.bf16.mxu1 %v9674_v25  ;;  %v9682_v18 = vld [vmem:[#allocation2 + $0x148] sm:$0xff]  ;;  %v4296_v59 = vld [vmem:[#allocation2 + $0x80] sm:$0xff]  ;;  %v4295_v23 = vld [vmem:[#allocation2 + $0x78] sm:$0xff] }
 0x2af   : > { %v9707_v38 = vld [vmem:[#allocation5 + $0x200] sm:$0xff]   ;;  %v4299_v17 = vld [vmem:[#allocation2 + $0x98] sm:$0xff] }
 0x2b2   : > { %v3611_v33 = vld [vmem:[#allocation2 + $0x1a8] sm:$0x80]  ;;  %v3608_v30 = vld [vmem:[#allocation2 + $0x190] sm:$0x80]  ;;  %4010 = vmatmul.mubr.bf16.gmra.mrb[208].mxu0 %v9545_v0 }
 0x2b3   : > { %v3612_v3 = vsel %vm9350_vm11, 0, %v3611_v33  ;;  %v3609_v54 = vsel %vm9350_vm11, 0, %v3608_v30  ;;  %4017 = vmatprep.mubr.bf16.mxu0 %v9499_v12  ;;  %v6479_v12 = vpop.f32.mrb[168].mxu0  ;;  %v4298_v33 = vld [vmem:[#allocation2 + $0x90] sm:$0xff] }
 0x2b4   : > { %3613 = vst [vmem:[#allocation2 + $0x1a8] sm:$0x80] %v3612_v3  ;;  %3610 = vst [vmem:[#allocation2 + $0x190] sm:$0x80] %v3609_v54  ;;  %7068 = vmatmul.mubr.bf16.gmra.mrb[180].mxu1 %v9682_v18  ;;  %v9691_v48 = vld [vmem:[#allocation2 + $0x178] sm:$0xff]  ;;  %v4302_v30 = vld [vmem:[#allocation2 + $0xb0] sm:$0xff] }
 0x2b5   : > { %v9684_v4 = vld [vmem:[#allocation2 + $0x160] sm:$0xff]  ;;  %3624 = vst [vmem:[#allocation2 + $0x1a8] sm:$0xff] %v9388_v44  ;;  %v6480_v44 = vpop.f32.mrb[169].mxu0  ;;  %v4301_v3 = vld [vmem:[#allocation2 + $0xa8] sm:$0xff] }
 0x2b6   : > { %7071 = vmatprep.mubr.bf16.mxu1 %v9684_v4  ;;  %v6482_v19 = vpop.f32.mrb[170].mxu0  ;;  %v9700_v10 = vadd.f32 %v6480_v44, %v6479_v12  ;;  %v4305_v54 = vld [vmem:[#allocation2 + $0xc8] sm:$0xff]  ;;  %v4307_v12 = vld [vmem:[#allocation2 + $0xd8] sm:$0xff] }
 0x2b7   : > { %v4313_v44 = vld [vmem:[#allocation2 + $0x108] sm:$0xff] }
 0x2ba   : > { %4018 = vmatmul.mubr.bf16.gmra.mrb[212].mxu0 %v9539_v35  ;;  %v6483_v35 = vpop.f32.mrb[171].mxu0 }
 0x2bb   : > { %4025 = vmatprep.mubr.bf16.mxu0 %v9532_v27  ;;  %v9702_v62 = vadd.f32 %v6483_v35, %v6482_v19 }
 0x2bc   : > { %7072 = vmatmul.mubr.bf16.gmra.mrb[184].mxu1 %v9691_v48 }
 0x2bd   : > { %4588 = vmatprep.mubr.bf16.mxu1 %v4284_v20  ;;  %v4304_v20 = vld [vmem:[#allocation2 + $0xc0] sm:$0xff] }
 0x2c2   : > { %4026 = vmatmul.mubr.bf16.gmra.mrb[216].mxu0 %v9583_v39 }
 0x2c3   : > { %4033 = vmatprep.mubr.bf16.mxu0 %v9530_v26 }
 0x2c4   : > { %4589 = vmatmul.mubr.bf16.vlgmr.msra.gmra.mrb[188].mxu1 %v4283_v60  ;;  %v4314_v60 = vld [vmem:[#allocation2 + $0x110] sm:$0xff] }
 0x2c5   : > { %4596 = vmatprep.mubr.bf16.mxu1 %v4287_v45  ;;  %7076 = vmatpush3.bf16.msra.mxu1 %v9573_v7  ;;  %v7639_v7 = vld [vmem:[#allocation5 + $0x160] sm:$0xff]  }
 0x2c6   : > { %7077 = vmatprep.subr.bf16.mxu1 %v7624_v8 }
 0x2c9   : > { %7078 = vmatpush3.bf16.msra.mxu1 %v7624_v8  ;;  %v4308_v8 = vld [vmem:[#allocation2 + $0xe0] sm:$0xff] }
 0x2ca   : > { %4034 = vmatmul.mubr.bf16.gmra.mrb[220].mxu0 %v9577_v6  ;;  %7079 = vmatprep.subr.bf16.mxu1 %v7627_v47 }
 0x2cb   : > { %4041 = vmatprep.mubr.bf16.mxu0 %v9596_v52 }
 0x2cc   : > { %4597 = vmatmul.mubr.bf16.gmra.mrb[192].mxu1 %v4286_v42 }
 0x2cd   : > { %4604 = vmatprep.mubr.bf16.mxu1 %v4290_v5  ;;  %7080 = vmatpush3.bf16.msra.mxu1 %v7627_v47 }
 0x2ce   : > { %7081 = vmatprep.subr.bf16.mxu1 %v7636_v56 }
 0x2d1   : > { %7082 = vmatpush3.bf16.msra.mxu1 %v7636_v56 }
 0x2d2   : > { %4042 = vmatmul.mubr.bf16.gmra.mrb[224].mxu0 %v9635_v14  ;;  %7083 = vmatprep.subr.bf16.mxu1 %v7639_v7 }
 0x2d3   : > { %4049 = vmatprep.mubr.bf16.mxu0 %v9594_v32 }
 0x2d4   : > { %4605 = vmatmul.mubr.bf16.gmra.mrb[196].mxu1 %v4289_v22 }
 0x2d5   : > { %4612 = vmatprep.mubr.bf16.mxu1 %v4293_v13  ;;  %7084 = vmatpush3.bf16.msra.mxu1 %v7639_v7  ;;  %v7645_v7 = vld [vmem:[#allocation5 + $0x210] sm:$0xff]  }
 0x2d6   : > { %7085 = vmatprep.subr.bf16.mxu1 %v7640_v46 }
 0x2d9   : > { %7086 = vmatpush3.bf16.msra.mxu1 %v7640_v46 }
 0x2da   : > { %4050 = vmatmul.mubr.bf16.gmra.mrb[228].mxu0 %v9629_v29  ;;  %7087 = vmatprep.subr.bf16.mxu1 %v7641_v36 }
 0x2db   : > { %5247 = vmatprep.mubr.bf16.mxu0 %v4287_v45  ;;  %v4967_v45 = vld [vmem:[#allocation2 + $0xf8] sm:$0xff] }
 0x2dc   : > { %4613 = vmatmul.mubr.bf16.gmra.mrb[200].mxu1 %v4292_v63 }
 0x2dd   : > { %4620 = vmatprep.mubr.bf16.mxu1 %v4296_v59  ;;  %7088 = vmatpush3.bf16.msra.mxu1 %v7641_v36 }
 0x2de   : > { %7089 = vmatprep.subr.bf16.mxu1 %v7642_v21 }
 0x2e1   : > { %7090 = vmatpush3.bf16.msra.mxu1 %v7642_v21  ;;  %v7646_v21 = vld [vmem:[#allocation5 + $0x218] sm:$0xff]  }
 0x2e2   : > { %5248 = vmatmul.mubr.bf16.vlgmr.msra.gmra.mrb[232].mxu0 %v4286_v42  ;;  %7123 = vmatprep.subr.bf16.mxu1 %v9707_v38  ;;  %v7644_v42 = vld [vmem:[#allocation5 + $0x208] sm:$0xff]  }
 0x2e3   : > { %5255 = vmatprep.mubr.bf16.mxu0 %v4290_v5 }
 0x2e4   : > { %4621 = vmatmul.mubr.bf16.gmra.mrb[204].mxu1 %v4295_v23 }
 0x2e5   : > { %4628 = vmatprep.mubr.bf16.mxu1 %v4299_v17 }
 0x2ea   : > { %5256 = vmatmul.mubr.bf16.gmra.mrb[236].mxu0 %v4289_v22 }
 0x2eb   : > { %5263 = vmatprep.mubr.bf16.mxu0 %v4293_v13 }
 0x2ec   : > { %4629 = vmatmul.mubr.bf16.gmra.mrb[208].mxu1 %v4298_v33 }
 0x2ed   : > { %4636 = vmatprep.mubr.bf16.mxu1 %v4302_v30 }
 0x2f2   : > { %5264 = vmatmul.mubr.bf16.gmra.mrb[240].mxu0 %v4292_v63 }
 0x2f3   : > { %5271 = vmatprep.mubr.bf16.mxu0 %v4296_v59  ;;  %v7647_v59 = vld [vmem:[#allocation5 + $0x220] sm:$0xff]  }
 0x2f4   : > { %4637 = vmatmul.mubr.bf16.gmra.mrb[212].mxu1 %v4301_v3 }
 0x2f5   : > { %4644 = vmatprep.mubr.bf16.mxu1 %v4305_v54 }
 0x2fa   : > { %5272 = vmatmul.mubr.bf16.gmra.mrb[244].mxu0 %v4295_v23 }
 0x2fb   : > { %5279 = vmatprep.mubr.bf16.mxu0 %v4299_v17 }
 0x2fc   : > { %4645 = vmatmul.mubr.bf16.gmra.mrb[216].mxu1 %v4304_v20 }
 0x2fd   : > { %4652 = vmatprep.mubr.bf16.mxu1 %v4308_v8 }
 0x302   : > { %5280 = vmatmul.mubr.bf16.gmra.mrb[248].mxu0 %v4298_v33 }
 0x303   : > { %5287 = vmatprep.mubr.bf16.mxu0 %v4302_v30 }
 0x304   : > { %4653 = vmatmul.mubr.bf16.gmra.mrb[220].mxu1 %v4307_v12 }
 0x305   : > { %4660 = vmatprep.mubr.bf16.mxu1 %v9501_v11  ;;  %v4966_v11 = vld [vmem:[#allocation2 + $0xf0] sm:$0xff] }
 0x30a   : > { %5288 = vmatmul.mubr.bf16.gmra.mrb[252].mxu0 %v4301_v3  ;;  %v9750_v3 = vld [vmem:[#allocation2 + $0x8] sm:$0xff] }
 0x30b   : > { %5295 = vmatprep.mubr.bf16.mxu0 %v4305_v54  ;;  %v7649_v54 = vld [vmem:[#allocation5 + $0x230] sm:$0xff]  }
 0x30c   : > { %4661 = vmatmul.mubr.bf16.gmra.mrb[224].mxu1 %v9545_v0  ;;  %v4976_v0 = vld [vmem:[#allocation2 + $0x140] sm:$0xff] }
 0x30d   : > { %4668 = vmatprep.mubr.bf16.mxu1 %v4314_v60 }
 0x312   : > { %5296 = vmatmul.mubr.bf16.gmra.mrb[0].mxu0 %v4304_v20 }
 0x313   : > { %5303 = vmatprep.mubr.bf16.mxu0 %v4308_v8 }
 0x314   : > { %4669 = vmatmul.mubr.bf16.gmra.mrb[228].mxu1 %v4313_v44 }
 0x315   : > { %4676 = vmatprep.mubr.bf16.mxu1 %v9532_v27 }
 0x31a   : > { %5304 = vmatmul.mubr.bf16.gmra.mrb[4].mxu0 %v4307_v12 }
 0x31b   : > { %5311 = vmatprep.mubr.bf16.mxu0 %v4967_v45 }
 0x31c   : > { %4677 = vmatmul.mubr.bf16.gmra.mrb[232].mxu1 %v9583_v39 }
 0x31d   : > { %4684 = vmatprep.mubr.bf16.mxu1 %v9530_v26  ;;  %v4975_v26 = vld [vmem:[#allocation2 + $0x138] sm:$0xff] }
 0x322   : > { %5312 = vmatmul.mubr.bf16.gmra.mrb[8].mxu0 %v4966_v11 }
 0x323   : > { %5319 = vmatprep.mubr.bf16.mxu0 %v4314_v60  ;;  %v7650_v60 = vld [vmem:[#allocation5 + $0x238] sm:$0xff]  }
 0x324   : > { %4685 = vmatmul.mubr.bf16.gmra.mrb[236].mxu1 %v9577_v6  ;;  %v4285_v6 = vld [vmem:[#allocation2 + $0x28] sm:$0xff] }
 0x325   : > { %4692 = vmatprep.mubr.bf16.mxu1 %v9596_v52 }
 0x32a   : > { %5320 = vmatmul.mubr.bf16.gmra.mrb[12].mxu0 %v4313_v44 }
 0x32b   : > { %5327 = vmatprep.mubr.bf16.mxu0 %v9532_v27 }
 0x32c   : > { %4693 = vmatmul.mubr.bf16.gmra.mrb[240].mxu1 %v9635_v14 }
 0x32d   : > { %4700 = vmatprep.mubr.bf16.mxu1 %v9594_v32 }
 0x332   : > { %5328 = vmatmul.mubr.bf16.gmra.mrb[16].mxu0 %v9583_v39 }
 0x333   : > { %5335 = vmatprep.mubr.bf16.mxu0 %v4976_v0 }
 0x334   : > { %4701 = vmatmul.mubr.bf16.gmra.mrb[244].mxu1 %v9629_v29  ;;  %v9730_v29 = vld [vmem:[#allocation2 + $0x40] sm:$0xff] }
 0x335   : > { %4708 = vmatprep.mubr.bf16.mxu1 %v9624_v57 }
 0x33a   : > { %5336 = vmatmul.mubr.bf16.gmra.mrb[20].mxu0 %v4975_v26  ;;  %v6485_v27 = vpop.f32.mrb[172].mxu0 }
 0x33b   : > { %5343 = vmatprep.mubr.bf16.mxu0 %v9596_v52  ;;  %v6486_v19 = vpop.f32.mrb[173].mxu0  ;;  %v9734_v52 = vld [vmem:[#allocation2 + $0x58] sm:$0xff] }
 0x33c   : > { %4709 = vmatmul.mubr.bf16.gmra.mrb[248].mxu1 %v9660_v53  ;;  %v9725_v35 = vadd.f32 %v6486_v19, %v6485_v27  ;;  %v6488_v47 = vpop.f32.mrb[174].mxu0 }
 0x33d   : > { %7091 = vmatprep.mubr.bf16.mxu1 %v4285_v6  ;;  %v6489_v39 = vpop.f32.mrb[175].mxu0 }
 0x33e   : > { %v9727_v56 = vadd.f32 %v6489_v39, %v6488_v47 }
 0x342   : > { %5344 = vmatmul.mubr.bf16.gmra.mrb[24].mxu0 %v9635_v14 }
 0x343   : > { %5351 = vmatprep.mubr.bf16.mxu0 %v9594_v32  ;;  %v6491_v5 = vpop.f32.mrb[176].mxu0  ;;  %v4981_v32 = vld [vmem:[#allocation2 + $0x168] sm:$0xff] }
 0x344   : > { %7092 = vmatmul.mubr.bf16.vlgmr.msra.gmra.mrb[156].mxu1 %v9730_v29  ;;  %v6492_v46 = vpop.f32.mrb[177].mxu0 }
 0x345   : > { %7095 = vmatprep.mubr.bf16.mxu1 %v9734_v52  ;;  %7124 = vmatpush3.bf16.msra.mxu1 %v9707_v38  ;;  %v9738_v22 = vadd.f32 %v6492_v46, %v6491_v5  ;;  %v6494_v13 = vpop.f32.mrb[178].mxu0 }
 0x346   : > { %7125 = vmatprep.subr.bf16.mxu1 %v7644_v42  ;;  %v6495_v14 = vpop.f32.mrb[179].mxu0 }
 0x347   : > { %v9740_v36 = vadd.f32 %v6495_v14, %v6494_v13 }
 0x349   : > { %7126 = vmatpush3.bf16.msra.mxu1 %v7644_v42 }
 0x34a   : > { %7127 = vmatprep.subr.bf16.mxu1 %v7645_v7  ;;  %5352 = vmatmul.mubr.bf16.gmra.mrb[28].mxu0 %v4981_v32 }
 0x34b   : > { %5359 = vmatprep.mubr.bf16.mxu0 %v9624_v57  ;;  %v7648_v57 = vld [vmem:[#allocation5 + $0x228] sm:$0xff]  }
 0x34c   : > { %7096 = vmatmul.mubr.bf16.gmra.mrb[160].mxu1 %v9521_v37  ;;  %v6497_v63 = vpop.f32.mrb[180].mxu0 }
 0x34d   : > { %7099 = vmatprep.mubr.bf16.mxu1 %v9528_v15  ;;  %7128 = vmatpush3.bf16.msra.mxu1 %v7645_v7  ;;  %v6498_v38 = vpop.f32.mrb[181].mxu0 }
 0x34e   : > { %7129 = vmatprep.subr.bf16.mxu1 %v7646_v21  ;;  %v9745_v23 = vadd.f32 %v6498_v38, %v6497_v63  ;;  %v6500_v17 = vpop.f32.mrb[182].mxu0 }
 0x34f   : > { %v6501_v33 = vpop.f32.mrb[183].mxu0 }
 0x350   : > { %v9747_v30 = vadd.f32 %v6501_v33, %v6500_v17  ;;  %v4950_v17 = vld [vmem:[#allocation2 + $0x70] sm:$0xff] }
 0x351   : > { %7130 = vmatpush3.bf16.msra.mxu1 %v7646_v21 }
 0x352   : > { %7131 = vmatprep.subr.bf16.mxu1 %v7647_v59  ;;  %5360 = vmatmul.mubr.bf16.gmra.mrb[32].mxu0 %v9660_v53 }
 0x353   : > { %5367 = vmatprep.mubr.bf16.mxu0 %v9750_v3 }
 0x354   : > { %7100 = vmatmul.mubr.bf16.gmra.mrb[164].mxu1 %v9558_v58  ;;  %v6503_v37 = vpop.f32.mrb[184].mxu0 }
 0x355   : > { %7103 = vmatprep.mubr.bf16.mxu1 %v9568_v41  ;;  %7132 = vmatpush3.bf16.msra.mxu1 %v7647_v59  ;;  %v6504_v15 = vpop.f32.mrb[185].mxu0 }
 0x356   : > { %7133 = vmatprep.subr.bf16.mxu1 %v7648_v57  ;;  %v9755_v20 = vadd.f32 %v6504_v15, %v6503_v37  ;;  %v6506_v8 = vpop.f32.mrb[186].mxu0 }
 0x357   : > { %v6507_v12 = vpop.f32.mrb[187].mxu0 }
 0x358   : > { %v9757_v53 = vadd.f32 %v6507_v12, %v6506_v8  ;;  %v4956_v12 = vld [vmem:[#allocation2 + $0xa0] sm:$0xff] }
 0x359   : > { %7134 = vmatpush3.bf16.msra.mxu1 %v7648_v57 }
 0x35a   : > { %5368 = vmatmul.mubr.bf16.gmra.mrb[36].mxu0 %v9750_v3  ;;  %7135 = vmatprep.subr.bf16.mxu1 %v7649_v54 }
 0x35c   : > { %7104 = vmatmul.mubr.bf16.gmra.mrb[168].mxu1 %v9622_v28  ;;  %v6509_v58 = vpop.f32.mrb[188].mxu0 }
 0x35d   : > { %7107 = vmatprep.mubr.bf16.mxu1 %v9645_v49  ;;  %7136 = vmatpush3.bf16.msra.mxu1 %v7649_v54  ;;  %v6510_v41 = vpop.f32.mrb[189].mxu0 }
 0x35e   : > { %7137 = vmatprep.subr.bf16.mxu1 %v7650_v60  ;;  %v9762_v44 = vadd.f32 %v6510_v41, %v6509_v58  ;;  %v6512_v45 = vpop.f32.mrb[190].mxu0 }
 0x35f   : > { %v6513_v11 = vpop.f32.mrb[191].mxu0 }
 0x360   : > { %v9764_v0 = vadd.f32 %v6513_v11, %v6512_v45  ;;  %v917_v11 = vunpack.c.l.bf16 %v9329_v24 }
 0x361   : > { %7138 = vmatpush3.bf16.msra.mxu1 %v7650_v60 }
 0x364   : > { %7108 = vmatmul.mubr.bf16.gmra.mrb[172].mxu1 %v9647_v61  ;;  %v6515_v26 = vpop.f32.mrb[192].mxu0 }
 0x365   : > { %7111 = vmatprep.mubr.bf16.mxu1 %v9666_v2  ;;  %v6516_v6 = vpop.f32.mrb[193].mxu0 }
 0x366   : > { %v9768_v28 = vadd.f32 %v6516_v6, %v6515_v26  ;;  %v6518_v49 = vpop.f32.mrb[194].mxu0  ;;  %v918_v6 = vunpack.c.h.bf16 %v9329_v24 }
 0x367   : > { %v6519_v27 = vpop.f32.mrb[195].mxu0 }
 0x368   : > { %v9770_v19 = vadd.f32 %v6519_v27, %v6518_v49  ;;  %v4959_v49 = vld [vmem:[#allocation2 + $0xb8] sm:$0xff]  ;;  %v9806_v27 = vld [vmem:[%s10176_s4] ss:$0 sm:$0xff] }
 0x36c   : > { %7112 = vmatmul.mubr.bf16.gmra.mrb[176].mxu1 %v9674_v25 }
 0x36d   : > { %7115 = vmatprep.mubr.bf16.mxu1 %v9682_v18  ;;  %v6521_v47 = vpop.f32.mrb[196].mxu0  ;;  %v9784_v18 = vld [vmem:[#allocation2 + $0x190] sm:$0xff] }
 0x36e   : > { %v6522_v39 = vpop.f32.mrb[197].mxu0 }
 0x36f   : > { %v9774_v42 = vadd.f32 %v6522_v39, %v6521_v47  ;;  %v6524_v5 = vpop.f32.mrb[198].mxu0  ;;  %v4962_v47 = vld [vmem:[#allocation2 + $0xd0] sm:$0xff]  ;;  %v956_v39 = vadd.f32 %v9806_v27, %v917_v11 }
 0x370   : > { %v6525_v61 = vpop.f32.mrb[199].mxu0 }
 0x371   : > { %v9776_v7 = vadd.f32 %v6525_v61, %v6524_v5 }
 0x374   : > { %7116 = vmatmul.mubr.bf16.gmra.mrb[180].mxu1 %v9684_v4 }
 0x375   : > { %7119 = vmatprep.mubr.bf16.mxu1 %v9691_v48  ;;  %v6527_v2 = vpop.f32.mrb[200].mxu0 }
 0x376   : > { %v6528_v46 = vpop.f32.mrb[201].mxu0 }
 0x377   : > { %v9780_v13 = vadd.f32 %v6528_v46, %v6527_v2  ;;  %v6530_v14 = vpop.f32.mrb[202].mxu0  ;;  %v957_v2 = vadd.f32 %v9806_v27, %v918_v6 }
 0x378   : > { %v6531_v25 = vpop.f32.mrb[203].mxu0 }
 0x379   : > { %v9782_v32 = vadd.f32 %v6531_v25, %v6530_v14 }
 0x37c   : > { %7120 = vmatmul.mubr.bf16.gmra.mrb[184].mxu1 %v9784_v18 }
 0x37d   : > { %7139 = vmatprep.mubr.bf16.mxu1 %v9730_v29  ;;  %v6533_v21 = vpop.f32.mrb[204].mxu0  ;;  %v4953_v29 = vld [vmem:[#allocation2 + $0x88] sm:$0xff] }
 0x37e   : > { %v6534_v63 = vpop.f32.mrb[205].mxu0 }
 0x37f   : > { %v9788_v59 = vadd.f32 %v6534_v63, %v6533_v21  ;;  %v6536_v4 = vpop.f32.mrb[206].mxu0  ;;  %v7207_v63 = vadd.f32 %v9700_v10, %v956_v39 }
 0x380   : > { %v6537_v48 = vpop.f32.mrb[207].mxu0 }
 0x381   : > { %v9790_v38 = vadd.f32 %v6537_v48, %v6536_v4  ;;  %v919_v4 = vunpack.c.l.bf16 %v9321_v51 }
 0x384   : > { %7140 = vmatmul.mubr.bf16.vlgmr.msra.gmra.mrb[156].mxu1 %v9734_v52 }
 0x385   : > { %7143 = vmatprep.mubr.bf16.mxu1 %v4950_v17  ;;  %v6539_v33 = vpop.f32.mrb[208].mxu0 }
 0x386   : > { %v6540_v57 = vpop.f32.mrb[209].mxu0 }
 0x387   : > { %v9793_v37 = vadd.f32 %v6540_v57, %v6539_v33  ;;  %v6542_v15 = vpop.f32.mrb[210].mxu0 }
 0x388   : > { %v6543_v54 = vpop.f32.mrb[211].mxu0 }
 0x389   : > { %v9795_v8 = vadd.f32 %v6543_v54, %v6542_v15  ;;  %v7215_v15 = vadd.f32 %v9702_v62, %v957_v2  ;;  %v920_v54 = vunpack.c.h.bf16 %v9321_v51 }
 0x38b   : > { %v959_v6 = vadd.f32 %v9806_v27, %v920_v54 }
 0x38c   : > { %7144 = vmatmul.mubr.bf16.gmra.mrb[160].mxu1 %v4953_v29 }
 0x38d   : > { %7147 = vmatprep.mubr.bf16.mxu1 %v4956_v12  ;;  %v6545_v60 = vpop.f32.mrb[212].mxu0 }
 0x38e   : > { %v6546_v58 = vpop.f32.mrb[213].mxu0 }
 0x38f   : > { %v9797_v41 = vadd.f32 %v6546_v58, %v6545_v60  ;;  %v6548_v45 = vpop.f32.mrb[214].mxu0  ;;  %v4965_v60 = vld [vmem:[#allocation2 + $0xe8] sm:$0xff]  ;;  %v4968_v58 = vld [vmem:[#allocation2 + $0x100] sm:$0xff] }
 0x390   : > { %v6549_v52 = vpop.f32.mrb[215].mxu0 }
 0x391   : > { %v9800_v26 = vadd.f32 %v6549_v52, %v6548_v45  ;;  %v958_v45 = vadd.f32 %v9806_v27, %v919_v4 }
 0x394   : > { %7148 = vmatmul.mubr.bf16.gmra.mrb[164].mxu1 %v4959_v49 }
 0x395   : > { %7151 = vmatprep.mubr.bf16.mxu1 %v4962_v47  ;;  %v6551_v5 = vpop.f32.mrb[216].mxu0 }
 0x396   : > { %v6552_v61 = vpop.f32.mrb[217].mxu0 }
 0x397   : > { %v6615_v46 = vpop.f32.mrb[188].mxu1  ;;  %v9810_v14 = vadd.f32 %v6552_v61, %v6551_v5  ;;  %v6554_v25 = vpop.f32.mrb[218].mxu0  ;;  %v7203_v5 = vadd.f32 %v9725_v35, %v958_v45  ;;  %v921_v61 = vunpack.c.l.bf16 %v9364_v9 }
 0x398   : > { %v6616_v24 = vpop.f32.mrb[189].mxu1  ;;  %v6555_v21 = vpop.f32.mrb[219].mxu0 }
 0x399   : > { %v6617_v48 = vadd.f32 %v6616_v24, %v6615_v46  ;;  %v6618_v17 = vpop.f32.mrb[190].mxu1  ;;  %v9814_v33 = vadd.f32 %v6555_v21, %v6554_v25  ;;  %v7211_v21 = vadd.f32 %v9727_v56, %v959_v6  ;;  %v10313_v6 = vld [vmem:[#allocation33_spill] sm:$0xff] }
 0x39a   : > { %v6619_v57 = vpop.f32.mrb[191].mxu1 }
 0x39b   : > { %v9818_v29 = vadd.f32 %v7207_v63, %v6617_v48  ;;  %v6620_v12 = vadd.f32 %v6619_v57, %v6618_v17  ;;  %v922_v63 = vunpack.c.h.bf16 %v9364_v9  ;;  %v4971_v17 = vld [vmem:[#allocation2 + $0x118] sm:$0xff]  ;;  %v4974_v57 = vld [vmem:[#allocation2 + $0x130] sm:$0xff] }
 0x39c   : > { %7152 = vmatmul.mubr.bf16.gmra.mrb[168].mxu1 %v4965_v60 }
 0x39d   : > { %v9821_v10 = vadd.f32 %v7215_v15, %v6620_v12  ;;  %7155 = vmatprep.mubr.bf16.mxu1 %v4968_v58  ;;  %v6557_v52 = vpop.f32.mrb[220].mxu0  ;;  %v960_v15 = vadd.f32 %v9806_v27, %v921_v61  ;;  %v961_v60 = vadd.f32 %v9806_v27, %v922_v63  ;;  %v4980_v63 = vld [vmem:[#allocation2 + $0x160] sm:$0xff] }
 0x39e   : > { %v6558_v11 = vpop.f32.mrb[221].mxu0 }
 0x39f   : > { %v6621_v49 = vpop.f32.mrb[192].mxu1  ;;  %v9824_v47 = vadd.f32 %v6558_v11, %v6557_v52  ;;  %v6560_v62 = vpop.f32.mrb[222].mxu0  ;;  %v7223_v11 = vadd.f32 %v9738_v22, %v960_v15  ;;  %v7231_v61 = vadd.f32 %v9740_v36, %v961_v60 }
 0x3a0   : > { %v6622_v51 = vpop.f32.mrb[193].mxu1  ;;  %v6561_v39 = vpop.f32.mrb[223].mxu0 }
 0x3a1   : > { %v6623_v2 = vadd.f32 %v6622_v51, %v6621_v49  ;;  %v6624_v46 = vpop.f32.mrb[194].mxu1  ;;  %v9828_v25 = vadd.f32 %v6561_v39, %v6560_v62  ;;  %v923_v49 = vunpack.c.l.bf16 %v10313_v6 }
 0x3a2   : > { %v6625_v24 = vpop.f32.mrb[195].mxu1 }
 0x3a3   : > { %v9832_v4 = vadd.f32 %v7203_v5, %v6623_v2  ;;  %v6626_v48 = vadd.f32 %v6625_v24, %v6624_v46  ;;  %v924_v2 = vunpack.c.h.bf16 %v10313_v6 }
 0x3a4   : > { %7156 = vmatmul.mubr.bf16.gmra.mrb[172].mxu1 %v4971_v17 }
 0x3a5   : > { %v9835_v35 = vadd.f32 %v7211_v21, %v6626_v48  ;;  %7159 = vmatprep.mubr.bf16.mxu1 %v4974_v57  ;;  %v6563_v54 = vpop.f32.mrb[224].mxu0  ;;  %v4977_v21 = vld [vmem:[#allocation2 + $0x148] sm:$0xff]  ;;  %v962_v48 = vadd.f32 %v9806_v27, %v923_v49  ;;  %v963_v15 = vadd.f32 %v9806_v27, %v924_v2  ;;  %v4983_v2 = vld [vmem:[#allocation2 + $0x178] sm:$0xff] }
 0x3a6   : > { %v6564_v12 = vpop.f32.mrb[225].mxu0 }
 0x3a7   : > { %v6627_v58 = vpop.f32.mrb[196].mxu1  ;;  %v9838_v45 = vadd.f32 %v6564_v12, %v6563_v54  ;;  %v6566_v56 = vpop.f32.mrb[226].mxu0 }
 0x3a8   : > { %v6628_v9 = vpop.f32.mrb[197].mxu1  ;;  %v6567_v52 = vpop.f32.mrb[227].mxu0 }
 0x3a9   : > { %v6629_v62 = vadd.f32 %v6628_v9, %v6627_v58  ;;  %v6630_v51 = vpop.f32.mrb[198].mxu1  ;;  %v9842_v39 = vadd.f32 %v6567_v52, %v6566_v56  ;;  %v7219_v56 = vadd.f32 %v9745_v23, %v962_v48  ;;  %v925_v9 = vunpack.c.l.bf16 %v9413_v1 }
 0x3aa   : > { %v6631_v5 = vpop.f32.mrb[199].mxu1 }
 0x3ab   : > { %v9846_v46 = vadd.f32 %v7223_v11, %v6629_v62  ;;  %v6632_v24 = vadd.f32 %v6631_v5, %v6630_v51  ;;  %v7227_v62 = vadd.f32 %v9747_v30, %v963_v15  ;;  %v926_v51 = vunpack.c.h.bf16 %v9413_v1 }
 0x3ac   : > { %7160 = vmatmul.mubr.bf16.gmra.mrb[176].mxu1 %v4977_v21  ;;  %v927_v1 = vunpack.c.l.bf16 %v9401_v34 }
 0x3ad   : > { %v9849_v22 = vadd.f32 %v7231_v61, %v6632_v24  ;;  %7163 = vmatprep.mubr.bf16.mxu1 %v4980_v63  ;;  %v6569_v17 = vpop.f32.mrb[228].mxu0  ;;  %v964_v24 = vadd.f32 %v9806_v27, %v925_v9  ;;  %v965_v48 = vadd.f32 %v9806_v27, %v926_v51 }
 0x3ae   : > { %v6570_v57 = vpop.f32.mrb[229].mxu0 }
 0x3af   : > { %v6633_v54 = vpop.f32.mrb[200].mxu1  ;;  %v9852_v12 = vadd.f32 %v6570_v57, %v6569_v17  ;;  %v6572_v36 = vpop.f32.mrb[230].mxu0 }
 0x3b0   : > { %v6634_v60 = vpop.f32.mrb[201].mxu1  ;;  %v6573_v58 = vpop.f32.mrb[231].mxu0 }
 0x3b1   : > { %v6635_v52 = vadd.f32 %v6634_v60, %v6633_v54  ;;  %v6636_v11 = vpop.f32.mrb[202].mxu1  ;;  %v9856_v6 = vadd.f32 %v6573_v58, %v6572_v36  ;;  %v7239_v36 = vadd.f32 %v9755_v20, %v964_v24  ;;  %v966_v20 = vadd.f32 %v9806_v27, %v927_v1 }
 0x3b2   : > { %v6637_v49 = vpop.f32.mrb[203].mxu1 }
 0x3b3   : > { %v9860_v5 = vadd.f32 %v7219_v56, %v6635_v52  ;;  %v6638_v61 = vadd.f32 %v6637_v49, %v6636_v11  ;;  %v7247_v11 = vadd.f32 %v9757_v53, %v965_v48  ;;  %v929_v53 = vunpack.c.l.bf16 %v9441_v31 }
 0x3b4   : > { %7164 = vmatmul.mubr.bf16.gmra.mrb[180].mxu1 %v4983_v2 }
 0x3b5   : > { %v9863_v21 = vadd.f32 %v7227_v62, %v6638_v61  ;;  %7167 = vmatprep.mubr.bf16.mxu1 %v9784_v18  ;;  %v6751_v23 = vpop.f32.mrb[232].mxu0  ;;  %v928_v18 = vunpack.c.h.bf16 %v9401_v34 }
 0x3b6   : > { %v6752_v63 = vpop.f32.mrb[233].mxu0 }
 0x3b7   : > { %v6639_v17 = vpop.f32.mrb[204].mxu1  ;;  %v6753_v57 = vadd.f32 %v6752_v63, %v6751_v23  ;;  %v6754_v30 = vpop.f32.mrb[234].mxu0  ;;  %v967_v24 = vadd.f32 %v9806_v27, %v928_v18  ;;  %v968_v18 = vadd.f32 %v9806_v27, %v929_v53  ;;  %v932_v53 = vunpack.c.h.bf16 %v9437_v40 }
 0x3b8   : > { %v6640_v15 = vpop.f32.mrb[205].mxu1  ;;  %v6755_v54 = vpop.f32.mrb[235].mxu0 }
 0x3b9   : > { %v6641_v60 = vadd.f32 %v6640_v15, %v6639_v17  ;;  %v6642_v58 = vpop.f32.mrb[206].mxu1  ;;  %v6756_v56 = vadd.f32 %v6755_v54, %v6754_v30  ;;  %v9870_v9 = vadd.f32 %v9818_v29, %v6753_v57  ;;  %v930_v15 = vunpack.c.h.bf16 %v9441_v31 }
 0x3ba   : > { %v6643_v52 = vpop.f32.mrb[207].mxu1 }
 0x3bb   : > { %v9874_v49 = vadd.f32 %v7239_v36, %v6641_v60  ;;  %v6644_v62 = vadd.f32 %v6643_v52, %v6642_v58  ;;  %v9877_v51 = vadd.f32 %v9821_v10, %v6756_v56  ;;  %v7235_v10 = vadd.f32 %v9762_v44, %v966_v20 }
 0x3bc   : > { %7168 = vmatmul.mubr.bf16.gmra.mrb[184].mxu1 %v9750_v3  ;;  %v7243_v36 = vadd.f32 %v9764_v0, %v967_v24  ;;  %v7255_v24 = vadd.f32 %v9768_v28, %v968_v18  ;;  %v933_v18 = vunpack.c.l.bf16 %v9494_v16 }
 0x3bd   : > { %v9881_v61 = vadd.f32 %v7247_v11, %v6644_v62  ;;  %v6757_v2 = vpop.f32.mrb[236].mxu0 }
 0x3be   : > { %v6758_v29 = vpop.f32.mrb[237].mxu0 }
 0x3bf   : > { %v6645_v34 = vpop.f32.mrb[208].mxu1  ;;  %v6759_v23 = vadd.f32 %v6758_v29, %v6757_v2  ;;  %v6760_v63 = vpop.f32.mrb[238].mxu0  ;;  %v931_v2 = vunpack.c.l.bf16 %v9437_v40 }
 0x3c0   : > { %v6646_v48 = vpop.f32.mrb[209].mxu1  ;;  %v6761_v17 = vpop.f32.mrb[239].mxu0 }
 0x3c1   : > { %v6647_v57 = vadd.f32 %v6646_v48, %v6645_v34  ;;  %v6648_v30 = vpop.f32.mrb[210].mxu1  ;;  %v6762_v3 = vadd.f32 %v6761_v17, %v6760_v63  ;;  %v9887_v1 = vadd.f32 %v9832_v4, %v6759_v23  ;;  %v969_v4 = vadd.f32 %v9806_v27, %v930_v15 }
 0x3c2   : > { %v6649_v54 = vpop.f32.mrb[211].mxu1 }
 0x3c3   : > { %v9891_v60 = vadd.f32 %v7235_v10, %v6647_v57  ;;  %v6650_v58 = vadd.f32 %v6649_v54, %v6648_v30  ;;  %v9894_v56 = vadd.f32 %v9835_v35, %v6762_v3  ;;  %v7263_v17 = vadd.f32 %v9770_v19, %v969_v4 }
 0x3c4   : > { %v970_v3 = vadd.f32 %v9806_v27, %v931_v2 }
 0x3c5   : > { %v9897_v44 = vadd.f32 %v7243_v36, %v6650_v58  ;;  %v6763_v52 = vpop.f32.mrb[240].mxu0 }
 0x3c6   : > { %v6764_v11 = vpop.f32.mrb[241].mxu0 }
 0x3c7   : > { %v6651_v62 = vpop.f32.mrb[212].mxu1  ;;  %v6765_v20 = vadd.f32 %v6764_v11, %v6763_v52  ;;  %v6766_v31 = vpop.f32.mrb[242].mxu0  ;;  %v7251_v11 = vadd.f32 %v9774_v42, %v970_v3 }
 0x3c8   : > { %v6652_v0 = vpop.f32.mrb[213].mxu1  ;;  %v6767_v29 = vpop.f32.mrb[243].mxu0 }
 0x3c9   : > { %v6653_v34 = vadd.f32 %v6652_v0, %v6651_v62  ;;  %v6654_v35 = vpop.f32.mrb[214].mxu1  ;;  %v6768_v23 = vadd.f32 %v6767_v29, %v6766_v31  ;;  %v9903_v63 = vadd.f32 %v9846_v46, %v6765_v20  ;;  %v971_v46 = vadd.f32 %v9806_v27, %v932_v53 }
 0x3ca   : > { %v6655_v48 = vpop.f32.mrb[215].mxu1  ;;  %v934_v31 = vunpack.c.h.bf16 %v9494_v16 }
 0x3cb   : > { %v9907_v10 = vadd.f32 %v7255_v24, %v6653_v34  ;;  %v6656_v57 = vadd.f32 %v6655_v48, %v6654_v35  ;;  %v9910_v30 = vadd.f32 %v9849_v22, %v6768_v23  ;;  %v7259_v0 = vadd.f32 %v9776_v7, %v971_v46 }
 0x3cc   : > { %v972_v35 = vadd.f32 %v9806_v27, %v933_v18 }
 0x3cd   : > { %v9913_v28 = vadd.f32 %v7263_v17, %v6656_v57  ;;  %v6769_v15 = vpop.f32.mrb[244].mxu0  ;;  %v10314_v57 = vld [vmem:[#allocation28_spill] sm:$0xff] }
 0x3ce   : > { %v6770_v54 = vpop.f32.mrb[245].mxu0  ;;  %v935_v3 = vunpack.c.l.bf16 %v10314_v57 }
 0x3cf   : > { %v6657_v36 = vpop.f32.mrb[216].mxu1  ;;  %v6771_v58 = vadd.f32 %v6770_v54, %v6769_v15  ;;  %v6772_v40 = vpop.f32.mrb[246].mxu0  ;;  %v7271_v54 = vadd.f32 %v9780_v13, %v972_v35  ;;  %v10315_v35 = vld [vmem:[#allocation34_spill] sm:$0xff] }
 0x3d0   : > { %v6658_v19 = vpop.f32.mrb[217].mxu1  ;;  %v6773_v52 = vpop.f32.mrb[247].mxu0 }
 0x3d1   : > { %v6659_v4 = vadd.f32 %v6658_v19, %v6657_v36  ;;  %v6660_v22 = vpop.f32.mrb[218].mxu1  ;;  %v6774_v62 = vadd.f32 %v6773_v52, %v6772_v40  ;;  %v9919_v20 = vadd.f32 %v9860_v5, %v6771_v58  ;;  %v973_v5 = vadd.f32 %v9806_v27, %v934_v31 }
 0x3d2   : > { %v6661_v2 = vpop.f32.mrb[219].mxu1  ;;  %v936_v40 = vunpack.c.h.bf16 %v10314_v57  ;;  %v938_v57 = vunpack.c.h.bf16 %v10315_v35 }
 0x3d3   : > { %v9923_v29 = vadd.f32 %v7251_v11, %v6659_v4  ;;  %v6662_v24 = vadd.f32 %v6661_v2, %v6660_v22  ;;  %v9926_v34 = vadd.f32 %v9863_v21, %v6774_v62  ;;  %v7279_v19 = vadd.f32 %v9782_v32, %v973_v5 }
 0x3d4   : > { %v974_v22 = vadd.f32 %v9806_v27, %v935_v3 }
 0x3d5   : > { %v9929_v42 = vadd.f32 %v7259_v0, %v6662_v24  ;;  %v6775_v23 = vpop.f32.mrb[248].mxu0 }
 0x3d6   : > { %v6776_v53 = vpop.f32.mrb[249].mxu0  ;;  %v7267_v5 = vadd.f32 %v9788_v59, %v974_v22  ;;  %v10316_v22 = vld [vmem:[#allocation29_spill] sm:$0xff] }
 0x3d7   : > { %v6663_v48 = vpop.f32.mrb[220].mxu1  ;;  %v6777_v17 = vadd.f32 %v6776_v53, %v6775_v23  ;;  %v6778_v16 = vpop.f32.mrb[250].mxu0  ;;  %v937_v23 = vunpack.c.l.bf16 %v10315_v35  ;;  %v940_v35 = vunpack.c.h.bf16 %v10316_v22 }
 0x3d8   : > { %v6664_v7 = vpop.f32.mrb[221].mxu1  ;;  %v6779_v15 = vpop.f32.mrb[251].mxu0 }
 0x3d9   : > { %v6665_v46 = vadd.f32 %v6664_v7, %v6663_v48  ;;  %v6666_v21 = vpop.f32.mrb[222].mxu1  ;;  %v6780_v36 = vadd.f32 %v6779_v15, %v6778_v16  ;;  %v9935_v58 = vadd.f32 %v9874_v49, %v6777_v17  ;;  %v975_v49 = vadd.f32 %v9806_v27, %v936_v40 }
 0x3da   : > { %v6667_v18 = vpop.f32.mrb[223].mxu1 }
 0x3db   : > { %v9939_v52 = vadd.f32 %v7271_v54, %v6665_v46  ;;  %v6668_v11 = vadd.f32 %v6667_v18, %v6666_v21  ;;  %v9942_v4 = vadd.f32 %v9881_v61, %v6780_v36  ;;  %v7275_v7 = vadd.f32 %v9790_v38, %v975_v49 }
 0x3dc   : > { %v976_v21 = vadd.f32 %v9806_v27, %v937_v23 }
 0x3dd   : > { %v9945_v13 = vadd.f32 %v7279_v19, %v6668_v11  ;;  %v6781_v62 = vpop.f32.mrb[252].mxu0 }
 0x3de   : > { %v6782_v31 = vpop.f32.mrb[253].mxu0  ;;  %v7287_v49 = vadd.f32 %v9793_v37, %v976_v21  ;;  %v941_v21 = vunpack.c.l.bf16 %v9589_v43 }
 0x3df   : > { %v6669_v2 = vpop.f32.mrb[224].mxu1  ;;  %v6783_v0 = vadd.f32 %v6782_v31, %v6781_v62  ;;  %v6784_v24 = vpop.f32.mrb[254].mxu0  ;;  %v939_v62 = vunpack.c.l.bf16 %v10316_v22 }
 0x3e0   : > { %v6670_v32 = vpop.f32.mrb[225].mxu1  ;;  %v6785_v53 = vpop.f32.mrb[255].mxu0 }
 0x3e1   : > { %v6671_v48 = vadd.f32 %v6670_v32, %v6669_v2  ;;  %v6672_v61 = vpop.f32.mrb[226].mxu1  ;;  %v6786_v17 = vadd.f32 %v6785_v53, %v6784_v24  ;;  %v9951_v16 = vadd.f32 %v9891_v60, %v6783_v0  ;;  %v977_v60 = vadd.f32 %v9806_v27, %v938_v57 }
 0x3e2   : > { %v6673_v3 = vpop.f32.mrb[227].mxu1 }
 0x3e3   : > { %v9955_v15 = vadd.f32 %v7267_v5, %v6671_v48  ;;  %v6674_v54 = vadd.f32 %v6673_v3, %v6672_v61  ;;  %v9958_v46 = vadd.f32 %v9897_v44, %v6786_v17  ;;  %v7295_v32 = vadd.f32 %v9795_v8, %v977_v60 }
 0x3e4   : > { %v978_v61 = vadd.f32 %v9806_v27, %v939_v62 }
 0x3e5   : > { %v9961_v59 = vadd.f32 %v7275_v7, %v6674_v54  ;;  %v6787_v36 = vpop.f32.mrb[0].mxu0 }
 0x3e6   : > { %v6788_v40 = vpop.f32.mrb[1].mxu0 }
 0x3e7   : > { %v6675_v18 = vpop.f32.mrb[228].mxu1  ;;  %v6789_v19 = vadd.f32 %v6788_v40, %v6787_v36  ;;  %v6790_v11 = vpop.f32.mrb[2].mxu0  ;;  %v7283_v40 = vadd.f32 %v9797_v41, %v978_v61 }
 0x3e8   : > { %v6676_v38 = vpop.f32.mrb[229].mxu1  ;;  %v6791_v31 = vpop.f32.mrb[3].mxu0 }
 0x3e9   : > { %v6677_v2 = vadd.f32 %v6676_v38, %v6675_v18  ;;  %v6678_v44 = vpop.f32.mrb[230].mxu1  ;;  %v6792_v0 = vadd.f32 %v6791_v31, %v6790_v11  ;;  %v9967_v24 = vadd.f32 %v9907_v10, %v6789_v19  ;;  %v979_v10 = vadd.f32 %v9806_v27, %v940_v35 }
 0x3ea   : > { %v6679_v23 = vpop.f32.mrb[231].mxu1  ;;  %v942_v11 = vunpack.c.h.bf16 %v9589_v43 }
 0x3eb   : > { %v9971_v53 = vadd.f32 %v7287_v49, %v6677_v2  ;;  %v6680_v5 = vadd.f32 %v6679_v23, %v6678_v44  ;;  %v9974_v48 = vadd.f32 %v9913_v28, %v6792_v0  ;;  %v7291_v62 = vadd.f32 %v9800_v26, %v979_v10 }
 0x3ec   : > { %v980_v2 = vadd.f32 %v9806_v27, %v941_v21 }
 0x3ed   : > { %v9977_v37 = vadd.f32 %v7295_v32, %v6680_v5  ;;  %v6793_v17 = vpop.f32.mrb[4].mxu0  ;;  %v943_v32 = vunpack.c.l.bf16 %v9587_v50 }
 0x3ee   : > { %v6794_v57 = vpop.f32.mrb[5].mxu0  ;;  %v7303_v61 = vadd.f32 %v9810_v14, %v980_v2 }
 0x3ef   : > { %v6681_v3 = vpop.f32.mrb[232].mxu1  ;;  %v6795_v7 = vadd.f32 %v6794_v57, %v6793_v17  ;;  %v6796_v54 = vpop.f32.mrb[6].mxu0 }
 0x3f0   : > { %v6682_v8 = vpop.f32.mrb[233].mxu1  ;;  %v6797_v36 = vpop.f32.mrb[7].mxu0 }
 0x3f1   : > { %v6683_v60 = vadd.f32 %v6682_v8, %v6681_v3  ;;  %v6684_v28 = vpop.f32.mrb[234].mxu1  ;;  %v6798_v18 = vadd.f32 %v6797_v36, %v6796_v54  ;;  %v9983_v19 = vadd.f32 %v9923_v29, %v6795_v7  ;;  %v981_v29 = vadd.f32 %v9806_v27, %v942_v11 }
 0x3f2   : > { %v6685_v22 = vpop.f32.mrb[235].mxu1  ;;  %v944_v3 = vunpack.c.h.bf16 %v9587_v50 }
 0x3f3   : > { %v9987_v38 = vadd.f32 %v7283_v40, %v6683_v60  ;;  %v6686_v31 = vadd.f32 %v6685_v22, %v6684_v28  ;;  %v9990_v49 = vadd.f32 %v9929_v42, %v6798_v18  ;;  %v7311_v54 = vadd.f32 %v9814_v33, %v981_v29 }
 0x3f4   : > { %v982_v40 = vadd.f32 %v9806_v27, %v943_v32  ;;  %v945_v22 = vunpack.c.l.bf16 %v9620_v55  ;;  %v946_v29 = vunpack.c.h.bf16 %v9620_v55 }
 0x3f5   : > { %v9993_v41 = vadd.f32 %v7291_v62, %v6686_v31  ;;  %v6799_v44 = vpop.f32.mrb[8].mxu0 }
 0x3f6   : > { %v6800_v0 = vpop.f32.mrb[9].mxu0  ;;  %v7299_v31 = vadd.f32 %v9824_v47, %v982_v40 }
 0x3f7   : > { %v6687_v35 = vpop.f32.mrb[236].mxu1  ;;  %v6801_v23 = vadd.f32 %v6800_v0, %v6799_v44  ;;  %v6802_v43 = vpop.f32.mrb[10].mxu0 }
 0x3f8   : > { %v6688_v26 = vpop.f32.mrb[237].mxu1  ;;  %v6803_v5 = vpop.f32.mrb[11].mxu0 }
 0x3f9   : > { %v6689_v17 = vadd.f32 %v6688_v26, %v6687_v35  ;;  %v6690_v42 = vpop.f32.mrb[238].mxu1  ;;  %v6804_v57 = vadd.f32 %v6803_v5, %v6802_v43  ;;  %v9999_v10 = vadd.f32 %v9939_v52, %v6801_v23  ;;  %v983_v52 = vadd.f32 %v9806_v27, %v944_v3 }
 0x3fa   : > { %v6691_v7 = vpop.f32.mrb[239].mxu1  ;;  %v984_v5 = vadd.f32 %v9806_v27, %v945_v22 }
 0x3fb   : > { %v10003_v21 = vadd.f32 %v7303_v61, %v6689_v17  ;;  %v6692_v8 = vadd.f32 %v6691_v7, %v6690_v42  ;;  %v10006_v36 = vadd.f32 %v9945_v13, %v6804_v57  ;;  %v7307_v23 = vadd.f32 %v9828_v25, %v983_v52  ;;  %v10317_v7 = vld [vmem:[#allocation13_spill] sm:$0xff] }
 0x3fc   : > { %v985_v42 = vadd.f32 %v9806_v27, %v946_v29  ;;  %v947_v55 = vunpack.c.l.bf16 %v10317_v7  ;;  %v7319_v25 = vadd.f32 %v9838_v45, %v984_v5  ;;  %v948_v52 = vunpack.c.h.bf16 %v10317_v7 }
 0x3fd   : > { %v10009_v14 = vadd.f32 %v7311_v54, %v6692_v8  ;;  %v6805_v60 = vpop.f32.mrb[12].mxu0 }
 0x3fe   : > { %v6806_v28 = vpop.f32.mrb[13].mxu0 }
 0x3ff   : > { %v6693_v18 = vpop.f32.mrb[240].mxu1  ;;  %v6807_v11 = vadd.f32 %v6806_v28, %v6805_v60  ;;  %v6808_v50 = vpop.f32.mrb[14].mxu0 }
 0x400   : > { %v6694_v33 = vpop.f32.mrb[241].mxu1  ;;  %v6809_v62 = vpop.f32.mrb[15].mxu0 }
 0x401   : > { %v6695_v2 = vadd.f32 %v6694_v33, %v6693_v18  ;;  %v6696_v13 = vpop.f32.mrb[242].mxu1  ;;  %v6810_v44 = vadd.f32 %v6809_v62, %v6808_v50  ;;  %v10015_v0 = vadd.f32 %v9955_v15, %v6807_v11  ;;  %v7327_v11 = vadd.f32 %v9842_v39, %v985_v42 }
 0x402   : > { %v6697_v35 = vpop.f32.mrb[243].mxu1  ;;  %v986_v62 = vadd.f32 %v9806_v27, %v947_v55 }
 0x403   : > { %v7300_v43 = vadd.f32 %v7299_v31, %v6695_v2  ;;  %v6698_v32 = vadd.f32 %v6697_v35, %v6696_v13  ;;  %v10020_v26 = vadd.f32 %v9961_v59, %v6810_v44  ;;  %v987_v13 = vadd.f32 %v9806_v27, %v948_v52 }
 0x405   : > { %v7308_v61 = vadd.f32 %v7307_v23, %v6698_v32  ;;  %v6811_v47 = vpop.f32.mrb[16].mxu0  ;;  %v7315_v32 = vadd.f32 %v9852_v12, %v986_v62  ;;  %v7323_v42 = vadd.f32 %v9856_v6, %v987_v13 }
 0x406   : > { %v6812_v17 = vpop.f32.mrb[17].mxu0 }
 0x407   : > { %v6699_v57 = vpop.f32.mrb[244].mxu1  ;;  %v6813_v15 = vadd.f32 %v6812_v17, %v6811_v47  ;;  %v6814_v3 = vpop.f32.mrb[18].mxu0 }
 0x408   : > { %v6700_v54 = vpop.f32.mrb[245].mxu1  ;;  %v6815_v8 = vpop.f32.mrb[19].mxu0 }
 0x409   : > { %v6701_v40 = vadd.f32 %v6700_v54, %v6699_v57  ;;  %v6702_v60 = vpop.f32.mrb[246].mxu1  ;;  %v6816_v59 = vadd.f32 %v6815_v8, %v6814_v3  ;;  %v10027_v28 = vadd.f32 %v9971_v53, %v6813_v15 }
 0x40a   : > { %v6703_v18 = vpop.f32.mrb[247].mxu1 }
 0x40b   : > { %v7320_v50 = vadd.f32 %v7319_v25, %v6701_v40  ;;  %v6704_v22 = vadd.f32 %v6703_v18, %v6702_v60  ;;  %v10032_v33 = vadd.f32 %v9977_v37, %v6816_v59 }
 0x40d   : > { %v7328_v31 = vadd.f32 %v7327_v11, %v6704_v22  ;;  %v6817_v45 = vpop.f32.mrb[20].mxu0 }
 0x40e   : > { %v6818_v2 = vpop.f32.mrb[21].mxu0 }
 0x40f   : > { %v6705_v44 = vpop.f32.mrb[248].mxu1  ;;  %v6819_v53 = vadd.f32 %v6818_v2, %v6817_v45  ;;  %v6820_v29 = vpop.f32.mrb[22].mxu0 }
 0x410   : > { %v6706_v35 = vpop.f32.mrb[249].mxu1  ;;  %v6821_v23 = vpop.f32.mrb[23].mxu0 }
 0x411   : > { %v6707_v39 = vadd.f32 %v6706_v35, %v6705_v44  ;;  %v6708_v5 = vpop.f32.mrb[250].mxu1  ;;  %v6822_v47 = vadd.f32 %v6821_v23, %v6820_v29  ;;  %v10038_v37 = vadd.f32 %v9987_v38, %v6819_v53 }
 0x412   : > { %v6709_v17 = vpop.f32.mrb[251].mxu1 }
 0x413   : > { %v7316_v57 = vadd.f32 %v7315_v32, %v6707_v39  ;;  %v6710_v15 = vadd.f32 %v6709_v17, %v6708_v5  ;;  %v10042_v27 = vadd.f32 %v9993_v41, %v6822_v47 }
 0x415   : > { %v7324_v3 = vadd.f32 %v7323_v42, %v6710_v15  ;;  %v6823_v7 = vpop.f32.mrb[24].mxu0 }
 0x416   : > { %v6824_v55 = vpop.f32.mrb[25].mxu0 }
 0x417   : > { %v6825_v54 = vadd.f32 %v6824_v55, %v6823_v7  ;;  %v6826_v8 = vpop.f32.mrb[26].mxu0 }
 0x418   : > { %v6827_v12 = vpop.f32.mrb[27].mxu0 }
 0x419   : > { %v6828_v25 = vadd.f32 %v6827_v12, %v6826_v8  ;;  %v10045_v40 = vadd.f32 %v10003_v21, %v6825_v54 }
 0x41b   : > { %v10048_v38 = vadd.f32 %v10009_v14, %v6828_v25 }
 0x41d   : > { %v6829_v60 = vpop.f32.mrb[28].mxu0 }
 0x41e   : > { %v6830_v6 = vpop.f32.mrb[29].mxu0 }
 0x41f   : > { %v6831_v59 = vadd.f32 %v6830_v6, %v6829_v60  ;;  %v6832_v52 = vpop.f32.mrb[30].mxu0 }
 0x420   : > { %v6833_v18 = vpop.f32.mrb[31].mxu0 }
 0x421   : > { %v6834_v41 = vadd.f32 %v6833_v18, %v6832_v52  ;;  %v10050_v11 = vadd.f32 %v7300_v43, %v6831_v59 }
 0x423   : > { %v10052_v22 = vadd.f32 %v7308_v61, %v6834_v41 }
 0x425   : > { %v6835_v62 = vpop.f32.mrb[32].mxu0 }
 0x426   : > { %v6836_v45 = vpop.f32.mrb[33].mxu0 }
 0x427   : > { %v6837_v2 = vadd.f32 %v6836_v45, %v6835_v62  ;;  %v6838_v13 = vpop.f32.mrb[34].mxu0 }
 0x428   : > { %v6839_v21 = vpop.f32.mrb[35].mxu0 }
 0x429   : > { %v6840_v44 = vadd.f32 %v6839_v21, %v6838_v13  ;;  %v10054_v53 = vadd.f32 %v7320_v50, %v6837_v2 }
 0x42b   : > { %v10056_v14 = vadd.f32 %v7328_v31, %v6840_v44 }
 0x42d   : > { %v6841_v29 = vpop.f32.mrb[36].mxu0 }
 0x42e   : > { %v6842_v35 = vpop.f32.mrb[37].mxu0 }
 0x42f   : > { %v6843_v23 = vadd.f32 %v6842_v35, %v6841_v29  ;;  %v6844_v32 = vpop.f32.mrb[38].mxu0 }
 0x430   : > { %v6845_v43 = vpop.f32.mrb[39].mxu0 }
 0x431   : > { %v6846_v39 = vadd.f32 %v6845_v43, %v6844_v32  ;;  %v10058_v61 = vadd.f32 %v7316_v57, %v6843_v23 }
 0x433   : > { %v10060_v5 = vadd.f32 %v7324_v3, %v6846_v39 }
 0x457   : > { %v7141_v47 = vpop.f32.mrb[156].mxu1 }
 0x458   : > { %v7206_v17 = vadd.f32 %v9887_v1, %v7141_v47  ;;  %v5410_v42 = vpop.f32.mrb[157].mxu1 }
 0x459   : > { %v7210_v50 = vadd.f32 %v9870_v9, %v5410_v42  ;;  %v7142_v15 = vpop.f32.mrb[158].mxu1 }
 0x45a   : > { %v7214_v31 = vadd.f32 %v9894_v56, %v7142_v15  ;;  %v5413_v7 = vpop.f32.mrb[159].mxu1  ;;  %v5635_v54 = vmax.f32 %v7206_v17, 0.0 }
 0x45b   : > { %v7218_v55 = vadd.f32 %v9877_v51, %v5413_v7  ;;  %v5633_v8 = vmax.f32 %v7210_v50, 0.0 }
 0x45c   : > { %v5636_v57 = vmax.f32 %v7214_v31, 0.0 }
 0x45d   : > { %v5634_v3 = vmax.f32 %v7218_v55, 0.0 }
 0x45e   : > { %v6298_v12 = vpack.c.bf16 %v5636_v57, %v5635_v54 }
 0x45f   : > { %v6293_v25 = vpack.c.bf16 %v5634_v3, %v5633_v8  ;;  %v7145_v60 = vpop.f32.mrb[160].mxu1 }
 0x460   : > { %6370 = vst [vmem:[%s10069_s27 + $0x8] sm:$0xff] %v6298_v12   ;;  %v7222_v9 = vadd.f32 %v9919_v20, %v7145_v60  ;;  %v5426_v1 = vpop.f32.mrb[161].mxu1 }
 0x461   : > { %6294 = vst [vmem:[%s10069_s27] sm:$0xff] %v6293_v25   ;;  %v7226_v51 = vadd.f32 %v9903_v63, %v5426_v1  ;;  %v7146_v56 = vpop.f32.mrb[162].mxu1 }
 0x462   : > { %v7230_v6 = vadd.f32 %v9926_v34, %v7146_v56  ;;  %v5429_v59 = vpop.f32.mrb[163].mxu1  ;;  %v5639_v18 = vmax.f32 %v7222_v9, 0.0 }
 0x463   : > { %v7234_v52 = vadd.f32 %v9910_v30, %v5429_v59  ;;  %v5637_v62 = vmax.f32 %v7226_v51, 0.0 }
 0x464   : > { %v5640_v41 = vmax.f32 %v7230_v6, 0.0 }
 0x465   : > { %v5638_v45 = vmax.f32 %v7234_v52, 0.0 }
 0x466   : > { %v6308_v2 = vpack.c.bf16 %v5640_v41, %v5639_v18 }
 0x467   : > { %v6303_v13 = vpack.c.bf16 %v5638_v45, %v5637_v62  ;;  %v7149_v21 = vpop.f32.mrb[164].mxu1 }
 0x468   : > { %6372 = vst [vmem:[%s10069_s27 + $0x18] sm:$0xff] %v6308_v2   ;;  %v7238_v20 = vadd.f32 %v9951_v16, %v7149_v21  ;;  %v5442_v44 = vpop.f32.mrb[165].mxu1 }
 0x469   : > { %6371 = vst [vmem:[%s10069_s27 + $0x10] sm:$0xff] %v6303_v13   ;;  %v7242_v63 = vadd.f32 %v9935_v58, %v5442_v44  ;;  %v7150_v34 = vpop.f32.mrb[166].mxu1 }
 0x46a   : > { %v7246_v29 = vadd.f32 %v9958_v46, %v7150_v34  ;;  %v5445_v30 = vpop.f32.mrb[167].mxu1  ;;  %v5643_v23 = vmax.f32 %v7238_v20, 0.0 }
 0x46b   : > { %v7250_v35 = vadd.f32 %v9942_v4, %v5445_v30  ;;  %v5641_v43 = vmax.f32 %v7242_v63, 0.0 }
 0x46c   : > { %v5644_v32 = vmax.f32 %v7246_v29, 0.0 }
 0x46d   : > { %v5642_v39 = vmax.f32 %v7250_v35, 0.0 }
 0x46e   : > { %v6318_v47 = vpack.c.bf16 %v5644_v32, %v5643_v23 }
 0x46f   : > { %v6313_v17 = vpack.c.bf16 %v5642_v39, %v5641_v43  ;;  %v7153_v42 = vpop.f32.mrb[168].mxu1 }
 0x470   : > { %6374 = vst [vmem:[%s10069_s27 + $0x28] sm:$0xff] %v6318_v47   ;;  %v7254_v16 = vadd.f32 %v9983_v19, %v7153_v42  ;;  %v5458_v50 = vpop.f32.mrb[169].mxu1 }
 0x471   : > { %6373 = vst [vmem:[%s10069_s27 + $0x20] sm:$0xff] %v6313_v17   ;;  %v7258_v58 = vadd.f32 %v9967_v24, %v5458_v50  ;;  %v7154_v46 = vpop.f32.mrb[170].mxu1 }
 0x472   : > { %v7262_v15 = vadd.f32 %v9990_v49, %v7154_v46  ;;  %v5461_v4 = vpop.f32.mrb[171].mxu1  ;;  %v5647_v7 = vmax.f32 %v7254_v16, 0.0 }
 0x473   : > { %v7266_v31 = vadd.f32 %v9974_v48, %v5461_v4  ;;  %v5645_v54 = vmax.f32 %v7258_v58, 0.0 }
 0x474   : > { %v5648_v55 = vmax.f32 %v7262_v15, 0.0 }
 0x475   : > { %v5646_v57 = vmax.f32 %v7266_v31, 0.0 }
 0x476   : > { %v6328_v8 = vpack.c.bf16 %v5648_v55, %v5647_v7 }
 0x477   : > { %v6323_v3 = vpack.c.bf16 %v5646_v57, %v5645_v54  ;;  %v7157_v12 = vpop.f32.mrb[172].mxu1 }
 0x478   : > { %6376 = vst [vmem:[%s10069_s27 + $0x38] sm:$0xff] %v6328_v8   ;;  %v7270_v19 = vadd.f32 %v10015_v0, %v7157_v12  ;;  %v5474_v25 = vpop.f32.mrb[173].mxu1 }
 0x479   : > { %6375 = vst [vmem:[%s10069_s27 + $0x30] sm:$0xff] %v6323_v3   ;;  %v7274_v24 = vadd.f32 %v9999_v10, %v5474_v25  ;;  %v7158_v49 = vpop.f32.mrb[174].mxu1 }
 0x47a   : > { %v7278_v60 = vadd.f32 %v10020_v26, %v7158_v49  ;;  %v5477_v48 = vpop.f32.mrb[175].mxu1  ;;  %v5651_v1 = vmax.f32 %v7270_v19, 0.0 }
 0x47b   : > { %v7282_v9 = vadd.f32 %v10006_v36, %v5477_v48  ;;  %v5649_v56 = vmax.f32 %v7274_v24, 0.0 }
 0x47c   : > { %v5652_v51 = vmax.f32 %v7278_v60, 0.0 }
 0x47d   : > { %v5650_v6 = vmax.f32 %v7282_v9, 0.0 }
 0x47e   : > { %v6338_v59 = vpack.c.bf16 %v5652_v51, %v5651_v1 }
 0x47f   : > { %v6333_v52 = vpack.c.bf16 %v5650_v6, %v5649_v56  ;;  %v7161_v18 = vpop.f32.mrb[176].mxu1 }
 0x480   : > { %6378 = vst [vmem:[%s10069_s27 + $0x48] sm:$0xff] %v6338_v59   ;;  %v7286_v0 = vadd.f32 %v10038_v37, %v7161_v18  ;;  %v5490_v41 = vpop.f32.mrb[177].mxu1 }
 0x481   : > { %6377 = vst [vmem:[%s10069_s27 + $0x40] sm:$0xff] %v6333_v52   ;;  %v7290_v10 = vadd.f32 %v10027_v28, %v5490_v41  ;;  %v7162_v26 = vpop.f32.mrb[178].mxu1 }
 0x482   : > { %v7294_v62 = vadd.f32 %v10042_v27, %v7162_v26  ;;  %v5493_v36 = vpop.f32.mrb[179].mxu1  ;;  %v5655_v2 = vmax.f32 %v7286_v0, 0.0 }
 0x483   : > { %v7298_v45 = vadd.f32 %v10032_v33, %v5493_v36  ;;  %v5653_v21 = vmax.f32 %v7290_v10, 0.0 }
 0x484   : > { %v5656_v13 = vmax.f32 %v7294_v62, 0.0 }
 0x485   : > { %v5654_v20 = vmax.f32 %v7298_v45, 0.0 }
 0x486   : > { %v6348_v44 = vpack.c.bf16 %v5656_v13, %v5655_v2 }
 0x487   : > { %v6343_v63 = vpack.c.bf16 %v5654_v20, %v5653_v21  ;;  %v7165_v34 = vpop.f32.mrb[180].mxu1 }
 0x488   : > { %6380 = vst [vmem:[%s10069_s27 + $0x58] sm:$0xff] %v6348_v44   ;;  %v7302_v37 = vadd.f32 %v10050_v11, %v7165_v34  ;;  %v5506_v29 = vpop.f32.mrb[181].mxu1 }
 0x489   : > { %6379 = vst [vmem:[%s10069_s27 + $0x50] sm:$0xff] %v6343_v63   ;;  %v7306_v28 = vadd.f32 %v10045_v40, %v5506_v29  ;;  %v7166_v27 = vpop.f32.mrb[182].mxu1 }
 0x48a   : > { %v7310_v30 = vadd.f32 %v10052_v22, %v7166_v27  ;;  %v5509_v33 = vpop.f32.mrb[183].mxu1  ;;  %v5659_v23 = vmax.f32 %v7302_v37, 0.0 }
 0x48b   : > { %v7314_v35 = vadd.f32 %v10048_v38, %v5509_v33  ;;  %v5657_v43 = vmax.f32 %v7306_v28, 0.0 }
 0x48c   : > { %v5660_v32 = vmax.f32 %v7310_v30, 0.0 }
 0x48d   : > { %v5658_v39 = vmax.f32 %v7314_v35, 0.0 }
 0x48e   : > { %v6358_v47 = vpack.c.bf16 %v5660_v32, %v5659_v23 }
 0x48f   : > { %v6353_v17 = vpack.c.bf16 %v5658_v39, %v5657_v43  ;;  %v7169_v11 = vpop.f32.mrb[184].mxu1 }
 0x490   : > { %6382 = vst [vmem:[%s10069_s27 + $0x68] sm:$0xff] %v6358_v47   ;;  %v7318_v42 = vadd.f32 %v10058_v61, %v7169_v11  ;;  %v5522_v16 = vpop.f32.mrb[185].mxu1 }
 0x491   : > { %6381 = vst [vmem:[%s10069_s27 + $0x60] sm:$0xff] %v6353_v17   ;;  %v7322_v40 = vadd.f32 %v10054_v53, %v5522_v16  ;;  %v7170_v22 = vpop.f32.mrb[186].mxu1 }
 0x492   : > { %v7326_v38 = vadd.f32 %v10060_v5, %v7170_v22  ;;  %v5525_v50 = vpop.f32.mrb[187].mxu1  ;;  %v5663_v46 = vmax.f32 %v7318_v42, 0.0 }
 0x493   : > { %v7330_v58 = vadd.f32 %v10056_v14, %v5525_v50  ;;  %v5661_v4 = vmax.f32 %v7322_v40, 0.0 }
 0x494   : > { %v5664_v15 = vmax.f32 %v7326_v38, 0.0 }
 0x495   : > { %v5662_v61 = vmax.f32 %v7330_v58, 0.0 }
 0x496   : > { %v6368_v31 = vpack.c.bf16 %v5664_v15, %v5663_v46 }
 0x497   : > { %v6363_v53 = vpack.c.bf16 %v5662_v61, %v5661_v4 }
 0x498   : > { %6384 = vst [vmem:[%s10069_s27 + $0x78] sm:$0xff] %v6368_v31  }
 0x499   : > { %6383 = vst [vmem:[%s10069_s27 + $0x70] sm:$0xff] %v6363_v53  }
 0x49a   : > { %7704 = shalt.err (!%p7701_p6)
}
 0x49b   : > { %s7705_s16 = scalar_lea.hbm %s10118_s10, 2048  ;;  %s7709_s25 = scalar_lea.hbm %s10177_s5, 4096 }
 0x49c   : > { %p7706_p7 = scmp.ne.s32.totalorder %s10118_s10, %s7705_s16  ;;  %p7710_p0 = scmp.lt.u32.totalorder %s10118_s10, %s10177_s5 }
 0x49d   : > { %p7711_p2 = scmp.lt.u32.totalorder %s7709_s25, %s7705_s16  ;;  %p7713_p8 = scmp.lt.u32.totalorder %s7705_s16, %s10118_s10 }
 0x49e   : > { %p7707_p9 = pnand %p7706_p7, %p10318_p10 }
 0x49f   : > { %p7712_p4 = por %p7711_p2, %p7710_p0 }
 0x4a0   : > { %p7708_p12 = pneg %p7707_p9 }
 0x4a1   : > { %p7714_p11 = por %p7713_p8, %p7712_p4 }
 0x4a3   : > { %p7715_p13 = pnand %p7714_p11, %p7708_p12 }
 0x4a5   : > { %7718 = shalt.err (!%p7715_p13)
}
 0x4a6   : > { %s7780_s29 = smov 64   ;;  %s7781_s11 = smov 4  }
 0x4a7   : > { %7400 = dma.vmem_to_hbm [thread:$0]  (%p10318_p10), %s10120_s12, 2048, %s10118_s10, %s10126_s21, %s7780_s29, %s7780_s29, %s7781_s11  }
 0x4a8 PF: > { %p7412_p1 = scmp.ge.s32.totalorder %s7773_s23, 2  ;;  %s5857_s13 = sand.u32 1, %s7753_s18  }
 0x4a9   : > { %p10319_p3 = scmp.ne.s32.totalorder %s10188_s30, 0  ;;  %s5858_s7 = scalar_lea.sflag [#allocation7], %s5857_s13 }
 0x4ab   : > { %p7407_p5 = pnand %p7412_p1, %p10319_p3 }
 0x4ad   : > { %7748 = dma.done.wait (!%p7407_p5), %s5858_s7, 2048  }
 0x4ae   : > { %7750 = vsyncadd (!%p7407_p5), %s5858_s7, 4294965248  ;;  %s19_s23 = sadd.s32 1, %s7773_s23   ;;  %s10320_s18 = smov %s7757_s19 }
 0x4af   : > { %p16_p6 = scmp.ge.s32.totalorder %s19_s23, 4   ;;  %s10321_s19 = smov %s7761_s20 }
 0x4b0   : > { %s10322_s20 = smov %s7865_s6  ;;  %s10323_s21 = smov %s7769_s22 }
 0x4b1   : > { %s10324_s22 = smov %s10326_s26  ;;  %18 = sbr.rel (!%p16_p6) target bundleno = 5 (0x5), region = 92 }
 0x4b8   :  { %5863 = vsyncpa [#allocation6], 1 }
 0x4b9   :  { %5865 = vsyncpa [#allocation6 + $0x1], 1 }
 0x4ba   :  { %5866 = vsyncpa [#allocation7], 1 }
 0x4bb   :  { %5868 = vsyncpa [#allocation7 + $0x1], 1 }

// kernel: tpu_custom_call.1
= control target key start
LH: loop header
LB: loop body
LE: loop exit
PB: predicated region body
PF: predicated region fallthrough
CT: control target
= control target key end

     0   :  { %10 = vsyncpa [#allocation6], 0  ;;  %s10172_s0 = inlined_call_operand.vmem [shape: bf16[2,20,18,128], index: 0, kind: input, shape index: {}]   ;;  %s10173_s1 = inlined_call_operand.vmem [shape: bf16[3,384,128], index: 1, kind: input, shape index: {}]   ;;  %s10174_s2 = inlined_call_operand.vmem [shape: f32[1,128], index: 2, kind: input, shape index: {}]   ;;  %s10175_s3 = inlined_call_operand.hbm [shape: bf16[3,384,128], index: 3, kind: input, shape index: {}]   ;;  %s10176_s4 = inlined_call_operand.vmem [shape: f32[1,128], index: 4, kind: input, shape index: {}]   ;;  %s10177_s5 = inlined_call_operand.hbm [shape: bf16[2,16,16,128], index: 5, kind: output, shape index: {}]  }
   0x1   :  { %11 = vsyncpa [#allocation7], 0 }
   0x2   :  { %13 = vsyncpa [#allocation7 + $0x1], 0  ;;  %s7812_s18 = smov 0   ;;  %s7814_s19 = smov 0  }
   0x3   :  { %s7816_s20 = smov 0   ;;  %s7818_s21 = smov 0  }
   0x4   :  { %s7820_s22 = smov 0   ;;  %s7822_s23 = smov 0  }
   0x5 LB: > { %s5929_s24 = sadd.s32 4294967295, %s7773_s23   ;;  %s5930_s25 = sadd.s32 4294967294, %s7773_s23   ;;  %s7773_s23 = sphi %s7822_s23, %s19_s23   ;;  %s7769_s22 = sphi %s7820_s22, %s10324_s22   ;;  %s7765_s21 = sphi %s7818_s21, %s10323_s21   ;;  %s7761_s20 = sphi %s7816_s20, %s10322_s20   ;;  %s7757_s19 = sphi %s7814_s19, %s10321_s19   ;;  %s7753_s18 = sphi %s7812_s18, %s10320_s18  }
   0x6   : > { %s31_s26 = sadd.s32 1, %s7769_s22  ;;  %s150_s27 = sadd.s32 1, %s7761_s20 }
   0x7   : > { %p33_p0 = scmp.ge.s32.totalorder %s31_s26, 2  ;;  %p160_p1 = scmp.ne.s32.totalorder %s7761_s20, %s7757_s19 }
   0x8   : > { %p161_p2 = scmp.eq.s32.totalorder %s5929_s24, 1  ;;  %p166_p3 = scmp.ne.s32.totalorder %s7757_s19, %s7753_s18 }
   0x9   : > { %s10326_s26 = smov (%p33_p0, %s31_s26), 0  ;;  %p167_p5 = scmp.eq.s32.totalorder %s5930_s25, 1 }
   0xa   : > { %p7852_p4 = por %p161_p2, %p160_p1  ;;  %s145_s29 = ssub.s32 %s7769_s22, %s10326_s26 }
   0xb   : > { %p5931_p6 = scmp.ge.s32.totalorder %s7773_s23, 1  ;;  %p148_p7 = scmp.eq.s32.totalorder %s145_s29, 0 }
   0xc   : > { %s10187_s28 = scalar_select %p7852_p4, 1, 0 }
   0xd   : > { %p7859_p8 = por %p167_p5, %p166_p3  ;;  %p174_p9 = scmp.lt.s32.totalorder %s7773_s23, 3 }
   0xe   : > { %s7865_s6 = scalar_select %p148_p7, %s7761_s20, %s150_s27  }
   0xf   : > { %s10188_s30 = scalar_select %p7859_p8, 1, 0 }
  0x10   : > { %p7867_p10 = pnand %p5931_p6, %p174_p9  ;;  %p7871_p11 = scmp.eq.s32.totalorder %s5929_s24, 0 }
  0x11   : > { %s7775_s9 = smov [#allocation5]   ;;  %s7663_s14 = scalar_lea.hbm %s10175_s3, 9216 }
  0x12   : > { %s10189_s7 = scalar_select %p7867_p10, 1, 0 }
  0x13   : > { %s10190_s8 = scalar_select %p7871_p11, 1, 0 }
  0x14   : > { %p7402_p12 = pneg %p7867_p10  ;;  %s192_s10 = sshll.u32 %s7775_s9, 4  ;;  %s193_s10 = int_to_ptr.vmem [resolvable:$true] %s192_s10 }
  0x15   : > { %p7664_p0 = scmp.ne.s32.totalorder %s10175_s3, %s7663_s14  ;;  %p7670_p5 = scmp.lt.u32.totalorder %s7663_s14, %s10175_s3 }
  0x16   : > { %p7879_p13 = pnand %p7871_p11, %p7402_p12 }
  0x18   : > { %p7665_p1 = pneg %p7879_p13 }
  0x1a   : > { %p7666_p2 = pnand %p7665_p1, %p7664_p0 }
  0x1c   : > { %p7667_p3 = pneg %p7666_p2 }
  0x1e   : > { %p7672_p6 = pnand %p7670_p5, %p7667_p3 }
  0x20   : > { %7675 = shalt.err (!%p7672_p6)
}
  0x21   : > { %s7676_s25 = scalar_lea.vmem %s193_s10, 9216  ;;  %p7684_p8 = scmp.lt.s32.totalorder %s193_s10, %s193_s10 }
  0x22   : > { %p7677_p7 = scmp.ne.s32.totalorder %s193_s10, %s7676_s25  ;;  %p7685_p4 = scmp.lt.s32.totalorder %s7676_s25, %s7676_s25 }
  0x24   : > { %p7679_p9 = pnand %p7677_p7, %p7665_p1  ;;  %p7686_p11 = por %p7685_p4, %p7684_p8 }
  0x26   : > { %p7680_p12 = pneg %p7679_p9 }
  0x28   : > { %p7687_p10 = pnand %p7686_p11, %p7680_p12 }
  0x2a   : > { %7690 = shalt.err (!%p7687_p10)
}
  0x2b   : > { %s7776_s27 = smov 64   ;;  %s7777_s29 = smov 4  }
  0x2c   : > { %7405 = dma.hbm_to_vmem [thread:$0]  (!%p7879_p13), %s10175_s3, 9216, %s193_s10, [#allocation6], %s7776_s27, %s7776_s27, %s7777_s29  }
  0x2d   : > { %p10192_p0 = scmp.ne.s32.totalorder %s10189_s7, 0 }
  0x2f   : > { %219 = sbr.rel (%p10192_p0) target bundleno = 1192 (0x4a8), region = 40 }
  0x36   : > { %p10193_p2 = scmp.ne.s32.totalorder %s10190_s8, 0 }
  0x38   : > { %7744 = dma.done.wait (%p10193_p2), [#allocation6], 9216  }
  0x39   : > { %7746 = vsyncadd (%p10193_p2), [#allocation6], 4294958080  ;;  %v7778_v0 = vmov 0   ;;  %v7467_v1 = vld [vmem:[%s10173_s1] sm:$0xff]   ;;  %v7468_v2 = vld [vmem:[%s10173_s1 + $0x8] sm:$0xff]   ;;  %p247_p4 = scmp.lt.s32.totalorder %s7765_s21, 1 }
  0x3a   : > { %1273 = vmatprep.subr.bf16.mxu0 %v7778_v0  ;;  %3619 = vst [vmem:[#allocation2 + $0x8] sm:$0xff] %v7778_v0  ;;  %v7469_v3 = vld [vmem:[%s10173_s1 + $0x10] sm:$0xff]   ;;  %v7476_v4 = vld [vmem:[%s10173_s1 + $0x80] sm:$0xff]   ;;  %v7470_v5 = vld [vmem:[%s10173_s1 + $0x18] sm:$0xff]   ;;  %vm518_vm0 = vsmask.f32 7424 }
  0x3b   : > { %1274 = vmatpush1.bf16.msra.mxu0 %v7467_v1  ;;  %6871 = vmatprep.subr.bf16.mxu1 %v7476_v4  ;;  %v7478_v6 = vld [vmem:[%s10173_s1 + $0x88] sm:$0xff]   ;;  %v7480_v7 = vld [vmem:[%s10173_s1 + $0x90] sm:$0xff]   ;;  %v7471_v8 = vld [vmem:[%s10173_s1 + $0x20] sm:$0xff]   ;;  %s248_s13 = scalar_select %p247_p4, %s7765_s21, 1  ;;  %vm3172_vm1 = vcmask 1040384   ;;  %vm799_vm3 = vcmask 1046528  }
  0x3c   : > { %1275 = vmatprep.subr.bf16.mxu0 %v7778_v0  ;;  %6872 = vmatpush3.bf16.msra.mxu1 %v7476_v4  ;;  %v7482_v9 = vld [vmem:[%s10173_s1 + $0x98] sm:$0xff]   ;;  %v7472_v10 = vld [vmem:[%s10173_s1 + $0x28] sm:$0xff]   ;;  %v7484_v11 = vld [vmem:[%s10173_s1 + $0xa0] sm:$0xff]   ;;  %vm3173_vm2 = vsmask.f32 256  ;;  %vm3373_vm5 = vcmask 1047552  }
  0x3d   : > { %6873 = vmatprep.subr.bf16.mxu1 %v7478_v6  ;;  %s7395_s15 = smul.u32 240, %s248_s13  ;;  %v7473_v12 = vld [vmem:[%s10173_s1 + $0x30] sm:$0xff]   ;;  %v7486_v13 = vld [vmem:[%s10173_s1 + $0xa8] sm:$0xff]   ;;  %v7474_v14 = vld [vmem:[%s10173_s1 + $0x38] sm:$0xff]   ;;  %vm3374_vm6 = vsmask.f32 7938 }
  0x3e   : > { %v7475_v22 = vld [vmem:[%s10173_s1 + $0x40] sm:$0xff]   ;;  %v7488_v23 = vld [vmem:[%s10173_s1 + $0xb0] sm:$0xff]   ;;  %v7490_v34 = vld [vmem:[%s10173_s1 + $0xb8] sm:$0xff]   ;;  %vm3557_vm9 = vcmask 1047559   ;;  %vm3558_vm10 = vsmask.f32 7966 }
  0x3f   : > { %1276 = vmatpush1.bf16.msra.mxu0 %v7468_v2  ;;  %s7953_s9 = scalar_lea.vmem %s10172_s0, %s7395_s15  ;;  %v7477_v44 = vld [vmem:[%s10173_s1 + $0x48] sm:$0xff]   ;;  %vm8007_vm4 = vmand %vm3172_vm1, %vm3173_vm2  ;;  %v7479_v54 = vld [vmem:[%s10173_s1 + $0x50] sm:$0xff]   ;;  %s244_s25 = sand.u32 1, %s7757_s19  }
  0x40   : > { %1277 = vmatprep.subr.bf16.mxu0 %v7778_v0  ;;  %6874 = vmatpush3.bf16.msra.mxu1 %v7478_v6  ;;  %v7963_v15 = vld [vmem:[%s7953_s9] sm:$0xff]   ;;  %v7492_v16 = vld [vmem:[%s7953_s9 + $0x8] ss:$0 sps:$4 sm:$0x11]   ;;  %v7967_v17 = vld [vmem:[%s7953_s9 + $0xc] sm:$0xff]   ;;  %s6289_s29 = sshll.u32 %s7765_s21, 11 }
  0x41   : > { %6875 = vmatprep.subr.bf16.mxu1 %v7480_v7  ;;  %v520_v18 = vshrl.u32 %v7963_v15, 16  ;;  %v522_v19 = vshll.u32 %v7963_v15, 16  ;;  %v527_v20 = vshll.u32 %v7492_v16, 16  ;;  %438 = vst [vmem:[#allocation2] sm:$0xff] %v7963_v15  ;;  %v800_v21 = vrot.slane %v7963_v15, 1  ;;  %439 = vst [vmem:[#allocation2 + $0x18] sm:$0xff] %v7967_v17  ;;  %s10118_s10 = scalar_lea.hbm %s10177_s5, %s6289_s29 }
  0x42   : > { %v801_v24 = vrot.slane %v7492_v16, 1  ;;  %v7494_v25 = vld [vmem:[%s7953_s9 + $0x14] ss:$0 sps:$4 sm:$0x11]   ;;  %v803_v26 = vrot.slane %v7967_v17, 1  ;;  %v532_v29 = vshrl.u32 %v7967_v17, 16  ;;  %vm9309_vm7 = vmand %vm3373_vm5, %vm3374_vm6 }
  0x43   : > { %1278 = vmatpush1.bf16.msra.mxu0 %v7469_v3  ;;  %v524_v27 = vrot.slane %v522_v19, 1  ;;  %v529_v28 = vrot.slane %v527_v20, 1  ;;  %v534_v30 = vshll.u32 %v7967_v17, 16  ;;  %v804_v32 = vrot.slane %v7494_v25, 1  ;;  %v7994_v39 = vld [vmem:[%s7953_s9 + $0x18] sm:$0xff]   ;;  %v8000_v43 = vld [vmem:[%s7953_s9 + $0x24] sm:$0xff]   ;;  %vm9316_vm8 = vmand %vm3373_vm5, %vm518_vm0 }
  0x44   : > { %1279 = vmatprep.subr.bf16.mxu0 %v7778_v0  ;;  %6876 = vmatpush3.bf16.msra.mxu1 %v7480_v7  ;;  %v802_v31 = vsel %vm799_vm3, %v800_v21, %v801_v24  ;;  %v539_v33 = vshll.u32 %v7494_v25, 16  ;;  %v7498_v42 = vld [vmem:[%s7953_s9 + $0x20] ss:$0 sps:$4 sm:$0x11]   ;;  %v544_v47 = vshrl.u32 %v7994_v39, 16  ;;  %v546_v48 = vshll.u32 %v7994_v39, 16  ;;  %vm9350_vm11 = vmand %vm3557_vm9, %vm3558_vm10 }
  0x45   : > { %6877 = vmatprep.subr.bf16.mxu1 %v7482_v9  ;;  %v525_v35 = vor.u32 %v524_v27, %v520_v18  ;;  %880 = vst [vmem:[#allocation2 + $0x10] sm:$0xff] %v802_v31  ;;  %6887 = vmatprep.mubr.bf16.mxu1 %v802_v31  ;;  %v536_v36 = vrot.slane %v534_v30, 1  ;;  %v7991_v37 = vsel %vm799_vm3, %v803_v26, %v804_v32  ;;  %440 = vst [vmem:[#allocation2 + $0x30] sm:$0xff] %v7994_v39  ;;  %v7500_v56 = vld [vmem:[%s7953_s9 + $0x2c] ss:$0 sps:$4 sm:$0x11]  }
  0x46   : > { %v541_v38 = vrot.slane %v539_v33, 1  ;;  %881 = vst [vmem:[#allocation2 + $0x28] sm:$0xff] %v7991_v37  ;;  %v806_v49 = vrot.slane %v7994_v39, 1  ;;  %v551_v52 = vshll.u32 %v7498_v42, 16  ;;  %v807_v53 = vrot.slane %v7498_v42, 1  ;;  %441 = vst [vmem:[#allocation2 + $0x48] sm:$0xff] %v8000_v43 }
  0x47   : > { %1280 = vmatpush1.bf16.msra.mxu0 %v7470_v5  ;;  %v530_v40 = vsel %vm518_vm0, %v525_v35, %v529_v28  ;;  %v537_v41 = vor.u32 %v536_v36, %v532_v29  ;;  %v548_v55 = vrot.slane %v546_v48, 1  ;;  %v809_v57 = vrot.slane %v8000_v43, 1  ;;  %v8035_v62 = vld [vmem:[%s10173_s1 + $0xc0] sm:$0xff]   ;;  %v8039_v4 = vld [vmem:[%s7953_s9 + $0x30] sm:$0xff]   ;;  %v7481_v5 = vld [vmem:[%s10173_s1 + $0x58] sm:$0xff]   ;;  %s10126_s21 = scalar_lea.sflag [#allocation7], %s244_s25 }
  0x48   : > { %1281 = vmatprep.subr.bf16.mxu0 %v7778_v0  ;;  %6878 = vmatpush3.bf16.msra.mxu1 %v7482_v9  ;;  %v3175_v46 = vld [vmem:[#allocation2] sm:$0x1]  ;;  %v556_v58 = vshrl.u32 %v8000_v43, 16  ;;  %v553_v59 = vrot.slane %v551_v52, 1  ;;  %v808_v60 = vsel %vm799_vm3, %v806_v49, %v807_v53  ;;  %v558_v61 = vshll.u32 %v8000_v43, 16  ;;  %442 = vst [vmem:[#allocation2 + $0x60] sm:$0xff] %v8039_v4 }
  0x49   : > { %6879 = vmatprep.subr.bf16.mxu1 %v7484_v11  ;;  %1305 = vmatprep.mubr.bf16.mxu0 %v530_v40  ;;  %v3176_v50 = vsel %vm8007_vm4, 0, %v3175_v46  ;;  %v8019_v51 = vsel %vm518_vm0, %v537_v41, %v541_v38  ;;  %v549_v63 = vor.u32 %v548_v55, %v544_v47  ;;  %882 = vst [vmem:[#allocation2 + $0x40] sm:$0xff] %v808_v60  ;;  %v810_v1 = vrot.slane %v7500_v56, 1  ;;  %v7504_v9 = vld [vmem:[%s7953_s9 + $0x38] ss:$0 sps:$4 sm:$0x11]  }
  0x4a   : > { %3177 = vst [vmem:[#allocation2] sm:$0x1] %v3176_v50  ;;  %780 = vst [vmem:[#allocation2 + $0x20] sm:$0xff] %v8019_v51  ;;  %v563_v2 = vshll.u32 %v7500_v56, 16  ;;  %v560_v3 = vrot.slane %v558_v61, 1  ;;  %v575_v16 = vshll.u32 %v7504_v9, 16 }
  0x4b   : > { %1282 = vmatpush1.bf16.msra.mxu0 %v7471_v8  ;;  %3618 = vst [vmem:[#allocation2] sm:$0xff] %v7778_v0  ;;  %v8045_v6 = vsel %vm518_vm0, %v549_v63, %v553_v59  ;;  %v8048_v7 = vsel %vm799_vm3, %v809_v57, %v810_v1  ;;  %v813_v18 = vrot.slane %v7504_v9, 1  ;;  %v8066_v19 = vld [vmem:[%s10173_s1 + $0xc8] sm:$0xff]   ;;  %v7483_v27 = vld [vmem:[%s10173_s1 + $0x60] sm:$0xff]   ;;  %v8086_v32 = vld [vmem:[%s10173_s1 + $0xd0] sm:$0xff]   ;;  %p10318_p10 = scmp.ne.s32.totalorder %s10187_s28, 0 }
  0x4c   : > { %1283 = vmatprep.subr.bf16.mxu0 %v7778_v0  ;;  %6880 = vmatpush3.bf16.msra.mxu1 %v7484_v11  ;;  %v565_v8 = vrot.slane %v563_v2, 1  ;;  %781 = vst [vmem:[#allocation2 + $0x38] sm:$0xff] %v8045_v6  ;;  %883 = vst [vmem:[#allocation2 + $0x58] sm:$0xff] %v8048_v7  ;;  %v568_v11 = vshrl.u32 %v8039_v4, 16  ;;  %v577_v24 = vrot.slane %v575_v16, 1  ;;  %v8099_v38 = vld [vmem:[%s7953_s9 + $0x54] sm:$0xff]  }
  0x4d   : > { %6881 = vmatprep.subr.bf16.mxu1 %v7486_v13  ;;  %v7510_v40 = vld [vmem:[%s7953_s9 + $0x50] ss:$0 sps:$4 sm:$0x11]   ;;  %v8106_v41 = vld [vmem:[%s7953_s9 + $0x60] sm:$0xff]   ;;  %v7485_v42 = vld [vmem:[%s10173_s1 + $0x68] sm:$0xff]   ;;  %445 = vst [vmem:[#allocation2 + $0xa8] sm:$0xff] %v8099_v38 }
  0x4e   : > { %v8120_v49 = vld [vmem:[%s10173_s1 + $0xd8] sm:$0xff]   ;;  %v599_v50 = vshll.u32 %v7510_v40, 16  ;;  %v819_v52 = vrot.slane %v7510_v40, 1  ;;  %v821_v53 = vrot.slane %v8099_v38, 1  ;;  %446 = vst [vmem:[#allocation2 + $0xc0] sm:$0xff] %v8106_v41  ;;  %v824_v59 = vrot.slane %v8106_v41, 1 }
  0x4f   : > { %1284 = vmatpush1.bf16.msra.mxu0 %v7472_v10  ;;  %v561_v10 = vor.u32 %v560_v3, %v556_v58  ;;  %v7512_v57 = vld [vmem:[%s7953_s9 + $0x5c] ss:$0 sps:$4 sm:$0x11]   ;;  %v606_v58 = vshll.u32 %v8099_v38, 16  ;;  %v8137_v63 = vld [vmem:[%s7953_s9 + $0x6c] sm:$0xff]   ;;  %s7779_s8 = smov [#allocation8]  }
  0x50   : > { %1285 = vmatprep.subr.bf16.mxu0 %v7778_v0  ;;  %6882 = vmatpush3.bf16.msra.mxu1 %v7486_v13  ;;  %v812_v13 = vrot.slane %v8039_v4, 1  ;;  %v7487_v1 = vld [vmem:[%s10173_s1 + $0x70] sm:$0xff]   ;;  %v822_v3 = vrot.slane %v7512_v57, 1  ;;  %v7514_v9 = vld [vmem:[%s7953_s9 + $0x68] ss:$0 sps:$4 sm:$0x11]  }
  0x51   : > { %6883 = vmatprep.subr.bf16.mxu1 %v7488_v23  ;;  %v8069_v20 = vsel %vm518_vm0, %v561_v10, %v565_v8  ;;  %v8146_v8 = vld [vmem:[%s10173_s1 + $0xe0] sm:$0xff]   ;;  %v827_v10 = vrot.slane %v8137_v63, 1  ;;  %447 = vst [vmem:[#allocation2 + $0xd8] sm:$0xff] %v8137_v63  ;;  %v7570_v45 = vld [vmem:[%s10173_s1 + $0x208] sm:$0xff]   ;;  %s7695_s14 = sshll.u32 %s7779_s8, 4  ;;  %s7696_s14 = int_to_ptr.vmem [resolvable:$false] %s7695_s14 }
  0x52   : > { %782 = vst [vmem:[#allocation2 + $0x50] sm:$0xff] %v8069_v20  ;;  %v814_v25 = vsel %vm799_vm3, %v812_v13, %v813_v18  ;;  %v8157_v18 = vld [vmem:[%s7953_s9 + $0x78] sm:$0xff]   ;;  %v8184_v40 = vld [vmem:[%s7953_s9 + $0x80] ss:$0 sps:$4 sm:$0x11]   ;;  %s7697_s15 = scalar_lea.vmem %s7696_s14, 4096 }
  0x53   : > { %1286 = vmatpush1.bf16.msra.mxu0 %v7473_v12  ;;  %v570_v12 = vshll.u32 %v8039_v4, 16  ;;  %884 = vst [vmem:[#allocation2 + $0x70] sm:$0xff] %v814_v25  ;;  %448 = vst [vmem:[#allocation2 + $0xf0] sm:$0xff] %v8157_v18 }
  0x54   : > { %1287 = vmatprep.subr.bf16.mxu0 %v7778_v0  ;;  %6884 = vmatpush3.bf16.msra.mxu1 %v7488_v23 }
  0x55   : > { %6885 = vmatprep.subr.bf16.mxu1 %v7490_v34  ;;  %v572_v21 = vrot.slane %v570_v12, 1  ;;  %v823_v12 = vsel %vm799_vm3, %v821_v53, %v822_v3  ;;  %v8209_v53 = vld [vmem:[%s10173_s1 + $0xf0] sm:$0xff]  }
  0x56   : > { %887 = vst [vmem:[#allocation2 + $0xb8] sm:$0xff] %v823_v12 }
  0x57   : > { %1288 = vmatpush1.bf16.msra.mxu0 %v7474_v14  ;;  %v8059_v14 = vld [vmem:[%s7953_s9 + $0x3c] sm:$0xff]   ;;  %v573_v28 = vor.u32 %v572_v21, %v568_v11 }
  0x58   : > { %1289 = vmatprep.subr.bf16.mxu0 %v7778_v0  ;;  %6886 = vmatpush3.bf16.msra.mxu1 %v7490_v34  ;;  %v815_v23 = vrot.slane %v8059_v14, 1  ;;  %443 = vst [vmem:[#allocation2 + $0x78] sm:$0xff] %v8059_v14  ;;  %v580_v26 = vshrl.u32 %v8059_v14, 16  ;;  %v582_v30 = vshll.u32 %v8059_v14, 16  ;;  %v7489_v21 = vld [vmem:[%s10173_s1 + $0x78] sm:$0xff]  }
  0x59   : > { %7171 = vmatprep.subr.bf16.mxu1 %v7778_v0  ;;  %v8090_v33 = vsel %vm518_vm0, %v573_v28, %v577_v24 }
  0x5a   : > { %v584_v35 = vrot.slane %v582_v30, 1  ;;  %783 = vst [vmem:[#allocation2 + $0x68] sm:$0xff] %v8090_v33  ;;  %v830_v30 = vrot.slane %v8157_v18, 1 }
  0x5b   : > { %1290 = vmatpush1.bf16.msra.mxu0 %v7475_v22  ;;  %6888 = vmatmul.mubr.bf16.vlgmr.msra.gmra.mrb[0].mxu1 %v7991_v37  ;;  %v7506_v22 = vld [vmem:[%s7953_s9 + $0x44] ss:$0 sps:$4 sm:$0x11]   ;;  %v8096_v37 = vld [vmem:[%s7953_s9 + $0x48] sm:$0xff]  }
  0x5c   : > { %1291 = vmatprep.subr.bf16.mxu0 %v7778_v0  ;;  %6891 = vmatprep.mubr.bf16.mxu1 %v808_v60  ;;  %v816_v29 = vrot.slane %v7506_v22, 1  ;;  %v587_v31 = vshll.u32 %v7506_v22, 16  ;;  %v592_v46 = vshrl.u32 %v8096_v37, 16  ;;  %v594_v47 = vshll.u32 %v8096_v37, 16  ;;  %444 = vst [vmem:[#allocation2 + $0x90] sm:$0xff] %v8096_v37 }
  0x5d   : > { %7187 = vmatpush1.bf16.msra.mxu1 %v8035_v62  ;;  %v818_v48 = vrot.slane %v8096_v37, 1  ;;  %v601_v60 = vrot.slane %v599_v50, 1  ;;  %v825_v22 = vrot.slane %v7514_v9, 1 }
  0x5e   : > { %7172 = vmatprep.subr.bf16.mxu1 %v7778_v0  ;;  %v8093_v34 = vsel %vm799_vm3, %v815_v23, %v816_v29  ;;  %v589_v36 = vrot.slane %v587_v31, 1  ;;  %v596_v56 = vrot.slane %v594_v47, 1  ;;  %v616_v23 = vshrl.u32 %v8106_v41, 16  ;;  %v8196_v47 = vld [vmem:[%s7953_s9 + $0x8c] ss:$0 sps:$4 sm:$0x11]  }
  0x5f   : > { %1292 = vmatpush1.bf16.msra.mxu0 %v7477_v44  ;;  %885 = vst [vmem:[#allocation2 + $0x88] sm:$0xff] %v8093_v34  ;;  %v585_v44 = vor.u32 %v584_v35, %v580_v26  ;;  %v820_v61 = vsel %vm799_vm3, %v818_v48, %v819_v52  ;;  %v618_v26 = vshll.u32 %v8106_v41, 16  ;;  %v826_v28 = vsel %vm799_vm3, %v824_v59, %v825_v22  ;;  %v8222_v59 = vld [vmem:[%s10173_s1 + $0xf8] sm:$0xff]  }
  0x60   : > { %1293 = vmatprep.subr.bf16.mxu0 %v7778_v0  ;;  %v597_v2 = vor.u32 %v596_v56, %v592_v46  ;;  %886 = vst [vmem:[#allocation2 + $0xa0] sm:$0xff] %v820_v61  ;;  %v623_v29 = vshll.u32 %v7514_v9, 16  ;;  %888 = vst [vmem:[#allocation2 + $0xd0] sm:$0xff] %v826_v28  ;;  %v8191_v46 = vld [vmem:[%s7953_s9 + $0x84] sm:$0xff]   ;;  %v628_v52 = vshrl.u32 %v8137_v63, 16  ;;  %v834_v56 = vrot.slane %v8196_v47, 1 }
  0x61   : > { %7188 = vmatpush1.bf16.msra.mxu1 %v8066_v19  ;;  %v8128_v55 = vsel %vm518_vm0, %v585_v44, %v589_v36  ;;  %v620_v35 = vrot.slane %v618_v26, 1  ;;  %v833_v50 = vrot.slane %v8191_v46, 1  ;;  %449 = vst [vmem:[#allocation2 + $0x108] sm:$0xff] %v8191_v46  ;;  %v8250_v9 = vld [vmem:[%s10173_s1 + $0x100] sm:$0xff]   ;;  %v647_v22 = vshll.u32 %v8184_v40, 16 }
  0x62   : > { %7173 = vmatprep.subr.bf16.mxu1 %v7778_v0  ;;  %784 = vst [vmem:[#allocation2 + $0x80] sm:$0xff] %v8128_v55  ;;  %v8153_v11 = vsel %vm518_vm0, %v597_v2, %v601_v60  ;;  %v625_v36 = vrot.slane %v623_v29, 1  ;;  %v8231_v2 = vld [vmem:[%s7953_s9 + $0x98] ss:$0 sps:$4 sm:$0x11]  }
  0x63   : > { %1294 = vmatpush1.bf16.msra.mxu0 %v7479_v54  ;;  %v604_v54 = vshrl.u32 %v8099_v38, 16  ;;  %6892 = vmatmul.mubr.bf16.gmra.mrb[4].mxu1 %v8048_v7  ;;  %v611_v7 = vshll.u32 %v7512_v57, 16  ;;  %785 = vst [vmem:[#allocation2 + $0x98] sm:$0xff] %v8153_v11  ;;  %v621_v44 = vor.u32 %v620_v35, %v616_v23  ;;  %v630_v57 = vshll.u32 %v8137_v63, 16  ;;  %v8268_v23 = vld [vmem:[%s7953_s9 + $0xa8] sm:$0xff]  }
  0x64   : > { %1295 = vmatprep.subr.bf16.mxu0 %v7778_v0  ;;  %6895 = vmatprep.mubr.bf16.mxu1 %v814_v25  ;;  %v7517_v25 = vld [vmem:[%s7953_s9 + $0x74] ss:$0 sps:$4 sm:$0x11]   ;;  %v8225_v60 = vsel %vm799_vm3, %v833_v50, %v834_v56  ;;  %v837_v3 = vrot.slane %v8231_v2, 1  ;;  %452 = vst [vmem:[#allocation2 + $0x150] sm:$0xff] %v8268_v23  ;;  %v654_v50 = vshll.u32 %v8191_v46, 16 }
  0x65   : > { %7189 = vmatpush1.bf16.msra.mxu1 %v8086_v32  ;;  %v613_v16 = vrot.slane %v611_v7, 1  ;;  %v828_v31 = vrot.slane %v7517_v25, 1  ;;  %v8200_v48 = vsel %vm518_vm0, %v621_v44, %v625_v36  ;;  %891 = vst [vmem:[#allocation2 + $0x118] sm:$0xff] %v8225_v60  ;;  %v8243_v7 = vld [vmem:[%s7953_s9 + $0xa4] ss:$0 sps:$4 sm:$0x11]  }
  0x66   : > { %7174 = vmatprep.subr.bf16.mxu1 %v7778_v0  ;;  %787 = vst [vmem:[#allocation2 + $0xc8] sm:$0xff] %v8200_v48  ;;  %v8278_v29 = vld [vmem:[%s7953_s9 + $0xb0] ss:$0 sps:$4 sm:$0x11]   ;;  %v659_v56 = vshll.u32 %v8196_v47, 16 }
  0x67   : > { %1296 = vmatpush1.bf16.msra.mxu0 %v7481_v5  ;;  %v608_v5 = vrot.slane %v606_v58, 1  ;;  %v635_v58 = vshll.u32 %v7517_v25, 16  ;;  %v843_v36 = vrot.slane %v8278_v29, 1 }
  0x68   : > { %1297 = vmatprep.subr.bf16.mxu0 %v7778_v0 }
  0x69   : > { %v609_v13 = vor.u32 %v608_v5, %v604_v54  ;;  %7190 = vmatpush1.bf16.msra.mxu1 %v8120_v49  ;;  %v8240_v5 = vld [vmem:[%s7953_s9 + $0x9c] sm:$0xff]  }
  0x6a   : > { %7175 = vmatprep.subr.bf16.mxu1 %v7778_v0  ;;  %451 = vst [vmem:[#allocation2 + $0x138] sm:$0xff] %v8240_v5 }
  0x6b   : > { %1298 = vmatpush1.bf16.msra.mxu0 %v7483_v27  ;;  %v8167_v24 = vsel %vm518_vm0, %v609_v13, %v613_v16  ;;  %v8175_v27 = vld [vmem:[%s10173_s1 + $0xe8] sm:$0xff]   ;;  %6896 = vmatmul.mubr.bf16.gmra.mrb[8].mxu1 %v8093_v34  ;;  %v831_v34 = vrot.slane %v8184_v40, 1  ;;  %v839_v13 = vrot.slane %v8240_v5, 1  ;;  %v840_v16 = vrot.slane %v8243_v7, 1 }
  0x6c   : > { %1299 = vmatprep.subr.bf16.mxu0 %v7778_v0  ;;  %786 = vst [vmem:[#allocation2 + $0xb0] sm:$0xff] %v8167_v24  ;;  %6899 = vmatprep.mubr.bf16.mxu1 %v820_v61  ;;  %v632_v61 = vrot.slane %v630_v57, 1  ;;  %v8296_v40 = vld [vmem:[%s7953_s9 + $0xbc] ss:$0 sps:$4 sm:$0x11]   ;;  %v8324_v57 = vld [vmem:[%s7953_s9 + $0xcc] sm:$0xff]  }
  0x6d   : > { %7191 = vmatpush1.bf16.msra.mxu1 %v8146_v8  ;;  %v832_v54 = vsel %vm799_vm3, %v830_v30, %v831_v34  ;;  %v8272_v25 = vsel %vm799_vm3, %v839_v13, %v840_v16  ;;  %v842_v30 = vrot.slane %v8268_v23, 1  ;;  %v846_v34 = vrot.slane %v8296_v40, 1  ;;  %455 = vst [vmem:[#allocation2 + $0x198] sm:$0xff] %v8324_v57 }
  0x6e   : > { %7176 = vmatprep.subr.bf16.mxu1 %v7778_v0  ;;  %890 = vst [vmem:[#allocation2 + $0x100] sm:$0xff] %v832_v54  ;;  %893 = vst [vmem:[#allocation2 + $0x148] sm:$0xff] %v8272_v25  ;;  %v851_v13 = vrot.slane %v8324_v57, 1 }
  0x6f   : > { %1300 = vmatpush1.bf16.msra.mxu0 %v7485_v42  ;;  %v8188_v42 = vsel %vm799_vm3, %v827_v10, %v828_v31  ;;  %v8290_v31 = vld [vmem:[%s7953_s9 + $0xb4] sm:$0xff]   ;;  %v8307_v44 = vsel %vm799_vm3, %v842_v30, %v843_v36  ;;  %v688_v30 = vshrl.u32 %v8268_v23, 16 }
  0x70   : > { %1301 = vmatprep.subr.bf16.mxu0 %v7778_v0  ;;  %889 = vst [vmem:[#allocation2 + $0xe8] sm:$0xff] %v8188_v42  ;;  %453 = vst [vmem:[#allocation2 + $0x168] sm:$0xff] %v8290_v31 }
  0x71   : > { %7192 = vmatpush1.bf16.msra.mxu1 %v8175_v27  ;;  %894 = vst [vmem:[#allocation2 + $0x160] sm:$0xff] %v8307_v44 }
  0x72   : > { %7177 = vmatprep.subr.bf16.mxu1 %v7778_v0 }
  0x73   : > { %1302 = vmatpush1.bf16.msra.mxu0 %v7487_v1  ;;  %v637_v1 = vrot.slane %v635_v58, 1  ;;  %6900 = vmatmul.mubr.bf16.gmra.mrb[12].mxu1 %v823_v12 }
  0x74   : > { %1303 = vmatprep.subr.bf16.mxu0 %v7778_v0  ;;  %6903 = vmatprep.mubr.bf16.mxu1 %v826_v28  ;;  %v649_v28 = vrot.slane %v647_v22, 1  ;;  %v676_v22 = vshrl.u32 %v8240_v5, 16 }
  0x75   : > { %7193 = vmatpush1.bf16.msra.mxu1 %v8209_v53 }
  0x76   : > { %7178 = vmatprep.subr.bf16.mxu1 %v7778_v0 }
  0x77   : > { %1304 = vmatpush1.bf16.msra.mxu0 %v7489_v21  ;;  %v642_v21 = vshll.u32 %v8157_v18, 16 }
  0x78   : > { %1911 = vmatprep.subr.bf16.mxu0 %v7778_v0 }
  0x79   : > { %7194 = vmatpush1.bf16.msra.mxu1 %v8222_v59  ;;  %v644_v26 = vrot.slane %v642_v21, 1  ;;  %v671_v21 = vshll.u32 %v8231_v2, 16  ;;  %v690_v2 = vshll.u32 %v8268_v23, 16 }
  0x7a   : > { %1306 = vmatmul.mubr.bf16.vlgmr.msra.gmra.mrb[0].mxu0 %v7963_v15  ;;  %v8228_v15 = vld [vmem:[%s7953_s9 + $0x90] sm:$0xff]   ;;  %7179 = vmatprep.subr.bf16.mxu1 %v7778_v0 }
  0x7b   : > { %1912 = vmatpush1.bf16.msra.mxu0 %v8035_v62  ;;  %1313 = vmatprep.mubr.bf16.mxu0 %v8019_v51  ;;  %v633_v51 = vor.u32 %v632_v61, %v628_v52  ;;  %v836_v62 = vrot.slane %v8228_v15, 1  ;;  %450 = vst [vmem:[#allocation2 + $0x120] sm:$0xff] %v8228_v15  ;;  %v8312_v52 = vld [vmem:[%s7953_s9 + $0xc0] sm:$0xff]   ;;  %v8331_v61 = vld [vmem:[%s7953_s9 + $0xc8] ss:$0 sps:$4 sm:$0x11]  }
  0x7c   : > { %1913 = vmatprep.subr.bf16.mxu0 %v7778_v0  ;;  %6904 = vmatmul.mubr.bf16.gmra.mrb[16].mxu1 %v8188_v42  ;;  %454 = vst [vmem:[#allocation2 + $0x180] sm:$0xff] %v8312_v52  ;;  %v848_v47 = vrot.slane %v8312_v52, 1  ;;  %v673_v36 = vrot.slane %v671_v21, 1  ;;  %v724_v21 = vshrl.u32 %v8324_v57, 16 }
  0x7d   : > { %v8253_v10 = vsel %vm518_vm0, %v633_v51, %v637_v1  ;;  %v8256_v12 = vsel %vm799_vm3, %v836_v62, %v837_v3  ;;  %6907 = vmatprep.mubr.bf16.mxu1 %v832_v54  ;;  %7195 = vmatpush1.bf16.msra.mxu1 %v8250_v9  ;;  %v8318_v54 = vld [vmem:[%s10173_s1 + $0x110] sm:$0xff]   ;;  %v661_v1 = vrot.slane %v659_v56, 1  ;;  %v849_v62 = vrot.slane %v8331_v61, 1 }
  0x7e   : > { %788 = vst [vmem:[#allocation2 + $0xe0] sm:$0xff] %v8253_v10  ;;  %892 = vst [vmem:[#allocation2 + $0x130] sm:$0xff] %v8256_v12  ;;  %7180 = vmatprep.subr.bf16.mxu1 %v7778_v0  ;;  %v8342_v3 = vld [vmem:[%s7953_s9 + $0xd4] ss:$0 sps:$4 sm:$0x11]   ;;  %v692_v56 = vrot.slane %v690_v2, 1 }
  0x7f   : > { %1914 = vmatpush1.bf16.msra.mxu0 %v8066_v19  ;;  %v640_v19 = vshrl.u32 %v8157_v18, 16 }
  0x80   : > { %1915 = vmatprep.subr.bf16.mxu0 %v7778_v0 }
  0x81   : > { %v645_v35 = vor.u32 %v644_v26, %v640_v19  ;;  %v8358_v19 = vsel %vm799_vm3, %v848_v47, %v849_v62  ;;  %v707_v47 = vshll.u32 %v8296_v40, 16  ;;  %v693_v62 = vor.u32 %v692_v56, %v688_v30  ;;  %v7548_v56 = vld [vmem:[%s10173_s1 + $0x1a8] sm:$0xff]  }
  0x82   : > { %1314 = vmatmul.mubr.bf16.gmra.mrb[4].mxu0 %v7967_v17  ;;  %v8287_v17 = vld [vmem:[%s10173_s1 + $0x108] sm:$0xff]   ;;  %896 = vst [vmem:[#allocation2 + $0x190] sm:$0xff] %v8358_v19  ;;  %v714_v40 = vshll.u32 %v8312_v52, 16 }
  0x83   : > { %1321 = vmatprep.mubr.bf16.mxu0 %v8045_v6  ;;  %1916 = vmatpush1.bf16.msra.mxu0 %v8086_v32  ;;  %v845_v6 = vrot.slane %v8290_v31, 1  ;;  %v652_v32 = vshrl.u32 %v8191_v46, 16  ;;  %v8304_v42 = vsel %vm518_vm0, %v645_v35, %v649_v28  ;;  %v683_v28 = vshll.u32 %v8243_v7, 16 }
  0x84   : > { %1917 = vmatprep.subr.bf16.mxu0 %v7778_v0  ;;  %789 = vst [vmem:[#allocation2 + $0xf8] sm:$0xff] %v8304_v42  ;;  %7196 = vmatpush1.bf16.msra.mxu1 %v8287_v17  ;;  %v700_v7 = vshrl.u32 %v8290_v31, 16 }
  0x85   : > { %v8328_v58 = vsel %vm799_vm3, %v845_v6, %v846_v34  ;;  %7181 = vmatprep.subr.bf16.mxu1 %v7778_v0  ;;  %6908 = vmatmul.mubr.bf16.gmra.mrb[20].mxu1 %v8225_v60  ;;  %v666_v60 = vshll.u32 %v8228_v15, 16  ;;  %v695_v6 = vshll.u32 %v8278_v29, 16  ;;  %v685_v34 = vrot.slane %v683_v28, 1 }
  0x86   : > { %895 = vst [vmem:[#allocation2 + $0x178] sm:$0xff] %v8328_v58  ;;  %6911 = vmatprep.mubr.bf16.mxu1 %v8256_v12  ;;  %v678_v12 = vshll.u32 %v8240_v5, 16  ;;  %v702_v29 = vshll.u32 %v8290_v31, 16 }
  0x87   : > { %1918 = vmatpush1.bf16.msra.mxu0 %v8120_v49  ;;  %v656_v49 = vrot.slane %v654_v50, 1  ;;  %v668_v35 = vrot.slane %v666_v60, 1 }
  0x88   : > { %1919 = vmatprep.subr.bf16.mxu0 %v7778_v0  ;;  %7197 = vmatpush1.bf16.msra.mxu1 %v8318_v54 }
  0x89   : > { %v657_v51 = vor.u32 %v656_v49, %v652_v32  ;;  %7182 = vmatprep.subr.bf16.mxu1 %v7778_v0  ;;  %v680_v32 = vrot.slane %v678_v12, 1  ;;  %v697_v49 = vrot.slane %v695_v6, 1  ;;  %v716_v12 = vrot.slane %v714_v40, 1  ;;  %v8573_v40 = vld [vmem:[#allocation2 + $0x78] sm:$0xff] }
  0x8a   : > { %1322 = vmatmul.mubr.bf16.gmra.mrb[8].mxu0 %v7994_v39  ;;  %v8352_v39 = vld [vmem:[%s10173_s1 + $0x118] sm:$0xff]  }
  0x8b   : > { %1329 = vmatprep.mubr.bf16.mxu0 %v8069_v20  ;;  %1920 = vmatpush1.bf16.msra.mxu0 %v8146_v8  ;;  %v8355_v16 = vsel %vm518_vm0, %v657_v51, %v661_v1  ;;  %v852_v20 = vrot.slane %v8342_v3, 1  ;;  %v664_v8 = vshrl.u32 %v8228_v15, 16  ;;  %v681_v1 = vor.u32 %v680_v32, %v676_v22 }
  0x8c   : > { %1921 = vmatprep.subr.bf16.mxu0 %v7778_v0  ;;  %790 = vst [vmem:[#allocation2 + $0x110] sm:$0xff] %v8355_v16  ;;  %v8380_v0 = vld [vmem:[#allocation2 + $0x8] sm:$0xff]  ;;  %7198 = vmatpush1.bf16.msra.mxu1 %v8352_v39  ;;  %v726_v22 = vshll.u32 %v8324_v57, 16 }
  0x8d   : > { %v8371_v26 = vsel %vm799_vm3, %v851_v13, %v852_v20  ;;  %v669_v50 = vor.u32 %v668_v35, %v664_v8  ;;  %7183 = vmatprep.subr.bf16.mxu1 %v8380_v0  ;;  %v704_v13 = vrot.slane %v702_v29, 1  ;;  %v712_v20 = vshrl.u32 %v8312_v52, 16  ;;  %6912 = vmatmul.mubr.bf16.gmra.mrb[24].mxu1 %v8272_v25  ;;  %v8428_v35 = vld [vmem:[#allocation2 + $0x18] sm:$0xff] }
  0x8e   : > { %897 = vst [vmem:[#allocation2 + $0x1a8] sm:$0xff] %v8371_v26  ;;  %v719_v8 = vshll.u32 %v8331_v61, 16  ;;  %6915 = vmatprep.mubr.bf16.mxu1 %v8307_v44  ;;  %v8417_v25 = vsel %vm518_vm0, %v693_v62, %v697_v49  ;;  %v731_v44 = vshll.u32 %v8342_v3, 16  ;;  %v728_v30 = vrot.slane %v726_v22, 1  ;;  %v8525_v49 = vld [vmem:[#allocation2 + $0x30] sm:$0xff] }
  0x8f   : > { %1922 = vmatpush1.bf16.msra.mxu0 %v8175_v27  ;;  %v8388_v27 = vld [vmem:[%s10173_s1 + $0x120] sm:$0xff]   ;;  %v8397_v51 = vsel %vm518_vm0, %v669_v50, %v673_v36  ;;  %v705_v60 = vor.u32 %v704_v13, %v700_v7  ;;  %793 = vst [vmem:[#allocation2 + $0x158] sm:$0xff] %v8417_v25  ;;  %v3178_v36 = vld [vmem:[#allocation2 + $0x18] sm:$0x1]  ;;  %v717_v2 = vor.u32 %v716_v12, %v712_v20 }
  0x90   : > { %1923 = vmatprep.subr.bf16.mxu0 %v8380_v0  ;;  %791 = vst [vmem:[#allocation2 + $0x128] sm:$0xff] %v8397_v51  ;;  %7199 = vmatpush1.bf16.msra.mxu1 %v8388_v27  ;;  %v721_v61 = vrot.slane %v719_v8, 1  ;;  %v733_v6 = vrot.slane %v731_v44, 1  ;;  %v3179_v32 = vsel %vm8007_vm4, 0, %v3178_v36  ;;  %v729_v3 = vor.u32 %v728_v30, %v724_v21  ;;  %v8509_v50 = vld [vmem:[%s10173_s1 + $0x140] sm:$0xff]   ;;  %v8589_v21 = vld [vmem:[#allocation2 + $0x90] sm:$0xff] }
  0x91   : > { %7184 = vmatprep.subr.bf16.mxu1 %v8380_v0  ;;  %3180 = vst [vmem:[#allocation2 + $0x18] sm:$0x1] %v3179_v32  ;;  %v8554_v13 = vld [vmem:[#allocation2 + $0x60] sm:$0xff]  ;;  %v7568_v12 = vld [vmem:[%s10173_s1 + $0x1f8] sm:$0xff]   ;;  %v8635_v32 = vld [vmem:[#allocation2 + $0xf0] sm:$0xff] }
  0x92   : > { %1330 = vmatmul.mubr.bf16.gmra.mrb[12].mxu0 %v8000_v43  ;;  %v8405_v43 = vld [vmem:[%s10173_s1 + $0x128] sm:$0xff]   ;;  %v8447_v7 = vsel %vm518_vm0, %v729_v3, %v733_v6  ;;  %v3202_v36 = vld [vmem:[#allocation2 + $0xd8] sm:$0x1]  ;;  %v1665_v3 = vld [vmem:[#allocation2 + $0x20] sm:$0xff] }
  0x93   : > { %1337 = vmatprep.mubr.bf16.mxu0 %v8090_v33  ;;  %1924 = vmatpush1.bf16.msra.mxu0 %v8209_v53  ;;  %v8409_v33 = vsel %vm518_vm0, %v681_v1, %v685_v34  ;;  %v709_v53 = vrot.slane %v707_v47, 1  ;;  %v8441_v34 = vsel %vm518_vm0, %v717_v2, %v721_v61  ;;  %796 = vst [vmem:[#allocation2 + $0x1a0] sm:$0xff] %v8447_v7  ;;  %v7552_v1 = vld [vmem:[%s10173_s1 + $0x1b8] sm:$0xff]   ;;  %v8541_v47 = vld [vmem:[#allocation2 + $0x48] sm:$0xff] }
  0x94   : > { %1925 = vmatprep.subr.bf16.mxu0 %v8380_v0  ;;  %792 = vst [vmem:[#allocation2 + $0x140] sm:$0xff] %v8409_v33  ;;  %7200 = vmatpush1.bf16.msra.mxu1 %v8405_v43  ;;  %795 = vst [vmem:[#allocation2 + $0x188] sm:$0xff] %v8441_v34  ;;  %v8605_v61 = vld [vmem:[#allocation2 + $0xa8] sm:$0xff] }
  0x95   : > { %v8426_v28 = vsel %vm518_vm0, %v705_v60, %v709_v53  ;;  %7185 = vmatprep.subr.bf16.mxu1 %v8380_v0  ;;  %6916 = vmatmul.mubr.bf16.gmra.mrb[28].mxu1 %v8328_v58  ;;  %v7559_v53 = vld [vmem:[%s10173_s1 + $0x1d8] sm:$0xff]   ;;  %v7563_v60 = vld [vmem:[%s10173_s1 + $0x1e8] sm:$0xff]  }
  0x96   : > { %794 = vst [vmem:[#allocation2 + $0x170] sm:$0xff] %v8426_v28  ;;  %6919 = vmatprep.mubr.bf16.mxu1 %v8358_v19  ;;  %v7545_v19 = vld [vmem:[%s10173_s1 + $0x190] sm:$0xff]  }
  0x97   : > { %1926 = vmatpush1.bf16.msra.mxu0 %v8222_v59  ;;  %v7541_v59 = vld [vmem:[%s10173_s1 + $0x130] sm:$0xff]  }
  0x98   : > { %1927 = vmatprep.subr.bf16.mxu0 %v8380_v0  ;;  %7201 = vmatpush1.bf16.msra.mxu1 %v7541_v59 }
  0x99   : > { %7186 = vmatprep.subr.bf16.mxu1 %v8380_v0 }
  0x9a   : > { %1338 = vmatmul.mubr.bf16.gmra.mrb[16].mxu0 %v8039_v4  ;;  %v7542_v4 = vld [vmem:[%s10173_s1 + $0x138] sm:$0xff]  }
  0x9b   : > { %1345 = vmatprep.mubr.bf16.mxu0 %v8128_v55  ;;  %1928 = vmatpush1.bf16.msra.mxu0 %v8250_v9  ;;  %v8472_v55 = vld [vmem:[%s7953_s9 + $0xd8] sm:$0xff]   ;;  %v8481_v9 = vld [vmem:[%s7953_s9 + $0xe0] ss:$0 sps:$4 sm:$0x11]  }
  0x9c   : > { %1929 = vmatprep.subr.bf16.mxu0 %v8380_v0  ;;  %7202 = vmatpush1.bf16.msra.mxu1 %v7542_v4  ;;  %456 = vst [vmem:[#allocation2 + $0x1b0] sm:$0xff] %v8472_v55  ;;  %v855_v2 = vrot.slane %v8481_v9, 1 }
  0x9d   : > { %2620 = vmatprep.subr.bf16.mxu1 %v8380_v0  ;;  %6920 = vmatmul.mubr.bf16.gmra.mrb[32].mxu1 %v8371_v26 }
  0x9e   : > { %1991 = vmatprep.mubr.bf16.mxu1 %v8167_v24 }
  0x9f   : > { %1930 = vmatpush1.bf16.msra.mxu0 %v8287_v17  ;;  %v736_v17 = vshrl.u32 %v8472_v55, 16 }
  0xa0   : > { %1931 = vmatprep.subr.bf16.mxu0 %v8380_v0 }
  0xa2   : > { %1346 = vmatmul.mubr.bf16.gmra.mrb[20].mxu0 %v8059_v14  ;;  %v7543_v14 = vld [vmem:[%s10173_s1 + $0x180] sm:$0xff]  }
  0xa3   : > { %1353 = vmatprep.mubr.bf16.mxu0 %v8153_v11  ;;  %1932 = vmatpush1.bf16.msra.mxu0 %v8318_v54  ;;  %v7544_v11 = vld [vmem:[%s10173_s1 + $0x188] sm:$0xff]   ;;  %v738_v54 = vshll.u32 %v8472_v55, 16 }
  0xa4   : > { %1933 = vmatprep.subr.bf16.mxu0 %v8380_v0 }
  0xa5   : > { %1992 = vmatmul.mubr.bf16.vlgmr.msra.gmra.mrb[36].mxu1 %v8099_v38 }
  0xa6   : > { %1999 = vmatprep.mubr.bf16.mxu1 %v8200_v48  ;;  %2621 = vmatpush1.bf16.msra.mxu1 %v7543_v14  ;;  %v7551_v14 = vld [vmem:[%s10173_s1 + $0x148] sm:$0xff]  }
  0xa7   : > { %1934 = vmatpush1.bf16.msra.mxu0 %v8352_v39  ;;  %2622 = vmatprep.subr.bf16.mxu1 %v8380_v0 }
  0xa8   : > { %1935 = vmatprep.subr.bf16.mxu0 %v8380_v0 }
  0xaa   : > { %1354 = vmatmul.mubr.bf16.gmra.mrb[24].mxu0 %v8096_v37  ;;  %v740_v37 = vrot.slane %v738_v54, 1  ;;  %2623 = vmatpush1.bf16.msra.mxu1 %v7544_v11  ;;  %v3211_v11 = vld [vmem:[#allocation2 + $0x120] sm:$0x1]  ;;  %v7555_v54 = vld [vmem:[%s10173_s1 + $0x158] sm:$0xff]  }
  0xab   : > { %1361 = vmatprep.mubr.bf16.mxu0 %v8167_v24  ;;  %1936 = vmatpush1.bf16.msra.mxu0 %v8388_v27  ;;  %v743_v24 = vshll.u32 %v8481_v9, 16  ;;  %v7546_v27 = vld [vmem:[%s10173_s1 + $0x198] sm:$0xff]   ;;  %v8650_v9 = vld [vmem:[#allocation2 + $0x120] sm:$0xff] }
  0xac   : > { %1937 = vmatprep.subr.bf16.mxu0 %v8380_v0  ;;  %v741_v58 = vor.u32 %v740_v37, %v736_v17  ;;  %2624 = vmatprep.subr.bf16.mxu1 %v8380_v0  ;;  %v1671_v17 = vld [vmem:[#allocation2 + $0x50] sm:$0xff]  ;;  %v8664_v37 = vld [vmem:[#allocation2 + $0x138] sm:$0xff] }
  0xad   : > { %v745_v39 = vrot.slane %v743_v24, 1  ;;  %2000 = vmatmul.mubr.bf16.gmra.mrb[40].mxu1 %v8106_v41 }
  0xae   : > { %2007 = vmatprep.mubr.bf16.mxu1 %v8253_v10  ;;  %2625 = vmatpush1.bf16.msra.mxu1 %v7545_v19  ;;  %v7560_v19 = vld [vmem:[%s10173_s1 + $0x168] sm:$0xff]  }
  0xaf   : > { %1938 = vmatpush1.bf16.msra.mxu0 %v8405_v43  ;;  %v8497_v26 = vsel %vm518_vm0, %v741_v58, %v745_v39  ;;  %2626 = vmatprep.subr.bf16.mxu1 %v8380_v0  ;;  %v3190_v43 = vld [vmem:[#allocation2 + $0x78] sm:$0x1]  ;;  %v1674_v58 = vld [vmem:[#allocation2 + $0x68] sm:$0xff]  ;;  %v7557_v39 = vld [vmem:[%s10173_s1 + $0x160] sm:$0xff]  }
  0xb0   : > { %1939 = vmatprep.subr.bf16.mxu0 %v8380_v0  ;;  %797 = vst [vmem:[#allocation2 + $0x1b8] sm:$0xff] %v8497_v26  ;;  %v3191_v8 = vsel %vm8007_vm4, 0, %v3190_v43 }
  0xb1   : > { %3192 = vst [vmem:[#allocation2 + $0x78] sm:$0x1] %v3191_v8 }
  0xb2   : > { %1362 = vmatmul.mubr.bf16.gmra.mrb[28].mxu0 %v8099_v38  ;;  %v7547_v38 = vld [vmem:[%s10173_s1 + $0x1a0] sm:$0xff]   ;;  %2627 = vmatpush1.bf16.msra.mxu1 %v7546_v27  ;;  %v8675_v27 = vld [vmem:[#allocation2 + $0x150] sm:$0xff] }
  0xb3   : > { %1369 = vmatprep.mubr.bf16.mxu0 %v8200_v48  ;;  %1940 = vmatpush1.bf16.msra.mxu0 %v7541_v59  ;;  %v3181_v48 = vld [vmem:[#allocation2 + $0x30] sm:$0x1] }
  0xb4   : > { %1941 = vmatprep.subr.bf16.mxu0 %v8380_v0  ;;  %2628 = vmatprep.subr.bf16.mxu1 %v8380_v0  ;;  %v3182_v29 = vsel %vm8007_vm4, 0, %v3181_v48  ;;  %v7562_v48 = vld [vmem:[%s10173_s1 + $0x170] sm:$0xff]  }
  0xb5   : > { %2008 = vmatmul.mubr.bf16.gmra.mrb[44].mxu1 %v8137_v63  ;;  %3183 = vst [vmem:[#allocation2 + $0x30] sm:$0x1] %v3182_v29  ;;  %v8688_v29 = vld [vmem:[#allocation2 + $0x168] sm:$0xff] }
  0xb6   : > { %2015 = vmatprep.mubr.bf16.mxu1 %v8304_v42  ;;  %2629 = vmatpush1.bf16.msra.mxu1 %v7547_v38  ;;  %v1677_v38 = vld [vmem:[#allocation2 + $0x80] sm:$0xff] }
  0xb7   : > { %1942 = vmatpush1.bf16.msra.mxu0 %v7542_v4  ;;  %2630 = vmatprep.subr.bf16.mxu1 %v8380_v0  ;;  %v8642_v4 = vld [vmem:[#allocation2 + $0x108] sm:$0xff] }
  0xb8   : > { %6923 = vmatprep.subr.bf16.mxu0 %v8509_v50 }
  0xba   : > { %1370 = vmatmul.mubr.bf16.gmra.mrb[32].mxu0 %v8106_v41  ;;  %v7550_v41 = vld [vmem:[%s10173_s1 + $0x1b0] sm:$0xff]   ;;  %2631 = vmatpush1.bf16.msra.mxu1 %v7548_v56  ;;  %v7567_v56 = vld [vmem:[%s10173_s1 + $0x178] sm:$0xff]  }
  0xbb   : > { %1377 = vmatprep.mubr.bf16.mxu0 %v8253_v10  ;;  %2632 = vmatprep.subr.bf16.mxu1 %v8380_v0  ;;  %v3184_v10 = vld [vmem:[#allocation2 + $0x48] sm:$0x1] }
  0xbc   : > { %v3185_v62 = vsel %vm8007_vm4, 0, %v3184_v10  ;;  %v1680_v10 = vld [vmem:[#allocation2 + $0x98] sm:$0xff] }
  0xbd   : > { %2016 = vmatmul.mubr.bf16.gmra.mrb[48].mxu1 %v8157_v18  ;;  %3186 = vst [vmem:[#allocation2 + $0x48] sm:$0x1] %v3185_v62  ;;  %v3223_v62 = vld [vmem:[#allocation2 + $0x180] sm:$0x1] }
  0xbe   : > { %2023 = vmatprep.mubr.bf16.mxu1 %v8355_v16  ;;  %2633 = vmatpush1.bf16.msra.mxu1 %v7550_v41 }
  0xbf   : > { %2634 = vmatprep.subr.bf16.mxu1 %v8380_v0 }
  0xc2   : > { %1378 = vmatmul.mubr.bf16.gmra.mrb[36].mxu0 %v8137_v63  ;;  %v7554_v63 = vld [vmem:[%s10173_s1 + $0x1c0] sm:$0xff]   ;;  %2635 = vmatpush1.bf16.msra.mxu1 %v7552_v1 }
  0xc3   : > { %1385 = vmatprep.mubr.bf16.mxu0 %v8304_v42  ;;  %2636 = vmatprep.subr.bf16.mxu1 %v8380_v0  ;;  %v3187_v42 = vld [vmem:[#allocation2 + $0x60] sm:$0x1] }
  0xc4   : > { %v3188_v20 = vsel %vm8007_vm4, 0, %v3187_v42  ;;  %v7569_v1 = vld [vmem:[%s10173_s1 + $0x200] sm:$0xff]   ;;  %v3224_v42 = vsel %vm8007_vm4, 0, %v3223_v62 }
  0xc5   : > { %2024 = vmatmul.mubr.bf16.gmra.mrb[52].mxu1 %v8191_v46  ;;  %3189 = vst [vmem:[#allocation2 + $0x60] sm:$0x1] %v3188_v20  ;;  %v2392_v20 = vld [vmem:[#allocation2 + $0xc8] sm:$0xff] }
  0xc6   : > { %2031 = vmatprep.mubr.bf16.mxu1 %v8397_v51  ;;  %2637 = vmatpush1.bf16.msra.mxu1 %v7554_v63  ;;  %v8697_v63 = vld [vmem:[#allocation2 + $0x180] sm:$0xff] }
  0xc7   : > { %2638 = vmatprep.subr.bf16.mxu1 %v8380_v0  ;;  %3225 = vst [vmem:[#allocation2 + $0x180] sm:$0x1] %v3224_v42  ;;  %v8801_v42 = vld [vmem:[#allocation2 + $0xe8] sm:$0xff] }
  0xca   : > { %1386 = vmatmul.mubr.bf16.gmra.mrb[40].mxu0 %v8157_v18  ;;  %v7556_v18 = vld [vmem:[%s10173_s1 + $0x1c8] sm:$0xff]  }
  0xcb   : > { %1393 = vmatprep.mubr.bf16.mxu0 %v8355_v16  ;;  %2639 = vmatpush1.bf16.msra.mxu1 %v7556_v18  ;;  %v7558_v16 = vld [vmem:[%s10173_s1 + $0x1d0] sm:$0xff]   ;;  %v3226_v18 = vld [vmem:[#allocation2 + $0x198] sm:$0x1] }
  0xcc   : > { %2640 = vmatprep.subr.bf16.mxu1 %v8380_v0  ;;  %v3227_v43 = vsel %vm8007_vm4, 0, %v3226_v18 }
  0xcd   : > { %2032 = vmatmul.mubr.bf16.gmra.mrb[56].mxu1 %v8228_v15 }
  0xce   : > { %2039 = vmatprep.mubr.bf16.mxu1 %v8409_v33 }
  0xcf   : > { %2641 = vmatpush1.bf16.msra.mxu1 %v7558_v16  ;;  %v8703_v16 = vld [vmem:[#allocation2 + $0x198] sm:$0xff] }
  0xd0   : > { %2642 = vmatprep.subr.bf16.mxu1 %v8380_v0  ;;  %3228 = vst [vmem:[#allocation2 + $0x198] sm:$0x1] %v3227_v43 }
  0xd2   : > { %1394 = vmatmul.mubr.bf16.gmra.mrb[44].mxu0 %v8191_v46  ;;  %v7561_v46 = vld [vmem:[%s10173_s1 + $0x1e0] sm:$0xff]  }
  0xd3   : > { %1401 = vmatprep.mubr.bf16.mxu0 %v8397_v51  ;;  %2643 = vmatpush1.bf16.msra.mxu1 %v7559_v53  ;;  %v3193_v51 = vld [vmem:[#allocation2 + $0x90] sm:$0x1]  ;;  %v8708_v53 = vld [vmem:[#allocation2 + $0x8] sm:$0xff] }
  0xd4   : > { %2644 = vmatprep.subr.bf16.mxu1 %v8380_v0  ;;  %v3194_v22 = vsel %vm8007_vm4, 0, %v3193_v51  ;;  %3622 = vst [vmem:[#allocation2 + $0x198] sm:$0xff] %v8708_v53 }
  0xd5   : > { %2040 = vmatmul.mubr.bf16.gmra.mrb[60].mxu1 %v8240_v5  ;;  %3195 = vst [vmem:[#allocation2 + $0x90] sm:$0x1] %v3194_v22 }
  0xd6   : > { %2047 = vmatprep.mubr.bf16.mxu1 %v8417_v25 }
  0xd7   : > { %2645 = vmatpush1.bf16.msra.mxu1 %v7561_v46  ;;  %v8715_v46 = vld [vmem:[#allocation2 + $0x58] sm:$0xff] }
  0xd8   : > { %2646 = vmatprep.subr.bf16.mxu1 %v8380_v0 }
  0xda   : > { %1402 = vmatmul.mubr.bf16.gmra.mrb[48].mxu0 %v8228_v15  ;;  %v7566_v15 = vld [vmem:[%s10173_s1 + $0x1f0] sm:$0xff]  }
  0xdb   : > { %1409 = vmatprep.mubr.bf16.mxu0 %v8409_v33  ;;  %2647 = vmatpush1.bf16.msra.mxu1 %v7563_v60  ;;  %v3196_v33 = vld [vmem:[#allocation2 + $0xa8] sm:$0x1] }
  0xdc   : > { %2648 = vmatprep.subr.bf16.mxu1 %v8380_v0  ;;  %v3197_v44 = vsel %vm8007_vm4, 0, %v3196_v33  ;;  %v8723_v60 = vld [vmem:[%s7953_s9 + $0xe4] sm:$0xff]   ;;  %v7578_v33 = vld [vmem:[%s7953_s9 + $0xec] ss:$0 sps:$4 sm:$0x11]   ;;  %s5936_s9 = sshll.u32 %s244_s25, 7 }
  0xdd   : > { %2048 = vmatmul.mubr.bf16.gmra.mrb[64].mxu1 %v8268_v23  ;;  %3198 = vst [vmem:[#allocation2 + $0xa8] sm:$0x1] %v3197_v44  ;;  %v748_v44 = vshrl.u32 %v8723_v60, 16  ;;  %s10069_s27 = scalar_lea.vmem [#allocation8], %s5936_s9 }
  0xde   : > { %2055 = vmatprep.mubr.bf16.mxu1 %v8426_v28  ;;  %s5842_s12 = sshll.u32 %s10069_s27, 4  ;;  %s10120_s12 = int_to_ptr.vmem [resolvable:$true] %s5842_s12 }
  0xdf   : > { %2649 = vmatpush1.bf16.msra.mxu1 %v7566_v15  ;;  %v2395_v15 = vld [vmem:[#allocation2 + $0xe0] sm:$0xff]  ;;  %s7691_s7 = scalar_lea.vmem %s10120_s12, 2048  ;;  %p7698_p1 = scmp.lt.s32.totalorder %s10120_s12, %s7696_s14 }
  0xe0   : > { %2650 = vmatprep.subr.bf16.mxu1 %v8380_v0  ;;  %v8622_v0 = vld [vmem:[#allocation2 + $0xd8] sm:$0xff]  ;;  %p7692_p8 = scmp.ne.s32.totalorder %s10120_s12, %s7691_s7  ;;  %p7699_p3 = scmp.lt.s32.totalorder %s7697_s15, %s7691_s7 }
  0xe2   : > { %1410 = vmatmul.mubr.bf16.gmra.mrb[52].mxu0 %v8240_v5  ;;  %v3199_v5 = vld [vmem:[#allocation2 + $0xc0] sm:$0x1]  ;;  %p7693_p11 = pnand %p7692_p8, %p10318_p10  ;;  %p7700_p5 = por %p7699_p3, %p7698_p1 }
  0xe3   : > { %1417 = vmatprep.mubr.bf16.mxu0 %v8417_v25  ;;  %2651 = vmatpush1.bf16.msra.mxu1 %v7568_v12  ;;  %v8614_v25 = vld [vmem:[#allocation2 + $0xc0] sm:$0xff]  ;;  %v3200_v30 = vsel %vm8007_vm4, 0, %v3199_v5  ;;  %v750_v12 = vshll.u32 %v8723_v60, 16 }
  0xe4   : > { %3201 = vst [vmem:[#allocation2 + $0xc0] sm:$0x1] %v3200_v30  ;;  %v755_v30 = vshll.u32 %v7578_v33, 16  ;;  %p7694_p13 = pneg %p7693_p11 }
  0xe5   : > { %2056 = vmatmul.mubr.bf16.gmra.mrb[68].mxu1 %v8290_v31  ;;  %v752_v5 = vrot.slane %v750_v12, 1 }
  0xe6   : > { %2063 = vmatprep.mubr.bf16.mxu1 %v8441_v34  ;;  %p7701_p6 = pnand %p7700_p5, %p7694_p13 }
  0xea   : > { %1418 = vmatmul.mubr.bf16.gmra.mrb[56].mxu0 %v8268_v23  ;;  %v3203_v23 = vsel %vm8007_vm4, 0, %v3202_v36  ;;  %v753_v36 = vor.u32 %v752_v5, %v748_v44 }
  0xeb   : > { %1425 = vmatprep.mubr.bf16.mxu0 %v8426_v28  ;;  %3204 = vst [vmem:[#allocation2 + $0xd8] sm:$0x1] %v3203_v23  ;;  %v854_v28 = vrot.slane %v8472_v55, 1  ;;  %v757_v23 = vrot.slane %v755_v30, 1  ;;  %v8824_v30 = vld [vmem:[#allocation2 + $0x118] sm:$0xff] }
  0xed   : > { %2064 = vmatmul.mubr.bf16.gmra.mrb[72].mxu1 %v8312_v52  ;;  %v8631_v6 = vsel %vm799_vm3, %v854_v28, %v855_v2  ;;  %v8738_v28 = vld [vmem:[#allocation2 + $0x70] sm:$0xff] }
  0xee   : > { %2071 = vmatprep.mubr.bf16.mxu1 %v8447_v7 }
  0xf2   : > { %1426 = vmatmul.mubr.bf16.gmra.mrb[60].mxu0 %v8290_v31  ;;  %v3205_v31 = vld [vmem:[#allocation2 + $0xf0] sm:$0x1] }
  0xf3   : > { %1433 = vmatprep.mubr.bf16.mxu0 %v8441_v34  ;;  %v3206_v59 = vsel %vm8007_vm4, 0, %v3205_v31  ;;  %v3208_v34 = vld [vmem:[#allocation2 + $0x108] sm:$0x1]  ;;  %v857_v31 = vrot.slane %v8723_v60, 1 }
  0xf4   : > { %3207 = vst [vmem:[#allocation2 + $0xf0] sm:$0x1] %v3206_v59  ;;  %v858_v59 = vrot.slane %v7578_v33, 1 }
  0xf5   : > { %2072 = vmatmul.mubr.bf16.gmra.mrb[76].mxu1 %v8324_v57 }
  0xf6   : > { %2079 = vmatprep.mubr.bf16.mxu1 %v8497_v26  ;;  %v3217_v26 = vld [vmem:[#allocation2 + $0x150] sm:$0x1] }
  0xfa   : > { %1434 = vmatmul.mubr.bf16.gmra.mrb[64].mxu0 %v8312_v52  ;;  %v3209_v52 = vsel %vm8007_vm4, 0, %v3208_v34 }
  0xfb   : > { %1441 = vmatprep.mubr.bf16.mxu0 %v8447_v7  ;;  %v1668_v7 = vld [vmem:[#allocation2 + $0x38] sm:$0xff]  ;;  %3210 = vst [vmem:[#allocation2 + $0x108] sm:$0x1] %v3209_v52  ;;  %v8751_v52 = vsel %vm518_vm0, %v753_v36, %v757_v23 }
  0xfd   : > { %2080 = vmatmul.mubr.bf16.gmra.mrb[80].mxu1 %v8472_v55  ;;  %v7553_v55 = vld [vmem:[%s10173_s1 + $0x150] sm:$0xff]  }
  0xfe   : > { %2652 = vmatprep.mubr.bf16.mxu1 %v1668_v7 }
 0x102   : > { %1442 = vmatmul.mubr.bf16.gmra.mrb[68].mxu0 %v8324_v57  ;;  %v3212_v57 = vsel %vm8007_vm4, 0, %v3211_v11 }
 0x103   : > { %1943 = vmatprep.mubr.bf16.mxu0 %v1665_v3  ;;  %3213 = vst [vmem:[#allocation2 + $0x120] sm:$0x1] %v3212_v57  ;;  %v8743_v3 = vld [vmem:[#allocation2 + $0x88] sm:$0xff]  ;;  %v2398_v57 = vld [vmem:[#allocation2 + $0xf8] sm:$0xff] }
 0x105   : > { %2653 = vmatmul.mubr.bf16.vlgmr.msra.gmra.mrb[84].mxu1 %v8525_v49 }
 0x106   : > { %2660 = vmatprep.mubr.bf16.mxu1 %v1671_v17 }
 0x10a   : > { %1944 = vmatmul.mubr.bf16.vlgmr.msra.gmra.mrb[72].mxu0 %v8428_v35  ;;  %v3214_v35 = vld [vmem:[#allocation2 + $0x138] sm:$0x1] }
 0x10b   : > { %6924 = vmatpush3.bf16.msra.mxu0 %v8509_v50  ;;  %1951 = vmatprep.mubr.bf16.mxu0 %v1668_v7  ;;  %v3215_v24 = vsel %vm8007_vm4, 0, %v3214_v35  ;;  %v3218_v50 = vsel %vm8007_vm4, 0, %v3217_v26  ;;  %v8770_v35 = vld [vmem:[#allocation2 + $0xb8] sm:$0xff]  ;;  %v8785_v26 = vld [vmem:[%s10174_s2] ss:$0 sm:$0xff] }
 0x10c   : > { %6925 = vmatprep.subr.bf16.mxu0 %v7551_v14  ;;  %3216 = vst [vmem:[#allocation2 + $0x138] sm:$0x1] %v3215_v24  ;;  %3219 = vst [vmem:[#allocation2 + $0x150] sm:$0x1] %v3218_v50  ;;  %v7574_v24 = vld [vmem:[%s10173_s1 + $0x228] sm:$0xff]   ;;  %v7575_v50 = vld [vmem:[%s10173_s1 + $0x230] sm:$0xff]  }
 0x10d   : > { %2661 = vmatmul.mubr.bf16.gmra.mrb[88].mxu1 %v8541_v47 }
 0x10e   : > { %2668 = vmatprep.mubr.bf16.mxu1 %v1674_v58 }
 0x10f   : > { %6926 = vmatpush3.bf16.msra.mxu0 %v7551_v14  ;;  %v8756_v14 = vsel %vm799_vm3, %v857_v31, %v858_v59  ;;  %v2407_v59 = vld [vmem:[#allocation2 + $0x140] sm:$0xff] }
 0x110   : > { %6927 = vmatprep.subr.bf16.mxu0 %v7553_v55 }
 0x112   : > { %1952 = vmatmul.mubr.bf16.gmra.mrb[76].mxu0 %v8525_v49  ;;  %v3220_v49 = vld [vmem:[#allocation2 + $0x168] sm:$0x1] }
 0x113   : > { %6928 = vmatpush3.bf16.msra.mxu0 %v7553_v55  ;;  %1959 = vmatprep.mubr.bf16.mxu0 %v1671_v17  ;;  %v3221_v41 = vsel %vm8007_vm4, 0, %v3220_v49  ;;  %v7573_v55 = vld [vmem:[%s10173_s1 + $0x220] sm:$0xff]  }
 0x114   : > { %6929 = vmatprep.subr.bf16.mxu0 %v7555_v54  ;;  %3222 = vst [vmem:[#allocation2 + $0x168] sm:$0x1] %v3221_v41  ;;  %v8766_v17 = vld [vmem:[#allocation2 + $0xa0] sm:$0xff]  ;;  %v8793_v41 = vld [vmem:[#allocation2 + $0xd0] sm:$0xff] }
 0x115   : > { %2669 = vmatmul.mubr.bf16.gmra.mrb[92].mxu1 %v8554_v13 }
 0x116   : > { %2676 = vmatprep.mubr.bf16.mxu1 %v1677_v38 }
 0x117   : > { %6930 = vmatpush3.bf16.msra.mxu0 %v7555_v54 }
 0x118   : > { %6931 = vmatprep.subr.bf16.mxu0 %v7557_v39 }
 0x11a   : > { %1960 = vmatmul.mubr.bf16.gmra.mrb[80].mxu0 %v8541_v47  ;;  %v2389_v47 = vld [vmem:[#allocation2 + $0xb0] sm:$0xff] }
 0x11b   : > { %1967 = vmatprep.mubr.bf16.mxu0 %v1674_v58  ;;  %6932 = vmatpush3.bf16.msra.mxu0 %v7557_v39 }
 0x11c   : > { %6933 = vmatprep.subr.bf16.mxu0 %v7560_v19 }
 0x11d   : > { %2677 = vmatmul.mubr.bf16.gmra.mrb[96].mxu1 %v8573_v40 }
 0x11e   : > { %2684 = vmatprep.mubr.bf16.mxu1 %v1680_v10 }
 0x11f   : > { %6934 = vmatpush3.bf16.msra.mxu0 %v7560_v19  ;;  %v2401_v19 = vld [vmem:[#allocation2 + $0x110] sm:$0xff] }
 0x120   : > { %6935 = vmatprep.subr.bf16.mxu0 %v7562_v48 }
 0x122   : > { %1968 = vmatmul.mubr.bf16.gmra.mrb[84].mxu0 %v8554_v13  ;;  %v1666_v13 = vld [vmem:[#allocation2 + $0x28] sm:$0xff] }
 0x123   : > { %1975 = vmatprep.mubr.bf16.mxu0 %v1677_v38  ;;  %6936 = vmatpush3.bf16.msra.mxu0 %v7562_v48 }
 0x124   : > { %6937 = vmatprep.subr.bf16.mxu0 %v7567_v56 }
 0x125   : > { %2685 = vmatmul.mubr.bf16.gmra.mrb[100].mxu1 %v8589_v21 }
 0x126   : > { %2692 = vmatprep.mubr.bf16.mxu1 %v2389_v47 }
 0x127   : > { %6938 = vmatpush3.bf16.msra.mxu0 %v7567_v56 }
 0x128   : > { %6975 = vmatprep.subr.bf16.mxu0 %v7569_v1 }
 0x12a   : > { %1976 = vmatmul.mubr.bf16.gmra.mrb[88].mxu0 %v8573_v40  ;;  %v8711_v40 = vld [vmem:[#allocation2 + $0x40] sm:$0xff] }
 0x12b   : > { %1983 = vmatprep.mubr.bf16.mxu0 %v1680_v10 }
 0x12d   : > { %2693 = vmatmul.mubr.bf16.gmra.mrb[104].mxu1 %v8605_v61  ;;  %v7571_v61 = vld [vmem:[%s10173_s1 + $0x210] sm:$0xff]  }
 0x12e   : > { %2700 = vmatprep.mubr.bf16.mxu1 %v2392_v20  ;;  %v8713_v8 = vpop.f32.mrb[0].mxu1 }
 0x12f   : > { %v8720_v51 = vpop.f32.mrb[1].mxu1 }
 0x132   : > { %1984 = vmatmul.mubr.bf16.gmra.mrb[92].mxu0 %v8589_v21  ;;  %v8725_v21 = vpop.f32.mrb[2].mxu1 }
 0x133   : > { %6939 = vmatprep.mubr.bf16.mxu0 %v1666_v13  ;;  %v8728_v22 = vpop.f32.mrb[3].mxu1 }
 0x135   : > { %2701 = vmatmul.mubr.bf16.gmra.mrb[108].mxu1 %v8614_v25  ;;  %v7572_v25 = vld [vmem:[%s10173_s1 + $0x218] sm:$0xff]  }
 0x136   : > { %2708 = vmatprep.mubr.bf16.mxu1 %v2395_v15  ;;  %v8740_v2 = vpop.f32.mrb[4].mxu1 }
 0x137   : > { %v8748_v34 = vpop.f32.mrb[5].mxu1 }
 0x138   : > { %v8753_v7 = vpop.f32.mrb[6].mxu1 }
 0x139   : > { %v8759_v11 = vpop.f32.mrb[7].mxu1 }
 0x13a   : > { %6940 = vmatmul.mubr.bf16.vlgmr.msra.gmra.mrb[96].mxu0 %v8711_v40 }
 0x13b   : > { %6976 = vmatpush3.bf16.msra.mxu0 %v7569_v1  ;;  %6943 = vmatprep.mubr.bf16.mxu0 %v8715_v46 }
 0x13c   : > { %6977 = vmatprep.subr.bf16.mxu0 %v7570_v45 }
 0x13d   : > { %2709 = vmatmul.mubr.bf16.gmra.mrb[112].mxu1 %v8622_v0 }
 0x13e   : > { %2716 = vmatprep.mubr.bf16.mxu1 %v2398_v57  ;;  %v8768_v54 = vpop.f32.mrb[8].mxu1 }
 0x13f   : > { %6978 = vmatpush3.bf16.msra.mxu0 %v7570_v45  ;;  %v8775_v58 = vpop.f32.mrb[9].mxu1 }
 0x140   : > { %6979 = vmatprep.subr.bf16.mxu0 %v7571_v61  ;;  %v8777_v39 = vpop.f32.mrb[10].mxu1 }
 0x141   : > { %v8780_v0 = vpop.f32.mrb[11].mxu1 }
 0x142   : > { %6944 = vmatmul.mubr.bf16.gmra.mrb[100].mxu0 %v8738_v28 }
 0x143   : > { %6947 = vmatprep.mubr.bf16.mxu0 %v8743_v3  ;;  %6980 = vmatpush3.bf16.msra.mxu0 %v7571_v61  ;;  %v8819_v61 = vld [vmem:[#allocation2 + $0x100] sm:$0xff] }
 0x144   : > { %6981 = vmatprep.subr.bf16.mxu0 %v7572_v25 }
 0x145   : > { %2717 = vmatmul.mubr.bf16.gmra.mrb[116].mxu1 %v8635_v32  ;;  %v7576_v32 = vld [vmem:[%s10173_s1 + $0x238] sm:$0xff]  }
 0x146   : > { %2724 = vmatprep.mubr.bf16.mxu1 %v2401_v19  ;;  %v8795_v10 = vpop.f32.mrb[12].mxu1  ;;  %v8842_v19 = vld [vmem:[#allocation2 + $0x130] sm:$0xff] }
 0x147   : > { %6982 = vmatpush3.bf16.msra.mxu0 %v7572_v25  ;;  %v8806_v13 = vpop.f32.mrb[13].mxu1 }
 0x148   : > { %6983 = vmatprep.subr.bf16.mxu0 %v7573_v55  ;;  %v8808_v20 = vpop.f32.mrb[14].mxu1 }
 0x149   : > { %v8814_v43 = vpop.f32.mrb[15].mxu1 }
 0x14a   : > { %6948 = vmatmul.mubr.bf16.gmra.mrb[104].mxu0 %v8766_v17 }
 0x14b   : > { %6951 = vmatprep.mubr.bf16.mxu0 %v8770_v35  ;;  %6984 = vmatpush3.bf16.msra.mxu0 %v7573_v55 }
 0x14c   : > { %6985 = vmatprep.subr.bf16.mxu0 %v7574_v24 }
 0x14d   : > { %v1307_v38 = vpop.f32.mrb[0].mxu0  ;;  %2725 = vmatmul.mubr.bf16.gmra.mrb[120].mxu1 %v8642_v4 }
 0x14e   : > { %v1309_v48 = vpop.f32.mrb[1].mxu0  ;;  %v1308_v56 = vadd.f32 %v8785_v26, %v1307_v38 }
 0x14f   : > { %v1310_v49 = vpop.f32.mrb[2].mxu0  ;;  %6986 = vmatpush3.bf16.msra.mxu0 %v7574_v24 }
 0x150   : > { %v8798_v1 = vadd.f32 %v8720_v51, %v1308_v56  ;;  %v1312_v47 = vpop.f32.mrb[3].mxu0  ;;  %v1311_v62 = vadd.f32 %v8785_v26, %v1310_v49  ;;  %6987 = vmatprep.subr.bf16.mxu0 %v7575_v50  ;;  %v7653_v51 = vld [vmem:[#allocation2 + $0x128] sm:$0xff] }
 0x151   : > { %2732 = vmatprep.mubr.bf16.mxu1 %v7653_v51  ;;  %v8850_v56 = vld [vmem:[#allocation2 + $0x148] sm:$0xff] }
 0x152   : > { %v8811_v18 = vadd.f32 %v8728_v22, %v1311_v62  ;;  %6952 = vmatmul.mubr.bf16.gmra.mrb[108].mxu0 %v8793_v41  ;;  %v8821_v22 = vpop.f32.mrb[16].mxu1 }
 0x153   : > { %6955 = vmatprep.mubr.bf16.mxu0 %v8801_v42  ;;  %6988 = vmatpush3.bf16.msra.mxu0 %v7575_v50  ;;  %v8826_v36 = vpop.f32.mrb[17].mxu1 }
 0x154   : > { %6989 = vmatprep.subr.bf16.mxu0 %v7576_v32  ;;  %v8831_v23 = vpop.f32.mrb[18].mxu1 }
 0x155   : > { %v1315_v45 = vpop.f32.mrb[4].mxu0  ;;  %v8834_v31 = vpop.f32.mrb[19].mxu1  ;;  %2733 = vmatmul.mubr.bf16.gmra.mrb[124].mxu1 %v8650_v9 }
 0x156   : > { %v1316_v15 = vadd.f32 %v8785_v26, %v1315_v45  ;;  %v1317_v33 = vpop.f32.mrb[5].mxu0  ;;  %2740 = vmatprep.mubr.bf16.mxu1 %v2407_v59  ;;  %v7579_v59 = vld [vmem:[#allocation5 + $0x80] sm:$0xff]  }
 0x157   : > { %v1318_v12 = vpop.f32.mrb[6].mxu0  ;;  %6990 = vmatpush3.bf16.msra.mxu0 %v7576_v32  ;;  %v2410_v32 = vld [vmem:[#allocation2 + $0x158] sm:$0xff]  ;;  %7027 = vmatprep.subr.bf16.mxu1 %v7579_v59 }
 0x158   : > { %v1319_v44 = vadd.f32 %v8785_v26, %v1318_v12  ;;  %v1320_v5 = vpop.f32.mrb[7].mxu0  ;;  %v8829_v4 = vadd.f32 %v8713_v8, %v1316_v15  ;;  %v8844_v50 = vpop.f32.mrb[20].mxu1  ;;  %7028 = vmatpush3.bf16.msra.mxu1 %v7579_v59  ;;  %v7655_v59 = vld [vmem:[#allocation2 + $0x190] sm:$0xff] }
 0x159   : > { %v8852_v49 = vpop.f32.mrb[21].mxu1 }
 0x15a   : > { %6956 = vmatmul.mubr.bf16.gmra.mrb[112].mxu0 %v8819_v61  ;;  %v8837_v25 = vadd.f32 %v8725_v21, %v1319_v44  ;;  %v8854_v9 = vpop.f32.mrb[22].mxu1  ;;  %v8868_v44 = vld [vmem:[#allocation2 + $0x178] sm:$0xff] }
 0x15b   : > { %6959 = vmatprep.mubr.bf16.mxu0 %v8824_v30  ;;  %v8860_v62 = vpop.f32.mrb[23].mxu1 }
 0x15d   : > { %v1323_v57 = vpop.f32.mrb[8].mxu0  ;;  %2741 = vmatmul.mubr.bf16.gmra.mrb[128].mxu1 %v8664_v37 }
 0x15e   : > { %v1325_v55 = vpop.f32.mrb[9].mxu0  ;;  %v1324_v8 = vadd.f32 %v8785_v26, %v1323_v57  ;;  %2748 = vmatprep.mubr.bf16.mxu1 %v2410_v32 }
 0x15f   : > { %v1326_v24 = vpop.f32.mrb[10].mxu0  ;;  %v7654_v55 = vld [vmem:[#allocation2 + $0x160] sm:$0xff] }
 0x160   : > { %v8847_v38 = vadd.f32 %v8748_v34, %v1324_v8  ;;  %v1328_v48 = vpop.f32.mrb[11].mxu0  ;;  %v1327_v21 = vadd.f32 %v8785_v26, %v1326_v24  ;;  %v8865_v33 = vpop.f32.mrb[24].mxu1  ;;  %v2413_v24 = vld [vmem:[#allocation2 + $0x170] sm:$0xff] }
 0x161   : > { %v8870_v5 = vpop.f32.mrb[25].mxu1 }
 0x162   : > { %v8857_v47 = vadd.f32 %v8759_v11, %v1327_v21  ;;  %6960 = vmatmul.mubr.bf16.gmra.mrb[116].mxu0 %v8842_v19  ;;  %v8875_v37 = vpop.f32.mrb[26].mxu1 }
 0x163   : > { %6963 = vmatprep.mubr.bf16.mxu0 %v8850_v56  ;;  %v8877_v8 = vpop.f32.mrb[27].mxu1 }
 0x165   : > { %v1331_v34 = vpop.f32.mrb[12].mxu0  ;;  %2749 = vmatmul.mubr.bf16.gmra.mrb[132].mxu1 %v8675_v27 }
 0x166   : > { %v1332_v45 = vadd.f32 %v8785_v26, %v1331_v34  ;;  %v1333_v51 = vpop.f32.mrb[13].mxu0  ;;  %2756 = vmatprep.mubr.bf16.mxu1 %v2413_v24  ;;  %v7656_v24 = vld [vmem:[#allocation2 + $0x1a8] sm:$0xff] }
 0x167   : > { %v1334_v15 = vpop.f32.mrb[14].mxu0 }
 0x168   : > { %v1335_v11 = vadd.f32 %v8785_v26, %v1334_v15  ;;  %v1336_v12 = vpop.f32.mrb[15].mxu0  ;;  %v8873_v57 = vadd.f32 %v8740_v2, %v1332_v45  ;;  %v8885_v45 = vpop.f32.mrb[28].mxu1 }
 0x16a   : > { %6964 = vmatmul.mubr.bf16.gmra.mrb[120].mxu0 %v7654_v55  ;;  %v8880_v48 = vadd.f32 %v8753_v7, %v1335_v11  ;;  %v8891_v11 = vpop.f32.mrb[29].mxu1 }
 0x16b   : > { %6967 = vmatprep.mubr.bf16.mxu0 %v8868_v44  ;;  %v8893_v12 = vpop.f32.mrb[30].mxu1 }
 0x16c   : > { %v8898_v55 = vpop.f32.mrb[31].mxu1 }
 0x16d   : > { %v1339_v21 = vpop.f32.mrb[16].mxu0  ;;  %2757 = vmatmul.mubr.bf16.gmra.mrb[136].mxu1 %v8688_v29 }
 0x16e   : > { %v1341_v2 = vpop.f32.mrb[17].mxu0  ;;  %v1340_v32 = vadd.f32 %v8785_v26, %v1339_v21  ;;  %v7657_v21 = vld [vmem:[#allocation2 + $0x188] sm:$0xff] }
 0x16f   : > { %v1342_v34 = vpop.f32.mrb[18].mxu0  ;;  %2764 = vmatprep.mubr.bf16.mxu1 %v7657_v21 }
 0x170   : > { %v8888_v51 = vadd.f32 %v8775_v58, %v1340_v32  ;;  %v1344_v15 = vpop.f32.mrb[19].mxu0  ;;  %v1343_v7 = vadd.f32 %v8785_v26, %v1342_v34 }
 0x171   : > { %v8902_v15 = vpop.f32.mrb[32].mxu1 }
 0x172   : > { %10196 = vst [vmem:[#allocation11_spill] sm:$0xff] %v8888_v51  ;;  %v8896_v27 = vadd.f32 %v8780_v0, %v1343_v7  ;;  %6968 = vmatmul.mubr.bf16.gmra.mrb[124].mxu0 %v7655_v59 }
 0x173   : > { %6971 = vmatprep.mubr.bf16.mxu0 %v7656_v24 }
 0x174   : > { %10197 = vst [vmem:[#allocation12_spill] sm:$0xff] %v8896_v27  ;;  %v8905_v27 = vpop.f32.mrb[33].mxu1 }
 0x175   : > { %v1347_v58 = vpop.f32.mrb[20].mxu0  ;;  %v8910_v24 = vpop.f32.mrb[34].mxu1  ;;  %2765 = vmatmul.mubr.bf16.gmra.mrb[140].mxu1 %v8697_v63 }
 0x176   : > { %v1348_v2 = vadd.f32 %v8785_v26, %v1347_v58  ;;  %v1349_v32 = vpop.f32.mrb[21].mxu0  ;;  %v8913_v29 = vpop.f32.mrb[35].mxu1 }
 0x177   : > { %v1350_v34 = vpop.f32.mrb[22].mxu0  ;;  %v7658_v32 = vld [vmem:[#allocation2 + $0x1a0] sm:$0xff] }
 0x178   : > { %v1351_v0 = vadd.f32 %v8785_v26, %v1350_v34  ;;  %v1352_v7 = vpop.f32.mrb[23].mxu0  ;;  %v8908_v59 = vadd.f32 %v8768_v54, %v1348_v2  ;;  %2772 = vmatprep.mubr.bf16.mxu1 %v7658_v32  ;;  %v7580_v34 = vld [vmem:[#allocation5 + $0x88] sm:$0xff]   ;;  %v8921_v51 = vpop.f32.mrb[36].mxu1 }
 0x179   : > { %7029 = vmatprep.subr.bf16.mxu1 %v7580_v34 }
 0x17a   : > { %10198 = vst [vmem:[#allocation13_spill] sm:$0xff] %v8908_v59  ;;  %6972 = vmatmul.mubr.bf16.gmra.mrb[128].mxu0 %v8631_v6  ;;  %v8916_v58 = vadd.f32 %v8777_v39, %v1351_v0  ;;  %7030 = vmatpush3.bf16.msra.mxu1 %v7580_v34 }
 0x17b   : > { %6991 = vmatprep.mubr.bf16.mxu0 %v8711_v40  ;;  %v1995_v40 = vpop.f32.mrb[37].mxu1 }
 0x17c   : > { %v8927_v63 = vpop.f32.mrb[38].mxu1 }
 0x17d   : > { %v1355_v21 = vpop.f32.mrb[24].mxu0  ;;  %2773 = vmatmul.mubr.bf16.gmra.mrb[144].mxu1 %v8703_v16 }
 0x17e   : > { %v1357_v7 = vpop.f32.mrb[25].mxu0  ;;  %v1356_v54 = vadd.f32 %v8785_v26, %v1355_v21  ;;  %v1998_v21 = vpop.f32.mrb[39].mxu1 }
 0x17f   : > { %v1358_v2 = vpop.f32.mrb[26].mxu0 }
 0x180   : > { %v8924_v59 = vadd.f32 %v8806_v13, %v1356_v54  ;;  %v1360_v39 = vpop.f32.mrb[27].mxu0  ;;  %v1359_v0 = vadd.f32 %v8785_v26, %v1358_v2  ;;  %v7659_v13 = vld [vmem:[#allocation2 + $0x1b8] sm:$0xff]  ;;  %v8936_v34 = vpop.f32.mrb[40].mxu1 }
 0x181   : > { %2780 = vmatprep.mubr.bf16.mxu1 %v7659_v13 }
 0x182   : > { %v8930_v32 = vadd.f32 %v8814_v43, %v1359_v0  ;;  %6992 = vmatmul.mubr.bf16.vlgmr.msra.gmra.mrb[132].mxu0 %v8715_v46  ;;  %v2003_v0 = vpop.f32.mrb[41].mxu1 }
 0x183   : > { %6995 = vmatprep.mubr.bf16.mxu0 %v8738_v28  ;;  %v8942_v21 = vpop.f32.mrb[42].mxu1 }
 0x184   : > { %v2006_v16 = vpop.f32.mrb[43].mxu1 }
 0x185   : > { %v1363_v7 = vpop.f32.mrb[28].mxu0  ;;  %v7581_v16 = vld [vmem:[#allocation5 + $0x90] sm:$0xff]  }
 0x186   : > { %v1364_v54 = vadd.f32 %v8785_v26, %v1363_v7  ;;  %v1365_v2 = vpop.f32.mrb[29].mxu0  ;;  %v7660_v7 = vld [vmem:[#allocation2 + $0x1b0] sm:$0xff]  ;;  %7031 = vmatprep.subr.bf16.mxu1 %v7581_v16 }
 0x187   : > { %v1366_v39 = vpop.f32.mrb[30].mxu0  ;;  %2781 = vmatmul.mubr.bf16.gmra.mrb[148].mxu1 %v7660_v7 }
 0x188   : > { %v1367_v40 = vadd.f32 %v8785_v26, %v1366_v39  ;;  %v1368_v43 = vpop.f32.mrb[31].mxu0  ;;  %v8940_v46 = vadd.f32 %v8795_v10, %v1364_v54  ;;  %2788 = vmatprep.mubr.bf16.mxu1 %v8751_v52  ;;  %v8951_v54 = vpop.f32.mrb[44].mxu1  ;;  %7032 = vmatpush3.bf16.msra.mxu1 %v7581_v16 }
 0x18a   : > { %6996 = vmatmul.mubr.bf16.gmra.mrb[136].mxu0 %v8743_v3  ;;  %v8946_v28 = vadd.f32 %v8808_v20, %v1367_v40  ;;  %v2011_v40 = vpop.f32.mrb[45].mxu1 }
 0x18b   : > { %6999 = vmatprep.mubr.bf16.mxu0 %v8766_v17  ;;  %v8957_v0 = vpop.f32.mrb[46].mxu1 }
 0x18c   : > { %v2014_v52 = vpop.f32.mrb[47].mxu1 }
 0x18d   : > { %v1371_v13 = vpop.f32.mrb[32].mxu0 }
 0x18e   : > { %v1373_v2 = vpop.f32.mrb[33].mxu0  ;;  %v1372_v39 = vadd.f32 %v8785_v26, %v1371_v13 }
 0x18f   : > { %v1374_v10 = vpop.f32.mrb[34].mxu0  ;;  %2789 = vmatmul.mubr.bf16.gmra.mrb[152].mxu1 %v8723_v60 }
 0x190   : > { %v8954_v43 = vadd.f32 %v8826_v36, %v1372_v39  ;;  %v1376_v3 = vpop.f32.mrb[35].mxu0  ;;  %v1375_v20 = vadd.f32 %v8785_v26, %v1374_v10  ;;  %7043 = vmatprep.mubr.bf16.mxu1 %v8708_v53  ;;  %v8967_v39 = vpop.f32.mrb[48].mxu1 }
 0x191   : > { %v2019_v10 = vpop.f32.mrb[49].mxu1 }
 0x192   : > { %v8960_v17 = vadd.f32 %v8834_v31, %v1375_v20  ;;  %7000 = vmatmul.mubr.bf16.gmra.mrb[140].mxu0 %v8770_v35 }
 0x193   : > { %7003 = vmatprep.mubr.bf16.mxu0 %v8793_v41  ;;  %v8973_v41 = vpop.f32.mrb[50].mxu1 }
 0x194   : > { %v2022_v60 = vpop.f32.mrb[51].mxu1 }
 0x195   : > { %v1379_v36 = vpop.f32.mrb[36].mxu0 }
 0x196   : > { %v1380_v7 = vadd.f32 %v8785_v26, %v1379_v36  ;;  %v1381_v13 = vpop.f32.mrb[37].mxu0 }
 0x197   : > { %v1382_v2 = vpop.f32.mrb[38].mxu0 }
 0x198   : > { %v1383_v31 = vadd.f32 %v8785_v26, %v1382_v2  ;;  %v1384_v35 = vpop.f32.mrb[39].mxu0  ;;  %v8971_v3 = vadd.f32 %v8821_v22, %v1380_v7  ;;  %v8981_v13 = vpop.f32.mrb[52].mxu1 }
 0x19a   : > { %7004 = vmatmul.mubr.bf16.gmra.mrb[144].mxu0 %v8801_v42  ;;  %v8977_v20 = vadd.f32 %v8831_v23, %v1383_v31  ;;  %v2027_v42 = vpop.f32.mrb[53].mxu1  ;;  %v7582_v31 = vld [vmem:[#allocation5 + $0x98] sm:$0xff]  }
 0x19b   : > { %7007 = vmatprep.mubr.bf16.mxu0 %v8819_v61  ;;  %v8987_v35 = vpop.f32.mrb[54].mxu1  ;;  %7033 = vmatprep.subr.bf16.mxu1 %v7582_v31 }
 0x19c   : > { %v2030_v61 = vpop.f32.mrb[55].mxu1  ;;  %7034 = vmatpush3.bf16.msra.mxu1 %v7582_v31 }
 0x19d   : > { %v1387_v40 = vpop.f32.mrb[40].mxu0 }
 0x19e   : > { %v1388_v52 = vadd.f32 %v8785_v26, %v1387_v40  ;;  %v1389_v16 = vpop.f32.mrb[41].mxu0 }
 0x19f   : > { %v1390_v36 = vpop.f32.mrb[42].mxu0 }
 0x1a0   : > { %v8984_v22 = vadd.f32 %v8852_v49, %v1388_v52  ;;  %v1391_v7 = vadd.f32 %v8785_v26, %v1390_v36  ;;  %v1392_v2 = vpop.f32.mrb[43].mxu0  ;;  %v8995_v52 = vpop.f32.mrb[56].mxu1 }
 0x1a2   : > { %v8990_v23 = vadd.f32 %v8860_v62, %v1391_v7  ;;  %7008 = vmatmul.mubr.bf16.gmra.mrb[148].mxu0 %v8824_v30  ;;  %v2411_v30 = vld [vmem:[#allocation2 + $0x160] sm:$0xff]  ;;  %v2035_v7 = vpop.f32.mrb[57].mxu1 }
 0x1a3   : > { %7011 = vmatprep.mubr.bf16.mxu0 %v8842_v19  ;;  %v9001_v2 = vpop.f32.mrb[58].mxu1  ;;  %v2417_v7 = vld [vmem:[#allocation2 + $0x190] sm:$0xff] }
 0x1a4   : > { %v2038_v42 = vpop.f32.mrb[59].mxu1 }
 0x1a5   : > { %v1395_v10 = vpop.f32.mrb[44].mxu0  ;;  %v7583_v42 = vld [vmem:[#allocation5 + $0xa0] sm:$0xff]  }
 0x1a6   : > { %v1396_v49 = vadd.f32 %v8785_v26, %v1395_v10  ;;  %v1397_v60 = vpop.f32.mrb[45].mxu0  ;;  %7035 = vmatprep.subr.bf16.mxu1 %v7583_v42 }
 0x1a7   : > { %v1398_v40 = vpop.f32.mrb[46].mxu0  ;;  %7036 = vmatpush3.bf16.msra.mxu1 %v7583_v42 }
 0x1a8   : > { %v8998_v16 = vadd.f32 %v8844_v50, %v1396_v49  ;;  %v1399_v62 = vadd.f32 %v8785_v26, %v1398_v40  ;;  %v1400_v36 = vpop.f32.mrb[47].mxu0  ;;  %v9008_v49 = vpop.f32.mrb[60].mxu1 }
 0x1aa   : > { %v9004_v19 = vadd.f32 %v8854_v9, %v1399_v62  ;;  %7012 = vmatmul.mubr.bf16.gmra.mrb[152].mxu0 %v8850_v56  ;;  %v2043_v9 = vpop.f32.mrb[61].mxu1 }
 0x1ab   : > { %7015 = vmatprep.mubr.bf16.mxu0 %v2411_v30  ;;  %v9014_v62 = vpop.f32.mrb[62].mxu1 }
 0x1ac   : > { %10200 = vst [vmem:[#allocation15_spill] sm:$0xff] %v9014_v62  ;;  %v2046_v30 = vpop.f32.mrb[63].mxu1 }
 0x1ad   : > { %v1403_v61 = vpop.f32.mrb[48].mxu0 }
 0x1ae   : > { %v1404_v31 = vadd.f32 %v8785_v26, %v1403_v61  ;;  %v1405_v10 = vpop.f32.mrb[49].mxu0 }
 0x1af   : > { %v1406_v50 = vpop.f32.mrb[50].mxu0 }
 0x1b0   : > { %v9011_v60 = vadd.f32 %v8870_v5, %v1404_v31  ;;  %v1407_v40 = vadd.f32 %v8785_v26, %v1406_v50  ;;  %v1408_v36 = vpop.f32.mrb[51].mxu0  ;;  %v2420_v50 = vld [vmem:[#allocation2 + $0x1a8] sm:$0xff] }
 0x1b1   : > { %v9021_v36 = vpop.f32.mrb[64].mxu1 }
 0x1b2   : > { %10199 = vst [vmem:[#allocation14_spill] sm:$0xff] %v9011_v60  ;;  %v9017_v56 = vadd.f32 %v8877_v8, %v1407_v40  ;;  %7016 = vmatmul.mubr.bf16.gmra.mrb[156].mxu0 %v8868_v44  ;;  %v2051_v44 = vpop.f32.mrb[65].mxu1 }
 0x1b3   : > { %7019 = vmatprep.mubr.bf16.mxu0 %v2417_v7  ;;  %v9027_v30 = vpop.f32.mrb[66].mxu1 }
 0x1b4   : > { %10201 = vst [vmem:[#allocation16_spill] sm:$0xff] %v9017_v56  ;;  %10202 = vst [vmem:[#allocation17_spill] sm:$0xff] %v9027_v30 }
 0x1b5   : > { %v1411_v61 = vpop.f32.mrb[52].mxu0 }
 0x1b6   : > { %v1412_v5 = vadd.f32 %v8785_v26, %v1411_v61  ;;  %v1413_v31 = vpop.f32.mrb[53].mxu0  ;;  %v2054_v61 = vpop.f32.mrb[67].mxu1 }
 0x1b7   : > { %v1414_v10 = vpop.f32.mrb[54].mxu0  ;;  %v7585_v31 = vld [vmem:[#allocation5 + $0x40] sm:$0xff]   ;;  %v7588_v61 = vld [vmem:[#allocation5 + $0x8] sm:$0xff]  }
 0x1b8   : > { %v9024_v9 = vadd.f32 %v8865_v33, %v1412_v5  ;;  %v1415_v8 = vadd.f32 %v8785_v26, %v1414_v10  ;;  %v1416_v40 = vpop.f32.mrb[55].mxu0  ;;  %v7586_v33 = vld [vmem:[#allocation5] sm:$0xff]   ;;  %v9034_v60 = vpop.f32.mrb[68].mxu1  ;;  %6463 = vmatprep.subr.bf16.mxu0 %v7585_v31 }
 0x1b9   : > { %10204 = vst [vmem:[#allocation19_spill] sm:$0xff] %v9034_v60  ;;  %6464 = vmatpush3.bf16.msra.mxu0 %v7586_v33  ;;  %v7591_v33 = vld [vmem:[#allocation5 + $0x10] sm:$0xff]  }
 0x1ba   : > { %v9030_v7 = vadd.f32 %v8875_v37, %v1415_v8  ;;  %7020 = vmatmul.mubr.bf16.gmra.mrb[160].mxu0 %v2420_v50  ;;  %v2059_v50 = vpop.f32.mrb[69].mxu1 }
 0x1bb   : > { %7023 = vmatprep.mubr.bf16.mxu0 %v8631_v6  ;;  %v9040_v40 = vpop.f32.mrb[70].mxu1  ;;  %v7587_v6 = vld [vmem:[#allocation5 + $0x48] sm:$0xff]  }
 0x1bc   : > { %10203 = vst [vmem:[#allocation18_spill] sm:$0xff] %v9030_v7  ;;  %10206 = vst [vmem:[#allocation21_spill] sm:$0xff] %v9040_v40  ;;  %6465 = vmatprep.subr.bf16.mxu0 %v7587_v6  ;;  %v7584_v6 = vld [vmem:[#allocation5 + $0xa8] sm:$0xff]  }
 0x1bd   : > { %v1419_v42 = vpop.f32.mrb[56].mxu0  ;;  %6466 = vmatpush3.bf16.msra.mxu0 %v7588_v61  ;;  %v7592_v61 = vld [vmem:[#allocation5 + $0x58] sm:$0xff]   ;;  %7037 = vmatprep.subr.bf16.mxu1 %v7584_v6 }
 0x1be   : > { %v1420_v56 = vadd.f32 %v8785_v26, %v1419_v42  ;;  %v1421_v62 = vpop.f32.mrb[57].mxu0  ;;  %7038 = vmatpush3.bf16.msra.mxu1 %v7584_v6 }
 0x1bf   : > { %v1422_v5 = vpop.f32.mrb[58].mxu0  ;;  %v2062_v62 = vpop.f32.mrb[71].mxu1 }
 0x1c0   : > { %v9037_v10 = vadd.f32 %v8891_v11, %v1420_v56  ;;  %v1423_v37 = vadd.f32 %v8785_v26, %v1422_v5  ;;  %v1424_v8 = vpop.f32.mrb[59].mxu0  ;;  %v7590_v56 = vld [vmem:[#allocation5 + $0x50] sm:$0xff]  }
 0x1c1   : > { %v9048_v8 = vpop.f32.mrb[72].mxu1  ;;  %6467 = vmatprep.subr.bf16.mxu0 %v7590_v56  ;;  %v7594_v56 = vld [vmem:[#allocation5 + $0x60] sm:$0xff]  }
 0x1c2   : > { %10205 = vst [vmem:[#allocation20_spill] sm:$0xff] %v9037_v10  ;;  %v9043_v44 = vadd.f32 %v8898_v55, %v1423_v37  ;;  %7024 = vmatmul.mubr.bf16.gmra.mrb[164].mxu0 %v8756_v14  ;;  %10208 = vst [vmem:[#allocation23_spill] sm:$0xff] %v9048_v8  ;;  %v2067_v50 = vpop.f32.mrb[73].mxu1 }
 0x1c3   : > { %3929 = vmatprep.mubr.bf16.mxu0 %v8708_v53  ;;  %6468 = vmatpush3.bf16.msra.mxu0 %v7591_v33  ;;  %v9054_v62 = vpop.f32.mrb[74].mxu1 }
 0x1c4   : > { %10207 = vst [vmem:[#allocation22_spill] sm:$0xff] %v9043_v44  ;;  %10210 = vst [vmem:[#allocation25_spill] sm:$0xff] %v9054_v62  ;;  %v7593_v44 = vld [vmem:[#allocation5 + $0x18] sm:$0xff]   ;;  %6469 = vmatprep.subr.bf16.mxu0 %v7592_v61 }
 0x1c5   : > { %v1427_v11 = vpop.f32.mrb[60].mxu0 }
 0x1c6   : > { %v1428_v42 = vadd.f32 %v8785_v26, %v1427_v11  ;;  %v1429_v31 = vpop.f32.mrb[61].mxu0 }
 0x1c7   : > { %v1430_v5 = vpop.f32.mrb[62].mxu0  ;;  %v2070_v31 = vpop.f32.mrb[75].mxu1  ;;  %6470 = vmatpush3.bf16.msra.mxu0 %v7593_v44  ;;  %v7596_v44 = vld [vmem:[#allocation5 + $0x68] sm:$0xff]  }
 0x1c8   : > { %v9051_v55 = vadd.f32 %v8885_v45, %v1428_v42  ;;  %v1431_v14 = vadd.f32 %v8785_v26, %v1430_v5  ;;  %v1432_v37 = vpop.f32.mrb[63].mxu0  ;;  %v9060_v33 = vpop.f32.mrb[76].mxu1  ;;  %6471 = vmatprep.subr.bf16.mxu0 %v7594_v56  ;;  %v7598_v56 = vld [vmem:[#allocation5 + $0x70] sm:$0xff]  }
 0x1c9   : > { %v7595_v37 = vld [vmem:[#allocation5 + $0x20] sm:$0xff]   ;;  %10212 = vst [vmem:[#allocation27_spill] sm:$0xff] %v9060_v33  ;;  %v2075_v31 = vpop.f32.mrb[77].mxu1 }
 0x1ca   : > { %10209 = vst [vmem:[#allocation24_spill] sm:$0xff] %v9051_v55  ;;  %v9057_v11 = vadd.f32 %v8893_v12, %v1431_v14  ;;  %v9066_v6 = vpop.f32.mrb[78].mxu1 }
 0x1cb   : > { %6472 = vmatpush3.bf16.msra.mxu0 %v7595_v37  ;;  %10214 = vst [vmem:[#allocation29_spill] sm:$0xff] %v9066_v6 }
 0x1cc   : > { %10211 = vst [vmem:[#allocation26_spill] sm:$0xff] %v9057_v11  ;;  %6473 = vmatprep.subr.bf16.mxu0 %v7596_v44 }
 0x1cd   : > { %v1435_v45 = vpop.f32.mrb[64].mxu0 }
 0x1ce   : > { %v1436_v42 = vadd.f32 %v8785_v26, %v1435_v45  ;;  %v1437_v5 = vpop.f32.mrb[65].mxu0  ;;  %v2078_v45 = vpop.f32.mrb[79].mxu1 }
 0x1cf   : > { %v1438_v50 = vpop.f32.mrb[66].mxu0  ;;  %v7597_v5 = vld [vmem:[#allocation5 + $0x28] sm:$0xff]   ;;  %v7601_v45 = vld [vmem:[#allocation5 + $0x78] sm:$0xff]  }
 0x1d0   : > { %v9063_v40 = vadd.f32 %v8905_v27, %v1436_v42  ;;  %v1439_v12 = vadd.f32 %v8785_v26, %v1438_v50  ;;  %v1440_v14 = vpop.f32.mrb[67].mxu0  ;;  %6474 = vmatpush3.bf16.msra.mxu0 %v7597_v5 }
 0x1d1   : > { %v9072_v14 = vpop.f32.mrb[80].mxu1  ;;  %6475 = vmatprep.subr.bf16.mxu0 %v7598_v56 }
 0x1d2   : > { %10213 = vst [vmem:[#allocation28_spill] sm:$0xff] %v9063_v40  ;;  %v9069_v61 = vadd.f32 %v8913_v29, %v1439_v12  ;;  %v7600_v40 = vld [vmem:[#allocation5 + $0x30] sm:$0xff]   ;;  %10216 = vst [vmem:[#allocation31_spill] sm:$0xff] %v9072_v14  ;;  %v2083_v31 = vpop.f32.mrb[81].mxu1 }
 0x1d3   : > { %v9078_v44 = vpop.f32.mrb[82].mxu1 }
 0x1d4   : > { %10215 = vst [vmem:[#allocation30_spill] sm:$0xff] %v9069_v61  ;;  %6476 = vmatpush3.bf16.msra.mxu0 %v7600_v40  ;;  %10218 = vst [vmem:[#allocation33_spill] sm:$0xff] %v9078_v44 }
 0x1d5   : > { %v1443_v33 = vpop.f32.mrb[68].mxu0  ;;  %6477 = vmatprep.subr.bf16.mxu0 %v7601_v45 }
 0x1d6   : > { %v1444_v27 = vadd.f32 %v8785_v26, %v1443_v33  ;;  %v1445_v42 = vpop.f32.mrb[69].mxu0  ;;  %v2086_v33 = vpop.f32.mrb[83].mxu1 }
 0x1d7   : > { %v1446_v50 = vpop.f32.mrb[70].mxu0  ;;  %v7602_v42 = vld [vmem:[#allocation5 + $0x38] sm:$0xff]  }
 0x1d8   : > { %v9075_v37 = vadd.f32 %v8902_v15, %v1444_v27  ;;  %v1447_v29 = vadd.f32 %v8785_v26, %v1446_v50  ;;  %v1448_v12 = vpop.f32.mrb[71].mxu0  ;;  %6478 = vmatpush3.bf16.msra.mxu0 %v7602_v42  ;;  %v9085_v15 = vpop.f32.mrb[84].mxu1 }
 0x1d9   : > { %10220 = vst [vmem:[#allocation35_spill] sm:$0xff] %v9085_v15  ;;  %v2656_v27 = vpop.f32.mrb[85].mxu1  ;;  %v7589_v15 = vld [vmem:[#allocation5 + $0xb0] sm:$0xff]  }
 0x1da   : > { %10217 = vst [vmem:[#allocation32_spill] sm:$0xff] %v9075_v37  ;;  %v9081_v5 = vadd.f32 %v8910_v24, %v1447_v29  ;;  %v9087_v50 = vpop.f32.mrb[86].mxu1  ;;  %7039 = vmatprep.subr.bf16.mxu1 %v7589_v15 }
 0x1db   : > { %10221 = vst [vmem:[#allocation36_spill] sm:$0xff] %v9087_v50  ;;  %3930 = vmatmul.mubr.bf16.vlgmr.msra.gmra.mrb[168].mxu0 %v8708_v53  ;;  %v2659_v40 = vpop.f32.mrb[87].mxu1  ;;  %7040 = vmatpush3.bf16.msra.mxu1 %v7589_v15 }
 0x1dc   : > { %10219 = vst [vmem:[#allocation34_spill] sm:$0xff] %v9081_v5 }
 0x1dd   : > { %v1945_v61 = vpop.f32.mrb[72].mxu0 }
 0x1de   : > { %v1947_v6 = vpop.f32.mrb[73].mxu0 }
 0x1df   : > { %v9083_v56 = vpop.f32.mrb[74].mxu0 }
 0x1e0   : > { %v1950_v26 = vpop.f32.mrb[75].mxu0  ;;  %v9090_v31 = vpop.f32.mrb[88].mxu1 }
 0x1e1   : > { %10222 = vst [vmem:[#allocation37_spill] sm:$0xff] %v9090_v31  ;;  %v2664_v33 = vpop.f32.mrb[89].mxu1  ;;  %v7599_v31 = vld [vmem:[#allocation5 + $0xb8] sm:$0xff]  }
 0x1e2   : > { %v9092_v6 = vpop.f32.mrb[90].mxu1  ;;  %7041 = vmatprep.subr.bf16.mxu1 %v7599_v31 }
 0x1e3   : > { %10223 = vst [vmem:[#allocation38_spill] sm:$0xff] %v9092_v6  ;;  %v2667_v42 = vpop.f32.mrb[91].mxu1  ;;  %7042 = vmatpush3.bf16.msra.mxu1 %v7599_v31 }
 0x1e5   : > { %v1953_v12 = vpop.f32.mrb[76].mxu0 }
 0x1e6   : > { %v1955_v24 = vpop.f32.mrb[77].mxu0 }
 0x1e7   : > { %v1956_v29 = vpop.f32.mrb[78].mxu0 }
 0x1e8   : > { %v1958_v45 = vpop.f32.mrb[79].mxu0  ;;  %v9096_v27 = vpop.f32.mrb[92].mxu1 }
 0x1e9   : > { %10224 = vst [vmem:[#allocation39_spill] sm:$0xff] %v9096_v27  ;;  %v2672_v37 = vpop.f32.mrb[93].mxu1 }
 0x1ea   : > { %v9098_v40 = vpop.f32.mrb[94].mxu1 }
 0x1eb   : > { %10225 = vst [vmem:[#allocation40_spill] sm:$0xff] %v9098_v40  ;;  %v2675_v24 = vpop.f32.mrb[95].mxu1 }
 0x1ed   : > { %v1961_v5 = vpop.f32.mrb[80].mxu0 }
 0x1ee   : > { %v1963_v44 = vpop.f32.mrb[81].mxu0 }
 0x1ef   : > { %v9094_v26 = vpop.f32.mrb[82].mxu0 }
 0x1f0   : > { %v1966_v50 = vpop.f32.mrb[83].mxu0  ;;  %v9100_v6 = vpop.f32.mrb[96].mxu1 }
 0x1f1   : > { %10226 = vst [vmem:[#allocation41_spill] sm:$0xff] %v9100_v6  ;;  %v2680_v14 = vpop.f32.mrb[97].mxu1  ;;  %v7603_v6 = vld [vmem:[#allocation5 + $0x100] sm:$0xff]  }
 0x1f2   : > { %v9102_v11 = vpop.f32.mrb[98].mxu1  ;;  %6599 = vmatprep.subr.bf16.mxu1 %v7603_v6 }
 0x1f3   : > { %10227 = vst [vmem:[#allocation42_spill] sm:$0xff] %v9102_v11  ;;  %v2683_v27 = vpop.f32.mrb[99].mxu1 }
 0x1f5   : > { %v1969_v45 = vpop.f32.mrb[84].mxu0 }
 0x1f6   : > { %v1971_v33 = vpop.f32.mrb[85].mxu0 }
 0x1f7   : > { %v1972_v42 = vpop.f32.mrb[86].mxu0 }
 0x1f8   : > { %v1974_v44 = vpop.f32.mrb[87].mxu0  ;;  %v9104_v62 = vpop.f32.mrb[100].mxu1 }
 0x1f9   : > { %10228 = vst [vmem:[#allocation43_spill] sm:$0xff] %v9104_v62  ;;  %v2688_v24 = vpop.f32.mrb[101].mxu1 }
 0x1fa   : > { %v9106_v40 = vpop.f32.mrb[102].mxu1 }
 0x1fb   : > { %10229 = vst [vmem:[#allocation44_spill] sm:$0xff] %v9106_v40  ;;  %v2691_v55 = vpop.f32.mrb[103].mxu1 }
 0x1fd   : > { %v1977_v50 = vpop.f32.mrb[88].mxu0 }
 0x1fe   : > { %v1979_v37 = vpop.f32.mrb[89].mxu0 }
 0x1ff   : > { %v1980_v10 = vpop.f32.mrb[90].mxu0 }
 0x200   : > { %v1982_v15 = vpop.f32.mrb[91].mxu0  ;;  %v9108_v8 = vpop.f32.mrb[104].mxu1 }
 0x201   : > { %10230 = vst [vmem:[#allocation45_spill] sm:$0xff] %v9108_v8  ;;  %v2696_v14 = vpop.f32.mrb[105].mxu1 }
 0x202   : > { %v9110_v11 = vpop.f32.mrb[106].mxu1 }
 0x203   : > { %v2699_v27 = vpop.f32.mrb[107].mxu1 }
 0x205   : > { %v1985_v31 = vpop.f32.mrb[92].mxu0 }
 0x206   : > { %v1987_v33 = vpop.f32.mrb[93].mxu0 }
 0x207   : > { %v1988_v60 = vpop.f32.mrb[94].mxu0 }
 0x208   : > { %v1990_v44 = vpop.f32.mrb[95].mxu0  ;;  %v9112_v30 = vpop.f32.mrb[108].mxu1 }
 0x209   : > { %v2704_v8 = vpop.f32.mrb[109].mxu1 }
 0x20a   : > { %v9121_v27 = vpop.f32.mrb[110].mxu1 }
 0x20d   : > { %v6941_v37 = vpop.f32.mrb[96].mxu0 }
 0x20e   : > { %v2131_v7 = vadd.f32 %v6941_v37, %v1953_v12  ;;  %v2122_v62 = vpop.f32.mrb[97].mxu0 }
 0x20f   : > { %v2123_v15 = vadd.f32 %v2122_v62, %v1945_v61  ;;  %v6942_v24 = vpop.f32.mrb[98].mxu0  ;;  %v2707_v62 = vpop.f32.mrb[111].mxu1 }
 0x210   : > { %v9115_v55 = vadd.f32 %v2131_v7, %v8829_v4  ;;  %v2134_v33 = vadd.f32 %v6942_v24, %v1956_v29  ;;  %v2125_v40 = vpop.f32.mrb[99].mxu0  ;;  %v9129_v8 = vpop.f32.mrb[112].mxu1 }
 0x211   : > { %v9118_v44 = vadd.f32 %v2123_v15, %v8798_v1  ;;  %v2126_v14 = vadd.f32 %v2125_v40, %v9083_v56  ;;  %v2712_v15 = vpop.f32.mrb[113].mxu1 }
 0x212   : > { %v9124_v12 = vadd.f32 %v2134_v33, %v8837_v25 }
 0x213   : > { %v9127_v61 = vadd.f32 %v2126_v14, %v8811_v18  ;;  %v9138_v18 = vpop.f32.mrb[114].mxu1 }
 0x215   : > { %v6945_v6 = vpop.f32.mrb[100].mxu0 }
 0x216   : > { %v2147_v4 = vadd.f32 %v6945_v6, %v1969_v45  ;;  %v2138_v7 = vpop.f32.mrb[101].mxu0 }
 0x217   : > { %v2139_v29 = vadd.f32 %v2138_v7, %v1961_v5  ;;  %v6946_v37 = vpop.f32.mrb[102].mxu0  ;;  %v2715_v5 = vpop.f32.mrb[115].mxu1 }
 0x218   : > { %v9132_v1 = vadd.f32 %v2147_v4, %v8873_v57  ;;  %v2150_v56 = vadd.f32 %v6946_v37, %v1972_v42  ;;  %v2141_v40 = vpop.f32.mrb[103].mxu0  ;;  %v9146_v4 = vpop.f32.mrb[116].mxu1 }
 0x219   : > { %v9135_v25 = vadd.f32 %v2139_v29, %v8847_v38  ;;  %v2142_v24 = vadd.f32 %v2141_v40, %v9094_v26  ;;  %v10231_v38 = vld [vmem:[#allocation13_spill] sm:$0xff]  ;;  %v2720_v37 = vpop.f32.mrb[117].mxu1  ;;  %v10232_v40 = vld [vmem:[#allocation11_spill] sm:$0xff] }
 0x21a   : > { %v9141_v45 = vadd.f32 %v2150_v56, %v8880_v48  ;;  %v9154_v15 = vpop.f32.mrb[118].mxu1 }
 0x21b   : > { %v9144_v33 = vadd.f32 %v2142_v24, %v8857_v47  ;;  %v10234_v24 = vld [vmem:[#allocation12_spill] sm:$0xff] }
 0x21d   : > { %v6949_v14 = vpop.f32.mrb[104].mxu0 }
 0x21e   : > { %v2163_v57 = vadd.f32 %v6949_v14, %v1985_v31  ;;  %v2154_v62 = vpop.f32.mrb[105].mxu0  ;;  %v2723_v31 = vpop.f32.mrb[119].mxu1 }
 0x21f   : > { %v2155_v42 = vadd.f32 %v2154_v62, %v1977_v50  ;;  %v6950_v6 = vpop.f32.mrb[106].mxu0  ;;  %v9159_v50 = vld [vmem:[#allocation2 + $0x1a0] sm:$0xff] }
 0x220   : > { %v9149_v7 = vadd.f32 %v2163_v57, %v10231_v38  ;;  %v2166_v26 = vadd.f32 %v6950_v6, %v1988_v60  ;;  %v2157_v29 = vpop.f32.mrb[107].mxu0  ;;  %10233 = vst [vmem:[#allocation13_spill] sm:$0xff] %v9159_v50  ;;  %3623 = vst [vmem:[#allocation2 + $0x1a0] sm:$0xff] %v8708_v53 }
 0x221   : > { %v9152_v48 = vadd.f32 %v2155_v42, %v10232_v40  ;;  %v2158_v56 = vadd.f32 %v2157_v29, %v1980_v10  ;;  %v9167_v42 = vpop.f32.mrb[120].mxu1 }
 0x222   : > { %v9157_v47 = vadd.f32 %v2166_v26, %v8916_v58  ;;  %v2728_v26 = vpop.f32.mrb[121].mxu1 }
 0x223   : > { %v9162_v5 = vadd.f32 %v2158_v56, %v10234_v24  ;;  %v9177_v37 = vpop.f32.mrb[122].mxu1 }
 0x225   : > { %v6953_v60 = vpop.f32.mrb[108].mxu0 }
 0x226   : > { %v2179_v14 = vadd.f32 %v6953_v60, %v8936_v34  ;;  %v2170_v57 = vpop.f32.mrb[109].mxu0 }
 0x227   : > { %v2171_v62 = vadd.f32 %v2170_v57, %v8921_v51  ;;  %v6954_v10 = vpop.f32.mrb[110].mxu0  ;;  %v2731_v51 = vpop.f32.mrb[123].mxu1 }
 0x228   : > { %v9170_v58 = vadd.f32 %v2179_v14, %v8940_v46  ;;  %v2182_v6 = vadd.f32 %v6954_v10, %v8942_v21  ;;  %v2173_v38 = vpop.f32.mrb[111].mxu0 }
 0x229   : > { %v9174_v29 = vadd.f32 %v2171_v62, %v8924_v59  ;;  %v2174_v53 = vadd.f32 %v2173_v38, %v8927_v63  ;;  %v9187_v59 = vpop.f32.mrb[124].mxu1 }
 0x22a   : > { %v9180_v34 = vadd.f32 %v2182_v6, %v8946_v28  ;;  %v2736_v14 = vpop.f32.mrb[125].mxu1 }
 0x22b   : > { %v9183_v40 = vadd.f32 %v2174_v53, %v8930_v32  ;;  %v9197_v62 = vpop.f32.mrb[126].mxu1  ;;  %v10235_v14 = vld [vmem:[#allocation17_spill] sm:$0xff] }
 0x22d   : > { %v6957_v46 = vpop.f32.mrb[112].mxu0 }
 0x22e   : > { %v2195_v56 = vadd.f32 %v6957_v46, %v8967_v39  ;;  %v2186_v21 = vpop.f32.mrb[113].mxu0 }
 0x22f   : > { %v2187_v31 = vadd.f32 %v2186_v21, %v8951_v54  ;;  %v6958_v24 = vpop.f32.mrb[114].mxu0  ;;  %v2739_v54 = vpop.f32.mrb[127].mxu1 }
 0x230   : > { %v9190_v63 = vadd.f32 %v2195_v56, %v8971_v3  ;;  %v2198_v60 = vadd.f32 %v6958_v24, %v8973_v41  ;;  %v2189_v28 = vpop.f32.mrb[115].mxu0 }
 0x231   : > { %v9194_v57 = vadd.f32 %v2187_v31, %v8954_v43  ;;  %v2190_v32 = vadd.f32 %v2189_v28, %v8957_v0  ;;  %v9207_v43 = vpop.f32.mrb[128].mxu1  ;;  %v7620_v31 = vld [vmem:[#allocation5 + $0x180] sm:$0xff]  }
 0x232   : > { %v9200_v39 = vadd.f32 %v2198_v60, %v8977_v20  ;;  %v2744_v51 = vpop.f32.mrb[129].mxu1 }
 0x233   : > { %v9203_v10 = vadd.f32 %v2190_v32, %v8960_v17  ;;  %v9217_v56 = vpop.f32.mrb[130].mxu1 }
 0x235   : > { %v6961_v3 = vpop.f32.mrb[116].mxu0 }
 0x236   : > { %v2211_v6 = vadd.f32 %v6961_v3, %v8995_v52  ;;  %v2202_v41 = vpop.f32.mrb[117].mxu0  ;;  %v10236_v3 = vld [vmem:[#allocation14_spill] sm:$0xff] }
 0x237   : > { %v2203_v38 = vadd.f32 %v2202_v41, %v8981_v13  ;;  %v6962_v26 = vpop.f32.mrb[118].mxu0  ;;  %v2747_v13 = vpop.f32.mrb[131].mxu1  ;;  %v10238_v41 = vld [vmem:[#allocation15_spill] sm:$0xff] }
 0x238   : > { %v9210_v0 = vadd.f32 %v2211_v6, %v8998_v16  ;;  %v2214_v53 = vadd.f32 %v6962_v26, %v9001_v2  ;;  %v2205_v20 = vpop.f32.mrb[119].mxu0  ;;  %v7619_v16 = vld [vmem:[#allocation5 + $0x1c0] sm:$0xff]   ;;  %v9227_v28 = vpop.f32.mrb[132].mxu1  ;;  %v10240_v26 = vld [vmem:[#allocation18_spill] sm:$0xff] }
 0x239   : > { %v9214_v46 = vadd.f32 %v2203_v38, %v8984_v22  ;;  %v2206_v17 = vadd.f32 %v2205_v20, %v8987_v35  ;;  %6735 = vmatprep.subr.bf16.mxu0 %v7619_v16  ;;  %v2752_v54 = vpop.f32.mrb[133].mxu1  ;;  %v10242_v20 = vld [vmem:[#allocation16_spill] sm:$0xff] }
 0x23a   : > { %v9220_v52 = vadd.f32 %v2214_v53, %v9004_v19  ;;  %6736 = vmatpush3.bf16.msra.mxu0 %v7620_v31  ;;  %v10245_v31 = vld [vmem:[#allocation19_spill] sm:$0xff] }
 0x23b   : > { %v9223_v21 = vadd.f32 %v2206_v17, %v8990_v23  ;;  %v10244_v17 = vld [vmem:[#allocation23_spill] sm:$0xff] }
 0x23d   : > { %v6965_v24 = vpop.f32.mrb[120].mxu0 }
 0x23e   : > { %v2227_v2 = vadd.f32 %v6965_v24, %v9021_v36  ;;  %v2218_v60 = vpop.f32.mrb[121].mxu0  ;;  %v9237_v36 = vpop.f32.mrb[134].mxu1 }
 0x23f   : > { %v2219_v22 = vadd.f32 %v2218_v60, %v9008_v49  ;;  %v6966_v35 = vpop.f32.mrb[122].mxu0  ;;  %10239 = vst [vmem:[#allocation12_spill] sm:$0xff] %v9237_v36  ;;  %v2755_v49 = vpop.f32.mrb[135].mxu1 }
 0x240   : > { %v9230_v19 = vadd.f32 %v2227_v2, %v9024_v9  ;;  %v2230_v32 = vadd.f32 %v6966_v35, %v10235_v14  ;;  %v2221_v23 = vpop.f32.mrb[123].mxu0  ;;  %v9247_v60 = vpop.f32.mrb[136].mxu1  ;;  %v10248_v14 = vld [vmem:[#allocation25_spill] sm:$0xff] }
 0x241   : > { %v9234_v6 = vadd.f32 %v2219_v22, %v10236_v3  ;;  %v2222_v38 = vadd.f32 %v2221_v23, %v10238_v41  ;;  %v10246_v22 = vld [vmem:[#allocation24_spill] sm:$0xff]  ;;  %v2760_v54 = vpop.f32.mrb[137].mxu1 }
 0x242   : > { %v9240_v53 = vadd.f32 %v2230_v32, %v10240_v26  ;;  %v10249_v3 = vld [vmem:[#allocation20_spill] sm:$0xff]  ;;  %v9257_v49 = vpop.f32.mrb[138].mxu1 }
 0x243   : > { %10237 = vst [vmem:[#allocation11_spill] sm:$0xff] %v9234_v6  ;;  %v9243_v51 = vadd.f32 %v2222_v38, %v10242_v20  ;;  %v10251_v38 = vld [vmem:[#allocation21_spill] sm:$0xff]  ;;  %v10252_v20 = vld [vmem:[#allocation26_spill] sm:$0xff] }
 0x244   : > { %10241 = vst [vmem:[#allocation17_spill] sm:$0xff] %v9240_v53  ;;  %v7638_v6 = vld [vmem:[#allocation5 + $0x1b8] sm:$0xff]  }
 0x245   : > { %10243 = vst [vmem:[#allocation14_spill] sm:$0xff] %v9243_v51  ;;  %v6969_v9 = vpop.f32.mrb[124].mxu0  ;;  %v9321_v51 = vld [vmem:[#allocation2 + $0x50] sm:$0xff] }
 0x246   : > { %v2243_v13 = vadd.f32 %v6969_v9, %v10244_v17  ;;  %v2234_v16 = vpop.f32.mrb[125].mxu0  ;;  %v2763_v17 = vpop.f32.mrb[139].mxu1 }
 0x247   : > { %v2235_v24 = vadd.f32 %v2234_v16, %v10245_v31  ;;  %v6970_v2 = vpop.f32.mrb[126].mxu0  ;;  %v10254_v16 = vld [vmem:[#allocation22_spill] sm:$0xff] }
 0x248   : > { %v9250_v35 = vadd.f32 %v2243_v13, %v10246_v22  ;;  %v2246_v23 = vadd.f32 %v6970_v2, %v10248_v14  ;;  %v2237_v32 = vpop.f32.mrb[127].mxu0  ;;  %v7622_v13 = vld [vmem:[#allocation5 + $0x1c8] sm:$0xff]   ;;  %v10256_v2 = vld [vmem:[#allocation31_spill] sm:$0xff] }
 0x249   : > { %v9254_v41 = vadd.f32 %v2235_v24, %v10249_v3  ;;  %v2238_v26 = vadd.f32 %v2237_v32, %v10251_v38  ;;  %v7623_v22 = vld [vmem:[#allocation5 + $0x188] sm:$0xff]   ;;  %6737 = vmatprep.subr.bf16.mxu0 %v7622_v13  ;;  %v10257_v24 = vld [vmem:[#allocation27_spill] sm:$0xff]  ;;  %v9267_v38 = vpop.f32.mrb[140].mxu1  ;;  %v10264_v13 = vld [vmem:[#allocation29_spill] sm:$0xff] }
 0x24a   : > { %10247 = vst [vmem:[#allocation15_spill] sm:$0xff] %v9250_v35  ;;  %v9260_v9 = vadd.f32 %v2246_v23, %v10252_v20  ;;  %6738 = vmatpush3.bf16.msra.mxu0 %v7623_v22  ;;  %10258 = vst [vmem:[#allocation19_spill] sm:$0xff] %v9267_v38  ;;  %v10261_v20 = vld [vmem:[#allocation33_spill] sm:$0xff] }
 0x24b   : > { %10250 = vst [vmem:[#allocation18_spill] sm:$0xff] %v9254_v41  ;;  %v9263_v31 = vadd.f32 %v2238_v26, %v10254_v16  ;;  %v10259_v41 = vld [vmem:[#allocation32_spill] sm:$0xff]  ;;  %v2768_v16 = vpop.f32.mrb[141].mxu1  ;;  %v7626_v22 = vld [vmem:[#allocation5 + $0x190] sm:$0xff]  }
 0x24c   : > { %10253 = vst [vmem:[#allocation16_spill] sm:$0xff] %v9260_v9  ;;  %v10262_v9 = vld [vmem:[#allocation28_spill] sm:$0xff]  ;;  %v7629_v16 = vld [vmem:[#allocation5 + $0x198] sm:$0xff]  }
 0x24d   : > { %10255 = vst [vmem:[#allocation23_spill] sm:$0xff] %v9263_v31  ;;  %v6973_v50 = vpop.f32.mrb[128].mxu0  ;;  %v7625_v31 = vld [vmem:[#allocation5 + $0x1d0] sm:$0xff]  }
 0x24e   : > { %v2259_v14 = vadd.f32 %v6973_v50, %v10256_v2  ;;  %v2250_v54 = vpop.f32.mrb[129].mxu0  ;;  %v9277_v2 = vpop.f32.mrb[142].mxu1  ;;  %6739 = vmatprep.subr.bf16.mxu0 %v7625_v31  ;;  %v10273_v31 = vld [vmem:[#allocation38_spill] sm:$0xff] }
 0x24f   : > { %v2251_v3 = vadd.f32 %v2250_v54, %v10257_v24  ;;  %v6974_v32 = vpop.f32.mrb[130].mxu0  ;;  %10265 = vst [vmem:[#allocation20_spill] sm:$0xff] %v9277_v2  ;;  %v10266_v54 = vld [vmem:[#allocation34_spill] sm:$0xff]  ;;  %v2771_v38 = vpop.f32.mrb[143].mxu1  ;;  %6740 = vmatpush3.bf16.msra.mxu0 %v7626_v22  ;;  %v7630_v22 = vld [vmem:[#allocation5 + $0x1e0] sm:$0xff]  }
 0x250   : > { %v9270_v23 = vadd.f32 %v2259_v14, %v10259_v41  ;;  %v2262_v17 = vadd.f32 %v6974_v32, %v10261_v20  ;;  %v2253_v26 = vpop.f32.mrb[131].mxu0  ;;  %v10268_v41 = vld [vmem:[#allocation30_spill] sm:$0xff]  ;;  %v9287_v2 = vpop.f32.mrb[144].mxu1 }
 0x251   : > { %v9274_v35 = vadd.f32 %v2251_v3, %v10262_v9  ;;  %v2254_v50 = vadd.f32 %v2253_v26, %v10264_v13  ;;  %v7628_v32 = vld [vmem:[#allocation5 + $0x1d8] sm:$0xff]   ;;  %v10271_v26 = vld [vmem:[#allocation35_spill] sm:$0xff]  ;;  %10272 = vst [vmem:[#allocation22_spill] sm:$0xff] %v9287_v2  ;;  %v7633_v2 = vld [vmem:[#allocation5 + $0x1a8] sm:$0xff]  }
 0x252   : > { %10260 = vst [vmem:[#allocation24_spill] sm:$0xff] %v9270_v23  ;;  %v9280_v24 = vadd.f32 %v2262_v17, %v10266_v54  ;;  %v10270_v23 = vld [vmem:[#allocation37_spill] sm:$0xff]  ;;  %6741 = vmatprep.subr.bf16.mxu0 %v7628_v32  ;;  %v2776_v54 = vpop.f32.mrb[145].mxu1  ;;  %v7631_v32 = vld [vmem:[#allocation5 + $0x1a0] sm:$0xff]  }
 0x253   : > { %10263 = vst [vmem:[#allocation25_spill] sm:$0xff] %v9274_v35  ;;  %v9283_v14 = vadd.f32 %v2254_v50, %v10268_v41  ;;  %6742 = vmatpush3.bf16.msra.mxu0 %v7629_v16 }
 0x254   : > { %10267 = vst [vmem:[#allocation21_spill] sm:$0xff] %v9280_v24  ;;  %6743 = vmatprep.subr.bf16.mxu0 %v7630_v22 }
 0x255   : > { %10269 = vst [vmem:[#allocation26_spill] sm:$0xff] %v9283_v14  ;;  %v6993_v20 = vpop.f32.mrb[132].mxu0  ;;  %v10274_v14 = vld [vmem:[#allocation36_spill] sm:$0xff] }
 0x256   : > { %v2840_v9 = vadd.f32 %v6993_v20, %v10270_v23  ;;  %v2831_v3 = vpop.f32.mrb[133].mxu0  ;;  %v9293_v23 = vpop.f32.mrb[146].mxu1 }
 0x257   : > { %v2832_v13 = vadd.f32 %v2831_v3, %v10271_v26  ;;  %v6994_v35 = vpop.f32.mrb[134].mxu0  ;;  %10275 = vst [vmem:[#allocation31_spill] sm:$0xff] %v9293_v23  ;;  %v2779_v3 = vpop.f32.mrb[147].mxu1  ;;  %6744 = vmatpush3.bf16.msra.mxu0 %v7631_v32  ;;  %v10279_v32 = vld [vmem:[#allocation42_spill] sm:$0xff] }
 0x258   : > { %v3012_v38 = vadd.f32 %v2840_v9, %v9115_v55  ;;  %v2843_v17 = vadd.f32 %v6994_v35, %v10273_v31  ;;  %v2834_v50 = vpop.f32.mrb[135].mxu0  ;;  %v7632_v35 = vld [vmem:[#allocation5 + $0x1e8] sm:$0xff]  }
 0x259   : > { %v3010_v41 = vadd.f32 %v2832_v13, %v9118_v44  ;;  %v2835_v24 = vadd.f32 %v2834_v50, %v10274_v14  ;;  %v10276_v13 = vld [vmem:[#allocation41_spill] sm:$0xff]  ;;  %6745 = vmatprep.subr.bf16.mxu0 %v7632_v35 }
 0x25a   : > { %v3013_v20 = vadd.f32 %v2843_v17, %v9124_v12  ;;  %v3120_v55 = vmax.f32 %v3012_v38, 0.0  ;;  %v10277_v17 = vld [vmem:[#allocation39_spill] sm:$0xff] }
 0x25b   : > { %v3011_v16 = vadd.f32 %v2835_v24, %v9127_v61  ;;  %v3118_v26 = vmax.f32 %v3010_v41, 0.0  ;;  %v9299_v61 = vpop.f32.mrb[148].mxu1  ;;  %6746 = vmatpush3.bf16.msra.mxu0 %v7633_v2 }
 0x25c   : > { %v3121_v9 = vmax.f32 %v3013_v20, 0.0  ;;  %10278 = vst [vmem:[#allocation27_spill] sm:$0xff] %v9299_v61  ;;  %v3503_v61 = vld [vmem:[#allocation2 + $0x10] sm:$0xff] }
 0x25d   : > { %v3119_v31 = vmax.f32 %v3011_v16, 0.0  ;;  %v6997_v54 = vpop.f32.mrb[136].mxu0 }
 0x25e   : > { %v3155_v44 = vpack.c.bf16 %v3121_v9, %v3120_v55  ;;  %v2856_v14 = vadd.f32 %v6997_v54, %v10276_v13  ;;  %v2847_v50 = vpop.f32.mrb[137].mxu0  ;;  %v2784_v55 = vpop.f32.mrb[149].mxu1  ;;  %v7634_v9 = vld [vmem:[#allocation5 + $0x1f0] sm:$0xff]  }
 0x25f   : > { %v3154_v12 = vpack.c.bf16 %v3119_v31, %v3118_v26  ;;  %v2848_v22 = vadd.f32 %v2847_v50, %v10277_v17  ;;  %v6998_v3 = vpop.f32.mrb[138].mxu0  ;;  %v10280_v31 = vld [vmem:[#allocation40_spill] sm:$0xff]  ;;  %v9305_v13 = vpop.f32.mrb[150].mxu1  ;;  %v7635_v50 = vld [vmem:[#allocation5 + $0x1b0] sm:$0xff]   ;;  %6747 = vmatprep.subr.bf16.mxu0 %v7634_v9 }
 0x260   : > { %v3237_v24 = vshrl.u32 %v3155_v44, 16  ;;  %v3240_v38 = vshll.u32 %v3155_v44, 16  ;;  %3431 = vst [vmem:[#allocation2 + $0x20] sm:$0xff] %v3155_v44  ;;  %v3016_v41 = vadd.f32 %v2856_v14, %v9132_v1  ;;  %v2859_v20 = vadd.f32 %v6998_v3, %v10279_v32  ;;  %v2850_v16 = vpop.f32.mrb[139].mxu0  ;;  %3937 = vmatprep.mubr.bf16.mxu0 %v3155_v44  ;;  %10281 = vst [vmem:[#allocation32_spill] sm:$0xff] %v9305_v13  ;;  %v2787_v14 = vpop.f32.mrb[151].mxu1 }
 0x261   : > { %v3233_v35 = vshll.u32 %v3154_v12, 16  ;;  %v3014_v26 = vadd.f32 %v2848_v22, %v9135_v25  ;;  %v2851_v54 = vadd.f32 %v2850_v16, %v10280_v31  ;;  %v3379_v3 = vld [vmem:[#allocation2 + $0x18] sm:$0xff]  ;;  %v3506_v22 = vld [vmem:[#allocation2 + $0x28] sm:$0xff]  ;;  %v3230_v32 = vshrl.u32 %v3154_v12, 16  ;;  %6748 = vmatpush3.bf16.msra.mxu0 %v7635_v50 }
 0x262   : > { %v3239_v2 = vrot.slane %v3237_v24, 7  ;;  %v3450_v1 = vrot.slane %v3240_v38, 1  ;;  %v3017_v44 = vadd.f32 %v2859_v20, %v9141_v45  ;;  %v3124_v23 = vmax.f32 %v3016_v41, 0.0  ;;  %v7637_v20 = vld [vmem:[#allocation5 + $0x1f8] sm:$0xff]   ;;  %v10286_v41 = vld [vmem:[#allocation45_spill] sm:$0xff] }
 0x263   : > { %v3448_v16 = vrot.slane %v3233_v35, 1  ;;  %v3015_v55 = vadd.f32 %v2851_v54, %v9144_v33  ;;  %v3122_v14 = vmax.f32 %v3014_v26, 0.0  ;;  %6749 = vmatprep.subr.bf16.mxu0 %v7637_v20 }
 0x264   : > { %v3242_v31 = vor.u32 %v3240_v38, %v3239_v2  ;;  %v3451_v13 = vor.u32 %v3450_v1, %v3237_v24  ;;  %v3125_v45 = vmax.f32 %v3017_v44, 0.0  ;;  %v9329_v24 = vld [vmem:[#allocation2 + $0x38] sm:$0xff]  ;;  %v10287_v2 = vld [vmem:[#allocation43_spill] sm:$0xff] }
 0x265   : > { %v3449_v9 = vor.u32 %v3448_v16, %v3230_v32  ;;  %v3123_v53 = vmax.f32 %v3015_v55, 0.0  ;;  %v7001_v36 = vpop.f32.mrb[140].mxu0  ;;  %6750 = vmatpush3.bf16.msra.mxu0 %v7638_v6 }
 0x266   : > { %v3380_v12 = vsel %vm9309_vm7, %v3242_v31, %v3379_v3  ;;  %v3507_v33 = vsel %vm9316_vm8, %v3451_v13, %v3506_v22  ;;  %v9327_v38 = vpack.c.bf16 %v3125_v45, %v3124_v23  ;;  %v2872_v35 = vadd.f32 %v7001_v36, %v10286_v41  ;;  %v2863_v54 = vpop.f32.mrb[141].mxu0  ;;  %v9335_v13 = vpop.f32.mrb[152].mxu1  ;;  %v10288_v31 = vld [vmem:[#allocation44_spill] sm:$0xff] }
 0x267   : > { %3381 = vst [vmem:[#allocation2 + $0x18] sm:$0xff] %v3380_v12  ;;  %3508 = vst [vmem:[#allocation2 + $0x28] sm:$0xff] %v3507_v33  ;;  %v3504_v26 = vsel %vm9316_vm8, %v3449_v9, %v3503_v61  ;;  %v3156_v50 = vpack.c.bf16 %v3123_v53, %v3122_v14  ;;  %v2864_v1 = vadd.f32 %v2863_v54, %v10287_v2  ;;  %v7002_v44 = vpop.f32.mrb[142].mxu0  ;;  %3938 = vmatmul.mubr.bf16.gmra.mrb[172].mxu0 %v3380_v12  ;;  %v2792_v61 = vpop.f32.mrb[153].mxu1  ;;  %v3385_v33 = vld [vmem:[#allocation2 + $0x48] sm:$0xff]  ;;  %v3509_v2 = vld [vmem:[#allocation2 + $0x40] sm:$0xff] }
 0x268   : > { %3505 = vst [vmem:[#allocation2 + $0x10] sm:$0xff] %v3504_v26  ;;  %v3251_v23 = vshrl.u32 %v9327_v38, 16  ;;  %v3254_v36 = vshll.u32 %v9327_v38, 16  ;;  %3433 = vst [vmem:[#allocation2 + $0x50] sm:$0xff] %v9327_v38  ;;  %v3020_v3 = vadd.f32 %v2872_v35, %v9149_v7  ;;  %v2875_v22 = vadd.f32 %v7002_v44, %v9110_v11  ;;  %v2866_v32 = vpop.f32.mrb[143].mxu0  ;;  %v9344_v20 = vpop.f32.mrb[154].mxu1 }
 0x269   : > { %v3244_v53 = vshrl.u32 %v3156_v50, 16  ;;  %v3247_v16 = vshll.u32 %v3156_v50, 16  ;;  %3432 = vst [vmem:[#allocation2 + $0x38] sm:$0xff] %v3156_v50  ;;  %v3018_v55 = vadd.f32 %v2864_v1, %v9152_v48  ;;  %v2867_v45 = vadd.f32 %v2866_v32, %v10288_v31  ;;  %3945 = vmatprep.mubr.bf16.mxu0 %v3156_v50  ;;  %v2795_v7 = vpop.f32.mrb[155].mxu1  ;;  %v3512_v11 = vld [vmem:[#allocation2 + $0x58] sm:$0xff]  ;;  %v3382_v50 = vld [vmem:[#allocation2 + $0x30] sm:$0xff] }
 0x26a   : > { %v3253_v9 = vrot.slane %v3251_v23, 7  ;;  %v3454_v14 = vrot.slane %v3254_v36, 1  ;;  %v3021_v12 = vadd.f32 %v2875_v22, %v9157_v47  ;;  %v3128_v1 = vmax.f32 %v3020_v3, 0.0  ;;  %v9354_v61 = vld [vmem:[#allocation2 + $0x80] sm:$0xff] }
 0x26b   : > { %v3246_v41 = vrot.slane %v3244_v53, 7  ;;  %v3452_v35 = vrot.slane %v3247_v16, 1  ;;  %v3019_v6 = vadd.f32 %v2867_v45, %v9162_v5  ;;  %v3126_v32 = vmax.f32 %v3018_v55, 0.0  ;;  %10291 = vst [vmem:[#allocation33_spill] sm:$0xff] %v9354_v61 }
 0x26c   : > { %v3256_v54 = vor.u32 %v3254_v36, %v3253_v9  ;;  %v3455_v26 = vor.u32 %v3454_v14, %v3251_v23  ;;  %v3129_v44 = vmax.f32 %v3021_v12, 0.0  ;;  %v9364_v9 = vld [vmem:[#allocation2 + $0x68] sm:$0xff] }
 0x26d   : > { %v3249_v47 = vor.u32 %v3247_v16, %v3246_v41  ;;  %v3453_v22 = vor.u32 %v3452_v35, %v3244_v53  ;;  %v3127_v31 = vmax.f32 %v3019_v6, 0.0  ;;  %v7005_v7 = vpop.f32.mrb[144].mxu0 }
 0x26e   : > { %v3563_v5 = vld [vmem:[#allocation2 + $0x28] sm:$0x80]  ;;  %v9358_v45 = vsel %vm9309_vm7, %v3256_v54, %v3385_v33  ;;  %v3513_v36 = vsel %vm9316_vm8, %v3455_v26, %v3512_v11  ;;  %v9362_v23 = vpack.c.bf16 %v3129_v44, %v3128_v1  ;;  %v2888_v3 = vadd.f32 %v7005_v7, %v9129_v8  ;;  %v2879_v53 = vpop.f32.mrb[145].mxu0 }
 0x26f   : > { %v3564_v16 = vsel %vm9350_vm11, 0, %v3563_v5  ;;  %v3560_v55 = vld [vmem:[#allocation2 + $0x10] sm:$0x80]  ;;  %3514 = vst [vmem:[#allocation2 + $0x58] sm:$0xff] %v3513_v36  ;;  %3387 = vst [vmem:[#allocation2 + $0x48] sm:$0xff] %v9358_v45  ;;  %v3383_v14 = vsel %vm9309_vm7, %v3249_v47, %v3382_v50  ;;  %v3510_v12 = vsel %vm9316_vm8, %v3453_v22, %v3509_v2  ;;  %v9374_v33 = vpack.c.bf16 %v3127_v31, %v3126_v32  ;;  %v7006_v11 = vpop.f32.mrb[146].mxu0 }
 0x270   : > { %3565 = vst [vmem:[#allocation2 + $0x28] sm:$0x80] %v3564_v16  ;;  %v3561_v8 = vsel %vm9350_vm11, 0, %v3560_v55  ;;  %3511 = vst [vmem:[#allocation2 + $0x40] sm:$0xff] %v3510_v12  ;;  %v3265_v41 = vshrl.u32 %v9362_v23, 16  ;;  %v3268_v35 = vshll.u32 %v9362_v23, 16  ;;  %v3024_v6 = vadd.f32 %v2888_v3, %v9170_v58  ;;  %3946 = vmatmul.mubr.bf16.gmra.mrb[176].mxu0 %v3383_v14 }
 0x271   : > { %3384 = vst [vmem:[#allocation2 + $0x30] sm:$0xff] %v3383_v14  ;;  %3435 = vst [vmem:[#allocation2 + $0x80] sm:$0xff] %v9362_v23  ;;  %v2882_v54 = vpop.f32.mrb[147].mxu0  ;;  %v3258_v26 = vshrl.u32 %v9374_v33, 16  ;;  %v3261_v50 = vshll.u32 %v9374_v33, 16  ;;  %v2880_v2 = vadd.f32 %v2879_v53, %v9112_v30  ;;  %v2891_v1 = vadd.f32 %v7006_v11, %v9138_v18  ;;  %3953 = vmatprep.mubr.bf16.mxu0 %v9327_v38  ;;  %v9388_v44 = vld [vmem:[#allocation2 + $0x8] sm:$0xff] }
 0x272   : > { %3562 = vst [vmem:[#allocation2 + $0x10] sm:$0x80] %v3561_v8  ;;  %3434 = vst [vmem:[#allocation2 + $0x68] sm:$0xff] %v9374_v33  ;;  %v3267_v58 = vrot.slane %v3265_v41, 7  ;;  %v3458_v47 = vrot.slane %v3268_v35, 1  ;;  %v2883_v22 = vadd.f32 %v2882_v54, %v9121_v27  ;;  %v3391_v32 = vld [vmem:[#allocation2 + $0x78] sm:$0xff] }
 0x273   : > { %3620 = vst [vmem:[#allocation2 + $0x10] sm:$0xff] %v9388_v44  ;;  %v3518_v31 = vld [vmem:[#allocation2 + $0x88] sm:$0xff]  ;;  %v3260_v7 = vrot.slane %v3258_v26, 7  ;;  %v3456_v5 = vrot.slane %v3261_v50, 1  ;;  %v3022_v36 = vadd.f32 %v2880_v2, %v9174_v29  ;;  %v3025_v30 = vadd.f32 %v2891_v1, %v9180_v34  ;;  %v3388_v53 = vld [vmem:[#allocation2 + $0x60] sm:$0xff]  ;;  %v3515_v38 = vld [vmem:[#allocation2 + $0x70] sm:$0xff] }
 0x274   : > { %v3270_v3 = vor.u32 %v3268_v35, %v3267_v58  ;;  %v3459_v18 = vor.u32 %v3458_v47, %v3265_v41  ;;  %v3132_v16 = vmax.f32 %v3024_v6, 0.0  ;;  %v3023_v55 = vadd.f32 %v2883_v22, %v9183_v40  ;;  %v7604_v54 = vld [vmem:[#allocation5 + $0xc0] sm:$0xff]   ;;  %v9401_v34 = vld [vmem:[#allocation2 + $0xb0] sm:$0xff]  ;;  %v7605_v40 = vld [vmem:[#allocation5 + $0x108] sm:$0xff]  }
 0x275   : > { %v3263_v14 = vor.u32 %v3261_v50, %v3260_v7  ;;  %v3457_v12 = vor.u32 %v3456_v5, %v3258_v26  ;;  %v3130_v11 = vmax.f32 %v3022_v36, 0.0  ;;  %v3133_v8 = vmax.f32 %v3025_v30, 0.0  ;;  %v7009_v27 = vpop.f32.mrb[148].mxu0  ;;  %v9413_v1 = vld [vmem:[#allocation2 + $0x98] sm:$0xff] }
 0x276   : > { %v9397_v61 = vsel %vm9309_vm7, %v3270_v3, %v3391_v32  ;;  %v3519_v29 = vsel %vm9316_vm8, %v3459_v18, %v3518_v31  ;;  %v3131_v41 = vmax.f32 %v3023_v55, 0.0  ;;  %v2904_v35 = vadd.f32 %v7009_v27, %v9167_v42  ;;  %v2895_v6 = vpop.f32.mrb[149].mxu0  ;;  %v3394_v27 = vld [vmem:[#allocation2 + $0x90] sm:$0xff] }
 0x277   : > { %3520 = vst [vmem:[#allocation2 + $0x88] sm:$0xff] %v3519_v29  ;;  %3393 = vst [vmem:[#allocation2 + $0x78] sm:$0xff] %v9397_v61  ;;  %v9407_v26 = vsel %vm9309_vm7, %v3263_v14, %v3388_v53  ;;  %v3516_v50 = vsel %vm9316_vm8, %v3457_v12, %v3515_v38  ;;  %v9411_v2 = vpack.c.bf16 %v3133_v8, %v3132_v16  ;;  %v7010_v47 = vpop.f32.mrb[150].mxu0  ;;  %v3630_v42 = vld [vmem:[#allocation2 + $0x28] sm:$0xff]  ;;  %v3566_v22 = vld [vmem:[#allocation2 + $0x40] sm:$0x80] }
 0x278   : > { %v2896_v58 = vadd.f32 %v2895_v6, %v9146_v4  ;;  %3517 = vst [vmem:[#allocation2 + $0x70] sm:$0xff] %v3516_v50  ;;  %3390 = vst [vmem:[#allocation2 + $0x60] sm:$0xff] %v9407_v26  ;;  %v9417_v32 = vpack.c.bf16 %v3131_v41, %v3130_v11  ;;  %v3028_v31 = vadd.f32 %v2904_v35, %v9190_v63  ;;  %v2898_v5 = vpop.f32.mrb[151].mxu0  ;;  %7044 = vmatmul.mubr.bf16.vlgmr.msra.gmra.mrb[156].mxu1 %v3630_v42  ;;  %v7606_v63 = vld [vmem:[#allocation5 + $0xc8] sm:$0xff]   ;;  %v7607_v16 = vld [vmem:[#allocation5 + $0x110] sm:$0xff]  }
 0x279   : > { %v2907_v7 = vadd.f32 %v7010_v47, %v9177_v37  ;;  %v3567_v36 = vsel %vm9350_vm11, 0, %v3566_v22  ;;  %3954 = vmatmul.mubr.bf16.gmra.mrb[180].mxu0 %v9358_v45  ;;  %v3279_v4 = vshrl.u32 %v9411_v2, 16  ;;  %v3282_v30 = vshll.u32 %v9411_v2, 16  ;;  %3437 = vst [vmem:[#allocation2 + $0xb0] sm:$0xff] %v9411_v2  ;;  %6600 = vmatpush3.bf16.msra.mxu1 %v7604_v54  ;;  %v3569_v37 = vld [vmem:[#allocation2 + $0x58] sm:$0x80] }
 0x27a   : > { %v3026_v3 = vadd.f32 %v2896_v58, %v9194_v57  ;;  %v2899_v18 = vadd.f32 %v2898_v5, %v9154_v15  ;;  %3568 = vst [vmem:[#allocation2 + $0x40] sm:$0x80] %v3567_v36  ;;  %3961 = vmatprep.mubr.bf16.mxu0 %v9374_v33  ;;  %v3272_v53 = vshrl.u32 %v9417_v32, 16  ;;  %v3275_v45 = vshll.u32 %v9417_v32, 16  ;;  %3436 = vst [vmem:[#allocation2 + $0x98] sm:$0xff] %v9417_v32  ;;  %v3397_v57 = vld [vmem:[#allocation2 + $0xa8] sm:$0xff] }
 0x27b   : > { %v3029_v38 = vadd.f32 %v2907_v7, %v9200_v39  ;;  %6601 = vmatprep.subr.bf16.mxu1 %v7605_v40  ;;  %v3281_v55 = vrot.slane %v3279_v4, 7  ;;  %v3462_v14 = vrot.slane %v3282_v30, 1  ;;  %v3136_v15 = vmax.f32 %v3028_v31, 0.0  ;;  %v3524_v11 = vld [vmem:[#allocation2 + $0xb8] sm:$0xff]  ;;  %v3521_v6 = vld [vmem:[#allocation2 + $0xa0] sm:$0xff]  ;;  %v7608_v47 = vld [vmem:[#allocation5 + $0xd0] sm:$0xff]  }
 0x27c   : > { %v3027_v12 = vadd.f32 %v2899_v18, %v9203_v10  ;;  %v3274_v8 = vrot.slane %v3272_v53, 7  ;;  %v3460_v33 = vrot.slane %v3275_v45, 1  ;;  %v3570_v29 = vsel %vm9350_vm11, 0, %v3569_v37  ;;  %v9437_v40 = vld [vmem:[#allocation2 + $0xe0] sm:$0xff]  ;;  %v9441_v31 = vld [vmem:[#allocation2 + $0xc8] sm:$0xff]  ;;  %v7609_v36 = vld [vmem:[#allocation5 + $0x118] sm:$0xff]  }
 0x27d   : > { %v3137_v54 = vmax.f32 %v3029_v38, 0.0  ;;  %v3284_v41 = vor.u32 %v3282_v30, %v3281_v55  ;;  %v3463_v35 = vor.u32 %v3462_v14, %v3279_v4  ;;  %v3134_v39 = vmax.f32 %v3026_v3, 0.0  ;;  %v7013_v58 = vpop.f32.mrb[152].mxu0  ;;  %3571 = vst [vmem:[#allocation2 + $0x58] sm:$0x80] %v3570_v29  ;;  %6602 = vmatpush3.bf16.msra.mxu1 %v7606_v63  ;;  %v3530_v29 = vld [vmem:[#allocation2 + $0xe8] sm:$0xff] }
 0x27e   : > { %v3135_v50 = vmax.f32 %v3027_v12, 0.0  ;;  %v3277_v10 = vor.u32 %v3275_v45, %v3274_v8  ;;  %v3461_v42 = vor.u32 %v3460_v33, %v3272_v53  ;;  %v2920_v7 = vadd.f32 %v7013_v58, %v9207_v43  ;;  %v2911_v5 = vpop.f32.mrb[153].mxu0  ;;  %6603 = vmatprep.subr.bf16.mxu1 %v7607_v16  ;;  %v7610_v12 = vld [vmem:[#allocation5 + $0xd8] sm:$0xff]   ;;  %v3400_v58 = vld [vmem:[#allocation2 + $0xc0] sm:$0xff] }
 0x27f   : > { %v9439_v22 = vpack.c.bf16 %v3137_v54, %v3136_v15  ;;  %v9446_v4 = vsel %vm9309_vm7, %v3284_v41, %v3397_v57  ;;  %v3525_v30 = vsel %vm9316_vm8, %v3463_v35, %v3524_v11  ;;  %v2912_v18 = vadd.f32 %v2911_v5, %v9187_v59  ;;  %v7014_v37 = vpop.f32.mrb[154].mxu0  ;;  %v3403_v59 = vld [vmem:[#allocation2 + $0xd8] sm:$0xff]  ;;  %v3572_v33 = vld [vmem:[#allocation2 + $0x70] sm:$0x80]  ;;  %v3575_v54 = vld [vmem:[#allocation2 + $0x88] sm:$0x80] }
 0x280   : > { %v9450_v3 = vpack.c.bf16 %v3135_v50, %v3134_v39  ;;  %3526 = vst [vmem:[#allocation2 + $0xb8] sm:$0xff] %v3525_v30  ;;  %3399 = vst [vmem:[#allocation2 + $0xa8] sm:$0xff] %v9446_v4  ;;  %v9456_v43 = vsel %vm9309_vm7, %v3277_v10, %v3394_v27  ;;  %v3522_v63 = vsel %vm9316_vm8, %v3461_v42, %v3521_v6  ;;  %v2914_v38 = vpop.f32.mrb[155].mxu0  ;;  %v3573_v5 = vsel %vm9350_vm11, 0, %v3572_v33  ;;  %v10293_v33 = vld [vmem:[#allocation11_spill] sm:$0xff] }
 0x281   : > { %v3293_v53 = vshrl.u32 %v9439_v22, 16  ;;  %v3296_v45 = vshll.u32 %v9439_v22, 16  ;;  %3439 = vst [vmem:[#allocation2 + $0xe0] sm:$0xff] %v9439_v22  ;;  %v3633_v16 = vld [vmem:[#allocation2 + $0x40] sm:$0xff]  ;;  %3962 = vmatmul.mubr.bf16.gmra.mrb[184].mxu0 %v9407_v26  ;;  %3523 = vst [vmem:[#allocation2 + $0xa0] sm:$0xff] %v3522_v63  ;;  %v3032_v14 = vadd.f32 %v2920_v7, %v9210_v0  ;;  %v3030_v15 = vadd.f32 %v2912_v18, %v9214_v46  ;;  %v9485_v18 = vld [vmem:[#allocation2 + $0x110] sm:$0xff] }
 0x282   : > { %3396 = vst [vmem:[#allocation2 + $0x90] sm:$0xff] %v9456_v43  ;;  %v3286_v55 = vshrl.u32 %v9450_v3, 16  ;;  %v3289_v57 = vshll.u32 %v9450_v3, 16  ;;  %3438 = vst [vmem:[#allocation2 + $0xc8] sm:$0xff] %v9450_v3  ;;  %7047 = vmatprep.mubr.bf16.mxu1 %v3633_v16  ;;  %6604 = vmatpush3.bf16.msra.mxu1 %v7608_v47  ;;  %v2923_v26 = vadd.f32 %v7014_v37, %v9217_v56  ;;  %v7611_v46 = vld [vmem:[#allocation5 + $0x120] sm:$0xff]   ;;  %v3527_v47 = vld [vmem:[#allocation2 + $0xd0] sm:$0xff] }
 0x283   : > { %v3295_v11 = vrot.slane %v3293_v53, 7  ;;  %v3466_v8 = vrot.slane %v3296_v45, 1  ;;  %v2915_v27 = vadd.f32 %v2914_v38, %v9197_v62  ;;  %3969 = vmatprep.mubr.bf16.mxu0 %v9362_v23  ;;  %6605 = vmatprep.subr.bf16.mxu1 %v7609_v36  ;;  %v3140_v0 = vmax.f32 %v3032_v14, 0.0  ;;  %10292 = vst [vmem:[#allocation28_spill] sm:$0xff] %v9485_v18  ;;  %3574 = vst [vmem:[#allocation2 + $0x70] sm:$0x80] %v3573_v5 }
 0x284   : > { %v3288_v41 = vrot.slane %v3286_v55, 7  ;;  %v3464_v35 = vrot.slane %v3289_v57, 1  ;;  %v3138_v6 = vmax.f32 %v3030_v15, 0.0  ;;  %v3033_v10 = vadd.f32 %v2923_v26, %v9220_v52  ;;  %v3636_v62 = vld [vmem:[#allocation2 + $0x58] sm:$0xff]  ;;  %v7613_v15 = vld [vmem:[#allocation5 + $0x128] sm:$0xff]  }
 0x285   : > { %v3298_v39 = vor.u32 %v3296_v45, %v3295_v11  ;;  %v3467_v50 = vor.u32 %v3466_v8, %v3293_v53  ;;  %v3031_v56 = vadd.f32 %v2915_v27, %v9223_v21  ;;  %7048 = vmatmul.mubr.bf16.gmra.mrb[160].mxu1 %v3636_v62  ;;  %v7017_v23 = vpop.f32.mrb[156].mxu0  ;;  %v3576_v36 = vsel %vm9350_vm11, 0, %v3575_v54  ;;  %v7612_v53 = vld [vmem:[#allocation5 + $0xe0] sm:$0xff]   ;;  %v9494_v16 = vld [vmem:[#allocation2 + $0xf8] sm:$0xff] }
 0x286   : > { %v3291_v42 = vor.u32 %v3289_v57, %v3288_v41  ;;  %v3465_v7 = vor.u32 %v3464_v35, %v3286_v55  ;;  %v3141_v21 = vmax.f32 %v3033_v10, 0.0  ;;  %v2927_v63 = vpop.f32.mrb[157].mxu0  ;;  %3577 = vst [vmem:[#allocation2 + $0x88] sm:$0x80] %v3576_v36  ;;  %6606 = vmatpush3.bf16.msra.mxu1 %v7610_v12 }
 0x287   : > { %v9481_v30 = vsel %vm9309_vm7, %v3298_v39, %v3403_v59  ;;  %v3531_v52 = vsel %vm9316_vm8, %v3467_v50, %v3530_v29  ;;  %v3139_v37 = vmax.f32 %v3031_v56, 0.0  ;;  %v2936_v59 = vadd.f32 %v7017_v23, %v9247_v60  ;;  %v7018_v57 = vpop.f32.mrb[158].mxu0  ;;  %v3581_v14 = vld [vmem:[#allocation2 + $0xb8] sm:$0x80]  ;;  %6607 = vmatprep.subr.bf16.mxu1 %v7611_v46  ;;  %v10294_v29 = vld [vmem:[#allocation12_spill] sm:$0xff]  ;;  %v3406_v39 = vld [vmem:[#allocation2 + $0xf0] sm:$0xff] }
 0x288   : > { %3532 = vst [vmem:[#allocation2 + $0xe8] sm:$0xff] %v3531_v52  ;;  %3405 = vst [vmem:[#allocation2 + $0xd8] sm:$0xff] %v9481_v30  ;;  %v9490_v45 = vsel %vm9309_vm7, %v3291_v42, %v3400_v58  ;;  %v3528_v38 = vsel %vm9316_vm8, %v3465_v7, %v3527_v47  ;;  %v2928_v55 = vadd.f32 %v2927_v63, %v9227_v28  ;;  %v2930_v26 = vpop.f32.mrb[159].mxu0  ;;  %v3578_v27 = vld [vmem:[#allocation2 + $0xa0] sm:$0x80]  ;;  %v3582_v60 = vsel %vm9350_vm11, 0, %v3581_v14 }
 0x289   : > { %3529 = vst [vmem:[#allocation2 + $0xd0] sm:$0xff] %v3528_v38  ;;  %3402 = vst [vmem:[#allocation2 + $0xc0] sm:$0xff] %v9490_v45  ;;  %v9499_v12 = vpack.c.bf16 %v3141_v21, %v3140_v0  ;;  %v9501_v11 = vpack.c.bf16 %v3139_v37, %v3138_v6  ;;  %v2939_v8 = vadd.f32 %v7018_v57, %v9257_v49  ;;  %3970 = vmatmul.mubr.bf16.gmra.mrb[188].mxu0 %v9397_v61  ;;  %v3409_v6 = vld [vmem:[#allocation2 + $0x108] sm:$0xff]  ;;  %v3536_v46 = vld [vmem:[#allocation2 + $0x118] sm:$0xff] }
 0x28a   : > { %v3036_v28 = vadd.f32 %v2936_v59, %v9230_v19  ;;  %v3034_v54 = vadd.f32 %v2928_v55, %v10293_v33  ;;  %v2931_v41 = vadd.f32 %v2930_v26, %v10294_v29  ;;  %v3579_v35 = vsel %vm9350_vm11, 0, %v3578_v27  ;;  %3583 = vst [vmem:[#allocation2 + $0xb8] sm:$0x80] %v3582_v60  ;;  %3977 = vmatprep.mubr.bf16.mxu0 %v9417_v32  ;;  %v10295_v50 = vld [vmem:[#allocation17_spill] sm:$0xff]  ;;  %v10296_v32 = vld [vmem:[#allocation14_spill] sm:$0xff]  ;;  %v3533_v7 = vld [vmem:[#allocation2 + $0x100] sm:$0xff] }
 0x28b   : > { %v3307_v49 = vshrl.u32 %v9499_v12, 16  ;;  %v3310_v0 = vshll.u32 %v9499_v12, 16  ;;  %3441 = vst [vmem:[#allocation2 + $0x110] sm:$0xff] %v9499_v12  ;;  %v3300_v61 = vshrl.u32 %v9501_v11, 16  ;;  %v3303_v19 = vshll.u32 %v9501_v11, 16  ;;  %3440 = vst [vmem:[#allocation2 + $0xf8] sm:$0xff] %v9501_v11  ;;  %6608 = vmatpush3.bf16.msra.mxu1 %v7612_v53 }
 0x28c   : > { %3580 = vst [vmem:[#allocation2 + $0xa0] sm:$0x80] %v3579_v35  ;;  %v3037_v58 = vadd.f32 %v2939_v8, %v10295_v50  ;;  %v3035_v47 = vadd.f32 %v2931_v41, %v10296_v32  ;;  %6609 = vmatprep.subr.bf16.mxu1 %v7613_v15  ;;  %v7614_v23 = vld [vmem:[#allocation5 + $0xe8] sm:$0xff]   ;;  %v3144_v5 = vmax.f32 %v3036_v28, 0.0  ;;  %v3142_v36 = vmax.f32 %v3034_v54, 0.0  ;;  %v9521_v37 = vld [vmem:[#allocation2 + $0x70] sm:$0xff] }
 0x28d   : > { %v3309_v10 = vrot.slane %v3307_v49, 7  ;;  %v3470_v56 = vrot.slane %v3310_v0, 1  ;;  %v3302_v62 = vrot.slane %v3300_v61, 7  ;;  %v3468_v42 = vrot.slane %v3303_v19, 1  ;;  %v7021_v63 = vpop.f32.mrb[160].mxu0  ;;  %v9523_v57 = vld [vmem:[#allocation2 + $0x140] sm:$0xff]  ;;  %7051 = vmatprep.mubr.bf16.mxu1 %v9521_v37 }
 0x28e   : > { %v3145_v52 = vmax.f32 %v3037_v58, 0.0  ;;  %v3143_v21 = vmax.f32 %v3035_v47, 0.0  ;;  %10297 = vst [vmem:[#allocation29_spill] sm:$0xff] %v9523_v57  ;;  %v9525_v14 = vld [vmem:[#allocation2 + $0x128] sm:$0xff]  ;;  %v2943_v8 = vpop.f32.mrb[161].mxu0  ;;  %v10299_v60 = vld [vmem:[#allocation22_spill] sm:$0xff] }
 0x28f   : > { %v3312_v53 = vor.u32 %v3310_v0, %v3309_v10  ;;  %v3471_v38 = vor.u32 %v3470_v56, %v3307_v49  ;;  %v3305_v59 = vor.u32 %v3303_v19, %v3302_v62  ;;  %v3469_v55 = vor.u32 %v3468_v42, %v3300_v61  ;;  %10298 = vst [vmem:[#allocation34_spill] sm:$0xff] %v9525_v14  ;;  %v9528_v15 = vld [vmem:[#allocation2 + $0x88] sm:$0xff]  ;;  %v10300_v33 = vld [vmem:[#allocation19_spill] sm:$0xff]  ;;  %v7022_v29 = vpop.f32.mrb[162].mxu0  ;;  %v7615_v41 = vld [vmem:[#allocation5 + $0x130] sm:$0xff]  }
 0x290   : > { %v9530_v26 = vpack.c.bf16 %v3145_v52, %v3144_v5  ;;  %v9532_v27 = vpack.c.bf16 %v3143_v21, %v3142_v36  ;;  %7052 = vmatmul.mubr.bf16.gmra.mrb[164].mxu1 %v9528_v15  ;;  %v2952_v28 = vadd.f32 %v7021_v63, %v10299_v60  ;;  %v2944_v54 = vadd.f32 %v2943_v8, %v10300_v33  ;;  %v2946_v19 = vpop.f32.mrb[163].mxu0  ;;  %v3415_v32 = vld [vmem:[#allocation2 + $0x138] sm:$0xff]  ;;  %v10301_v47 = vld [vmem:[#allocation15_spill] sm:$0xff]  ;;  %v10304_v5 = vld [vmem:[#allocation20_spill] sm:$0xff] }
 0x291   : > { %v9539_v35 = vsel %vm9309_vm7, %v3312_v53, %v3409_v6  ;;  %v3537_v49 = vsel %vm9316_vm8, %v3471_v38, %v3536_v46  ;;  %v9545_v0 = vsel %vm9309_vm7, %v3305_v59, %v3406_v39  ;;  %v3534_v61 = vsel %vm9316_vm8, %v3469_v55, %v3533_v7  ;;  %3978 = vmatmul.mubr.bf16.gmra.mrb[192].mxu0 %v9456_v43  ;;  %v7616_v43 = vld [vmem:[#allocation5 + $0xf0] sm:$0xff]   ;;  %v10302_v56 = vld [vmem:[#allocation18_spill] sm:$0xff]  ;;  %v10303_v42 = vld [vmem:[#allocation31_spill] sm:$0xff] }
 0x292   : > { %3538 = vst [vmem:[#allocation2 + $0x118] sm:$0xff] %v3537_v49  ;;  %3411 = vst [vmem:[#allocation2 + $0x108] sm:$0xff] %v9539_v35  ;;  %v3321_v6 = vshrl.u32 %v9530_v26, 16  ;;  %v3324_v46 = vshll.u32 %v9530_v26, 16  ;;  %v3314_v39 = vshrl.u32 %v9532_v27, 16  ;;  %v3317_v50 = vshll.u32 %v9532_v27, 16  ;;  %3985 = vmatprep.mubr.bf16.mxu0 %v9411_v2  ;;  %6610 = vmatpush3.bf16.msra.mxu1 %v7614_v23 }
 0x293   : > { %3535 = vst [vmem:[#allocation2 + $0x100] sm:$0xff] %v3534_v61  ;;  %3408 = vst [vmem:[#allocation2 + $0xf0] sm:$0xff] %v9545_v0  ;;  %v9558_v58 = vld [vmem:[#allocation2 + $0xa0] sm:$0xff]  ;;  %v3040_v10 = vadd.f32 %v2952_v28, %v10301_v47  ;;  %v3038_v62 = vadd.f32 %v2944_v54, %v10302_v56  ;;  %v2955_v7 = vadd.f32 %v7022_v29, %v10303_v42  ;;  %v7617_v52 = vld [vmem:[#allocation5 + $0x138] sm:$0xff]   ;;  %6611 = vmatprep.subr.bf16.mxu1 %v7615_v41 }
 0x294   : > { %3443 = vst [vmem:[#allocation2 + $0x140] sm:$0xff] %v9530_v26  ;;  %3442 = vst [vmem:[#allocation2 + $0x128] sm:$0xff] %v9532_v27  ;;  %v2947_v36 = vadd.f32 %v2946_v19, %v10304_v5  ;;  %7055 = vmatprep.mubr.bf16.mxu1 %v9558_v58  ;;  %v3323_v21 = vrot.slane %v3321_v6, 7  ;;  %v3474_v63 = vrot.slane %v3324_v46, 1  ;;  %v3316_v53 = vrot.slane %v3314_v39, 7  ;;  %v3542_v2 = vld [vmem:[#allocation2 + $0x148] sm:$0xff] }
 0x295   : > { %v3472_v38 = vrot.slane %v3317_v50, 1  ;;  %v3584_v59 = vld [vmem:[#allocation2 + $0xd0] sm:$0x80]  ;;  %v3412_v23 = vld [vmem:[#allocation2 + $0x120] sm:$0xff]  ;;  %v3148_v8 = vmax.f32 %v3040_v10, 0.0  ;;  %v3146_v60 = vmax.f32 %v3038_v62, 0.0 }
 0x296   : > { %v3539_v55 = vld [vmem:[#allocation2 + $0x130] sm:$0xff]  ;;  %v10305_v28 = vld [vmem:[#allocation16_spill] sm:$0xff]  ;;  %v10306_v54 = vld [vmem:[#allocation23_spill] sm:$0xff]  ;;  %v3326_v49 = vor.u32 %v3324_v46, %v3323_v21  ;;  %v3475_v61 = vor.u32 %v3474_v63, %v3321_v6  ;;  %v3319_v19 = vor.u32 %v3317_v50, %v3316_v53  ;;  %v7025_v56 = vpop.f32.mrb[164].mxu0  ;;  %6612 = vmatpush3.bf16.msra.mxu1 %v7616_v43  ;;  %v3585_v62 = vsel %vm9350_vm11, 0, %v3584_v59 }
 0x297   : > { %v3041_v33 = vadd.f32 %v2955_v7, %v10305_v28  ;;  %v3039_v29 = vadd.f32 %v2947_v36, %v10306_v54  ;;  %v3473_v47 = vor.u32 %v3472_v38, %v3314_v39  ;;  %v3587_v42 = vld [vmem:[#allocation2 + $0xe8] sm:$0x80]  ;;  %v7618_v5 = vld [vmem:[#allocation5 + $0xf8] sm:$0xff]   ;;  %v2968_v18 = vadd.f32 %v7025_v56, %v9335_v13  ;;  %v2959_v10 = vpop.f32.mrb[165].mxu0  ;;  %6613 = vmatprep.subr.bf16.mxu1 %v7617_v52  ;;  %v9573_v7 = vld [vmem:[#allocation5 + $0x140] sm:$0xff]  }
 0x298   : > { %v9568_v41 = vld [vmem:[#allocation2 + $0xb8] sm:$0xff]  ;;  %v9577_v6 = vsel %vm9309_vm7, %v3326_v49, %v3415_v32  ;;  %v3543_v46 = vsel %vm9316_vm8, %v3475_v61, %v3542_v2  ;;  %v9583_v39 = vsel %vm9309_vm7, %v3319_v19, %v3412_v23  ;;  %v9587_v50 = vld [vmem:[#allocation2 + $0x170] sm:$0xff]  ;;  %v7026_v36 = vpop.f32.mrb[166].mxu0  ;;  %3586 = vst [vmem:[#allocation2 + $0xd0] sm:$0x80] %v3585_v62  ;;  %v10307_v21 = vld [vmem:[#allocation24_spill] sm:$0xff] }
 0x299   : > { %v3149_v57 = vmax.f32 %v3041_v33, 0.0  ;;  %v3147_v14 = vmax.f32 %v3039_v29, 0.0  ;;  %v3540_v13 = vsel %vm9316_vm8, %v3473_v47, %v3539_v55  ;;  %v9589_v43 = vld [vmem:[#allocation2 + $0x158] sm:$0xff]  ;;  %7056 = vmatmul.mubr.bf16.gmra.mrb[168].mxu1 %v9568_v41  ;;  %3544 = vst [vmem:[#allocation2 + $0x148] sm:$0xff] %v3543_v46  ;;  %3417 = vst [vmem:[#allocation2 + $0x138] sm:$0xff] %v9577_v6  ;;  %v3044_v63 = vadd.f32 %v2968_v18, %v10307_v21  ;;  %v10308_v53 = vld [vmem:[#allocation27_spill] sm:$0xff] }
 0x29a   : > { %3541 = vst [vmem:[#allocation2 + $0x130] sm:$0xff] %v3540_v13  ;;  %3414 = vst [vmem:[#allocation2 + $0x120] sm:$0xff] %v9583_v39  ;;  %v2960_v38 = vadd.f32 %v2959_v10, %v10308_v53  ;;  %v2962_v59 = vpop.f32.mrb[167].mxu0  ;;  %v3590_v2 = vld [vmem:[#allocation2 + $0x100] sm:$0x80]  ;;  %3986 = vmatmul.mubr.bf16.gmra.mrb[196].mxu0 %v9446_v4  ;;  %v2971_v23 = vadd.f32 %v7026_v36, %v9344_v20  ;;  %v10309_v55 = vld [vmem:[#allocation32_spill] sm:$0xff]  ;;  %6614 = vmatpush3.bf16.msra.mxu1 %v7618_v5 }
 0x29b   : > { %v9594_v32 = vpack.c.bf16 %v3149_v57, %v3148_v8  ;;  %v9596_v52 = vpack.c.bf16 %v3147_v14, %v3146_v60  ;;  %v2963_v28 = vadd.f32 %v2962_v59, %v10309_v55  ;;  %v3588_v33 = vsel %vm9350_vm11, 0, %v3587_v42  ;;  %3993 = vmatprep.mubr.bf16.mxu0 %v9450_v3  ;;  %v3593_v8 = vld [vmem:[#allocation2 + $0x118] sm:$0x80]  ;;  %7075 = vmatprep.subr.bf16.mxu1 %v9573_v7  ;;  %v10310_v3 = vld [vmem:[#allocation25_spill] sm:$0xff]  ;;  %v3421_v56 = vld [vmem:[#allocation2 + $0x168] sm:$0xff] }
 0x29c   : > { %v3591_v57 = vsel %vm9350_vm11, 0, %v3590_v2  ;;  %3589 = vst [vmem:[#allocation2 + $0xe8] sm:$0x80] %v3588_v33  ;;  %v3152_v60 = vmax.f32 %v3044_v63, 0.0  ;;  %v3042_v54 = vadd.f32 %v2960_v38, %v10310_v3  ;;  %v10311_v29 = vld [vmem:[#allocation21_spill] sm:$0xff]  ;;  %v10312_v61 = vld [vmem:[#allocation26_spill] sm:$0xff] }
 0x29d   : > { %v3335_v18 = vshrl.u32 %v9594_v32, 16  ;;  %v3338_v14 = vshll.u32 %v9594_v32, 16  ;;  %3445 = vst [vmem:[#allocation2 + $0x170] sm:$0xff] %v9594_v32  ;;  %v3328_v4 = vshrl.u32 %v9596_v52, 16  ;;  %v3331_v20 = vshll.u32 %v9596_v52, 16  ;;  %3444 = vst [vmem:[#allocation2 + $0x158] sm:$0xff] %v9596_v52 }
 0x29e   : > { %3592 = vst [vmem:[#allocation2 + $0x100] sm:$0x80] %v3591_v57  ;;  %v3045_v49 = vadd.f32 %v2971_v23, %v10311_v29  ;;  %v3043_v19 = vadd.f32 %v2963_v28, %v10312_v61  ;;  %v3548_v5 = vld [vmem:[#allocation2 + $0x178] sm:$0xff]  ;;  %v3418_v46 = vld [vmem:[#allocation2 + $0x150] sm:$0xff]  ;;  %v3545_v13 = vld [vmem:[#allocation2 + $0x160] sm:$0xff]  ;;  %v3150_v36 = vmax.f32 %v3042_v54, 0.0 }
 0x29f   : > { %v3337_v47 = vrot.slane %v3335_v18, 7  ;;  %v3478_v42 = vrot.slane %v3338_v14, 1  ;;  %v3330_v10 = vrot.slane %v3328_v4, 7  ;;  %v3476_v62 = vrot.slane %v3331_v20, 1  ;;  %v9620_v55 = vld [vmem:[#allocation2 + $0x188] sm:$0xff]  ;;  %v9622_v28 = vld [vmem:[#allocation2 + $0xd0] sm:$0xff] }
 0x2a0   : > { %v3153_v21 = vmax.f32 %v3045_v49, 0.0  ;;  %v3151_v53 = vmax.f32 %v3043_v19, 0.0  ;;  %v3594_v63 = vsel %vm9350_vm11, 0, %v3593_v8  ;;  %7059 = vmatprep.mubr.bf16.mxu1 %v9622_v28  ;;  %v3599_v54 = vld [vmem:[#allocation2 + $0x148] sm:$0x80] }
 0x2a1   : > { %v3340_v59 = vor.u32 %v3338_v14, %v3337_v47  ;;  %v3479_v38 = vor.u32 %v3478_v42, %v3335_v18  ;;  %v3333_v2 = vor.u32 %v3331_v20, %v3330_v10  ;;  %v3477_v23 = vor.u32 %v3476_v62, %v3328_v4  ;;  %3595 = vst [vmem:[#allocation2 + $0x118] sm:$0x80] %v3594_v63  ;;  %v3596_v3 = vld [vmem:[#allocation2 + $0x130] sm:$0x80]  ;;  %v3554_v10 = vld [vmem:[#allocation2 + $0x1a8] sm:$0xff]  ;;  %v3424_v62 = vld [vmem:[#allocation2 + $0x180] sm:$0xff] }
 0x2a2   : > { %v3171_v33 = vpack.c.bf16 %v3153_v21, %v3152_v60  ;;  %v9624_v57 = vpack.c.bf16 %v3151_v53, %v3150_v36  ;;  %3994 = vmatmul.mubr.bf16.gmra.mrb[200].mxu0 %v9490_v45  ;;  %v3597_v45 = vsel %vm9350_vm11, 0, %v3596_v3  ;;  %v3600_v19 = vsel %vm9350_vm11, 0, %v3599_v54 }
 0x2a3   : > { %v9629_v29 = vsel %vm9309_vm7, %v3340_v59, %v3421_v56  ;;  %v3549_v18 = vsel %vm9316_vm8, %v3479_v38, %v3548_v5  ;;  %v9635_v14 = vsel %vm9309_vm7, %v3333_v2, %v3418_v46  ;;  %v3546_v4 = vsel %vm9316_vm8, %v3477_v23, %v3545_v13  ;;  %v9645_v49 = vld [vmem:[#allocation2 + $0xe8] sm:$0xff]  ;;  %4001 = vmatprep.mubr.bf16.mxu0 %v9439_v22  ;;  %v3551_v46 = vld [vmem:[#allocation2 + $0x190] sm:$0xff] }
 0x2a4   : > { %3550 = vst [vmem:[#allocation2 + $0x178] sm:$0xff] %v3549_v18  ;;  %3423 = vst [vmem:[#allocation2 + $0x168] sm:$0xff] %v9629_v29  ;;  %v3352_v20 = vshll.u32 %v3171_v33, 16  ;;  %v3342_v8 = vshrl.u32 %v9624_v57, 16  ;;  %v3345_v60 = vshll.u32 %v9624_v57, 16  ;;  %7060 = vmatmul.mubr.bf16.gmra.mrb[172].mxu1 %v9645_v49  ;;  %v3349_v47 = vshrl.u32 %v3171_v33, 16 }
 0x2a5   : > { %3547 = vst [vmem:[#allocation2 + $0x160] sm:$0xff] %v3546_v4  ;;  %3420 = vst [vmem:[#allocation2 + $0x150] sm:$0xff] %v9635_v14  ;;  %v9647_v61 = vld [vmem:[#allocation2 + $0x100] sm:$0xff] }
 0x2a6   : > { %3446 = vst [vmem:[#allocation2 + $0x188] sm:$0xff] %v9624_v57  ;;  %v3482_v56 = vrot.slane %v3352_v20, 1  ;;  %v3344_v42 = vrot.slane %v3342_v8, 7  ;;  %v3480_v5 = vrot.slane %v3345_v60, 1  ;;  %7063 = vmatprep.mubr.bf16.mxu1 %v9647_v61  ;;  %3598 = vst [vmem:[#allocation2 + $0x130] sm:$0x80] %v3597_v45 }
 0x2a7   : > { %3601 = vst [vmem:[#allocation2 + $0x148] sm:$0x80] %v3600_v19  ;;  %v4284_v20 = vld [vmem:[#allocation2 + $0x20] sm:$0xff]  ;;  %v4287_v45 = vld [vmem:[#allocation2 + $0x38] sm:$0xff] }
 0x2a8   : > { %v3483_v22 = vor.u32 %v3482_v56, %v3349_v47  ;;  %v3347_v13 = vor.u32 %v3345_v60, %v3344_v42  ;;  %v3481_v36 = vor.u32 %v3480_v5, %v3342_v8  ;;  %v9666_v2 = vld [vmem:[#allocation2 + $0x118] sm:$0xff]  ;;  %v7624_v8 = vld [vmem:[#allocation5 + $0x148] sm:$0xff]   ;;  %v7627_v47 = vld [vmem:[#allocation5 + $0x150] sm:$0xff]  }
 0x2a9   : > { %v4283_v60 = vld [vmem:[#allocation2 + $0x18] sm:$0xff]  ;;  %v4286_v42 = vld [vmem:[#allocation2 + $0x30] sm:$0xff] }
 0x2aa   : > { %v3555_v21 = vsel %vm9316_vm8, %v3483_v22, %v3554_v10  ;;  %v9660_v53 = vsel %vm9309_vm7, %v3347_v13, %v3424_v62  ;;  %v3552_v63 = vsel %vm9316_vm8, %v3481_v36, %v3551_v46  ;;  %4002 = vmatmul.mubr.bf16.gmra.mrb[204].mxu0 %v9481_v30  ;;  %v7636_v56 = vld [vmem:[#allocation5 + $0x158] sm:$0xff]   ;;  %v4290_v5 = vld [vmem:[#allocation2 + $0x50] sm:$0xff]  ;;  %v7640_v46 = vld [vmem:[#allocation5 + $0x168] sm:$0xff]  }
 0x2ab   : > { %3556 = vst [vmem:[#allocation2 + $0x1a8] sm:$0xff] %v3555_v21  ;;  %3553 = vst [vmem:[#allocation2 + $0x190] sm:$0xff] %v3552_v63  ;;  %v3605_v38 = vld [vmem:[#allocation2 + $0x178] sm:$0x80]  ;;  %4009 = vmatprep.mubr.bf16.mxu0 %v9501_v11  ;;  %v4289_v22 = vld [vmem:[#allocation2 + $0x48] sm:$0xff] }
 0x2ac   : > { %3426 = vst [vmem:[#allocation2 + $0x180] sm:$0xff] %v9660_v53  ;;  %v3602_v59 = vld [vmem:[#allocation2 + $0x160] sm:$0x80]  ;;  %v3606_v17 = vsel %vm9350_vm11, 0, %v3605_v38  ;;  %7064 = vmatmul.mubr.bf16.gmra.mrb[176].mxu1 %v9666_v2  ;;  %v4293_v13 = vld [vmem:[#allocation2 + $0x68] sm:$0xff]  ;;  %v7641_v36 = vld [vmem:[#allocation5 + $0x170] sm:$0xff]  }
 0x2ad   : > { %v3603_v23 = vsel %vm9350_vm11, 0, %v3602_v59  ;;  %v9674_v25 = vld [vmem:[#allocation2 + $0x130] sm:$0xff]  ;;  %3607 = vst [vmem:[#allocation2 + $0x178] sm:$0x80] %v3606_v17  ;;  %v7642_v21 = vld [vmem:[#allocation5 + $0x178] sm:$0xff]   ;;  %v4292_v63 = vld [vmem:[#allocation2 + $0x60] sm:$0xff] }
 0x2ae   : > { %3604 = vst [vmem:[#allocation2 + $0x160] sm:$0x80] %v3603_v23  ;;  %7067 = vmatprep.mubr.bf16.mxu1 %v9674_v25  ;;  %v9682_v18 = vld [vmem:[#allocation2 + $0x148] sm:$0xff]  ;;  %v4296_v59 = vld [vmem:[#allocation2 + $0x80] sm:$0xff]  ;;  %v4295_v23 = vld [vmem:[#allocation2 + $0x78] sm:$0xff] }
 0x2af   : > { %v9707_v38 = vld [vmem:[#allocation5 + $0x200] sm:$0xff]   ;;  %v4299_v17 = vld [vmem:[#allocation2 + $0x98] sm:$0xff] }
 0x2b2   : > { %v3611_v33 = vld [vmem:[#allocation2 + $0x1a8] sm:$0x80]  ;;  %v3608_v30 = vld [vmem:[#allocation2 + $0x190] sm:$0x80]  ;;  %4010 = vmatmul.mubr.bf16.gmra.mrb[208].mxu0 %v9545_v0 }
 0x2b3   : > { %v3612_v3 = vsel %vm9350_vm11, 0, %v3611_v33  ;;  %v3609_v54 = vsel %vm9350_vm11, 0, %v3608_v30  ;;  %4017 = vmatprep.mubr.bf16.mxu0 %v9499_v12  ;;  %v6479_v12 = vpop.f32.mrb[168].mxu0  ;;  %v4298_v33 = vld [vmem:[#allocation2 + $0x90] sm:$0xff] }
 0x2b4   : > { %3613 = vst [vmem:[#allocation2 + $0x1a8] sm:$0x80] %v3612_v3  ;;  %3610 = vst [vmem:[#allocation2 + $0x190] sm:$0x80] %v3609_v54  ;;  %7068 = vmatmul.mubr.bf16.gmra.mrb[180].mxu1 %v9682_v18  ;;  %v9691_v48 = vld [vmem:[#allocation2 + $0x178] sm:$0xff]  ;;  %v4302_v30 = vld [vmem:[#allocation2 + $0xb0] sm:$0xff] }
 0x2b5   : > { %v9684_v4 = vld [vmem:[#allocation2 + $0x160] sm:$0xff]  ;;  %3624 = vst [vmem:[#allocation2 + $0x1a8] sm:$0xff] %v9388_v44  ;;  %v6480_v44 = vpop.f32.mrb[169].mxu0  ;;  %v4301_v3 = vld [vmem:[#allocation2 + $0xa8] sm:$0xff] }
 0x2b6   : > { %7071 = vmatprep.mubr.bf16.mxu1 %v9684_v4  ;;  %v6482_v19 = vpop.f32.mrb[170].mxu0  ;;  %v9700_v10 = vadd.f32 %v6480_v44, %v6479_v12  ;;  %v4305_v54 = vld [vmem:[#allocation2 + $0xc8] sm:$0xff]  ;;  %v4307_v12 = vld [vmem:[#allocation2 + $0xd8] sm:$0xff] }
 0x2b7   : > { %v4313_v44 = vld [vmem:[#allocation2 + $0x108] sm:$0xff] }
 0x2ba   : > { %4018 = vmatmul.mubr.bf16.gmra.mrb[212].mxu0 %v9539_v35  ;;  %v6483_v35 = vpop.f32.mrb[171].mxu0 }
 0x2bb   : > { %4025 = vmatprep.mubr.bf16.mxu0 %v9532_v27  ;;  %v9702_v62 = vadd.f32 %v6483_v35, %v6482_v19 }
 0x2bc   : > { %7072 = vmatmul.mubr.bf16.gmra.mrb[184].mxu1 %v9691_v48 }
 0x2bd   : > { %4588 = vmatprep.mubr.bf16.mxu1 %v4284_v20  ;;  %v4304_v20 = vld [vmem:[#allocation2 + $0xc0] sm:$0xff] }
 0x2c2   : > { %4026 = vmatmul.mubr.bf16.gmra.mrb[216].mxu0 %v9583_v39 }
 0x2c3   : > { %4033 = vmatprep.mubr.bf16.mxu0 %v9530_v26 }
 0x2c4   : > { %4589 = vmatmul.mubr.bf16.vlgmr.msra.gmra.mrb[188].mxu1 %v4283_v60  ;;  %v4314_v60 = vld [vmem:[#allocation2 + $0x110] sm:$0xff] }
 0x2c5   : > { %4596 = vmatprep.mubr.bf16.mxu1 %v4287_v45  ;;  %7076 = vmatpush3.bf16.msra.mxu1 %v9573_v7  ;;  %v7639_v7 = vld [vmem:[#allocation5 + $0x160] sm:$0xff]  }
 0x2c6   : > { %7077 = vmatprep.subr.bf16.mxu1 %v7624_v8 }
 0x2c9   : > { %7078 = vmatpush3.bf16.msra.mxu1 %v7624_v8  ;;  %v4308_v8 = vld [vmem:[#allocation2 + $0xe0] sm:$0xff] }
 0x2ca   : > { %4034 = vmatmul.mubr.bf16.gmra.mrb[220].mxu0 %v9577_v6  ;;  %7079 = vmatprep.subr.bf16.mxu1 %v7627_v47 }
 0x2cb   : > { %4041 = vmatprep.mubr.bf16.mxu0 %v9596_v52 }
 0x2cc   : > { %4597 = vmatmul.mubr.bf16.gmra.mrb[192].mxu1 %v4286_v42 }
 0x2cd   : > { %4604 = vmatprep.mubr.bf16.mxu1 %v4290_v5  ;;  %7080 = vmatpush3.bf16.msra.mxu1 %v7627_v47 }
 0x2ce   : > { %7081 = vmatprep.subr.bf16.mxu1 %v7636_v56 }
 0x2d1   : > { %7082 = vmatpush3.bf16.msra.mxu1 %v7636_v56 }
 0x2d2   : > { %4042 = vmatmul.mubr.bf16.gmra.mrb[224].mxu0 %v9635_v14  ;;  %7083 = vmatprep.subr.bf16.mxu1 %v7639_v7 }
 0x2d3   : > { %4049 = vmatprep.mubr.bf16.mxu0 %v9594_v32 }
 0x2d4   : > { %4605 = vmatmul.mubr.bf16.gmra.mrb[196].mxu1 %v4289_v22 }
 0x2d5   : > { %4612 = vmatprep.mubr.bf16.mxu1 %v4293_v13  ;;  %7084 = vmatpush3.bf16.msra.mxu1 %v7639_v7  ;;  %v7645_v7 = vld [vmem:[#allocation5 + $0x210] sm:$0xff]  }
 0x2d6   : > { %7085 = vmatprep.subr.bf16.mxu1 %v7640_v46 }
 0x2d9   : > { %7086 = vmatpush3.bf16.msra.mxu1 %v7640_v46 }
 0x2da   : > { %4050 = vmatmul.mubr.bf16.gmra.mrb[228].mxu0 %v9629_v29  ;;  %7087 = vmatprep.subr.bf16.mxu1 %v7641_v36 }
 0x2db   : > { %5247 = vmatprep.mubr.bf16.mxu0 %v4287_v45  ;;  %v4967_v45 = vld [vmem:[#allocation2 + $0xf8] sm:$0xff] }
 0x2dc   : > { %4613 = vmatmul.mubr.bf16.gmra.mrb[200].mxu1 %v4292_v63 }
 0x2dd   : > { %4620 = vmatprep.mubr.bf16.mxu1 %v4296_v59  ;;  %7088 = vmatpush3.bf16.msra.mxu1 %v7641_v36 }
 0x2de   : > { %7089 = vmatprep.subr.bf16.mxu1 %v7642_v21 }
 0x2e1   : > { %7090 = vmatpush3.bf16.msra.mxu1 %v7642_v21  ;;  %v7646_v21 = vld [vmem:[#allocation5 + $0x218] sm:$0xff]  }
 0x2e2   : > { %5248 = vmatmul.mubr.bf16.vlgmr.msra.gmra.mrb[232].mxu0 %v4286_v42  ;;  %7123 = vmatprep.subr.bf16.mxu1 %v9707_v38  ;;  %v7644_v42 = vld [vmem:[#allocation5 + $0x208] sm:$0xff]  }
 0x2e3   : > { %5255 = vmatprep.mubr.bf16.mxu0 %v4290_v5 }
 0x2e4   : > { %4621 = vmatmul.mubr.bf16.gmra.mrb[204].mxu1 %v4295_v23 }
 0x2e5   : > { %4628 = vmatprep.mubr.bf16.mxu1 %v4299_v17 }
 0x2ea   : > { %5256 = vmatmul.mubr.bf16.gmra.mrb[236].mxu0 %v4289_v22 }
 0x2eb   : > { %5263 = vmatprep.mubr.bf16.mxu0 %v4293_v13 }
 0x2ec   : > { %4629 = vmatmul.mubr.bf16.gmra.mrb[208].mxu1 %v4298_v33 }
 0x2ed   : > { %4636 = vmatprep.mubr.bf16.mxu1 %v4302_v30 }
 0x2f2   : > { %5264 = vmatmul.mubr.bf16.gmra.mrb[240].mxu0 %v4292_v63 }
 0x2f3   : > { %5271 = vmatprep.mubr.bf16.mxu0 %v4296_v59  ;;  %v7647_v59 = vld [vmem:[#allocation5 + $0x220] sm:$0xff]  }
 0x2f4   : > { %4637 = vmatmul.mubr.bf16.gmra.mrb[212].mxu1 %v4301_v3 }
 0x2f5   : > { %4644 = vmatprep.mubr.bf16.mxu1 %v4305_v54 }
 0x2fa   : > { %5272 = vmatmul.mubr.bf16.gmra.mrb[244].mxu0 %v4295_v23 }
 0x2fb   : > { %5279 = vmatprep.mubr.bf16.mxu0 %v4299_v17 }
 0x2fc   : > { %4645 = vmatmul.mubr.bf16.gmra.mrb[216].mxu1 %v4304_v20 }
 0x2fd   : > { %4652 = vmatprep.mubr.bf16.mxu1 %v4308_v8 }
 0x302   : > { %5280 = vmatmul.mubr.bf16.gmra.mrb[248].mxu0 %v4298_v33 }
 0x303   : > { %5287 = vmatprep.mubr.bf16.mxu0 %v4302_v30 }
 0x304   : > { %4653 = vmatmul.mubr.bf16.gmra.mrb[220].mxu1 %v4307_v12 }
 0x305   : > { %4660 = vmatprep.mubr.bf16.mxu1 %v9501_v11  ;;  %v4966_v11 = vld [vmem:[#allocation2 + $0xf0] sm:$0xff] }
 0x30a   : > { %5288 = vmatmul.mubr.bf16.gmra.mrb[252].mxu0 %v4301_v3  ;;  %v9750_v3 = vld [vmem:[#allocation2 + $0x8] sm:$0xff] }
 0x30b   : > { %5295 = vmatprep.mubr.bf16.mxu0 %v4305_v54  ;;  %v7649_v54 = vld [vmem:[#allocation5 + $0x230] sm:$0xff]  }
 0x30c   : > { %4661 = vmatmul.mubr.bf16.gmra.mrb[224].mxu1 %v9545_v0  ;;  %v4976_v0 = vld [vmem:[#allocation2 + $0x140] sm:$0xff] }
 0x30d   : > { %4668 = vmatprep.mubr.bf16.mxu1 %v4314_v60 }
 0x312   : > { %5296 = vmatmul.mubr.bf16.gmra.mrb[0].mxu0 %v4304_v20 }
 0x313   : > { %5303 = vmatprep.mubr.bf16.mxu0 %v4308_v8 }
 0x314   : > { %4669 = vmatmul.mubr.bf16.gmra.mrb[228].mxu1 %v4313_v44 }
 0x315   : > { %4676 = vmatprep.mubr.bf16.mxu1 %v9532_v27 }
 0x31a   : > { %5304 = vmatmul.mubr.bf16.gmra.mrb[4].mxu0 %v4307_v12 }
 0x31b   : > { %5311 = vmatprep.mubr.bf16.mxu0 %v4967_v45 }
 0x31c   : > { %4677 = vmatmul.mubr.bf16.gmra.mrb[232].mxu1 %v9583_v39 }
 0x31d   : > { %4684 = vmatprep.mubr.bf16.mxu1 %v9530_v26  ;;  %v4975_v26 = vld [vmem:[#allocation2 + $0x138] sm:$0xff] }
 0x322   : > { %5312 = vmatmul.mubr.bf16.gmra.mrb[8].mxu0 %v4966_v11 }
 0x323   : > { %5319 = vmatprep.mubr.bf16.mxu0 %v4314_v60  ;;  %v7650_v60 = vld [vmem:[#allocation5 + $0x238] sm:$0xff]  }
 0x324   : > { %4685 = vmatmul.mubr.bf16.gmra.mrb[236].mxu1 %v9577_v6  ;;  %v4285_v6 = vld [vmem:[#allocation2 + $0x28] sm:$0xff] }
 0x325   : > { %4692 = vmatprep.mubr.bf16.mxu1 %v9596_v52 }
 0x32a   : > { %5320 = vmatmul.mubr.bf16.gmra.mrb[12].mxu0 %v4313_v44 }
 0x32b   : > { %5327 = vmatprep.mubr.bf16.mxu0 %v9532_v27 }
 0x32c   : > { %4693 = vmatmul.mubr.bf16.gmra.mrb[240].mxu1 %v9635_v14 }
 0x32d   : > { %4700 = vmatprep.mubr.bf16.mxu1 %v9594_v32 }
 0x332   : > { %5328 = vmatmul.mubr.bf16.gmra.mrb[16].mxu0 %v9583_v39 }
 0x333   : > { %5335 = vmatprep.mubr.bf16.mxu0 %v4976_v0 }
 0x334   : > { %4701 = vmatmul.mubr.bf16.gmra.mrb[244].mxu1 %v9629_v29  ;;  %v9730_v29 = vld [vmem:[#allocation2 + $0x40] sm:$0xff] }
 0x335   : > { %4708 = vmatprep.mubr.bf16.mxu1 %v9624_v57 }
 0x33a   : > { %5336 = vmatmul.mubr.bf16.gmra.mrb[20].mxu0 %v4975_v26  ;;  %v6485_v27 = vpop.f32.mrb[172].mxu0 }
 0x33b   : > { %5343 = vmatprep.mubr.bf16.mxu0 %v9596_v52  ;;  %v6486_v19 = vpop.f32.mrb[173].mxu0  ;;  %v9734_v52 = vld [vmem:[#allocation2 + $0x58] sm:$0xff] }
 0x33c   : > { %4709 = vmatmul.mubr.bf16.gmra.mrb[248].mxu1 %v9660_v53  ;;  %v9725_v35 = vadd.f32 %v6486_v19, %v6485_v27  ;;  %v6488_v47 = vpop.f32.mrb[174].mxu0 }
 0x33d   : > { %7091 = vmatprep.mubr.bf16.mxu1 %v4285_v6  ;;  %v6489_v39 = vpop.f32.mrb[175].mxu0 }
 0x33e   : > { %v9727_v56 = vadd.f32 %v6489_v39, %v6488_v47 }
 0x342   : > { %5344 = vmatmul.mubr.bf16.gmra.mrb[24].mxu0 %v9635_v14 }
 0x343   : > { %5351 = vmatprep.mubr.bf16.mxu0 %v9594_v32  ;;  %v6491_v5 = vpop.f32.mrb[176].mxu0  ;;  %v4981_v32 = vld [vmem:[#allocation2 + $0x168] sm:$0xff] }
 0x344   : > { %7092 = vmatmul.mubr.bf16.vlgmr.msra.gmra.mrb[156].mxu1 %v9730_v29  ;;  %v6492_v46 = vpop.f32.mrb[177].mxu0 }
 0x345   : > { %7095 = vmatprep.mubr.bf16.mxu1 %v9734_v52  ;;  %7124 = vmatpush3.bf16.msra.mxu1 %v9707_v38  ;;  %v9738_v22 = vadd.f32 %v6492_v46, %v6491_v5  ;;  %v6494_v13 = vpop.f32.mrb[178].mxu0 }
 0x346   : > { %7125 = vmatprep.subr.bf16.mxu1 %v7644_v42  ;;  %v6495_v14 = vpop.f32.mrb[179].mxu0 }
 0x347   : > { %v9740_v36 = vadd.f32 %v6495_v14, %v6494_v13 }
 0x349   : > { %7126 = vmatpush3.bf16.msra.mxu1 %v7644_v42 }
 0x34a   : > { %7127 = vmatprep.subr.bf16.mxu1 %v7645_v7  ;;  %5352 = vmatmul.mubr.bf16.gmra.mrb[28].mxu0 %v4981_v32 }
 0x34b   : > { %5359 = vmatprep.mubr.bf16.mxu0 %v9624_v57  ;;  %v7648_v57 = vld [vmem:[#allocation5 + $0x228] sm:$0xff]  }
 0x34c   : > { %7096 = vmatmul.mubr.bf16.gmra.mrb[160].mxu1 %v9521_v37  ;;  %v6497_v63 = vpop.f32.mrb[180].mxu0 }
 0x34d   : > { %7099 = vmatprep.mubr.bf16.mxu1 %v9528_v15  ;;  %7128 = vmatpush3.bf16.msra.mxu1 %v7645_v7  ;;  %v6498_v38 = vpop.f32.mrb[181].mxu0 }
 0x34e   : > { %7129 = vmatprep.subr.bf16.mxu1 %v7646_v21  ;;  %v9745_v23 = vadd.f32 %v6498_v38, %v6497_v63  ;;  %v6500_v17 = vpop.f32.mrb[182].mxu0 }
 0x34f   : > { %v6501_v33 = vpop.f32.mrb[183].mxu0 }
 0x350   : > { %v9747_v30 = vadd.f32 %v6501_v33, %v6500_v17  ;;  %v4950_v17 = vld [vmem:[#allocation2 + $0x70] sm:$0xff] }
 0x351   : > { %7130 = vmatpush3.bf16.msra.mxu1 %v7646_v21 }
 0x352   : > { %7131 = vmatprep.subr.bf16.mxu1 %v7647_v59  ;;  %5360 = vmatmul.mubr.bf16.gmra.mrb[32].mxu0 %v9660_v53 }
 0x353   : > { %5367 = vmatprep.mubr.bf16.mxu0 %v9750_v3 }
 0x354   : > { %7100 = vmatmul.mubr.bf16.gmra.mrb[164].mxu1 %v9558_v58  ;;  %v6503_v37 = vpop.f32.mrb[184].mxu0 }
 0x355   : > { %7103 = vmatprep.mubr.bf16.mxu1 %v9568_v41  ;;  %7132 = vmatpush3.bf16.msra.mxu1 %v7647_v59  ;;  %v6504_v15 = vpop.f32.mrb[185].mxu0 }
 0x356   : > { %7133 = vmatprep.subr.bf16.mxu1 %v7648_v57  ;;  %v9755_v20 = vadd.f32 %v6504_v15, %v6503_v37  ;;  %v6506_v8 = vpop.f32.mrb[186].mxu0 }
 0x357   : > { %v6507_v12 = vpop.f32.mrb[187].mxu0 }
 0x358   : > { %v9757_v53 = vadd.f32 %v6507_v12, %v6506_v8  ;;  %v4956_v12 = vld [vmem:[#allocation2 + $0xa0] sm:$0xff] }
 0x359   : > { %7134 = vmatpush3.bf16.msra.mxu1 %v7648_v57 }
 0x35a   : > { %5368 = vmatmul.mubr.bf16.gmra.mrb[36].mxu0 %v9750_v3  ;;  %7135 = vmatprep.subr.bf16.mxu1 %v7649_v54 }
 0x35c   : > { %7104 = vmatmul.mubr.bf16.gmra.mrb[168].mxu1 %v9622_v28  ;;  %v6509_v58 = vpop.f32.mrb[188].mxu0 }
 0x35d   : > { %7107 = vmatprep.mubr.bf16.mxu1 %v9645_v49  ;;  %7136 = vmatpush3.bf16.msra.mxu1 %v7649_v54  ;;  %v6510_v41 = vpop.f32.mrb[189].mxu0 }
 0x35e   : > { %7137 = vmatprep.subr.bf16.mxu1 %v7650_v60  ;;  %v9762_v44 = vadd.f32 %v6510_v41, %v6509_v58  ;;  %v6512_v45 = vpop.f32.mrb[190].mxu0 }
 0x35f   : > { %v6513_v11 = vpop.f32.mrb[191].mxu0 }
 0x360   : > { %v9764_v0 = vadd.f32 %v6513_v11, %v6512_v45  ;;  %v917_v11 = vunpack.c.l.bf16 %v9329_v24 }
 0x361   : > { %7138 = vmatpush3.bf16.msra.mxu1 %v7650_v60 }
 0x364   : > { %7108 = vmatmul.mubr.bf16.gmra.mrb[172].mxu1 %v9647_v61  ;;  %v6515_v26 = vpop.f32.mrb[192].mxu0 }
 0x365   : > { %7111 = vmatprep.mubr.bf16.mxu1 %v9666_v2  ;;  %v6516_v6 = vpop.f32.mrb[193].mxu0 }
 0x366   : > { %v9768_v28 = vadd.f32 %v6516_v6, %v6515_v26  ;;  %v6518_v49 = vpop.f32.mrb[194].mxu0  ;;  %v918_v6 = vunpack.c.h.bf16 %v9329_v24 }
 0x367   : > { %v6519_v27 = vpop.f32.mrb[195].mxu0 }
 0x368   : > { %v9770_v19 = vadd.f32 %v6519_v27, %v6518_v49  ;;  %v4959_v49 = vld [vmem:[#allocation2 + $0xb8] sm:$0xff]  ;;  %v9806_v27 = vld [vmem:[%s10176_s4] ss:$0 sm:$0xff] }
 0x36c   : > { %7112 = vmatmul.mubr.bf16.gmra.mrb[176].mxu1 %v9674_v25 }
 0x36d   : > { %7115 = vmatprep.mubr.bf16.mxu1 %v9682_v18  ;;  %v6521_v47 = vpop.f32.mrb[196].mxu0  ;;  %v9784_v18 = vld [vmem:[#allocation2 + $0x190] sm:$0xff] }
 0x36e   : > { %v6522_v39 = vpop.f32.mrb[197].mxu0 }
 0x36f   : > { %v9774_v42 = vadd.f32 %v6522_v39, %v6521_v47  ;;  %v6524_v5 = vpop.f32.mrb[198].mxu0  ;;  %v4962_v47 = vld [vmem:[#allocation2 + $0xd0] sm:$0xff]  ;;  %v956_v39 = vadd.f32 %v9806_v27, %v917_v11 }
 0x370   : > { %v6525_v61 = vpop.f32.mrb[199].mxu0 }
 0x371   : > { %v9776_v7 = vadd.f32 %v6525_v61, %v6524_v5 }
 0x374   : > { %7116 = vmatmul.mubr.bf16.gmra.mrb[180].mxu1 %v9684_v4 }
 0x375   : > { %7119 = vmatprep.mubr.bf16.mxu1 %v9691_v48  ;;  %v6527_v2 = vpop.f32.mrb[200].mxu0 }
 0x376   : > { %v6528_v46 = vpop.f32.mrb[201].mxu0 }
 0x377   : > { %v9780_v13 = vadd.f32 %v6528_v46, %v6527_v2  ;;  %v6530_v14 = vpop.f32.mrb[202].mxu0  ;;  %v957_v2 = vadd.f32 %v9806_v27, %v918_v6 }
 0x378   : > { %v6531_v25 = vpop.f32.mrb[203].mxu0 }
 0x379   : > { %v9782_v32 = vadd.f32 %v6531_v25, %v6530_v14 }
 0x37c   : > { %7120 = vmatmul.mubr.bf16.gmra.mrb[184].mxu1 %v9784_v18 }
 0x37d   : > { %7139 = vmatprep.mubr.bf16.mxu1 %v9730_v29  ;;  %v6533_v21 = vpop.f32.mrb[204].mxu0  ;;  %v4953_v29 = vld [vmem:[#allocation2 + $0x88] sm:$0xff] }
 0x37e   : > { %v6534_v63 = vpop.f32.mrb[205].mxu0 }
 0x37f   : > { %v9788_v59 = vadd.f32 %v6534_v63, %v6533_v21  ;;  %v6536_v4 = vpop.f32.mrb[206].mxu0  ;;  %v7207_v63 = vadd.f32 %v9700_v10, %v956_v39 }
 0x380   : > { %v6537_v48 = vpop.f32.mrb[207].mxu0 }
 0x381   : > { %v9790_v38 = vadd.f32 %v6537_v48, %v6536_v4  ;;  %v919_v4 = vunpack.c.l.bf16 %v9321_v51 }
 0x384   : > { %7140 = vmatmul.mubr.bf16.vlgmr.msra.gmra.mrb[156].mxu1 %v9734_v52 }
 0x385   : > { %7143 = vmatprep.mubr.bf16.mxu1 %v4950_v17  ;;  %v6539_v33 = vpop.f32.mrb[208].mxu0 }
 0x386   : > { %v6540_v57 = vpop.f32.mrb[209].mxu0 }
 0x387   : > { %v9793_v37 = vadd.f32 %v6540_v57, %v6539_v33  ;;  %v6542_v15 = vpop.f32.mrb[210].mxu0 }
 0x388   : > { %v6543_v54 = vpop.f32.mrb[211].mxu0 }
 0x389   : > { %v9795_v8 = vadd.f32 %v6543_v54, %v6542_v15  ;;  %v7215_v15 = vadd.f32 %v9702_v62, %v957_v2  ;;  %v920_v54 = vunpack.c.h.bf16 %v9321_v51 }
 0x38b   : > { %v959_v6 = vadd.f32 %v9806_v27, %v920_v54 }
 0x38c   : > { %7144 = vmatmul.mubr.bf16.gmra.mrb[160].mxu1 %v4953_v29 }
 0x38d   : > { %7147 = vmatprep.mubr.bf16.mxu1 %v4956_v12  ;;  %v6545_v60 = vpop.f32.mrb[212].mxu0 }
 0x38e   : > { %v6546_v58 = vpop.f32.mrb[213].mxu0 }
 0x38f   : > { %v9797_v41 = vadd.f32 %v6546_v58, %v6545_v60  ;;  %v6548_v45 = vpop.f32.mrb[214].mxu0  ;;  %v4965_v60 = vld [vmem:[#allocation2 + $0xe8] sm:$0xff]  ;;  %v4968_v58 = vld [vmem:[#allocation2 + $0x100] sm:$0xff] }
 0x390   : > { %v6549_v52 = vpop.f32.mrb[215].mxu0 }
 0x391   : > { %v9800_v26 = vadd.f32 %v6549_v52, %v6548_v45  ;;  %v958_v45 = vadd.f32 %v9806_v27, %v919_v4 }
 0x394   : > { %7148 = vmatmul.mubr.bf16.gmra.mrb[164].mxu1 %v4959_v49 }
 0x395   : > { %7151 = vmatprep.mubr.bf16.mxu1 %v4962_v47  ;;  %v6551_v5 = vpop.f32.mrb[216].mxu0 }
 0x396   : > { %v6552_v61 = vpop.f32.mrb[217].mxu0 }
 0x397   : > { %v6615_v46 = vpop.f32.mrb[188].mxu1  ;;  %v9810_v14 = vadd.f32 %v6552_v61, %v6551_v5  ;;  %v6554_v25 = vpop.f32.mrb[218].mxu0  ;;  %v7203_v5 = vadd.f32 %v9725_v35, %v958_v45  ;;  %v921_v61 = vunpack.c.l.bf16 %v9364_v9 }
 0x398   : > { %v6616_v24 = vpop.f32.mrb[189].mxu1  ;;  %v6555_v21 = vpop.f32.mrb[219].mxu0 }
 0x399   : > { %v6617_v48 = vadd.f32 %v6616_v24, %v6615_v46  ;;  %v6618_v17 = vpop.f32.mrb[190].mxu1  ;;  %v9814_v33 = vadd.f32 %v6555_v21, %v6554_v25  ;;  %v7211_v21 = vadd.f32 %v9727_v56, %v959_v6  ;;  %v10313_v6 = vld [vmem:[#allocation33_spill] sm:$0xff] }
 0x39a   : > { %v6619_v57 = vpop.f32.mrb[191].mxu1 }
 0x39b   : > { %v9818_v29 = vadd.f32 %v7207_v63, %v6617_v48  ;;  %v6620_v12 = vadd.f32 %v6619_v57, %v6618_v17  ;;  %v922_v63 = vunpack.c.h.bf16 %v9364_v9  ;;  %v4971_v17 = vld [vmem:[#allocation2 + $0x118] sm:$0xff]  ;;  %v4974_v57 = vld [vmem:[#allocation2 + $0x130] sm:$0xff] }
 0x39c   : > { %7152 = vmatmul.mubr.bf16.gmra.mrb[168].mxu1 %v4965_v60 }
 0x39d   : > { %v9821_v10 = vadd.f32 %v7215_v15, %v6620_v12  ;;  %7155 = vmatprep.mubr.bf16.mxu1 %v4968_v58  ;;  %v6557_v52 = vpop.f32.mrb[220].mxu0  ;;  %v960_v15 = vadd.f32 %v9806_v27, %v921_v61  ;;  %v961_v60 = vadd.f32 %v9806_v27, %v922_v63  ;;  %v4980_v63 = vld [vmem:[#allocation2 + $0x160] sm:$0xff] }
 0x39e   : > { %v6558_v11 = vpop.f32.mrb[221].mxu0 }
 0x39f   : > { %v6621_v49 = vpop.f32.mrb[192].mxu1  ;;  %v9824_v47 = vadd.f32 %v6558_v11, %v6557_v52  ;;  %v6560_v62 = vpop.f32.mrb[222].mxu0  ;;  %v7223_v11 = vadd.f32 %v9738_v22, %v960_v15  ;;  %v7231_v61 = vadd.f32 %v9740_v36, %v961_v60 }
 0x3a0   : > { %v6622_v51 = vpop.f32.mrb[193].mxu1  ;;  %v6561_v39 = vpop.f32.mrb[223].mxu0 }
 0x3a1   : > { %v6623_v2 = vadd.f32 %v6622_v51, %v6621_v49  ;;  %v6624_v46 = vpop.f32.mrb[194].mxu1  ;;  %v9828_v25 = vadd.f32 %v6561_v39, %v6560_v62  ;;  %v923_v49 = vunpack.c.l.bf16 %v10313_v6 }
 0x3a2   : > { %v6625_v24 = vpop.f32.mrb[195].mxu1 }
 0x3a3   : > { %v9832_v4 = vadd.f32 %v7203_v5, %v6623_v2  ;;  %v6626_v48 = vadd.f32 %v6625_v24, %v6624_v46  ;;  %v924_v2 = vunpack.c.h.bf16 %v10313_v6 }
 0x3a4   : > { %7156 = vmatmul.mubr.bf16.gmra.mrb[172].mxu1 %v4971_v17 }
 0x3a5   : > { %v9835_v35 = vadd.f32 %v7211_v21, %v6626_v48  ;;  %7159 = vmatprep.mubr.bf16.mxu1 %v4974_v57  ;;  %v6563_v54 = vpop.f32.mrb[224].mxu0  ;;  %v4977_v21 = vld [vmem:[#allocation2 + $0x148] sm:$0xff]  ;;  %v962_v48 = vadd.f32 %v9806_v27, %v923_v49  ;;  %v963_v15 = vadd.f32 %v9806_v27, %v924_v2  ;;  %v4983_v2 = vld [vmem:[#allocation2 + $0x178] sm:$0xff] }
 0x3a6   : > { %v6564_v12 = vpop.f32.mrb[225].mxu0 }
 0x3a7   : > { %v6627_v58 = vpop.f32.mrb[196].mxu1  ;;  %v9838_v45 = vadd.f32 %v6564_v12, %v6563_v54  ;;  %v6566_v56 = vpop.f32.mrb[226].mxu0 }
 0x3a8   : > { %v6628_v9 = vpop.f32.mrb[197].mxu1  ;;  %v6567_v52 = vpop.f32.mrb[227].mxu0 }
 0x3a9   : > { %v6629_v62 = vadd.f32 %v6628_v9, %v6627_v58  ;;  %v6630_v51 = vpop.f32.mrb[198].mxu1  ;;  %v9842_v39 = vadd.f32 %v6567_v52, %v6566_v56  ;;  %v7219_v56 = vadd.f32 %v9745_v23, %v962_v48  ;;  %v925_v9 = vunpack.c.l.bf16 %v9413_v1 }
 0x3aa   : > { %v6631_v5 = vpop.f32.mrb[199].mxu1 }
 0x3ab   : > { %v9846_v46 = vadd.f32 %v7223_v11, %v6629_v62  ;;  %v6632_v24 = vadd.f32 %v6631_v5, %v6630_v51  ;;  %v7227_v62 = vadd.f32 %v9747_v30, %v963_v15  ;;  %v926_v51 = vunpack.c.h.bf16 %v9413_v1 }
 0x3ac   : > { %7160 = vmatmul.mubr.bf16.gmra.mrb[176].mxu1 %v4977_v21  ;;  %v927_v1 = vunpack.c.l.bf16 %v9401_v34 }
 0x3ad   : > { %v9849_v22 = vadd.f32 %v7231_v61, %v6632_v24  ;;  %7163 = vmatprep.mubr.bf16.mxu1 %v4980_v63  ;;  %v6569_v17 = vpop.f32.mrb[228].mxu0  ;;  %v964_v24 = vadd.f32 %v9806_v27, %v925_v9  ;;  %v965_v48 = vadd.f32 %v9806_v27, %v926_v51 }
 0x3ae   : > { %v6570_v57 = vpop.f32.mrb[229].mxu0 }
 0x3af   : > { %v6633_v54 = vpop.f32.mrb[200].mxu1  ;;  %v9852_v12 = vadd.f32 %v6570_v57, %v6569_v17  ;;  %v6572_v36 = vpop.f32.mrb[230].mxu0 }
 0x3b0   : > { %v6634_v60 = vpop.f32.mrb[201].mxu1  ;;  %v6573_v58 = vpop.f32.mrb[231].mxu0 }
 0x3b1   : > { %v6635_v52 = vadd.f32 %v6634_v60, %v6633_v54  ;;  %v6636_v11 = vpop.f32.mrb[202].mxu1  ;;  %v9856_v6 = vadd.f32 %v6573_v58, %v6572_v36  ;;  %v7239_v36 = vadd.f32 %v9755_v20, %v964_v24  ;;  %v966_v20 = vadd.f32 %v9806_v27, %v927_v1 }
 0x3b2   : > { %v6637_v49 = vpop.f32.mrb[203].mxu1 }
 0x3b3   : > { %v9860_v5 = vadd.f32 %v7219_v56, %v6635_v52  ;;  %v6638_v61 = vadd.f32 %v6637_v49, %v6636_v11  ;;  %v7247_v11 = vadd.f32 %v9757_v53, %v965_v48  ;;  %v929_v53 = vunpack.c.l.bf16 %v9441_v31 }
 0x3b4   : > { %7164 = vmatmul.mubr.bf16.gmra.mrb[180].mxu1 %v4983_v2 }
 0x3b5   : > { %v9863_v21 = vadd.f32 %v7227_v62, %v6638_v61  ;;  %7167 = vmatprep.mubr.bf16.mxu1 %v9784_v18  ;;  %v6751_v23 = vpop.f32.mrb[232].mxu0  ;;  %v928_v18 = vunpack.c.h.bf16 %v9401_v34 }
 0x3b6   : > { %v6752_v63 = vpop.f32.mrb[233].mxu0 }
 0x3b7   : > { %v6639_v17 = vpop.f32.mrb[204].mxu1  ;;  %v6753_v57 = vadd.f32 %v6752_v63, %v6751_v23  ;;  %v6754_v30 = vpop.f32.mrb[234].mxu0  ;;  %v967_v24 = vadd.f32 %v9806_v27, %v928_v18  ;;  %v968_v18 = vadd.f32 %v9806_v27, %v929_v53  ;;  %v932_v53 = vunpack.c.h.bf16 %v9437_v40 }
 0x3b8   : > { %v6640_v15 = vpop.f32.mrb[205].mxu1  ;;  %v6755_v54 = vpop.f32.mrb[235].mxu0 }
 0x3b9   : > { %v6641_v60 = vadd.f32 %v6640_v15, %v6639_v17  ;;  %v6642_v58 = vpop.f32.mrb[206].mxu1  ;;  %v6756_v56 = vadd.f32 %v6755_v54, %v6754_v30  ;;  %v9870_v9 = vadd.f32 %v9818_v29, %v6753_v57  ;;  %v930_v15 = vunpack.c.h.bf16 %v9441_v31 }
 0x3ba   : > { %v6643_v52 = vpop.f32.mrb[207].mxu1 }
 0x3bb   : > { %v9874_v49 = vadd.f32 %v7239_v36, %v6641_v60  ;;  %v6644_v62 = vadd.f32 %v6643_v52, %v6642_v58  ;;  %v9877_v51 = vadd.f32 %v9821_v10, %v6756_v56  ;;  %v7235_v10 = vadd.f32 %v9762_v44, %v966_v20 }
 0x3bc   : > { %7168 = vmatmul.mubr.bf16.gmra.mrb[184].mxu1 %v9750_v3  ;;  %v7243_v36 = vadd.f32 %v9764_v0, %v967_v24  ;;  %v7255_v24 = vadd.f32 %v9768_v28, %v968_v18  ;;  %v933_v18 = vunpack.c.l.bf16 %v9494_v16 }
 0x3bd   : > { %v9881_v61 = vadd.f32 %v7247_v11, %v6644_v62  ;;  %v6757_v2 = vpop.f32.mrb[236].mxu0 }
 0x3be   : > { %v6758_v29 = vpop.f32.mrb[237].mxu0 }
 0x3bf   : > { %v6645_v34 = vpop.f32.mrb[208].mxu1  ;;  %v6759_v23 = vadd.f32 %v6758_v29, %v6757_v2  ;;  %v6760_v63 = vpop.f32.mrb[238].mxu0  ;;  %v931_v2 = vunpack.c.l.bf16 %v9437_v40 }
 0x3c0   : > { %v6646_v48 = vpop.f32.mrb[209].mxu1  ;;  %v6761_v17 = vpop.f32.mrb[239].mxu0 }
 0x3c1   : > { %v6647_v57 = vadd.f32 %v6646_v48, %v6645_v34  ;;  %v6648_v30 = vpop.f32.mrb[210].mxu1  ;;  %v6762_v3 = vadd.f32 %v6761_v17, %v6760_v63  ;;  %v9887_v1 = vadd.f32 %v9832_v4, %v6759_v23  ;;  %v969_v4 = vadd.f32 %v9806_v27, %v930_v15 }
 0x3c2   : > { %v6649_v54 = vpop.f32.mrb[211].mxu1 }
 0x3c3   : > { %v9891_v60 = vadd.f32 %v7235_v10, %v6647_v57  ;;  %v6650_v58 = vadd.f32 %v6649_v54, %v6648_v30  ;;  %v9894_v56 = vadd.f32 %v9835_v35, %v6762_v3  ;;  %v7263_v17 = vadd.f32 %v9770_v19, %v969_v4 }
 0x3c4   : > { %v970_v3 = vadd.f32 %v9806_v27, %v931_v2 }
 0x3c5   : > { %v9897_v44 = vadd.f32 %v7243_v36, %v6650_v58  ;;  %v6763_v52 = vpop.f32.mrb[240].mxu0 }
 0x3c6   : > { %v6764_v11 = vpop.f32.mrb[241].mxu0 }
 0x3c7   : > { %v6651_v62 = vpop.f32.mrb[212].mxu1  ;;  %v6765_v20 = vadd.f32 %v6764_v11, %v6763_v52  ;;  %v6766_v31 = vpop.f32.mrb[242].mxu0  ;;  %v7251_v11 = vadd.f32 %v9774_v42, %v970_v3 }
 0x3c8   : > { %v6652_v0 = vpop.f32.mrb[213].mxu1  ;;  %v6767_v29 = vpop.f32.mrb[243].mxu0 }
 0x3c9   : > { %v6653_v34 = vadd.f32 %v6652_v0, %v6651_v62  ;;  %v6654_v35 = vpop.f32.mrb[214].mxu1  ;;  %v6768_v23 = vadd.f32 %v6767_v29, %v6766_v31  ;;  %v9903_v63 = vadd.f32 %v9846_v46, %v6765_v20  ;;  %v971_v46 = vadd.f32 %v9806_v27, %v932_v53 }
 0x3ca   : > { %v6655_v48 = vpop.f32.mrb[215].mxu1  ;;  %v934_v31 = vunpack.c.h.bf16 %v9494_v16 }
 0x3cb   : > { %v9907_v10 = vadd.f32 %v7255_v24, %v6653_v34  ;;  %v6656_v57 = vadd.f32 %v6655_v48, %v6654_v35  ;;  %v9910_v30 = vadd.f32 %v9849_v22, %v6768_v23  ;;  %v7259_v0 = vadd.f32 %v9776_v7, %v971_v46 }
 0x3cc   : > { %v972_v35 = vadd.f32 %v9806_v27, %v933_v18 }
 0x3cd   : > { %v9913_v28 = vadd.f32 %v7263_v17, %v6656_v57  ;;  %v6769_v15 = vpop.f32.mrb[244].mxu0  ;;  %v10314_v57 = vld [vmem:[#allocation28_spill] sm:$0xff] }
 0x3ce   : > { %v6770_v54 = vpop.f32.mrb[245].mxu0  ;;  %v935_v3 = vunpack.c.l.bf16 %v10314_v57 }
 0x3cf   : > { %v6657_v36 = vpop.f32.mrb[216].mxu1  ;;  %v6771_v58 = vadd.f32 %v6770_v54, %v6769_v15  ;;  %v6772_v40 = vpop.f32.mrb[246].mxu0  ;;  %v7271_v54 = vadd.f32 %v9780_v13, %v972_v35  ;;  %v10315_v35 = vld [vmem:[#allocation34_spill] sm:$0xff] }
 0x3d0   : > { %v6658_v19 = vpop.f32.mrb[217].mxu1  ;;  %v6773_v52 = vpop.f32.mrb[247].mxu0 }
 0x3d1   : > { %v6659_v4 = vadd.f32 %v6658_v19, %v6657_v36  ;;  %v6660_v22 = vpop.f32.mrb[218].mxu1  ;;  %v6774_v62 = vadd.f32 %v6773_v52, %v6772_v40  ;;  %v9919_v20 = vadd.f32 %v9860_v5, %v6771_v58  ;;  %v973_v5 = vadd.f32 %v9806_v27, %v934_v31 }
 0x3d2   : > { %v6661_v2 = vpop.f32.mrb[219].mxu1  ;;  %v936_v40 = vunpack.c.h.bf16 %v10314_v57  ;;  %v938_v57 = vunpack.c.h.bf16 %v10315_v35 }
 0x3d3   : > { %v9923_v29 = vadd.f32 %v7251_v11, %v6659_v4  ;;  %v6662_v24 = vadd.f32 %v6661_v2, %v6660_v22  ;;  %v9926_v34 = vadd.f32 %v9863_v21, %v6774_v62  ;;  %v7279_v19 = vadd.f32 %v9782_v32, %v973_v5 }
 0x3d4   : > { %v974_v22 = vadd.f32 %v9806_v27, %v935_v3 }
 0x3d5   : > { %v9929_v42 = vadd.f32 %v7259_v0, %v6662_v24  ;;  %v6775_v23 = vpop.f32.mrb[248].mxu0 }
 0x3d6   : > { %v6776_v53 = vpop.f32.mrb[249].mxu0  ;;  %v7267_v5 = vadd.f32 %v9788_v59, %v974_v22  ;;  %v10316_v22 = vld [vmem:[#allocation29_spill] sm:$0xff] }
 0x3d7   : > { %v6663_v48 = vpop.f32.mrb[220].mxu1  ;;  %v6777_v17 = vadd.f32 %v6776_v53, %v6775_v23  ;;  %v6778_v16 = vpop.f32.mrb[250].mxu0  ;;  %v937_v23 = vunpack.c.l.bf16 %v10315_v35  ;;  %v940_v35 = vunpack.c.h.bf16 %v10316_v22 }
 0x3d8   : > { %v6664_v7 = vpop.f32.mrb[221].mxu1  ;;  %v6779_v15 = vpop.f32.mrb[251].mxu0 }
 0x3d9   : > { %v6665_v46 = vadd.f32 %v6664_v7, %v6663_v48  ;;  %v6666_v21 = vpop.f32.mrb[222].mxu1  ;;  %v6780_v36 = vadd.f32 %v6779_v15, %v6778_v16  ;;  %v9935_v58 = vadd.f32 %v9874_v49, %v6777_v17  ;;  %v975_v49 = vadd.f32 %v9806_v27, %v936_v40 }
 0x3da   : > { %v6667_v18 = vpop.f32.mrb[223].mxu1 }
 0x3db   : > { %v9939_v52 = vadd.f32 %v7271_v54, %v6665_v46  ;;  %v6668_v11 = vadd.f32 %v6667_v18, %v6666_v21  ;;  %v9942_v4 = vadd.f32 %v9881_v61, %v6780_v36  ;;  %v7275_v7 = vadd.f32 %v9790_v38, %v975_v49 }
 0x3dc   : > { %v976_v21 = vadd.f32 %v9806_v27, %v937_v23 }
 0x3dd   : > { %v9945_v13 = vadd.f32 %v7279_v19, %v6668_v11  ;;  %v6781_v62 = vpop.f32.mrb[252].mxu0 }
 0x3de   : > { %v6782_v31 = vpop.f32.mrb[253].mxu0  ;;  %v7287_v49 = vadd.f32 %v9793_v37, %v976_v21  ;;  %v941_v21 = vunpack.c.l.bf16 %v9589_v43 }
 0x3df   : > { %v6669_v2 = vpop.f32.mrb[224].mxu1  ;;  %v6783_v0 = vadd.f32 %v6782_v31, %v6781_v62  ;;  %v6784_v24 = vpop.f32.mrb[254].mxu0  ;;  %v939_v62 = vunpack.c.l.bf16 %v10316_v22 }
 0x3e0   : > { %v6670_v32 = vpop.f32.mrb[225].mxu1  ;;  %v6785_v53 = vpop.f32.mrb[255].mxu0 }
 0x3e1   : > { %v6671_v48 = vadd.f32 %v6670_v32, %v6669_v2  ;;  %v6672_v61 = vpop.f32.mrb[226].mxu1  ;;  %v6786_v17 = vadd.f32 %v6785_v53, %v6784_v24  ;;  %v9951_v16 = vadd.f32 %v9891_v60, %v6783_v0  ;;  %v977_v60 = vadd.f32 %v9806_v27, %v938_v57 }
 0x3e2   : > { %v6673_v3 = vpop.f32.mrb[227].mxu1 }
 0x3e3   : > { %v9955_v15 = vadd.f32 %v7267_v5, %v6671_v48  ;;  %v6674_v54 = vadd.f32 %v6673_v3, %v6672_v61  ;;  %v9958_v46 = vadd.f32 %v9897_v44, %v6786_v17  ;;  %v7295_v32 = vadd.f32 %v9795_v8, %v977_v60 }
 0x3e4   : > { %v978_v61 = vadd.f32 %v9806_v27, %v939_v62 }
 0x3e5   : > { %v9961_v59 = vadd.f32 %v7275_v7, %v6674_v54  ;;  %v6787_v36 = vpop.f32.mrb[0].mxu0 }
 0x3e6   : > { %v6788_v40 = vpop.f32.mrb[1].mxu0 }
 0x3e7   : > { %v6675_v18 = vpop.f32.mrb[228].mxu1  ;;  %v6789_v19 = vadd.f32 %v6788_v40, %v6787_v36  ;;  %v6790_v11 = vpop.f32.mrb[2].mxu0  ;;  %v7283_v40 = vadd.f32 %v9797_v41, %v978_v61 }
 0x3e8   : > { %v6676_v38 = vpop.f32.mrb[229].mxu1  ;;  %v6791_v31 = vpop.f32.mrb[3].mxu0 }
 0x3e9   : > { %v6677_v2 = vadd.f32 %v6676_v38, %v6675_v18  ;;  %v6678_v44 = vpop.f32.mrb[230].mxu1  ;;  %v6792_v0 = vadd.f32 %v6791_v31, %v6790_v11  ;;  %v9967_v24 = vadd.f32 %v9907_v10, %v6789_v19  ;;  %v979_v10 = vadd.f32 %v9806_v27, %v940_v35 }
 0x3ea   : > { %v6679_v23 = vpop.f32.mrb[231].mxu1  ;;  %v942_v11 = vunpack.c.h.bf16 %v9589_v43 }
 0x3eb   : > { %v9971_v53 = vadd.f32 %v7287_v49, %v6677_v2  ;;  %v6680_v5 = vadd.f32 %v6679_v23, %v6678_v44  ;;  %v9974_v48 = vadd.f32 %v9913_v28, %v6792_v0  ;;  %v7291_v62 = vadd.f32 %v9800_v26, %v979_v10 }
 0x3ec   : > { %v980_v2 = vadd.f32 %v9806_v27, %v941_v21 }
 0x3ed   : > { %v9977_v37 = vadd.f32 %v7295_v32, %v6680_v5  ;;  %v6793_v17 = vpop.f32.mrb[4].mxu0  ;;  %v943_v32 = vunpack.c.l.bf16 %v9587_v50 }
 0x3ee   : > { %v6794_v57 = vpop.f32.mrb[5].mxu0  ;;  %v7303_v61 = vadd.f32 %v9810_v14, %v980_v2 }
 0x3ef   : > { %v6681_v3 = vpop.f32.mrb[232].mxu1  ;;  %v6795_v7 = vadd.f32 %v6794_v57, %v6793_v17  ;;  %v6796_v54 = vpop.f32.mrb[6].mxu0 }
 0x3f0   : > { %v6682_v8 = vpop.f32.mrb[233].mxu1  ;;  %v6797_v36 = vpop.f32.mrb[7].mxu0 }
 0x3f1   : > { %v6683_v60 = vadd.f32 %v6682_v8, %v6681_v3  ;;  %v6684_v28 = vpop.f32.mrb[234].mxu1  ;;  %v6798_v18 = vadd.f32 %v6797_v36, %v6796_v54  ;;  %v9983_v19 = vadd.f32 %v9923_v29, %v6795_v7  ;;  %v981_v29 = vadd.f32 %v9806_v27, %v942_v11 }
 0x3f2   : > { %v6685_v22 = vpop.f32.mrb[235].mxu1  ;;  %v944_v3 = vunpack.c.h.bf16 %v9587_v50 }
 0x3f3   : > { %v9987_v38 = vadd.f32 %v7283_v40, %v6683_v60  ;;  %v6686_v31 = vadd.f32 %v6685_v22, %v6684_v28  ;;  %v9990_v49 = vadd.f32 %v9929_v42, %v6798_v18  ;;  %v7311_v54 = vadd.f32 %v9814_v33, %v981_v29 }
 0x3f4   : > { %v982_v40 = vadd.f32 %v9806_v27, %v943_v32  ;;  %v945_v22 = vunpack.c.l.bf16 %v9620_v55  ;;  %v946_v29 = vunpack.c.h.bf16 %v9620_v55 }
 0x3f5   : > { %v9993_v41 = vadd.f32 %v7291_v62, %v6686_v31  ;;  %v6799_v44 = vpop.f32.mrb[8].mxu0 }
 0x3f6   : > { %v6800_v0 = vpop.f32.mrb[9].mxu0  ;;  %v7299_v31 = vadd.f32 %v9824_v47, %v982_v40 }
 0x3f7   : > { %v6687_v35 = vpop.f32.mrb[236].mxu1  ;;  %v6801_v23 = vadd.f32 %v6800_v0, %v6799_v44  ;;  %v6802_v43 = vpop.f32.mrb[10].mxu0 }
 0x3f8   : > { %v6688_v26 = vpop.f32.mrb[237].mxu1  ;;  %v6803_v5 = vpop.f32.mrb[11].mxu0 }
 0x3f9   : > { %v6689_v17 = vadd.f32 %v6688_v26, %v6687_v35  ;;  %v6690_v42 = vpop.f32.mrb[238].mxu1  ;;  %v6804_v57 = vadd.f32 %v6803_v5, %v6802_v43  ;;  %v9999_v10 = vadd.f32 %v9939_v52, %v6801_v23  ;;  %v983_v52 = vadd.f32 %v9806_v27, %v944_v3 }
 0x3fa   : > { %v6691_v7 = vpop.f32.mrb[239].mxu1  ;;  %v984_v5 = vadd.f32 %v9806_v27, %v945_v22 }
 0x3fb   : > { %v10003_v21 = vadd.f32 %v7303_v61, %v6689_v17  ;;  %v6692_v8 = vadd.f32 %v6691_v7, %v6690_v42  ;;  %v10006_v36 = vadd.f32 %v9945_v13, %v6804_v57  ;;  %v7307_v23 = vadd.f32 %v9828_v25, %v983_v52  ;;  %v10317_v7 = vld [vmem:[#allocation13_spill] sm:$0xff] }
 0x3fc   : > { %v985_v42 = vadd.f32 %v9806_v27, %v946_v29  ;;  %v947_v55 = vunpack.c.l.bf16 %v10317_v7  ;;  %v7319_v25 = vadd.f32 %v9838_v45, %v984_v5  ;;  %v948_v52 = vunpack.c.h.bf16 %v10317_v7 }
 0x3fd   : > { %v10009_v14 = vadd.f32 %v7311_v54, %v6692_v8  ;;  %v6805_v60 = vpop.f32.mrb[12].mxu0 }
 0x3fe   : > { %v6806_v28 = vpop.f32.mrb[13].mxu0 }
 0x3ff   : > { %v6693_v18 = vpop.f32.mrb[240].mxu1  ;;  %v6807_v11 = vadd.f32 %v6806_v28, %v6805_v60  ;;  %v6808_v50 = vpop.f32.mrb[14].mxu0 }
 0x400   : > { %v6694_v33 = vpop.f32.mrb[241].mxu1  ;;  %v6809_v62 = vpop.f32.mrb[15].mxu0 }
 0x401   : > { %v6695_v2 = vadd.f32 %v6694_v33, %v6693_v18  ;;  %v6696_v13 = vpop.f32.mrb[242].mxu1  ;;  %v6810_v44 = vadd.f32 %v6809_v62, %v6808_v50  ;;  %v10015_v0 = vadd.f32 %v9955_v15, %v6807_v11  ;;  %v7327_v11 = vadd.f32 %v9842_v39, %v985_v42 }
 0x402   : > { %v6697_v35 = vpop.f32.mrb[243].mxu1  ;;  %v986_v62 = vadd.f32 %v9806_v27, %v947_v55 }
 0x403   : > { %v7300_v43 = vadd.f32 %v7299_v31, %v6695_v2  ;;  %v6698_v32 = vadd.f32 %v6697_v35, %v6696_v13  ;;  %v10020_v26 = vadd.f32 %v9961_v59, %v6810_v44  ;;  %v987_v13 = vadd.f32 %v9806_v27, %v948_v52 }
 0x405   : > { %v7308_v61 = vadd.f32 %v7307_v23, %v6698_v32  ;;  %v6811_v47 = vpop.f32.mrb[16].mxu0  ;;  %v7315_v32 = vadd.f32 %v9852_v12, %v986_v62  ;;  %v7323_v42 = vadd.f32 %v9856_v6, %v987_v13 }
 0x406   : > { %v6812_v17 = vpop.f32.mrb[17].mxu0 }
 0x407   : > { %v6699_v57 = vpop.f32.mrb[244].mxu1  ;;  %v6813_v15 = vadd.f32 %v6812_v17, %v6811_v47  ;;  %v6814_v3 = vpop.f32.mrb[18].mxu0 }
 0x408   : > { %v6700_v54 = vpop.f32.mrb[245].mxu1  ;;  %v6815_v8 = vpop.f32.mrb[19].mxu0 }
 0x409   : > { %v6701_v40 = vadd.f32 %v6700_v54, %v6699_v57  ;;  %v6702_v60 = vpop.f32.mrb[246].mxu1  ;;  %v6816_v59 = vadd.f32 %v6815_v8, %v6814_v3  ;;  %v10027_v28 = vadd.f32 %v9971_v53, %v6813_v15 }
 0x40a   : > { %v6703_v18 = vpop.f32.mrb[247].mxu1 }
 0x40b   : > { %v7320_v50 = vadd.f32 %v7319_v25, %v6701_v40  ;;  %v6704_v22 = vadd.f32 %v6703_v18, %v6702_v60  ;;  %v10032_v33 = vadd.f32 %v9977_v37, %v6816_v59 }
 0x40d   : > { %v7328_v31 = vadd.f32 %v7327_v11, %v6704_v22  ;;  %v6817_v45 = vpop.f32.mrb[20].mxu0 }
 0x40e   : > { %v6818_v2 = vpop.f32.mrb[21].mxu0 }
 0x40f   : > { %v6705_v44 = vpop.f32.mrb[248].mxu1  ;;  %v6819_v53 = vadd.f32 %v6818_v2, %v6817_v45  ;;  %v6820_v29 = vpop.f32.mrb[22].mxu0 }
 0x410   : > { %v6706_v35 = vpop.f32.mrb[249].mxu1  ;;  %v6821_v23 = vpop.f32.mrb[23].mxu0 }
 0x411   : > { %v6707_v39 = vadd.f32 %v6706_v35, %v6705_v44  ;;  %v6708_v5 = vpop.f32.mrb[250].mxu1  ;;  %v6822_v47 = vadd.f32 %v6821_v23, %v6820_v29  ;;  %v10038_v37 = vadd.f32 %v9987_v38, %v6819_v53 }
 0x412   : > { %v6709_v17 = vpop.f32.mrb[251].mxu1 }
 0x413   : > { %v7316_v57 = vadd.f32 %v7315_v32, %v6707_v39  ;;  %v6710_v15 = vadd.f32 %v6709_v17, %v6708_v5  ;;  %v10042_v27 = vadd.f32 %v9993_v41, %v6822_v47 }
 0x415   : > { %v7324_v3 = vadd.f32 %v7323_v42, %v6710_v15  ;;  %v6823_v7 = vpop.f32.mrb[24].mxu0 }
 0x416   : > { %v6824_v55 = vpop.f32.mrb[25].mxu0 }
 0x417   : > { %v6825_v54 = vadd.f32 %v6824_v55, %v6823_v7  ;;  %v6826_v8 = vpop.f32.mrb[26].mxu0 }
 0x418   : > { %v6827_v12 = vpop.f32.mrb[27].mxu0 }
 0x419   : > { %v6828_v25 = vadd.f32 %v6827_v12, %v6826_v8  ;;  %v10045_v40 = vadd.f32 %v10003_v21, %v6825_v54 }
 0x41b   : > { %v10048_v38 = vadd.f32 %v10009_v14, %v6828_v25 }
 0x41d   : > { %v6829_v60 = vpop.f32.mrb[28].mxu0 }
 0x41e   : > { %v6830_v6 = vpop.f32.mrb[29].mxu0 }
 0x41f   : > { %v6831_v59 = vadd.f32 %v6830_v6, %v6829_v60  ;;  %v6832_v52 = vpop.f32.mrb[30].mxu0 }
 0x420   : > { %v6833_v18 = vpop.f32.mrb[31].mxu0 }
 0x421   : > { %v6834_v41 = vadd.f32 %v6833_v18, %v6832_v52  ;;  %v10050_v11 = vadd.f32 %v7300_v43, %v6831_v59 }
 0x423   : > { %v10052_v22 = vadd.f32 %v7308_v61, %v6834_v41 }
 0x425   : > { %v6835_v62 = vpop.f32.mrb[32].mxu0 }
 0x426   : > { %v6836_v45 = vpop.f32.mrb[33].mxu0 }
 0x427   : > { %v6837_v2 = vadd.f32 %v6836_v45, %v6835_v62  ;;  %v6838_v13 = vpop.f32.mrb[34].mxu0 }
 0x428   : > { %v6839_v21 = vpop.f32.mrb[35].mxu0 }
 0x429   : > { %v6840_v44 = vadd.f32 %v6839_v21, %v6838_v13  ;;  %v10054_v53 = vadd.f32 %v7320_v50, %v6837_v2 }
 0x42b   : > { %v10056_v14 = vadd.f32 %v7328_v31, %v6840_v44 }
 0x42d   : > { %v6841_v29 = vpop.f32.mrb[36].mxu0 }
 0x42e   : > { %v6842_v35 = vpop.f32.mrb[37].mxu0 }
 0x42f   : > { %v6843_v23 = vadd.f32 %v6842_v35, %v6841_v29  ;;  %v6844_v32 = vpop.f32.mrb[38].mxu0 }
 0x430   : > { %v6845_v43 = vpop.f32.mrb[39].mxu0 }
 0x431   : > { %v6846_v39 = vadd.f32 %v6845_v43, %v6844_v32  ;;  %v10058_v61 = vadd.f32 %v7316_v57, %v6843_v23 }
 0x433   : > { %v10060_v5 = vadd.f32 %v7324_v3, %v6846_v39 }
 0x457   : > { %v7141_v47 = vpop.f32.mrb[156].mxu1 }
 0x458   : > { %v7206_v17 = vadd.f32 %v9887_v1, %v7141_v47  ;;  %v5410_v42 = vpop.f32.mrb[157].mxu1 }
 0x459   : > { %v7210_v50 = vadd.f32 %v9870_v9, %v5410_v42  ;;  %v7142_v15 = vpop.f32.mrb[158].mxu1 }
 0x45a   : > { %v7214_v31 = vadd.f32 %v9894_v56, %v7142_v15  ;;  %v5413_v7 = vpop.f32.mrb[159].mxu1  ;;  %v5635_v54 = vmax.f32 %v7206_v17, 0.0 }
 0x45b   : > { %v7218_v55 = vadd.f32 %v9877_v51, %v5413_v7  ;;  %v5633_v8 = vmax.f32 %v7210_v50, 0.0 }
 0x45c   : > { %v5636_v57 = vmax.f32 %v7214_v31, 0.0 }
 0x45d   : > { %v5634_v3 = vmax.f32 %v7218_v55, 0.0 }
 0x45e   : > { %v6298_v12 = vpack.c.bf16 %v5636_v57, %v5635_v54 }
 0x45f   : > { %v6293_v25 = vpack.c.bf16 %v5634_v3, %v5633_v8  ;;  %v7145_v60 = vpop.f32.mrb[160].mxu1 }
 0x460   : > { %6370 = vst [vmem:[%s10069_s27 + $0x8] sm:$0xff] %v6298_v12   ;;  %v7222_v9 = vadd.f32 %v9919_v20, %v7145_v60  ;;  %v5426_v1 = vpop.f32.mrb[161].mxu1 }
 0x461   : > { %6294 = vst [vmem:[%s10069_s27] sm:$0xff] %v6293_v25   ;;  %v7226_v51 = vadd.f32 %v9903_v63, %v5426_v1  ;;  %v7146_v56 = vpop.f32.mrb[162].mxu1 }
 0x462   : > { %v7230_v6 = vadd.f32 %v9926_v34, %v7146_v56  ;;  %v5429_v59 = vpop.f32.mrb[163].mxu1  ;;  %v5639_v18 = vmax.f32 %v7222_v9, 0.0 }
 0x463   : > { %v7234_v52 = vadd.f32 %v9910_v30, %v5429_v59  ;;  %v5637_v62 = vmax.f32 %v7226_v51, 0.0 }
 0x464   : > { %v5640_v41 = vmax.f32 %v7230_v6, 0.0 }
 0x465   : > { %v5638_v45 = vmax.f32 %v7234_v52, 0.0 }
 0x466   : > { %v6308_v2 = vpack.c.bf16 %v5640_v41, %v5639_v18 }
 0x467   : > { %v6303_v13 = vpack.c.bf16 %v5638_v45, %v5637_v62  ;;  %v7149_v21 = vpop.f32.mrb[164].mxu1 }
 0x468   : > { %6372 = vst [vmem:[%s10069_s27 + $0x18] sm:$0xff] %v6308_v2   ;;  %v7238_v20 = vadd.f32 %v9951_v16, %v7149_v21  ;;  %v5442_v44 = vpop.f32.mrb[165].mxu1 }
 0x469   : > { %6371 = vst [vmem:[%s10069_s27 + $0x10] sm:$0xff] %v6303_v13   ;;  %v7242_v63 = vadd.f32 %v9935_v58, %v5442_v44  ;;  %v7150_v34 = vpop.f32.mrb[166].mxu1 }
 0x46a   : > { %v7246_v29 = vadd.f32 %v9958_v46, %v7150_v34  ;;  %v5445_v30 = vpop.f32.mrb[167].mxu1  ;;  %v5643_v23 = vmax.f32 %v7238_v20, 0.0 }
 0x46b   : > { %v7250_v35 = vadd.f32 %v9942_v4, %v5445_v30  ;;  %v5641_v43 = vmax.f32 %v7242_v63, 0.0 }
 0x46c   : > { %v5644_v32 = vmax.f32 %v7246_v29, 0.0 }
 0x46d   : > { %v5642_v39 = vmax.f32 %v7250_v35, 0.0 }
 0x46e   : > { %v6318_v47 = vpack.c.bf16 %v5644_v32, %v5643_v23 }
 0x46f   : > { %v6313_v17 = vpack.c.bf16 %v5642_v39, %v5641_v43  ;;  %v7153_v42 = vpop.f32.mrb[168].mxu1 }
 0x470   : > { %6374 = vst [vmem:[%s10069_s27 + $0x28] sm:$0xff] %v6318_v47   ;;  %v7254_v16 = vadd.f32 %v9983_v19, %v7153_v42  ;;  %v5458_v50 = vpop.f32.mrb[169].mxu1 }
 0x471   : > { %6373 = vst [vmem:[%s10069_s27 + $0x20] sm:$0xff] %v6313_v17   ;;  %v7258_v58 = vadd.f32 %v9967_v24, %v5458_v50  ;;  %v7154_v46 = vpop.f32.mrb[170].mxu1 }
 0x472   : > { %v7262_v15 = vadd.f32 %v9990_v49, %v7154_v46  ;;  %v5461_v4 = vpop.f32.mrb[171].mxu1  ;;  %v5647_v7 = vmax.f32 %v7254_v16, 0.0 }
 0x473   : > { %v7266_v31 = vadd.f32 %v9974_v48, %v5461_v4  ;;  %v5645_v54 = vmax.f32 %v7258_v58, 0.0 }
 0x474   : > { %v5648_v55 = vmax.f32 %v7262_v15, 0.0 }
 0x475   : > { %v5646_v57 = vmax.f32 %v7266_v31, 0.0 }
 0x476   : > { %v6328_v8 = vpack.c.bf16 %v5648_v55, %v5647_v7 }
 0x477   : > { %v6323_v3 = vpack.c.bf16 %v5646_v57, %v5645_v54  ;;  %v7157_v12 = vpop.f32.mrb[172].mxu1 }
 0x478   : > { %6376 = vst [vmem:[%s10069_s27 + $0x38] sm:$0xff] %v6328_v8   ;;  %v7270_v19 = vadd.f32 %v10015_v0, %v7157_v12  ;;  %v5474_v25 = vpop.f32.mrb[173].mxu1 }
 0x479   : > { %6375 = vst [vmem:[%s10069_s27 + $0x30] sm:$0xff] %v6323_v3   ;;  %v7274_v24 = vadd.f32 %v9999_v10, %v5474_v25  ;;  %v7158_v49 = vpop.f32.mrb[174].mxu1 }
 0x47a   : > { %v7278_v60 = vadd.f32 %v10020_v26, %v7158_v49  ;;  %v5477_v48 = vpop.f32.mrb[175].mxu1  ;;  %v5651_v1 = vmax.f32 %v7270_v19, 0.0 }
 0x47b   : > { %v7282_v9 = vadd.f32 %v10006_v36, %v5477_v48  ;;  %v5649_v56 = vmax.f32 %v7274_v24, 0.0 }
 0x47c   : > { %v5652_v51 = vmax.f32 %v7278_v60, 0.0 }
 0x47d   : > { %v5650_v6 = vmax.f32 %v7282_v9, 0.0 }
 0x47e   : > { %v6338_v59 = vpack.c.bf16 %v5652_v51, %v5651_v1 }
 0x47f   : > { %v6333_v52 = vpack.c.bf16 %v5650_v6, %v5649_v56  ;;  %v7161_v18 = vpop.f32.mrb[176].mxu1 }
 0x480   : > { %6378 = vst [vmem:[%s10069_s27 + $0x48] sm:$0xff] %v6338_v59   ;;  %v7286_v0 = vadd.f32 %v10038_v37, %v7161_v18  ;;  %v5490_v41 = vpop.f32.mrb[177].mxu1 }
 0x481   : > { %6377 = vst [vmem:[%s10069_s27 + $0x40] sm:$0xff] %v6333_v52   ;;  %v7290_v10 = vadd.f32 %v10027_v28, %v5490_v41  ;;  %v7162_v26 = vpop.f32.mrb[178].mxu1 }
 0x482   : > { %v7294_v62 = vadd.f32 %v10042_v27, %v7162_v26  ;;  %v5493_v36 = vpop.f32.mrb[179].mxu1  ;;  %v5655_v2 = vmax.f32 %v7286_v0, 0.0 }
 0x483   : > { %v7298_v45 = vadd.f32 %v10032_v33, %v5493_v36  ;;  %v5653_v21 = vmax.f32 %v7290_v10, 0.0 }
 0x484   : > { %v5656_v13 = vmax.f32 %v7294_v62, 0.0 }
 0x485   : > { %v5654_v20 = vmax.f32 %v7298_v45, 0.0 }
 0x486   : > { %v6348_v44 = vpack.c.bf16 %v5656_v13, %v5655_v2 }
 0x487   : > { %v6343_v63 = vpack.c.bf16 %v5654_v20, %v5653_v21  ;;  %v7165_v34 = vpop.f32.mrb[180].mxu1 }
 0x488   : > { %6380 = vst [vmem:[%s10069_s27 + $0x58] sm:$0xff] %v6348_v44   ;;  %v7302_v37 = vadd.f32 %v10050_v11, %v7165_v34  ;;  %v5506_v29 = vpop.f32.mrb[181].mxu1 }
 0x489   : > { %6379 = vst [vmem:[%s10069_s27 + $0x50] sm:$0xff] %v6343_v63   ;;  %v7306_v28 = vadd.f32 %v10045_v40, %v5506_v29  ;;  %v7166_v27 = vpop.f32.mrb[182].mxu1 }
 0x48a   : > { %v7310_v30 = vadd.f32 %v10052_v22, %v7166_v27  ;;  %v5509_v33 = vpop.f32.mrb[183].mxu1  ;;  %v5659_v23 = vmax.f32 %v7302_v37, 0.0 }
 0x48b   : > { %v7314_v35 = vadd.f32 %v10048_v38, %v5509_v33  ;;  %v5657_v43 = vmax.f32 %v7306_v28, 0.0 }
 0x48c   : > { %v5660_v32 = vmax.f32 %v7310_v30, 0.0 }
 0x48d   : > { %v5658_v39 = vmax.f32 %v7314_v35, 0.0 }
 0x48e   : > { %v6358_v47 = vpack.c.bf16 %v5660_v32, %v5659_v23 }
 0x48f   : > { %v6353_v17 = vpack.c.bf16 %v5658_v39, %v5657_v43  ;;  %v7169_v11 = vpop.f32.mrb[184].mxu1 }
 0x490   : > { %6382 = vst [vmem:[%s10069_s27 + $0x68] sm:$0xff] %v6358_v47   ;;  %v7318_v42 = vadd.f32 %v10058_v61, %v7169_v11  ;;  %v5522_v16 = vpop.f32.mrb[185].mxu1 }
 0x491   : > { %6381 = vst [vmem:[%s10069_s27 + $0x60] sm:$0xff] %v6353_v17   ;;  %v7322_v40 = vadd.f32 %v10054_v53, %v5522_v16  ;;  %v7170_v22 = vpop.f32.mrb[186].mxu1 }
 0x492   : > { %v7326_v38 = vadd.f32 %v10060_v5, %v7170_v22  ;;  %v5525_v50 = vpop.f32.mrb[187].mxu1  ;;  %v5663_v46 = vmax.f32 %v7318_v42, 0.0 }
 0x493   : > { %v7330_v58 = vadd.f32 %v10056_v14, %v5525_v50  ;;  %v5661_v4 = vmax.f32 %v7322_v40, 0.0 }
 0x494   : > { %v5664_v15 = vmax.f32 %v7326_v38, 0.0 }
 0x495   : > { %v5662_v61 = vmax.f32 %v7330_v58, 0.0 }
 0x496   : > { %v6368_v31 = vpack.c.bf16 %v5664_v15, %v5663_v46 }
 0x497   : > { %v6363_v53 = vpack.c.bf16 %v5662_v61, %v5661_v4 }
 0x498   : > { %6384 = vst [vmem:[%s10069_s27 + $0x78] sm:$0xff] %v6368_v31  }
 0x499   : > { %6383 = vst [vmem:[%s10069_s27 + $0x70] sm:$0xff] %v6363_v53  }
 0x49a   : > { %7704 = shalt.err (!%p7701_p6)
}
 0x49b   : > { %s7705_s16 = scalar_lea.hbm %s10118_s10, 2048  ;;  %s7709_s25 = scalar_lea.hbm %s10177_s5, 4096 }
 0x49c   : > { %p7706_p7 = scmp.ne.s32.totalorder %s10118_s10, %s7705_s16  ;;  %p7710_p0 = scmp.lt.u32.totalorder %s10118_s10, %s10177_s5 }
 0x49d   : > { %p7711_p2 = scmp.lt.u32.totalorder %s7709_s25, %s7705_s16  ;;  %p7713_p8 = scmp.lt.u32.totalorder %s7705_s16, %s10118_s10 }
 0x49e   : > { %p7707_p9 = pnand %p7706_p7, %p10318_p10 }
 0x49f   : > { %p7712_p4 = por %p7711_p2, %p7710_p0 }
 0x4a0   : > { %p7708_p12 = pneg %p7707_p9 }
 0x4a1   : > { %p7714_p11 = por %p7713_p8, %p7712_p4 }
 0x4a3   : > { %p7715_p13 = pnand %p7714_p11, %p7708_p12 }
 0x4a5   : > { %7718 = shalt.err (!%p7715_p13)
}
 0x4a6   : > { %s7780_s29 = smov 64   ;;  %s7781_s11 = smov 4  }
 0x4a7   : > { %7400 = dma.vmem_to_hbm [thread:$0]  (%p10318_p10), %s10120_s12, 2048, %s10118_s10, %s10126_s21, %s7780_s29, %s7780_s29, %s7781_s11  }
 0x4a8 PF: > { %p7412_p1 = scmp.ge.s32.totalorder %s7773_s23, 2  ;;  %s5857_s13 = sand.u32 1, %s7753_s18  }
 0x4a9   : > { %p10319_p3 = scmp.ne.s32.totalorder %s10188_s30, 0  ;;  %s5858_s7 = scalar_lea.sflag [#allocation7], %s5857_s13 }
 0x4ab   : > { %p7407_p5 = pnand %p7412_p1, %p10319_p3 }
 0x4ad   : > { %7748 = dma.done.wait (!%p7407_p5), %s5858_s7, 2048  }
 0x4ae   : > { %7750 = vsyncadd (!%p7407_p5), %s5858_s7, 4294965248  ;;  %s19_s23 = sadd.s32 1, %s7773_s23   ;;  %s10320_s18 = smov %s7757_s19 }
 0x4af   : > { %p16_p6 = scmp.ge.s32.totalorder %s19_s23, 4   ;;  %s10321_s19 = smov %s7761_s20 }
 0x4b0   : > { %s10322_s20 = smov %s7865_s6  ;;  %s10323_s21 = smov %s7769_s22 }
 0x4b1   : > { %s10324_s22 = smov %s10326_s26  ;;  %18 = sbr.rel (!%p16_p6) target bundleno = 5 (0x5), region = 92 }
 0x4b8   :  { %5863 = vsyncpa [#allocation6], 1 }
 0x4b9   :  { %5865 = vsyncpa [#allocation6 + $0x1], 1 }
 0x4ba   :  { %5866 = vsyncpa [#allocation7], 1 }
 0x4bb   :  { %5868 = vsyncpa [#allocation7 + $0x1], 1 }

</bundles_post_ra>
